<compile_context>
chip_gen: v7x
topology: tpu7x:2x2x1
jax: 0.10.0
libtpu: 0.0.40
codegen_flags: <defaults>
</compile_context>

<pallas_src>
import functools

import jax
import jax.numpy as jnp
import numpy as np
from jax.experimental import pallas as pl
from jax.experimental.pallas import tpu as pltpu


# -----------------------------------------------------------------------------
# Fused 3x3 conv (SAME, stride 1) + bias + ReLU (+ optional 2x2 ceil-mode pool).
# -----------------------------------------------------------------------------
def _conv3x3_relu_kernel(x_ref, w_ref, b_ref, o_ref, xpad_ref, *, pool):
    # x_ref:    (B, H, W, Cin)      f32 input block
    # w_ref:    (9*Cin, Cout)       bf16 weights, row order = (ky, kx, cin)
    # b_ref:    (1, Cout)           f32 bias
    # o_ref:    (B, Ho, Wo, Cout)   f32 output block (pooled if pool=True)
    # xpad_ref: (B, H+2, W+2, Cin)  bf16 VMEM scratch (zero halo)
    B, H, W, Cin = x_ref.shape
    Cout = o_ref.shape[-1]

    # Zero-halo pad entirely in VMEM. Re-zeroed every grid step: scratch state
    # must not be relied upon across "parallel" (megacore-sharded) iterations,
    # and the memset is negligible next to the matmul.
    xpad_ref[...] = jnp.zeros_like(xpad_ref)
    xpad_ref[:, 1:H + 1, 1:W + 1, :] = x_ref[...].astype(xpad_ref.dtype)

    # im2col: nine shifted taps concatenated along channels -> a single fat-K
    # MXU matmul (K = 9*Cin) with bf16 operands and f32 accumulation.
    taps = [xpad_ref[:, ky:ky + H, kx:kx + W, :]
            for ky in range(3) for kx in range(3)]
    patches = jnp.concatenate(taps, axis=-1).reshape(B * H * W, 9 * Cin)
    acc = jnp.dot(patches, w_ref[...], preferred_element_type=jnp.float32)
    acc = jnp.maximum(acc + b_ref[...], 0.0)              # bias + ReLU (f32)
    acc = acc.reshape(B, H, W, Cout)

    if pool:
        # Fused MaxPool2d(2, stride=2, ceil_mode=True). Post-ReLU activations
        # are >= 0 and every 2x2 window contains at least one real element, so
        # zero padding is equivalent to -inf padding for the ceil-mode edge.
        Ho, Wo = (H + 1) // 2, (W + 1) // 2
        if 2 * Ho != H:                                    # static; odd H only
            acc = jnp.concatenate(
                [acc, jnp.zeros((B, 2 * Ho - H, W, Cout), acc.dtype)], axis=1)
        if 2 * Wo != W:                                    # static; odd W only
            acc = jnp.concatenate(
                [acc, jnp.zeros((B, acc.shape[1], 2 * Wo - W, Cout), acc.dtype)],
                axis=2)
        acc = acc.reshape(B, Ho, 2, Wo, 2, Cout).max(axis=(2, 4))

    o_ref[...] = acc.astype(o_ref.dtype)


@functools.lru_cache(maxsize=None)
def _vmem_cap_bytes():
    """~75% of physical VMEM of the detected chip (v5e/v6e 128MiB, v7x 64MiB)."""
    try:
        cap = int(pltpu.get_tpu_info().vmem_capacity_bytes)
    except Exception:
        cap = 64 * 1024 * 1024          # conservative fallback (v7x per-TC)
    return (cap * 3) // 4               # headroom for DMA + internal scratch


def conv3x3_relu(x, w, b, *, pool):
    """x: (N, H, W, Cin) f32, w: (3,3,Cin,Cout), b: (Cout,) ->
    (N, Ho, Wo, Cout) f32 with (Ho, Wo) = ceil(H/2), ceil(W/2) if pool."""
    N, H, W, Cin = x.shape
    Cout = w.shape[-1]
    Ho, Wo = ((H + 1) // 2, (W + 1) // 2) if pool else (H, W)

    # Small-spatial layers: fold the whole batch into the matmul M dimension
    # (one grid step, activations stay resident). Large layers: batch grid,
    # "parallel" for megacore sharding.
    B = N if H * W <= 512 else 1
    grid = (N // B,)

    w2 = w.reshape(9 * Cin, Cout).astype(jnp.bfloat16)     # (ky, kx, cin) rows
    b2 = b.reshape(1, Cout).astype(jnp.float32)

    need = (2 * B * H * W * Cin * 4            # double-buffered input tile
            + 2 * B * Ho * Wo * Cout * 4       # double-buffered output tile
            + 2 * 9 * Cin * Cout * 2           # weights (bf16)
            + B * (H + 2) * (W + 2) * Cin * 2  # halo scratch (bf16)
            + B * H * W * 9 * Cin * 2          # im2col slab (bf16)
            + B * H * W * Cout * 4)            # f32 pre-pool activation
    vmem_limit = int(min(max(2 * need, 32 * 1024 * 1024), _vmem_cap_bytes()))

    return pl.pallas_call(
        functools.partial(_conv3x3_relu_kernel, pool=pool),
        out_shape=jax.ShapeDtypeStruct((N, Ho, Wo, Cout), jnp.float32),
        grid_spec=pltpu.PrefetchScalarGridSpec(
            num_scalar_prefetch=0,
            grid=grid,
            in_specs=[
                pl.BlockSpec((B, H, W, Cin), lambda n: (n, 0, 0, 0)),
                pl.BlockSpec((9 * Cin, Cout), lambda n: (0, 0)),
                pl.BlockSpec((1, Cout), lambda n: (0, 0)),
            ],
            out_specs=pl.BlockSpec((B, Ho, Wo, Cout), lambda n: (n, 0, 0, 0)),
            scratch_shapes=[pltpu.VMEM((B, H + 2, W + 2, Cin), jnp.bfloat16)],
        ),
        compiler_params=pltpu.CompilerParams(
            dimension_semantics=("parallel",),
            vmem_limit_bytes=vmem_limit,
        ),
    )(x, w2, b2)


# -----------------------------------------------------------------------------
# VGG16 configuration (mirrors the nn.Sequential structure of the module).
# -----------------------------------------------------------------------------
VGG_CFG = {
    "conv123": [(3, 64), (64, 64), "M",
                (64, 128), (128, 128), "M",
                (128, 256), (256, 256), (256, 256), "M"],
    "conv4": [(256, 512), (512, 512), (512, 512), "M"],
    "conv5": [(512, 512), (512, 512), (512, 512)],
}


def init_params(key):
    params = {}
    for stage, cfg in VGG_CFG.items():
        layers = []
        for item in cfg:
            if item == "M":
                continue
            cin, cout = item
            key, kw, kb = jax.random.split(key, 3)
            std = float(np.sqrt(2.0 / (9.0 * cin)))          # He init
            w = jax.random.normal(kw, (3, 3, cin, cout), jnp.float32) * std
            b = jax.random.normal(kb, (cout,), jnp.float32) * 0.01
            layers.append((w, b))
        params[stage] = layers
    return params


def _run_stage(x, layers, cfg):
    """Pallas path: every MaxPool is fused into the preceding conv kernel."""
    li, i = 0, 0
    while i < len(cfg):
        assert cfg[i] != "M"
        w, b = layers[li]
        li += 1
        pool = (i + 1 < len(cfg) and cfg[i + 1] == "M")
        x = conv3x3_relu(x, w, b, pool=pool)
        i += 2 if pool else 1
    return x


def vgg16_forward(x_nchw, params):
    """Pallas forward. Input NCHW, returns [x3, x4, x5] in NCHW like PyTorch."""
    x = jnp.transpose(x_nchw, (0, 2, 3, 1))                  # -> NHWC
    x3 = _run_stage(x, params["conv123"], VGG_CFG["conv123"])
    x4 = _run_stage(x3, params["conv4"], VGG_CFG["conv4"])
    x5 = _run_stage(x4, params["conv5"], VGG_CFG["conv5"])
    to_nchw = lambda t: jnp.transpose(t, (0, 3, 1, 2))
    return [to_nchw(x3), to_nchw(x4), to_nchw(x5)]


# -----------------------------------------------------------------------------
# Pure-JAX reference (same bf16 MXU input precision, f32 accumulation).
# -----------------------------------------------------------------------------
def _ref_conv(x, w, b):
    y = jax.lax.conv_general_dilated(
        x.astype(jnp.bfloat16), w.astype(jnp.bfloat16),
        window_strides=(1, 1), padding="SAME",
        dimension_numbers=("NHWC", "HWIO", "NHWC"),
        preferred_element_type=jnp.float32)
    return jax.nn.relu(y + b[None, None, None, :].astype(jnp.float32))


def _ref_pool(x):
    N, H, W, C = x.shape
    Ho, Wo = -(-H // 2), -(-W // 2)
    xp = jnp.pad(x, ((0, 0), (0, 2 * Ho - H), (0, 2 * Wo - W), (0, 0)),
                 constant_values=-jnp.inf)
    return xp.reshape(N, Ho, 2, Wo, 2, C).max(axis=(2, 4))


def _ref_run_stage(x, layers, cfg):
    li = 0
    for item in cfg:
        if item == "M":
            x = _ref_pool(x)
        else:
            w, b = layers[li]
            li += 1
            x = _ref_conv(x, w, b)
    return x


def vgg16_forward_ref(x_nchw, params):
    x = jnp.transpose(x_nchw, (0, 2, 3, 1))
    x3 = _ref_run_stage(x, params["conv123"], VGG_CFG["conv123"])
    x4 = _ref_run_stage(x3, params["conv4"], VGG_CFG["conv4"])
    x5 = _ref_run_stage(x4, params["conv5"], VGG_CFG["conv5"])
    to_nchw = lambda t: jnp.transpose(t, (0, 3, 1, 2))
    return [to_nchw(x3), to_nchw(x4), to_nchw(x5)]


if __name__ == "__main__":
    key = jax.random.PRNGKey(0)
    k_params, k_x = jax.random.split(key)

    params = init_params(k_params)
    # Small NCHW input (PyTorch convention): batch=2, channels=3, spatial=32.
    x = jax.random.normal(k_x, (2, 3, 32, 32), jnp.float32)

    outs = jax.block_until_ready(vgg16_forward(x, params))
    refs = jax.block_until_ready(vgg16_forward_ref(x, params))

    expected_shapes = [(2, 256, 4, 4), (2, 512, 2, 2), (2, 512, 2, 2)]
    for o, r, s in zip(outs, refs, expected_shapes):
        assert o.shape == s, (o.shape, s)
        np.testing.assert_allclose(np.asarray(o), np.asarray(r),
                                   rtol=2e-2, atol=2e-2)

    print("KERNEL_OK")
</pallas_src>

<mosaic_0001>
module attributes {stable_mosaic.version = 11 : i64} {
  func.func @_conv3x3_relu_kernel(%arg0: i32, %arg1: memref<1x32x32x3xf32, #tpu.memory_space<vmem>>, %arg2: memref<27x64xbf16, #tpu.memory_space<vmem>>, %arg3: memref<1x64xf32, #tpu.memory_space<vmem>>, %arg4: memref<1x32x32x64xf32, #tpu.memory_space<vmem>>, %arg5: memref<1x34x34x3xbf16, #tpu.memory_space<vmem>>) attributes {dimension_semantics = [#tpu.dimension_semantics<parallel>], iteration_bounds = array<i64: 2>, scalar_prefetch = 0 : i64, scratch_operands = 1 : i64, tpu.core_type = #tpu.core_type<tc>, window_params = [{transform_indices = @transform_0, window_bounds = array<i64: 1, 32, 32, 3>}, {pipeline_mode = #tpu.pipeline_mode<synchronous>, transform_indices = @transform_1, window_bounds = array<i64: 27, 64>}, {pipeline_mode = #tpu.pipeline_mode<synchronous>, transform_indices = @transform_2, window_bounds = array<i64: 1, 64>}, {transform_indices = @transform_3, window_bounds = array<i64: 1, 32, 32, 64>}]} {
    %cst = arith.constant 0.000000e+00 : bf16
    %0 = vector.broadcast %cst : bf16 to vector<1x34x34x3xbf16>
    %c0 = arith.constant 0 : index
    %c0_0 = arith.constant 0 : index
    %c0_1 = arith.constant 0 : index
    %c0_2 = arith.constant 0 : index
    %1 = vector.load %arg5[%c0, %c0_0, %c0_1, %c0_2] : memref<1x34x34x3xbf16, #tpu.memory_space<vmem>>, vector<1x34x34x3xbf16>
    tpu.vector_store %arg5[%c0, %c0_0, %c0_1, %c0_2], %0 {strides = array<i32>} : memref<1x34x34x3xbf16, #tpu.memory_space<vmem>>, vector<1x34x34x3xbf16>,
    %c0_3 = arith.constant 0 : index
    %c0_4 = arith.constant 0 : index
    %c0_5 = arith.constant 0 : index
    %c0_6 = arith.constant 0 : index
    %2 = vector.load %arg1[%c0_3, %c0_4, %c0_5, %c0_6] : memref<1x32x32x3xf32, #tpu.memory_space<vmem>>, vector<1x32x32x3xf32>
    %3 = arith.truncf %2 : vector<1x32x32x3xf32> to vector<1x32x32x3xbf16>
    %c0_7 = arith.constant 0 : index
    %c1 = arith.constant 1 : index
    %c1_8 = arith.constant 1 : index
    %c0_9 = arith.constant 0 : index
    %4 = vector.load %arg5[%c0_7, %c1, %c1_8, %c0_9] : memref<1x34x34x3xbf16, #tpu.memory_space<vmem>>, vector<1x32x32x3xbf16>
    tpu.vector_store %arg5[%c0_7, %c1, %c1_8, %c0_9], %3 {strides = array<i32>} : memref<1x34x34x3xbf16, #tpu.memory_space<vmem>>, vector<1x32x32x3xbf16>,
    %c0_10 = arith.constant 0 : index
    %c0_11 = arith.constant 0 : index
    %c0_12 = arith.constant 0 : index
    %c0_13 = arith.constant 0 : index
    %5 = vector.load %arg5[%c0_10, %c0_11, %c0_12, %c0_13] : memref<1x34x34x3xbf16, #tpu.memory_space<vmem>>, vector<1x32x32x3xbf16>
    %c0_14 = arith.constant 0 : index
    %c0_15 = arith.constant 0 : index
    %c1_16 = arith.constant 1 : index
    %c0_17 = arith.constant 0 : index
    %6 = vector.load %arg5[%c0_14, %c0_15, %c1_16, %c0_17] : memref<1x34x34x3xbf16, #tpu.memory_space<vmem>>, vector<1x32x32x3xbf16>
    %c0_18 = arith.constant 0 : index
    %c0_19 = arith.constant 0 : index
    %c2 = arith.constant 2 : index
    %c0_20 = arith.constant 0 : index
    %7 = vector.load %arg5[%c0_18, %c0_19, %c2, %c0_20] : memref<1x34x34x3xbf16, #tpu.memory_space<vmem>>, vector<1x32x32x3xbf16>
    %c0_21 = arith.constant 0 : index
    %c1_22 = arith.constant 1 : index
    %c0_23 = arith.constant 0 : index
    %c0_24 = arith.constant 0 : index
    %8 = vector.load %arg5[%c0_21, %c1_22, %c0_23, %c0_24] : memref<1x34x34x3xbf16, #tpu.memory_space<vmem>>, vector<1x32x32x3xbf16>
    %c0_25 = arith.constant 0 : index
    %c1_26 = arith.constant 1 : index
    %c1_27 = arith.constant 1 : index
    %c0_28 = arith.constant 0 : index
    %9 = vector.load %arg5[%c0_25, %c1_26, %c1_27, %c0_28] : memref<1x34x34x3xbf16, #tpu.memory_space<vmem>>, vector<1x32x32x3xbf16>
    %c0_29 = arith.constant 0 : index
    %c1_30 = arith.constant 1 : index
    %c2_31 = arith.constant 2 : index
    %c0_32 = arith.constant 0 : index
    %10 = vector.load %arg5[%c0_29, %c1_30, %c2_31, %c0_32] : memref<1x34x34x3xbf16, #tpu.memory_space<vmem>>, vector<1x32x32x3xbf16>
    %c0_33 = arith.constant 0 : index
    %c2_34 = arith.constant 2 : index
    %c0_35 = arith.constant 0 : index
    %c0_36 = arith.constant 0 : index
    %11 = vector.load %arg5[%c0_33, %c2_34, %c0_35, %c0_36] : memref<1x34x34x3xbf16, #tpu.memory_space<vmem>>, vector<1x32x32x3xbf16>
    %c0_37 = arith.constant 0 : index
    %c2_38 = arith.constant 2 : index
    %c1_39 = arith.constant 1 : index
    %c0_40 = arith.constant 0 : index
    %12 = vector.load %arg5[%c0_37, %c2_38, %c1_39, %c0_40] : memref<1x34x34x3xbf16, #tpu.memory_space<vmem>>, vector<1x32x32x3xbf16>
    %c0_41 = arith.constant 0 : index
    %c2_42 = arith.constant 2 : index
    %c2_43 = arith.constant 2 : index
    %c0_44 = arith.constant 0 : index
    %13 = vector.load %arg5[%c0_41, %c2_42, %c2_43, %c0_44] : memref<1x34x34x3xbf16, #tpu.memory_space<vmem>>, vector<1x32x32x3xbf16>
    %14 = tpu.concatenate %5, %6, %7, %8, %9, %10, %11, %12, %13 in 3 : vector<1x32x32x3xbf16>, vector<1x32x32x3xbf16>, vector<1x32x32x3xbf16>, vector<1x32x32x3xbf16>, vector<1x32x32x3xbf16>, vector<1x32x32x3xbf16>, vector<1x32x32x3xbf16>, vector<1x32x32x3xbf16>, vector<1x32x32x3xbf16> -> vector<1x32x32x27xbf16>
    %15 = vector.shape_cast %14 : vector<1x32x32x27xbf16> to vector<1024x27xbf16>
    %c0_45 = arith.constant 0 : index
    %c0_46 = arith.constant 0 : index
    %16 = vector.load %arg2[%c0_45, %c0_46] : memref<27x64xbf16, #tpu.memory_space<vmem>>, vector<27x64xbf16>
    %cst_47 = arith.constant dense<0.000000e+00> : vector<1024x64xf32>
    %17 = tpu.matmul %15, %16, %cst_47 {dimension_numbers = #tpu.dot_dimension_numbers<[1], [0], [0], [1], [0, 0, 1, 1], [], []>} : vector<1024x27xbf16>, vector<27x64xbf16>, vector<1024x64xf32> -> vector<1024x64xf32>
    %c0_48 = arith.constant 0 : index
    %c0_49 = arith.constant 0 : index
    %18 = vector.load %arg3[%c0_48, %c0_49] : memref<1x64xf32, #tpu.memory_space<vmem>>, vector<1x64xf32>
    %19 = vector.broadcast %18 : vector<1x64xf32> to vector<1024x64xf32>
    %20 = arith.addf %17, %19 : vector<1024x64xf32>
    %cst_50 = arith.constant 0.000000e+00 : f32
    %21 = vector.broadcast %cst_50 : f32 to vector<1024x64xf32>
    %22 = arith.maximumf %20, %21 : vector<1024x64xf32>
    %23 = vector.shape_cast %22 : vector<1024x64xf32> to vector<1x32x32x64xf32>
    %c0_51 = arith.constant 0 : index
    %c0_52 = arith.constant 0 : index
    %c0_53 = arith.constant 0 : index
    %c0_54 = arith.constant 0 : index
    %24 = vector.load %arg4[%c0_51, %c0_52, %c0_53, %c0_54] : memref<1x32x32x64xf32, #tpu.memory_space<vmem>>, vector<1x32x32x64xf32>
    tpu.vector_store %arg4[%c0_51, %c0_52, %c0_53, %c0_54], %23 {strides = array<i32>} : memref<1x32x32x64xf32, #tpu.memory_space<vmem>>, vector<1x32x32x64xf32>,
    return
  }
  func.func @transform_0(%arg0: i32) -> (i32, i32, i32, i32) {
    %c0_i32 = arith.constant 0 : i32
    %c0_i32_0 = arith.constant 0 : i32
    %c0_i32_1 = arith.constant 0 : i32
    %c0_i32_2 = arith.constant 0 : i32
    return %arg0, %c0_i32, %c0_i32_0, %c0_i32_1 : i32, i32, i32, i32
  }
  func.func @transform_1(%arg0: i32) -> (i32, i32) {
    %c0_i32 = arith.constant 0 : i32
    %c0_i32_0 = arith.constant 0 : i32
    %c0_i32_1 = arith.constant 0 : i32
    return %c0_i32, %c0_i32_0 : i32, i32
  }
  func.func @transform_2(%arg0: i32) -> (i32, i32) {
    %c0_i32 = arith.constant 0 : i32
    %c0_i32_0 = arith.constant 0 : i32
    %c0_i32_1 = arith.constant 0 : i32
    return %c0_i32, %c0_i32_0 : i32, i32
  }
  func.func @transform_3(%arg0: i32) -> (i32, i32, i32, i32) {
    %c0_i32 = arith.constant 0 : i32
    %c0_i32_0 = arith.constant 0 : i32
    %c0_i32_1 = arith.constant 0 : i32
    %c0_i32_2 = arith.constant 0 : i32
    return %arg0, %c0_i32, %c0_i32_0, %c0_i32_1 : i32, i32, i32, i32
  }
}

</mosaic_0001>

<bundles_post_ra>
// kernel: tpu_custom_call.1
= control target key start
LH: loop header
LB: loop body
LE: loop exit
PB: predicated region body
PF: predicated region fallthrough
CT: control target
= control target key end

     0   :  { %8 = vsyncpa [#allocation4], 0  ;;  %s17063_s0 = inlined_call_operand.vmem [shape: f32[2,32,32,3], index: 0, kind: input, shape index: {}]   ;;  %s17064_s1 = inlined_call_operand.vmem [shape: bf16[27,64], index: 1, kind: input, shape index: {}]   ;;  %s17065_s2 = inlined_call_operand.vmem [shape: f32[1,64], index: 2, kind: input, shape index: {}]   ;;  %s17066_s3 = inlined_call_operand.hbm [shape: f32[2,32,32,64], index: 3, kind: output, shape index: {}]  }
   0x1   :  { %10 = vsyncpa [#allocation4 + $0x1], 0  ;;  %s11627_s12 = smov 0   ;;  %s11629_s13 = smov 0  }
   0x2   :  { %s11631_s14 = smov 0   ;;  %s11633_s15 = smov 0  }
   0x3 LB: > { %s11648_s16 = sadd.s32 4294967295, %s11592_s15   ;;  %s10038_s17 = sadd.s32 4294967294, %s11592_s15   ;;  %s11592_s15 = sphi %s11633_s15, %s17830_s15   ;;  %s11588_s14 = sphi %s11631_s14, %s17829_s14   ;;  %s11584_s13 = sphi %s11629_s13, %s17828_s13   ;;  %s11580_s12 = sphi %s11627_s12, %s17827_s12  }
   0x4   : > { %s11652_s18 = sadd.s32 1, %s11592_s15   ;;  %s91_s19 = sadd.s32 1, %s11588_s14 }
   0x5   : > { %s88_s20 = ssub.s32 %s11592_s15, %s11652_s18  ;;  %p101_p0 = scmp.ne.s32.totalorder %s11588_s14, %s11584_s13 }
   0x6   : > { %p89_p1 = scmp.eq.s32.totalorder %s88_s20, 0  ;;  %p102_p2 = scmp.eq.s32.totalorder %s11648_s16, 1 }
   0x7   : > { %p107_p3 = scmp.ne.s32.totalorder %s11584_s13, %s11580_s12  ;;  %p108_p4 = scmp.eq.s32.totalorder %s10038_s17, 1 }
   0x8   : > { %s11663_s21 = scalar_select %p89_p1, %s11588_s14, %s91_s19  }
   0x9   : > { %p11665_p5 = por %p102_p2, %p101_p0  ;;  %p11669_p6 = por %p108_p4, %p107_p3 }
   0xa   : > { %p10041_p7 = scmp.ge.s32.totalorder %s11592_s15, 1  ;;  %p140_p8 = scmp.lt.s32.totalorder %s11592_s15, 3 }
   0xc   : > { %p141_p9 = pnand %p10041_p7, %p140_p8 }
   0xe   : > { %144 = sbr.rel (%p141_p9) target bundleno = 1686 (0x696), region = 32 }
  0x15   : > { %vm170_vm0 = vcmask 19456   ;;  %vm175_vm1 = vcmask 16384   ;;  %v11594_v0 = vmov 0   ;;  %p164_p10 = scmp.lt.s32.totalorder %s11648_s16, 1  ;;  %vm3424_vm2 = vsmask.f32 7424 }
  0x16   : > { %171 = vst.msk [vmem:[#allocation2] sm:$0xf] %vm170_vm0, %v11594_v0  ;;  %172 = vst.msk [vmem:[#allocation2 + $0x4] sm:$0xf] %vm170_vm0, %v11594_v0  ;;  %vm854_vm3 = vsmask.f32 256 }
  0x17   : > { %173 = vst.msk [vmem:[#allocation2 + $0x8] sm:$0xf] %vm170_vm0, %v11594_v0  ;;  %174 = vst.msk [vmem:[#allocation2 + $0xc] sm:$0xf] %vm170_vm0, %v11594_v0  ;;  %s165_s24 = scalar_select %p164_p10, %s11648_s16, 1  ;;  %vm4289_vm9 = vcmask 1046528  }
  0x18   : > { %177 = vst.msk [vmem:[#allocation2 + $0x14] sm:$0xf] %vm170_vm0, %v11594_v0  ;;  %178 = vst.msk [vmem:[#allocation2 + $0x18] sm:$0xf] %vm170_vm0, %v11594_v0  ;;  %vm855_vm4 = vsmask.f32 4368 }
  0x19   : > { %179 = vst.msk [vmem:[#allocation2 + $0x1c] sm:$0xf] %vm170_vm0, %v11594_v0  ;;  %180 = vst.msk [vmem:[#allocation2 + $0x20] sm:$0xf] %vm170_vm0, %v11594_v0  ;;  %s10629_s25 = sshll.u32 %s165_s24, 10  ;;  %s11595_s29 = smov 3  }
  0x1a   : > { %182 = vst.msk [vmem:[#allocation2 + $0x28] sm:$0xf] %vm170_vm0, %v11594_v0  ;;  %183 = vst.msk [vmem:[#allocation2 + $0x2c] sm:$0xf] %vm170_vm0, %v11594_v0  ;;  %s12020_s28 = scalar_lea.vmem %s17063_s0, %s10629_s25  ;;  %vm2139_vm5 = vsmask.f32 7938 }
  0x1b   : > { %184 = vst.msk [vmem:[#allocation2 + $0x30] sm:$0xf] %vm170_vm0, %v11594_v0  ;;  %185 = vst.msk [vmem:[#allocation2 + $0x34] sm:$0xf] %vm170_vm0, %v11594_v0  ;;  %v346_v1 = vld [vmem:[%s12020_s28 + $0x20] sm:$0xff]  ;;  %v347_v2 = vld [vmem:[%s12020_s28 + $0x28] sm:$0xff] }
  0x1c   : > { %187 = vst.msk [vmem:[#allocation2 + $0x3c] sm:$0xf] %vm170_vm0, %v11594_v0  ;;  %188 = vst.msk [vmem:[#allocation2 + $0x40] sm:$0xf] %vm170_vm0, %v11594_v0  ;;  %v348_v3 = vld [vmem:[%s12020_s28 + $0x30] sm:$0xff]  ;;  %v10634_v6 = vpack.c.bf16 %v346_v1, %v346_v1  ;;  %v10635_v7 = vpack.c.bf16 %v347_v2, %v347_v2  ;;  %v349_v12 = vld [vmem:[%s12020_s28 + $0x38] sm:$0xff] }
  0x1d   : > { %189 = vst.msk [vmem:[#allocation2 + $0x44] sm:$0xf] %vm170_vm0, %v11594_v0  ;;  %190 = vst.msk [vmem:[#allocation2 + $0x48] sm:$0xf] %vm170_vm0, %v11594_v0  ;;  %v2431_v4 = vld [vmem:[#allocation2] sm:$0xf]  ;;  %v10636_v10 = vpack.c.bf16 %v348_v3, %v348_v3  ;;  %v10637_v20 = vpack.c.bf16 %v349_v12, %v349_v12 }
  0x1e   : > { %192 = vst.msk [vmem:[#allocation2 + $0x50] sm:$0xf] %vm170_vm0, %v11594_v0  ;;  %193 = vst.msk [vmem:[#allocation2 + $0x54] sm:$0xf] %vm170_vm0, %v11594_v0  ;;  %v2432_v5 = vld [vmem:[#allocation2 + $0x4] sm:$0xf] }
  0x1f   : > { %194 = vst.msk [vmem:[#allocation2 + $0x58] sm:$0xf] %vm170_vm0, %v11594_v0  ;;  %195 = vst.msk [vmem:[#allocation2 + $0x5c] sm:$0xf] %vm170_vm0, %v11594_v0  ;;  %v12025_v8 = vcombine.low %v2431_v4, %v2432_v5  ;;  %v11013_v9 = vld [vmem:[#allocation2 + $0x8] sm:$0xff]   ;;  %v893_v13 = vshrl.u32 %v10634_v6, 16 }
  0x20   : > { %197 = vst.msk [vmem:[#allocation2 + $0x64] sm:$0xf] %vm170_vm0, %v11594_v0  ;;  %198 = vst.msk [vmem:[#allocation2 + $0x68] sm:$0xf] %vm170_vm0, %v11594_v0  ;;  %v896_v14 = vshll.u32 %v10634_v6, 16  ;;  %v3433_v17 = vshll.u32 %v11013_v9, 16 }
  0x21   : > { %199 = vst.msk [vmem:[#allocation2 + $0x6c] sm:$0xf] %vm170_vm0, %v11594_v0  ;;  %200 = vst.msk [vmem:[#allocation2 + $0x70] sm:$0xf] %vm170_vm0, %v11594_v0  ;;  %v3426_v15 = vshrl.u32 %v12025_v8, 16  ;;  %v3428_v16 = vshll.u32 %v12025_v8, 16 }
  0x22   : > { %202 = vst.msk [vmem:[#allocation2 + $0x78] sm:$0xf] %vm170_vm0, %v11594_v0  ;;  %203 = vst.msk [vmem:[#allocation2 + $0x7c] sm:$0xf] %vm170_vm0, %v11594_v0  ;;  %v3437_v18 = vshrl.u32 %v11013_v9, 16  ;;  %v895_v21 = vrot.slane %v893_v13, 7 }
  0x23   : > { %204 = vst.msk [vmem:[#allocation2 + $0x80] sm:$0xf] %vm170_vm0, %v11594_v0  ;;  %205 = vst.msk [vmem:[#allocation2 + $0x84] sm:$0xf] %vm170_vm0, %v11594_v0  ;;  %v901_v22 = vshrl.u32 %v10635_v7, 16  ;;  %v3430_v23 = vrot.slane %v3428_v16, 1 }
  0x24   : > { %207 = vst.msk [vmem:[#allocation2 + $0x8c] sm:$0xf] %vm170_vm0, %v11594_v0  ;;  %208 = vst.msk [vmem:[#allocation2 + $0x90] sm:$0xf] %vm170_vm0, %v11594_v0  ;;  %v3435_v24 = vrot.slane %v3433_v17, 1  ;;  %v904_v25 = vshll.u32 %v10635_v7, 16  ;;  %v898_v29 = vor.u32 %v896_v14, %v895_v21 }
  0x25   : > { %209 = vst.msk [vmem:[#allocation2 + $0x94] sm:$0xf] %vm170_vm0, %v11594_v0  ;;  %210 = vst.msk [vmem:[#allocation2 + $0x98] sm:$0xf] %vm170_vm0, %v11594_v0  ;;  %v910_v26 = vshrl.u32 %v10636_v10, 16  ;;  %v899_v30 = vrot.slane %v895_v21, 4  ;;  %v3431_v32 = vor.u32 %v3430_v23, %v3426_v15 }
  0x26   : > { %212 = vst.msk [vmem:[#allocation2 + $0xa0] sm:$0xf] %vm170_vm0, %v11594_v0  ;;  %213 = vst.msk [vmem:[#allocation2 + $0xa4] sm:$0xf] %vm170_vm0, %v11594_v0  ;;  %v903_v31 = vrot.slane %v901_v22, 7  ;;  %v3439_v33 = vor.u32 %v3437_v18, %v3435_v24  ;;  %v913_v35 = vshll.u32 %v10636_v10, 16 }
  0x27   : > { %214 = vst.msk [vmem:[#allocation2 + $0xa8] sm:$0xf] %vm170_vm0, %v11594_v0  ;;  %215 = vst.msk [vmem:[#allocation2 + $0xac] sm:$0xf] %vm170_vm0, %v11594_v0  ;;  %v912_v34 = vrot.slane %v910_v26, 7  ;;  %v342_v38 = vld [vmem:[%s12020_s28] sm:$0xff]  ;;  %v3436_v46 = vsel %vm3424_vm2, %v3431_v32, %v3435_v24 }
  0x28   : > { %217 = vst.msk [vmem:[#allocation2 + $0xb4] sm:$0xf] %vm170_vm0, %v11594_v0  ;;  %218 = vst.msk [vmem:[#allocation2 + $0xb8] sm:$0xf] %vm170_vm0, %v11594_v0  ;;  %v2152_v37 = vld [vmem:[#allocation2 + $0x28] sm:$0xf]  ;;  %v906_v39 = vor.u32 %v904_v25, %v903_v31  ;;  %4065 = vrot.lane.b32.xlu0 %v3436_v46, %s11595_s29  ;;  %v10630_v54 = vpack.c.bf16 %v342_v38, %v342_v38 }
  0x29   : > { %219 = vst.msk [vmem:[#allocation2 + $0xbc] sm:$0xf] %vm170_vm0, %v11594_v0  ;;  %220 = vst.msk [vmem:[#allocation2 + $0xc0] sm:$0xf] %vm170_vm0, %v11594_v0  ;;  %v908_v40 = vrot.slane %v903_v31, 4  ;;  %v919_v41 = vshrl.u32 %v10637_v20, 16  ;;  %v915_v48 = vor.u32 %v913_v35, %v912_v34 }
  0x2a   : > { %222 = vst.msk [vmem:[#allocation2 + $0xc8] sm:$0xf] %vm170_vm0, %v11594_v0  ;;  %223 = vst.msk [vmem:[#allocation2 + $0xcc] sm:$0xf] %vm170_vm0, %v11594_v0  ;;  %v922_v42 = vshll.u32 %v10637_v20, 16  ;;  %v343_v43 = vld [vmem:[%s12020_s28 + $0x8] sm:$0xff] }
  0x2b   : > { %224 = vst.msk [vmem:[#allocation2 + $0xd0] sm:$0xf] %vm170_vm0, %v11594_v0  ;;  %225 = vst.msk [vmem:[#allocation2 + $0xd4] sm:$0xf] %vm170_vm0, %v11594_v0  ;;  %v344_v44 = vld [vmem:[%s12020_s28 + $0x10] sm:$0xff]  ;;  %v345_v45 = vld [vmem:[%s12020_s28 + $0x18] sm:$0xff]  ;;  %v10631_v56 = vpack.c.bf16 %v343_v43, %v343_v43 }
  0x2c   : > { %227 = vst.msk [vmem:[#allocation2 + $0xdc] sm:$0xf] %vm170_vm0, %v11594_v0  ;;  %228 = vst.msk [vmem:[#allocation2 + $0xe0] sm:$0xf] %vm170_vm0, %v11594_v0  ;;  %v917_v49 = vrot.slane %v912_v34, 4  ;;  %v350_v50 = vld [vmem:[%s12020_s28 + $0x40] sm:$0xff]  ;;  %v10632_v57 = vpack.c.bf16 %v344_v44, %v344_v44  ;;  %v10633_v58 = vpack.c.bf16 %v345_v45, %v345_v45 }
  0x2d   : > { %229 = vst.msk [vmem:[#allocation2 + $0xe4] sm:$0xf] %vm170_vm0, %v11594_v0  ;;  %230 = vst.msk [vmem:[#allocation2 + $0xe8] sm:$0xf] %vm170_vm0, %v11594_v0  ;;  %v12052_v52 = vrot.slane %v919_v41, 7  ;;  %v858_v60 = vshrl.u32 %v10630_v54, 16 }
  0x2e   : > { %232 = vst.msk [vmem:[#allocation2 + $0xf0] sm:$0xf] %vm170_vm0, %v11594_v0  ;;  %233 = vst.msk [vmem:[#allocation2 + $0xf4] sm:$0xf] %vm170_vm0, %v11594_v0  ;;  %v861_v61 = vshll.u32 %v10630_v54, 16  ;;  %v351_v62 = vld [vmem:[%s12020_s28 + $0x48] sm:$0xff] }
  0x2f   : > { %234 = vst.msk [vmem:[#allocation2 + $0xf8] sm:$0xf] %vm170_vm0, %v11594_v0  ;;  %235 = vst.msk [vmem:[#allocation2 + $0xfc] sm:$0xf] %vm170_vm0, %v11594_v0  ;;  %v924_v59 = vor.u32 %v922_v42, %v12052_v52  ;;  %v352_v63 = vld [vmem:[%s12020_s28 + $0x50] sm:$0xff]  ;;  %v866_v1 = vshrl.u32 %v10631_v56, 16  ;;  %v10639_v14 = vpack.c.bf16 %v351_v62, %v351_v62 }
  0x30   : > { %237 = vst.msk [vmem:[#allocation2 + $0x104] sm:$0xf] %vm170_vm0, %v11594_v0  ;;  %238 = vst.msk [vmem:[#allocation2 + $0x108] sm:$0xf] %vm170_vm0, %v11594_v0  ;;  %v869_v2 = vshll.u32 %v10631_v56, 16  ;;  %v875_v3 = vshrl.u32 %v10632_v57, 16  ;;  %v10640_v15 = vpack.c.bf16 %v352_v63, %v352_v63 }
  0x31   : > { %239 = vst.msk [vmem:[#allocation2 + $0x10c] sm:$0xf] %vm170_vm0, %v11594_v0  ;;  %240 = vst.msk [vmem:[#allocation2 + $0x110] sm:$0xf] %vm170_vm0, %v11594_v0  ;;  %v878_v4 = vshll.u32 %v10632_v57, 16  ;;  %v353_v5 = vld [vmem:[%s12020_s28 + $0x58] sm:$0xff] }
  0x32   : > { %242 = vst.msk [vmem:[#allocation2 + $0x118] sm:$0xf] %vm170_vm0, %v11594_v0  ;;  %243 = vst.msk [vmem:[#allocation2 + $0x11c] sm:$0xf] %vm170_vm0, %v11594_v0  ;;  %v860_v7 = vrot.slane %v858_v60, 7  ;;  %v884_v9 = vshrl.u32 %v10633_v58, 16 }
  0x33   : > { %244 = vst.msk [vmem:[#allocation2 + $0x120] sm:$0xf] %vm170_vm0, %v11594_v0  ;;  %245 = vst.msk [vmem:[#allocation2 + $0x124] sm:$0xf] %vm170_vm0, %v11594_v0  ;;  %v887_v10 = vshll.u32 %v10633_v58, 16  ;;  %v877_v12 = vrot.slane %v875_v3, 7 }
  0x34   : > { %247 = vst.msk [vmem:[#allocation2 + $0x12c] sm:$0xf] %vm170_vm0, %v11594_v0  ;;  %248 = vst.msk [vmem:[#allocation2 + $0x130] sm:$0xf] %vm170_vm0, %v11594_v0  ;;  %v2141_v13 = vld [vmem:[#allocation2 + $0x14] sm:$0xf]  ;;  %v863_v16 = vor.u32 %v861_v61, %v860_v7 }
  0x35   : > { %249 = vst.msk [vmem:[#allocation2 + $0x134] sm:$0xf] %vm170_vm0, %v11594_v0  ;;  %250 = vst.msk [vmem:[#allocation2 + $0x138] sm:$0xf] %vm170_vm0, %v11594_v0  ;;  %v864_v17 = vrot.slane %v860_v7, 4  ;;  %v12068_v18 = vrot.slane %v884_v9, 7  ;;  %v880_v22 = vor.u32 %v878_v4, %v877_v12 }
  0x36   : > { %252 = vst.msk [vmem:[#allocation2 + $0x140] sm:$0xf] %vm170_vm0, %v11594_v0  ;;  %253 = vst.msk [vmem:[#allocation2 + $0x144] sm:$0xf] %vm170_vm0, %v11594_v0  ;;  %v882_v23 = vrot.slane %v877_v12, 4  ;;  %v936_v34 = vshrl.u32 %v10639_v14, 16 }
  0x37   : > { %254 = vst.msk [vmem:[#allocation2 + $0x148] sm:$0xf] %vm170_vm0, %v11594_v0  ;;  %255 = vst.msk [vmem:[#allocation2 + $0x14c] sm:$0xf] %vm170_vm0, %v11594_v0  ;;  %v889_v26 = vor.u32 %v887_v10, %v12068_v18  ;;  %v939_v38 = vshll.u32 %v10639_v14, 16  ;;  %v948_v43 = vshll.u32 %v10640_v15, 16 }
  0x38   : > { %257 = vst.msk [vmem:[#allocation2 + $0x154] sm:$0xf] %vm170_vm0, %v11594_v0  ;;  %258 = vst.msk [vmem:[#allocation2 + $0x158] sm:$0xf] %vm170_vm0, %v11594_v0  ;;  %v938_v42 = vrot.slane %v936_v34, 7  ;;  %v354_v57 = vld [vmem:[%s12020_s28 + $0x60] sm:$0xff] }
  0x39   : > { %259 = vst.msk [vmem:[#allocation2 + $0x15c] sm:$0xf] %vm170_vm0, %v11594_v0  ;;  %260 = vst.msk [vmem:[#allocation2 + $0x160] sm:$0xf] %vm170_vm0, %v11594_v0  ;;  %v2161_v44 = vld [vmem:[#allocation2 + $0x3c] sm:$0xf]  ;;  %v10642_v10 = vpack.c.bf16 %v354_v57, %v354_v57 }
  0x3a   : > { %262 = vst.msk [vmem:[#allocation2 + $0x168] sm:$0xf] %vm170_vm0, %v11594_v0  ;;  %263 = vst.msk [vmem:[#allocation2 + $0x16c] sm:$0xf] %vm170_vm0, %v11594_v0  ;;  %v355_v62 = vld [vmem:[%s12020_s28 + $0x68] sm:$0xff]  ;;  %v356_v63 = vld [vmem:[%s12020_s28 + $0x70] sm:$0xff] }
  0x3b   : > { %264 = vst.msk [vmem:[#allocation2 + $0x170] sm:$0xf] %vm170_vm0, %v11594_v0  ;;  %265 = vst.msk [vmem:[#allocation2 + $0x174] sm:$0xf] %vm170_vm0, %v11594_v0  ;;  %v891_v4 = vrot.slane %v12068_v18, 4  ;;  %v10644_v14 = vpack.c.bf16 %v356_v63, %v356_v63  ;;  %v360_v57 = vld [vmem:[%s12020_s28 + $0x90] sm:$0xff] }
  0x3c   : > { %267 = vst.msk [vmem:[#allocation2 + $0x17c] sm:$0xf] %vm170_vm0, %v11594_v0  ;;  %268 = vst.msk [vmem:[#allocation2 + $0x180] sm:$0xf] %vm170_vm0, %v11594_v0  ;;  %s11596_s30 = smov 6   ;;  %s11597_s4 = smov 9  }
  0x3d   : > { %269 = vst.msk [vmem:[#allocation2 + $0x184] sm:$0xf] %vm170_vm0, %v11594_v0  ;;  %270 = vst.msk [vmem:[#allocation2 + $0x188] sm:$0xf] %vm170_vm0, %v11594_v0  ;;  %v983_v34 = vshll.u32 %v10644_v14, 16  ;;  %s11598_s5 = smov 12  }
  0x3e   : > { %272 = vst.msk [vmem:[#allocation2 + $0x190] sm:$0xf] %vm170_vm0, %v11594_v0  ;;  %273 = vst.msk [vmem:[#allocation2 + $0x194] sm:$0xf] %vm170_vm0, %v11594_v0  ;;  %s11599_s6 = smov 15   ;;  %vm9153_vm10 = vcmask 1044480  }
  0x3f   : > { %274 = vst.msk [vmem:[#allocation2 + $0x198] sm:$0xf] %vm170_vm0, %v11594_v0  ;;  %275 = vst.msk [vmem:[#allocation2 + $0x19c] sm:$0xf] %vm170_vm0, %v11594_v0  ;;  %s11600_s9 = smov 18   ;;  %vm9154_vm11 = vcmask 1045504  }
  0x40   : > { %277 = vst.msk [vmem:[#allocation2 + $0x1a4] sm:$0xf] %vm170_vm0, %v11594_v0  ;;  %278 = vst.msk [vmem:[#allocation2 + $0x1a8] sm:$0xf] %vm170_vm0, %v11594_v0  ;;  %s11602_s17 = smov 21   ;;  %s11603_s19 = smov 24  }
  0x41   : > { %279 = vst.msk [vmem:[#allocation2 + $0x1ac] sm:$0xf] %vm170_vm0, %v11594_v0  ;;  %280 = vst.msk [vmem:[#allocation2 + $0x1b0] sm:$0xf] %vm170_vm0, %v11594_v0  ;;  %vm7970_vm12 = vcmask 23552   ;;  %vm8099_vm13 = vcmask 48128  }
  0x42   : > { %282 = vst.msk [vmem:[#allocation2 + $0x1b8] sm:$0xf] %vm170_vm0, %v11594_v0  ;;  %283 = vst.msk [vmem:[#allocation2 + $0x1bc] sm:$0xf] %vm170_vm0, %v11594_v0  ;;  %vm8228_vm14 = vcmask 72704   ;;  %vm8357_vm15 = vcmask 97280  }
  0x43   : > { %284 = vst.msk [vmem:[#allocation2 + $0x1c0] sm:$0xf] %vm170_vm0, %v11594_v0  ;;  %285 = vst.msk [vmem:[#allocation2 + $0x1c4] sm:$0xf] %vm170_vm0, %v11594_v0  ;;  %s161_s20 = sand.u32 1, %s11584_s13  }
  0x44   : > { %287 = vst.msk [vmem:[#allocation2 + $0x1cc] sm:$0xf] %vm170_vm0, %v11594_v0  ;;  %288 = vst.msk [vmem:[#allocation2 + $0x1d0] sm:$0xf] %vm170_vm0, %v11594_v0  ;;  %s16094_s26 = sshll.u32 %s161_s20, 10 }
  0x45   : > { %289 = vst.msk [vmem:[#allocation2 + $0x1d4] sm:$0xf] %vm170_vm0, %v11594_v0  ;;  %290 = vst.msk [vmem:[#allocation2 + $0x1d8] sm:$0xf] %vm170_vm0, %v11594_v0  ;;  %s16129_s27 = scalar_lea.vmem [#allocation3], %s16094_s26 }
  0x46   : > { %292 = vst.msk [vmem:[#allocation2 + $0x1e0] sm:$0xf] %vm170_vm0, %v11594_v0  ;;  %293 = vst.msk [vmem:[#allocation2 + $0x1e4] sm:$0xf] %vm170_vm0, %v11594_v0 }
  0x47   : > { %294 = vst.msk [vmem:[#allocation2 + $0x1e8] sm:$0xf] %vm170_vm0, %v11594_v0  ;;  %295 = vst.msk [vmem:[#allocation2 + $0x1ec] sm:$0xf] %vm170_vm0, %v11594_v0 }
  0x48   : > { %297 = vst.msk [vmem:[#allocation2 + $0x1f4] sm:$0xf] %vm170_vm0, %v11594_v0  ;;  %298 = vst.msk [vmem:[#allocation2 + $0x1f8] sm:$0xf] %vm170_vm0, %v11594_v0 }
  0x49   : > { %299 = vst.msk [vmem:[#allocation2 + $0x1fc] sm:$0xf] %vm170_vm0, %v11594_v0  ;;  %300 = vst.msk [vmem:[#allocation2 + $0x200] sm:$0xf] %vm170_vm0, %v11594_v0 }
  0x4a   : > { %302 = vst.msk [vmem:[#allocation2 + $0x208] sm:$0xf] %vm170_vm0, %v11594_v0  ;;  %303 = vst.msk [vmem:[#allocation2 + $0x20c] sm:$0xf] %vm170_vm0, %v11594_v0 }
  0x4b   : > { %304 = vst.msk [vmem:[#allocation2 + $0x210] sm:$0xf] %vm170_vm0, %v11594_v0  ;;  %305 = vst.msk [vmem:[#allocation2 + $0x214] sm:$0xf] %vm170_vm0, %v11594_v0 }
  0x4c   : > { %307 = vst.msk [vmem:[#allocation2 + $0x21c] sm:$0xf] %vm170_vm0, %v11594_v0  ;;  %308 = vst.msk [vmem:[#allocation2 + $0x220] sm:$0xf] %vm170_vm0, %v11594_v0 }
  0x4d   : > { %309 = vst.msk [vmem:[#allocation2 + $0x224] sm:$0xf] %vm170_vm0, %v11594_v0  ;;  %310 = vst.msk [vmem:[#allocation2 + $0x228] sm:$0xf] %vm170_vm0, %v11594_v0 }
  0x4e   : > { %312 = vst.msk [vmem:[#allocation2 + $0x230] sm:$0xf] %vm170_vm0, %v11594_v0  ;;  %313 = vst.msk [vmem:[#allocation2 + $0x234] sm:$0xf] %vm170_vm0, %v11594_v0 }
  0x4f   : > { %314 = vst.msk [vmem:[#allocation2 + $0x238] sm:$0xf] %vm170_vm0, %v11594_v0  ;;  %315 = vst.msk [vmem:[#allocation2 + $0x23c] sm:$0xf] %vm170_vm0, %v11594_v0 }
  0x50   : > { %317 = vst.msk [vmem:[#allocation2 + $0x244] sm:$0xf] %vm170_vm0, %v11594_v0  ;;  %318 = vst.msk [vmem:[#allocation2 + $0x248] sm:$0xf] %vm170_vm0, %v11594_v0 }
  0x51   : > { %319 = vst.msk [vmem:[#allocation2 + $0x24c] sm:$0xf] %vm170_vm0, %v11594_v0  ;;  %320 = vst.msk [vmem:[#allocation2 + $0x250] sm:$0xf] %vm170_vm0, %v11594_v0 }
  0x52   : > { %322 = vst.msk [vmem:[#allocation2 + $0x258] sm:$0xf] %vm170_vm0, %v11594_v0  ;;  %323 = vst.msk [vmem:[#allocation2 + $0x25c] sm:$0xf] %vm170_vm0, %v11594_v0 }
  0x53   : > { %324 = vst.msk [vmem:[#allocation2 + $0x260] sm:$0xf] %vm170_vm0, %v11594_v0  ;;  %325 = vst.msk [vmem:[#allocation2 + $0x264] sm:$0xf] %vm170_vm0, %v11594_v0 }
  0x54   : > { %327 = vst.msk [vmem:[#allocation2 + $0x26c] sm:$0xf] %vm170_vm0, %v11594_v0  ;;  %328 = vst.msk [vmem:[#allocation2 + $0x270] sm:$0xf] %vm170_vm0, %v11594_v0 }
  0x55   : > { %329 = vst.msk [vmem:[#allocation2 + $0x274] sm:$0xf] %vm170_vm0, %v11594_v0  ;;  %330 = vst.msk [vmem:[#allocation2 + $0x278] sm:$0xf] %vm170_vm0, %v11594_v0 }
  0x56   : > { %332 = vst.msk [vmem:[#allocation2 + $0x280] sm:$0xf] %vm170_vm0, %v11594_v0  ;;  %333 = vst.msk [vmem:[#allocation2 + $0x284] sm:$0xf] %vm170_vm0, %v11594_v0 }
  0x57   : > { %334 = vst.msk [vmem:[#allocation2 + $0x288] sm:$0xf] %vm170_vm0, %v11594_v0  ;;  %335 = vst.msk [vmem:[#allocation2 + $0x28c] sm:$0xf] %vm170_vm0, %v11594_v0 }
  0x58   : > { %337 = vst.msk [vmem:[#allocation2 + $0x294] sm:$0xf] %vm170_vm0, %v11594_v0  ;;  %338 = vst.msk [vmem:[#allocation2 + $0x298] sm:$0xf] %vm170_vm0, %v11594_v0 }
  0x59   : > { %339 = vst.msk [vmem:[#allocation2 + $0x29c] sm:$0xf] %vm170_vm0, %v11594_v0  ;;  %340 = vst.msk [vmem:[#allocation2 + $0x2a0] sm:$0xf] %vm170_vm0, %v11594_v0 }
  0x5a   : > { %176 = vst.msk [vmem:[#allocation2 + $0x10] sm:$0x1] %vm175_vm1, %v11594_v0  ;;  %181 = vst.msk [vmem:[#allocation2 + $0x24] sm:$0x1] %vm175_vm1, %v11594_v0 }
  0x5b   : > { %186 = vst.msk [vmem:[#allocation2 + $0x38] sm:$0x1] %vm175_vm1, %v11594_v0  ;;  %191 = vst.msk [vmem:[#allocation2 + $0x4c] sm:$0x1] %vm175_vm1, %v11594_v0 }
  0x5c   : > { %196 = vst.msk [vmem:[#allocation2 + $0x60] sm:$0x1] %vm175_vm1, %v11594_v0  ;;  %201 = vst.msk [vmem:[#allocation2 + $0x74] sm:$0x1] %vm175_vm1, %v11594_v0 }
  0x5d   : > { %206 = vst.msk [vmem:[#allocation2 + $0x88] sm:$0x1] %vm175_vm1, %v11594_v0  ;;  %211 = vst.msk [vmem:[#allocation2 + $0x9c] sm:$0x1] %vm175_vm1, %v11594_v0 }
  0x5e   : > { %216 = vst.msk [vmem:[#allocation2 + $0xb0] sm:$0x1] %vm175_vm1, %v11594_v0  ;;  %221 = vst.msk [vmem:[#allocation2 + $0xc4] sm:$0x1] %vm175_vm1, %v11594_v0 }
  0x5f   : > { %226 = vst.msk [vmem:[#allocation2 + $0xd8] sm:$0x1] %vm175_vm1, %v11594_v0  ;;  %231 = vst.msk [vmem:[#allocation2 + $0xec] sm:$0x1] %vm175_vm1, %v11594_v0 }
  0x60   : > { %236 = vst.msk [vmem:[#allocation2 + $0x100] sm:$0x1] %vm175_vm1, %v11594_v0  ;;  %241 = vst.msk [vmem:[#allocation2 + $0x114] sm:$0x1] %vm175_vm1, %v11594_v0 }
  0x61   : > { %246 = vst.msk [vmem:[#allocation2 + $0x128] sm:$0x1] %vm175_vm1, %v11594_v0  ;;  %251 = vst.msk [vmem:[#allocation2 + $0x13c] sm:$0x1] %vm175_vm1, %v11594_v0  ;;  %v2149_v56 = vld [vmem:[#allocation2 + $0x24] sm:$0x1] }
  0x62   : > { %256 = vst.msk [vmem:[#allocation2 + $0x150] sm:$0x1] %vm175_vm1, %v11594_v0  ;;  %261 = vst.msk [vmem:[#allocation2 + $0x164] sm:$0x1] %vm175_vm1, %v11594_v0 }
  0x63   : > { %266 = vst.msk [vmem:[#allocation2 + $0x178] sm:$0x1] %vm175_vm1, %v11594_v0  ;;  %271 = vst.msk [vmem:[#allocation2 + $0x18c] sm:$0x1] %vm175_vm1, %v11594_v0 }
  0x64   : > { %276 = vst.msk [vmem:[#allocation2 + $0x1a0] sm:$0x1] %vm175_vm1, %v11594_v0  ;;  %281 = vst.msk [vmem:[#allocation2 + $0x1b4] sm:$0x1] %vm175_vm1, %v11594_v0 }
  0x65   : > { %286 = vst.msk [vmem:[#allocation2 + $0x1c8] sm:$0x1] %vm175_vm1, %v11594_v0  ;;  %291 = vst.msk [vmem:[#allocation2 + $0x1dc] sm:$0x1] %vm175_vm1, %v11594_v0 }
  0x66   : > { %296 = vst.msk [vmem:[#allocation2 + $0x1f0] sm:$0x1] %vm175_vm1, %v11594_v0  ;;  %301 = vst.msk [vmem:[#allocation2 + $0x204] sm:$0x1] %vm175_vm1, %v11594_v0 }
  0x67   : > { %306 = vst.msk [vmem:[#allocation2 + $0x218] sm:$0x1] %vm175_vm1, %v11594_v0  ;;  %311 = vst.msk [vmem:[#allocation2 + $0x22c] sm:$0x1] %vm175_vm1, %v11594_v0 }
  0x68   : > { %316 = vst.msk [vmem:[#allocation2 + $0x240] sm:$0x1] %vm175_vm1, %v11594_v0  ;;  %321 = vst.msk [vmem:[#allocation2 + $0x254] sm:$0x1] %vm175_vm1, %v11594_v0 }
  0x69   : > { %326 = vst.msk [vmem:[#allocation2 + $0x268] sm:$0x1] %vm175_vm1, %v11594_v0  ;;  %331 = vst.msk [vmem:[#allocation2 + $0x27c] sm:$0x1] %vm175_vm1, %v11594_v0 }
  0x6a   : > { %336 = vst.msk [vmem:[#allocation2 + $0x290] sm:$0x1] %vm175_vm1, %v11594_v0  ;;  %341 = vst.msk [vmem:[#allocation2 + $0x2a4] sm:$0x1] %vm175_vm1, %v11594_v0  ;;  %v10638_v0 = vpack.c.bf16 %v350_v50, %v350_v50 }
  0x6b   : > { %17144 = vst [vmem:[#allocation6_spill] sm:$0xff] %v12025_v8  ;;  %v11014_v11 = vld [vmem:[#allocation2 + $0x10] ss:$0 sps:$4 sm:$0x11]   ;;  %vm12032_vm6 = vmor %vm854_vm3, %vm855_vm4  ;;  %vm8873_vm4 = vcmask 195584  }
  0x6c   : > { %v3441_v19 = vshll.u32 %v11014_v11, 16  ;;  %vm12038_vm7 = vmand %vm170_vm0, %vm2139_vm5  ;;  %v907_v51 = vsel %vm12032_vm6, %v899_v30, %v906_v39  ;;  %v916_v55 = vsel %vm12032_vm6, %v908_v40, %v915_v48  ;;  %v925_v6 = vsel %vm12032_vm6, %v917_v49, %v924_v59 }
  0x6d   : > { %v2153_v53 = vsel %vm12038_vm7, %v898_v29, %v2152_v37  ;;  %2155 = vst.msk [vmem:[#allocation2 + $0x2c] sm:$0xf] %vm170_vm0, %v907_v51  ;;  %2156 = vst.msk [vmem:[#allocation2 + $0x30] sm:$0xf] %vm170_vm0, %v916_v55  ;;  %v868_v11 = vrot.slane %v866_v1, 7  ;;  %v928_v29 = vshrl.u32 %v10638_v0, 16  ;;  %v890_v35 = vsel %vm12032_vm6, %v882_v23, %v889_v26 }
  0x6e   : > { %v3443_v27 = vrot.slane %v3441_v19, 1  ;;  %2154 = vst [vmem:[#allocation2 + $0x28] sm:$0xf] %v2153_v53  ;;  %2157 = vst.msk [vmem:[#allocation2 + $0x34] sm:$0xf] %vm170_vm0, %v925_v6  ;;  %v10641_v19 = vpack.c.bf16 %v353_v5, %v353_v5  ;;  %v931_v30 = vshll.u32 %v10638_v0, 16  ;;  %v941_v51 = vor.u32 %v939_v38, %v938_v42 }
  0x6f   : > { %v871_v20 = vor.u32 %v869_v2, %v868_v11  ;;  %v873_v21 = vrot.slane %v868_v11, 4  ;;  %v930_v37 = vrot.slane %v928_v29, 7  ;;  %v945_v39 = vshrl.u32 %v10640_v15, 16  ;;  %2146 = vst.msk [vmem:[#allocation2 + $0x20] sm:$0xf] %vm170_vm0, %v890_v35  ;;  %vm12090_vm8 = vmand %vm175_vm1, %vm854_vm3  ;;  %v357_v0 = vld [vmem:[%s12020_s28 + $0x78] sm:$0xff] }
  0x70   : > { %v3444_v47 = vsel %vm3424_vm2, %v3439_v33, %v3443_v27  ;;  %v2142_v27 = vsel %vm12038_vm7, %v863_v16, %v2141_v13  ;;  %v954_v49 = vshrl.u32 %v10641_v19, 16  ;;  %v943_v53 = vrot.slane %v938_v42, 4  ;;  %v2170_v35 = vld [vmem:[#allocation2 + $0x50] sm:$0xf] }
  0x71   : > { %4067 = vrot.lane.b32.xlu0 %v3444_v47, %s11595_s29  ;;  %v872_v32 = vsel %vm12032_vm6, %v864_v17, %v871_v20  ;;  %v881_v33 = vsel %vm12032_vm6, %v873_v21, %v880_v22  ;;  %2143 = vst [vmem:[#allocation2 + $0x14] sm:$0xf] %v2142_v27  ;;  %v933_v46 = vor.u32 %v931_v30, %v930_v37  ;;  %v934_v47 = vrot.slane %v930_v37, 4 }
  0x72   : > { %2144 = vst.msk [vmem:[#allocation2 + $0x18] sm:$0xf] %vm170_vm0, %v872_v32  ;;  %2145 = vst.msk [vmem:[#allocation2 + $0x1c] sm:$0xf] %vm170_vm0, %v881_v33  ;;  %v947_v48 = vrot.slane %v945_v39, 7  ;;  %v957_v54 = vshll.u32 %v10641_v19, 16  ;;  %v2150_v12 = vsel %vm12090_vm8, %v891_v4, %v2149_v56  ;;  %v10643_v13 = vpack.c.bf16 %v355_v62, %v355_v62 }
  0x73   : > { %v12096_v61 = vrot.slane %v954_v49, 7  ;;  %v942_v2 = vsel %vm12032_vm6, %v934_v47, %v941_v51  ;;  %v2162_v3 = vsel %vm12038_vm7, %v933_v46, %v2161_v44  ;;  %v12115_v15 = vpack.c.bf16 %v357_v0, %v357_v0  ;;  %2151 = vst [vmem:[#allocation2 + $0x24] sm:$0x1] %v2150_v12  ;;  %v359_v56 = vld [vmem:[%s12020_s28 + $0x88] sm:$0xff] }
  0x74   : > { %v2440_v25 = vld [vmem:[#allocation2 + $0x2c] sm:$0xf]  ;;  %v950_v59 = vor.u32 %v948_v43, %v947_v48  ;;  %v952_v60 = vrot.slane %v947_v48, 4  ;;  %2163 = vst [vmem:[#allocation2 + $0x3c] sm:$0xf] %v2162_v3  ;;  %v963_v20 = vshrl.u32 %v10642_v10, 16 }
  0x75   : > { %v2439_v24 = vld [vmem:[#allocation2 + $0x28] sm:$0xf]  ;;  %v12086_v45 = vld [vmem:[#allocation2 + $0x30] sm:$0xff]   ;;  %v959_v9 = vor.u32 %v957_v54, %v12096_v61  ;;  %2164 = vst.msk [vmem:[#allocation2 + $0x40] sm:$0xf] %vm170_vm0, %v942_v2  ;;  %v966_v21 = vshll.u32 %v10642_v10, 16 }
  0x76   : > { %v12073_v31 = vcombine.low %v2439_v24, %v2440_v25  ;;  %v3473_v58 = vshll.u32 %v12086_v45, 16  ;;  %v951_v7 = vsel %vm12032_vm6, %v943_v53, %v950_v59  ;;  %v971_v22 = vshrl.u32 %v10643_v13, 16  ;;  %v2158_v54 = vld [vmem:[#allocation2 + $0x38] sm:$0x1] }
  0x77   : > { %2165 = vst.msk [vmem:[#allocation2 + $0x44] sm:$0xf] %vm170_vm0, %v951_v7  ;;  %v960_v19 = vsel %vm12032_vm6, %v952_v60, %v959_v9  ;;  %v974_v23 = vshll.u32 %v10643_v13, 16  ;;  %v980_v24 = vshrl.u32 %v10644_v14, 16  ;;  %v965_v30 = vrot.slane %v963_v20, 7 }
  0x78   : > { %17149 = vst [vmem:[#allocation7_spill] sm:$0xff] %v12073_v31  ;;  %v3466_v40 = vshrl.u32 %v12073_v31, 16  ;;  %v3468_v41 = vshll.u32 %v12073_v31, 16  ;;  %v12106_v5 = vrot.slane %v3473_v58, 1  ;;  %v2435_v6 = vld [vmem:[#allocation2 + $0x14] sm:$0xf]  ;;  %v10647_v14 = vpack.c.bf16 %v359_v56, %v359_v56 }
  0x79   : > { %v2436_v11 = vld [vmem:[#allocation2 + $0x18] sm:$0xf]  ;;  %v11018_v18 = vld [vmem:[#allocation2 + $0x1c] sm:$0xff]   ;;  %2166 = vst.msk [vmem:[#allocation2 + $0x48] sm:$0xf] %vm170_vm0, %v960_v19  ;;  %v973_v32 = vrot.slane %v971_v22, 7  ;;  %v968_v44 = vor.u32 %v966_v21, %v965_v30 }
  0x7a   : > { %v3470_v50 = vrot.slane %v3468_v41, 1  ;;  %v12119_v17 = vcombine.low %v2435_v6, %v2436_v11  ;;  %v3453_v27 = vshll.u32 %v11018_v18, 16  ;;  %v3457_v29 = vshrl.u32 %v11018_v18, 16  ;;  %v358_v41 = vld [vmem:[%s12020_s28 + $0x80] sm:$0xff]  ;;  %v361_v11 = vld [vmem:[%s12020_s28 + $0x98] sm:$0xff] }
  0x7b   : > { %v982_v33 = vrot.slane %v980_v24, 7  ;;  %v989_v39 = vshrl.u32 %v12115_v15, 16  ;;  %v2443_v42 = vld [vmem:[#allocation2 + $0x3c] sm:$0xf]  ;;  %v969_v46 = vrot.slane %v965_v30, 4  ;;  %v976_v47 = vor.u32 %v974_v23, %v973_v32  ;;  %v362_v23 = vld [vmem:[%s12020_s28 + $0xa0] sm:$0xff] }
  0x7c   : > { %v3471_v1 = vor.u32 %v3470_v50, %v3466_v40  ;;  %17152 = vst [vmem:[#allocation8_spill] sm:$0xff] %v12119_v17  ;;  %v3446_v25 = vshrl.u32 %v12119_v17, 16  ;;  %v3448_v26 = vshll.u32 %v12119_v17, 16  ;;  %v3455_v38 = vrot.slane %v3453_v27, 1  ;;  %v2444_v43 = vld [vmem:[#allocation2 + $0x40] sm:$0xf] }
  0x7d   : > { %v992_v40 = vshll.u32 %v12115_v15, 16  ;;  %v978_v48 = vrot.slane %v973_v32, 4  ;;  %v12130_v50 = vcombine.low %v2443_v42, %v2444_v43  ;;  %v985_v53 = vor.u32 %v983_v34, %v982_v33  ;;  %v11021_v58 = vld [vmem:[#allocation2 + $0x24] ss:$0 sps:$4 sm:$0x11]   ;;  %v363_v24 = vld [vmem:[%s12020_s28 + $0xa8] sm:$0xff] }
  0x7e   : > { %v3476_v16 = vsel %vm3424_vm2, %v3471_v1, %v12106_v5  ;;  %v3450_v37 = vrot.slane %v3448_v26, 1  ;;  %v3459_v51 = vor.u32 %v3457_v29, %v3455_v38  ;;  %v977_v59 = vsel %vm12032_vm6, %v969_v46, %v976_v47  ;;  %v2179_v34 = vld [vmem:[#allocation2 + $0x64] sm:$0xf]  ;;  %v364_v47 = vld [vmem:[%s12020_s28 + $0xb0] sm:$0xff] }
  0x7f   : > { %4073 = vrot.lane.b32.xlu0 %v3476_v16, %s11595_s29  ;;  %17153 = vst [vmem:[#allocation9_spill] sm:$0xff] %v12130_v50  ;;  %v987_v60 = vrot.slane %v982_v33, 4  ;;  %v2171_v62 = vsel %vm12038_vm7, %v968_v44, %v2170_v35  ;;  %v10646_v63 = vpack.c.bf16 %v358_v41, %v358_v41  ;;  %v3486_v2 = vshrl.u32 %v12130_v50, 16  ;;  %2173 = vst.msk [vmem:[#allocation2 + $0x54] sm:$0xf] %vm170_vm0, %v977_v59 }
  0x80   : > { %v3451_v49 = vor.u32 %v3450_v37, %v3446_v25  ;;  %v12139_v1 = vld [vmem:[#allocation2 + $0x44] sm:$0xff]   ;;  %v3488_v3 = vshll.u32 %v12130_v50, 16  ;;  %v986_v4 = vsel %vm12032_vm6, %v978_v48, %v985_v53  ;;  %2172 = vst [vmem:[#allocation2 + $0x50] sm:$0xf] %v2171_v62  ;;  %v3461_v6 = vshll.u32 %v11021_v58, 16 }
  0x81   : > { %v12147_v7 = vrot.slane %v989_v39, 7  ;;  %2174 = vst.msk [vmem:[#allocation2 + $0x58] sm:$0xf] %vm170_vm0, %v986_v4  ;;  %v926_v9 = vrot.slane %v12052_v52, 4  ;;  %v3477_v10 = vshrl.u32 %v12086_v45, 16  ;;  %v3493_v13 = vshll.u32 %v12139_v1, 16 }
  0x82   : > { %v3456_v0 = vsel %vm3424_vm2, %v3451_v49, %v3455_v38  ;;  %v3490_v12 = vrot.slane %v3488_v3, 1  ;;  %v10648_v15 = vpack.c.bf16 %v360_v57, %v360_v57  ;;  %v3463_v16 = vrot.slane %v3461_v6, 1  ;;  %v2167_v59 = vld [vmem:[#allocation2 + $0x4c] sm:$0x1] }
  0x83   : > { %4069 = vrot.lane.b32.xlu1 %v3456_v0, %s11595_s29  ;;  %v994_v18 = vor.u32 %v992_v40, %v12147_v7  ;;  %v2159_v19 = vsel %vm12090_vm8, %v926_v9, %v2158_v54  ;;  %v12158_v20 = vor.u32 %v3477_v10, %v12106_v5  ;;  %v3495_v21 = vrot.slane %v3493_v13, 1 }
  0x84   : > { %v3491_v52 = vor.u32 %v3490_v12, %v3486_v2  ;;  %2160 = vst [vmem:[#allocation2 + $0x38] sm:$0x1] %v2159_v19  ;;  %v10649_v45 = vpack.c.bf16 %v361_v11, %v361_v11  ;;  %v998_v22 = vshrl.u32 %v10646_v63, 16  ;;  %v3464_v25 = vsel %vm3424_vm2, %v3459_v51, %v3463_v16 }
  0x85   : > { %v995_v26 = vsel %vm12032_vm6, %v987_v60, %v994_v18  ;;  %v1001_v27 = vshll.u32 %v10646_v63, 16  ;;  %v1006_v29 = vshrl.u32 %v10647_v14, 16  ;;  %v1009_v32 = vshll.u32 %v10647_v14, 16  ;;  %v365_v60 = vld [vmem:[%s12020_s28 + $0xb8] sm:$0xff] }
  0x86   : > { %v3496_v30 = vsel %vm3424_vm2, %v3491_v52, %v3495_v21  ;;  %2175 = vst.msk [vmem:[#allocation2 + $0x5c] sm:$0xf] %vm170_vm0, %v995_v26  ;;  %v1000_v5 = vrot.slane %v998_v22, 7  ;;  %v1015_v33 = vshrl.u32 %v10648_v15, 16  ;;  %v2448_v37 = vld [vmem:[#allocation2 + $0x54] sm:$0xf]  ;;  %v10650_v40 = vpack.c.bf16 %v362_v23, %v362_v23 }
  0x87   : > { %4071 = vrot.lane.b32.xlu1 %v3464_v25, %s11595_s29  ;;  %4077 = vrot.lane.b32.xlu0 %v3496_v30, %s11595_s29  ;;  %v2447_v35 = vld [vmem:[#allocation2 + $0x50] sm:$0xf]  ;;  %v1008_v38 = vrot.slane %v1006_v29, 7  ;;  %v1018_v39 = vshll.u32 %v10648_v15, 16  ;;  %v12169_v41 = vpack.c.bf16 %v363_v24, %v363_v24  ;;  %v1024_v51 = vshrl.u32 %v10649_v45, 16 }
  0x88   : > { %v12171_v42 = vcombine.low %v2447_v35, %v2448_v37  ;;  %v1003_v43 = vor.u32 %v1001_v27, %v1000_v5  ;;  %v1004_v44 = vrot.slane %v1000_v5, 4  ;;  %v1017_v46 = vrot.slane %v1015_v33, 7  ;;  %v2188_v27 = vld [vmem:[#allocation2 + $0x78] sm:$0xf]  ;;  %v2176_v37 = vld [vmem:[#allocation2 + $0x60] sm:$0x1] }
  0x89   : > { %v1011_v48 = vor.u32 %v1009_v32, %v1008_v38  ;;  %v1013_v49 = vrot.slane %v1008_v38, 4  ;;  %v1027_v53 = vshll.u32 %v10649_v45, 16  ;;  %v12179_v0 = vrot.slane %v1024_v51, 7  ;;  %v366_v38 = vld [vmem:[%s12020_s28 + $0xc0] sm:$0xff]  ;;  %v367_v51 = vld [vmem:[%s12020_s28 + $0xc8] sm:$0xff] }
  0x8a   : > { %17154 = vst [vmem:[#allocation10_spill] sm:$0xff] %v12171_v42  ;;  %v3506_v54 = vshrl.u32 %v12171_v42, 16  ;;  %v3508_v56 = vshll.u32 %v12171_v42, 16  ;;  %v1020_v57 = vor.u32 %v1018_v39, %v1017_v46  ;;  %v1022_v58 = vrot.slane %v1017_v46, 4 }
  0x8b   : > { %v11024_v62 = vld [vmem:[#allocation2 + $0x38] ss:$0 sps:$4 sm:$0x11]   ;;  %v1012_v63 = vsel %vm12032_vm6, %v1004_v44, %v1011_v48  ;;  %v2180_v2 = vsel %vm12038_vm7, %v1003_v43, %v2179_v34  ;;  %v10652_v3 = vpack.c.bf16 %v364_v47, %v364_v47  ;;  %v961_v9 = vrot.slane %v12096_v61, 4 }
  0x8c   : > { %v3510_v4 = vrot.slane %v3508_v56, 1  ;;  %v1021_v6 = vsel %vm12032_vm6, %v1013_v49, %v1020_v57  ;;  %2181 = vst [vmem:[#allocation2 + $0x64] sm:$0xf] %v2180_v2  ;;  %2182 = vst.msk [vmem:[#allocation2 + $0x68] sm:$0xf] %vm170_vm0, %v1012_v63  ;;  %v3497_v10 = vshrl.u32 %v12139_v1, 16  ;;  %v1029_v13 = vor.u32 %v1027_v53, %v12179_v0 }
  0x8d   : > { %v11023_v11 = vld [vmem:[#allocation2 + $0x58] sm:$0xff]   ;;  %v3481_v12 = vshll.u32 %v11024_v62, 16  ;;  %2183 = vst.msk [vmem:[#allocation2 + $0x6c] sm:$0xf] %vm170_vm0, %v1021_v6  ;;  %v10653_v14 = vpack.c.bf16 %v365_v60, %v365_v60  ;;  %v1033_v15 = vshrl.u32 %v10650_v40, 16  ;;  %v2168_v18 = vsel %vm12090_vm8, %v961_v9, %v2167_v59  ;;  %v368_v53 = vld [vmem:[%s12020_s28 + $0xd0] sm:$0xff] }
  0x8e   : > { %v3511_v16 = vor.u32 %v3510_v4, %v3506_v54  ;;  %v12192_v19 = vor.u32 %v3497_v10, %v3495_v21  ;;  %v1036_v52 = vshll.u32 %v10650_v40, 16  ;;  %v3513_v45 = vshll.u32 %v11023_v11, 16  ;;  %2169 = vst [vmem:[#allocation2 + $0x4c] sm:$0x1] %v2168_v18  ;;  %v370_v59 = vld [vmem:[%s12020_s28 + $0xe0] sm:$0xff] }
  0x8f   : > { %v3483_v22 = vrot.slane %v3481_v12, 1  ;;  %v1030_v61 = vsel %vm12032_vm6, %v1022_v58, %v1029_v13  ;;  %v1035_v1 = vrot.slane %v1033_v15, 7  ;;  %v1041_v23 = vshrl.u32 %v12169_v41, 16 }
  0x90   : > { %2184 = vst.msk [vmem:[#allocation2 + $0x70] sm:$0xf] %vm170_vm0, %v1030_v61  ;;  %v1044_v24 = vshll.u32 %v12169_v41, 16  ;;  %v1050_v25 = vshrl.u32 %v10652_v3, 16  ;;  %v1053_v26 = vshll.u32 %v10652_v3, 16  ;;  %v3515_v21 = vrot.slane %v3513_v45, 1 }
  0x91   : > { %v3484_v29 = vsel %vm3424_vm2, %v12158_v20, %v3483_v22  ;;  %v1038_v30 = vor.u32 %v1036_v52, %v1035_v1  ;;  %v1039_v5 = vrot.slane %v1035_v1, 4  ;;  %v1043_v32 = vrot.slane %v1041_v23, 7 }
  0x92   : > { %4075 = vrot.lane.b32.xlu1 %v3484_v29, %s11595_s29  ;;  %v1052_v33 = vrot.slane %v1050_v25, 7  ;;  %v1059_v34 = vshrl.u32 %v10653_v14, 16  ;;  %v1062_v35 = vshll.u32 %v10653_v14, 16  ;;  %v3516_v39 = vsel %vm3424_vm2, %v3511_v16, %v3515_v21 }
  0x93   : > { %v2451_v40 = vld [vmem:[#allocation2 + $0x64] sm:$0xf]  ;;  %v2452_v41 = vld [vmem:[#allocation2 + $0x68] sm:$0xf]  ;;  %v2189_v20 = vsel %vm12038_vm7, %v1038_v30, %v2188_v27  ;;  %v996_v43 = vrot.slane %v12147_v7, 4  ;;  %v3517_v44 = vshrl.u32 %v11023_v11, 16  ;;  %4081 = vrot.lane.b32.xlu0 %v3516_v39, %s11595_s29  ;;  %v1046_v47 = vor.u32 %v1044_v24, %v1043_v32 }
  0x94   : > { %v12208_v46 = vcombine.low %v2451_v40, %v2452_v41  ;;  %v1048_v48 = vrot.slane %v1043_v32, 4  ;;  %v1055_v49 = vor.u32 %v1053_v26, %v1052_v33  ;;  %2190 = vst [vmem:[#allocation2 + $0x78] sm:$0xf] %v2189_v20  ;;  %v1057_v54 = vrot.slane %v1052_v33, 4  ;;  %v369_v7 = vld [vmem:[%s12020_s28 + $0xd8] sm:$0xff] }
  0x95   : > { %v12212_v56 = vrot.slane %v1059_v34, 7  ;;  %v2177_v57 = vsel %vm12090_vm8, %v996_v43, %v2176_v37  ;;  %v12216_v58 = vor.u32 %v3517_v44, %v3515_v21  ;;  %v1047_v63 = vsel %vm12032_vm6, %v1039_v5, %v1046_v47  ;;  %v11027_v4 = vld [vmem:[#allocation2 + $0x4c] ss:$0 sps:$4 sm:$0x11]   ;;  %v2185_v21 = vld [vmem:[#allocation2 + $0x74] sm:$0x1] }
  0x96   : > { %17155 = vst [vmem:[#allocation11_spill] sm:$0xff] %v12208_v46  ;;  %v3526_v60 = vshrl.u32 %v12208_v46, 16  ;;  %v3528_v62 = vshll.u32 %v12208_v46, 16  ;;  %v1056_v2 = vsel %vm12032_vm6, %v1048_v48, %v1055_v49  ;;  %2178 = vst [vmem:[#allocation2 + $0x60] sm:$0x1] %v2177_v57  ;;  %v10654_v9 = vpack.c.bf16 %v366_v38, %v366_v38 }
  0x97   : > { %v12226_v3 = vld [vmem:[#allocation2 + $0x6c] sm:$0xff]   ;;  %v1064_v6 = vor.u32 %v1062_v35, %v12212_v56  ;;  %2191 = vst.msk [vmem:[#allocation2 + $0x7c] sm:$0xf] %vm170_vm0, %v1047_v63  ;;  %2192 = vst.msk [vmem:[#allocation2 + $0x80] sm:$0xf] %vm170_vm0, %v1056_v2  ;;  %v10655_v10 = vpack.c.bf16 %v367_v51, %v367_v51  ;;  %v10656_v11 = vpack.c.bf16 %v368_v53, %v368_v53  ;;  %v1031_v14 = vrot.slane %v12179_v0, 4 }
  0x98   : > { %v3530_v12 = vrot.slane %v3528_v62, 1  ;;  %v10657_v13 = vpack.c.bf16 %v369_v7, %v369_v7  ;;  %v12232_v15 = vpack.c.bf16 %v370_v59, %v370_v59  ;;  %v3533_v16 = vshll.u32 %v12226_v3, 16  ;;  %v2197_v24 = vld [vmem:[#allocation2 + $0x8c] sm:$0xf]  ;;  %v372_v53 = vld [vmem:[%s12020_s28 + $0xf0] sm:$0xff] }
  0x99   : > { %v3501_v18 = vshll.u32 %v11027_v4, 16  ;;  %v1065_v52 = vsel %vm12032_vm6, %v1057_v54, %v1064_v6  ;;  %v1068_v45 = vshrl.u32 %v10654_v9, 16  ;;  %v1071_v61 = vshll.u32 %v10654_v9, 16  ;;  %v371_v51 = vld [vmem:[%s12020_s28 + $0xe8] sm:$0xff]  ;;  %v373_v54 = vld [vmem:[%s12020_s28 + $0xf8] sm:$0xff] }
  0x9a   : > { %v3531_v22 = vor.u32 %v3530_v12, %v3526_v60  ;;  %2193 = vst.msk [vmem:[#allocation2 + $0x84] sm:$0xf] %vm170_vm0, %v1065_v52  ;;  %v1076_v1 = vshrl.u32 %v10655_v10, 16  ;;  %v1079_v23 = vshll.u32 %v10655_v10, 16  ;;  %v3535_v25 = vrot.slane %v3533_v16, 1  ;;  %v375_v52 = vld [vmem:[%s12020_s28 + $0x108] sm:$0xff] }
  0x9b   : > { %v3503_v26 = vrot.slane %v3501_v18, 1  ;;  %v1070_v27 = vrot.slane %v1068_v45, 7  ;;  %v1085_v0 = vshrl.u32 %v10656_v11, 16  ;;  %v2455_v29 = vld [vmem:[#allocation2 + $0x78] sm:$0xf]  ;;  %v1088_v5 = vshll.u32 %v10656_v11, 16 }
  0x9c   : > { %v1078_v30 = vrot.slane %v1076_v1, 7  ;;  %v1094_v32 = vshrl.u32 %v10657_v13, 16  ;;  %v1097_v33 = vshll.u32 %v10657_v13, 16  ;;  %v3536_v34 = vsel %vm3424_vm2, %v3531_v22, %v3535_v25  ;;  %v376_v45 = vld [vmem:[%s12020_s28 + $0x110] sm:$0xff] }
  0x9d   : > { %v3504_v35 = vsel %vm3424_vm2, %v12192_v19, %v3503_v26  ;;  %v11030_v37 = vld [vmem:[#allocation2 + $0x60] ss:$0 sps:$4 sm:$0x11]   ;;  %v1073_v38 = vor.u32 %v1071_v61, %v1070_v27  ;;  %v1074_v39 = vrot.slane %v1070_v27, 4  ;;  %4085 = vrot.lane.b32.xlu0 %v3536_v34, %s11595_s29  ;;  %v1087_v43 = vrot.slane %v1085_v0, 7 }
  0x9e   : > { %4079 = vrot.lane.b32.xlu1 %v3504_v35, %s11595_s29  ;;  %v2456_v40 = vld [vmem:[#allocation2 + $0x7c] sm:$0xf]  ;;  %v1081_v41 = vor.u32 %v1079_v23, %v1078_v30  ;;  %v1083_v20 = vrot.slane %v1078_v30, 4  ;;  %v2186_v44 = vsel %vm12090_vm8, %v1031_v14, %v2185_v21  ;;  %v3521_v19 = vshll.u32 %v11030_v37, 16  ;;  %v2206_v35 = vld [vmem:[#allocation2 + $0xa0] sm:$0xf] }
  0x9f   : > { %v12245_v47 = vcombine.low %v2455_v29, %v2456_v40  ;;  %v12247_v48 = vrot.slane %v1094_v32, 7  ;;  %v2198_v49 = vsel %vm12038_vm7, %v1073_v38, %v2197_v24  ;;  %2187 = vst [vmem:[#allocation2 + $0x74] sm:$0x1] %v2186_v44  ;;  %v1090_v7 = vor.u32 %v1088_v5, %v1087_v43 }
  0xa0   : > { %v1082_v57 = vsel %vm12032_vm6, %v1074_v39, %v1081_v41  ;;  %v1092_v59 = vrot.slane %v1087_v43, 4  ;;  %2199 = vst [vmem:[#allocation2 + $0x8c] sm:$0xf] %v2198_v49  ;;  %v3537_v60 = vshrl.u32 %v12226_v3, 16  ;;  %v3523_v4 = vrot.slane %v3521_v19, 1  ;;  %v374_v3 = vld [vmem:[%s12020_s28 + $0x100] sm:$0xff] }
  0xa1   : > { %17156 = vst [vmem:[#allocation12_spill] sm:$0xff] %v12245_v47  ;;  %v12257_v62 = vld [vmem:[#allocation2 + $0x80] sm:$0xff]   ;;  %v3546_v63 = vshrl.u32 %v12245_v47, 16  ;;  %v3548_v2 = vshll.u32 %v12245_v47, 16  ;;  %v1099_v6 = vor.u32 %v1097_v33, %v12247_v48  ;;  %2200 = vst.msk [vmem:[#allocation2 + $0x90] sm:$0xf] %vm170_vm0, %v1082_v57  ;;  %v1091_v9 = vsel %vm12032_vm6, %v1083_v20, %v1090_v7 }
  0xa2   : > { %v3539_v10 = vor.u32 %v3537_v60, %v3535_v25  ;;  %v10659_v11 = vpack.c.bf16 %v371_v51, %v371_v51  ;;  %v10660_v12 = vpack.c.bf16 %v372_v53, %v372_v53  ;;  %v3553_v14 = vshll.u32 %v12257_v62, 16  ;;  %2201 = vst.msk [vmem:[#allocation2 + $0x94] sm:$0xf] %vm170_vm0, %v1091_v9  ;;  %v2194_v49 = vld [vmem:[#allocation2 + $0x88] sm:$0x1]  ;;  %v377_v51 = vld [vmem:[%s12020_s28 + $0x118] sm:$0xff] }
  0xa3   : > { %v3550_v13 = vrot.slane %v3548_v2, 1  ;;  %v3524_v16 = vsel %vm3424_vm2, %v12216_v58, %v3523_v4  ;;  %v1100_v18 = vsel %vm12032_vm6, %v1092_v59, %v1099_v6  ;;  %v10661_v22 = vpack.c.bf16 %v373_v54, %v373_v54 }
  0xa4   : > { %4083 = vrot.lane.b32.xlu1 %v3524_v16, %s11595_s29  ;;  %2202 = vst.msk [vmem:[#allocation2 + $0x98] sm:$0xf] %vm170_vm0, %v1100_v18  ;;  %v1103_v61 = vshrl.u32 %v12232_v15, 16  ;;  %v1106_v1 = vshll.u32 %v12232_v15, 16  ;;  %v1111_v23 = vshrl.u32 %v10659_v11, 16  ;;  %v3555_v25 = vrot.slane %v3553_v14, 1 }
  0xa5   : > { %v3551_v24 = vor.u32 %v3550_v13, %v3546_v63  ;;  %v1114_v58 = vshll.u32 %v10659_v11, 16  ;;  %v1120_v26 = vshrl.u32 %v10660_v12, 16  ;;  %v12278_v21 = vpack.c.bf16 %v374_v3, %v374_v3 }
  0xa6   : > { %v11033_v27 = vld [vmem:[#allocation2 + $0x74] ss:$0 sps:$4 sm:$0x11]   ;;  %v1105_v0 = vrot.slane %v1103_v61, 7  ;;  %v12280_v29 = vpack.c.bf16 %v375_v52, %v375_v52  ;;  %v12282_v30 = vpack.c.bf16 %v376_v45, %v376_v45  ;;  %v1113_v33 = vrot.slane %v1111_v23, 7 }
  0xa7   : > { %v3556_v5 = vsel %vm3424_vm2, %v3551_v24, %v3555_v25  ;;  %v2459_v32 = vld [vmem:[#allocation2 + $0x8c] sm:$0xf]  ;;  %v1122_v34 = vrot.slane %v1120_v26, 7  ;;  %v1123_v15 = vshll.u32 %v10660_v12, 16  ;;  %v3541_v38 = vshll.u32 %v11033_v27, 16 }
  0xa8   : > { %4089 = vrot.lane.b32.xlu0 %v3556_v5, %s11595_s29  ;;  %v2460_v37 = vld [vmem:[#allocation2 + $0x90] sm:$0xf]  ;;  %v1108_v39 = vor.u32 %v1106_v1, %v1105_v0  ;;  %v1109_v40 = vrot.slane %v1105_v0, 4  ;;  %v1129_v41 = vshrl.u32 %v10661_v22, 16  ;;  %v1116_v43 = vor.u32 %v1114_v58, %v1113_v33  ;;  %v2215_v23 = vld [vmem:[#allocation2 + $0xb4] sm:$0xf] }
  0xa9   : > { %v12286_v20 = vcombine.low %v2459_v32, %v2460_v37  ;;  %v1118_v44 = vrot.slane %v1113_v33, 4  ;;  %v1125_v19 = vor.u32 %v1123_v15, %v1122_v34  ;;  %v3543_v53 = vrot.slane %v3541_v38, 1  ;;  %v379_v37 = vld [vmem:[%s12020_s28 + $0x128] sm:$0xff]  ;;  %v380_v38 = vld [vmem:[%s12020_s28 + $0x130] sm:$0xff] }
  0xaa   : > { %v1127_v54 = vrot.slane %v1122_v34, 4  ;;  %v12289_v57 = vrot.slane %v1129_v41, 7  ;;  %v1132_v7 = vshll.u32 %v10661_v22, 16  ;;  %v1117_v2 = vsel %vm12032_vm6, %v1109_v40, %v1116_v43 }
  0xab   : > { %17157 = vst [vmem:[#allocation13_spill] sm:$0xff] %v12286_v20  ;;  %v12291_v59 = vld [vmem:[#allocation2 + $0x94] sm:$0xff]   ;;  %v3566_v60 = vshrl.u32 %v12286_v20, 16  ;;  %v3568_v63 = vshll.u32 %v12286_v20, 16  ;;  %v1126_v4 = vsel %vm12032_vm6, %v1118_v44, %v1125_v19  ;;  %v3544_v6 = vsel %vm3424_vm2, %v3539_v10, %v3543_v53  ;;  %2209 = vst.msk [vmem:[#allocation2 + $0xa4] sm:$0xf] %vm170_vm0, %v1117_v2 }
  0xac   : > { %v1134_v9 = vor.u32 %v1132_v7, %v12289_v57  ;;  %v2207_v11 = vsel %vm12038_vm7, %v1108_v39, %v2206_v35  ;;  %2210 = vst.msk [vmem:[#allocation2 + $0xa8] sm:$0xf] %vm170_vm0, %v1126_v4  ;;  %v1066_v12 = vrot.slane %v12212_v56, 4  ;;  %v3573_v13 = vshll.u32 %v12291_v59, 16  ;;  %4087 = vrot.lane.b32.xlu1 %v3544_v6, %s11595_s29  ;;  %v378_v56 = vld [vmem:[%s12020_s28 + $0x120] sm:$0xff] }
  0xad   : > { %v3570_v3 = vrot.slane %v3568_v63, 1  ;;  %2208 = vst [vmem:[#allocation2 + $0xa0] sm:$0xf] %v2207_v11  ;;  %v3557_v10 = vshrl.u32 %v12257_v62, 16  ;;  %v10665_v14 = vpack.c.bf16 %v377_v51, %v377_v51  ;;  %v1138_v52 = vshrl.u32 %v12278_v21, 16 }
  0xae   : > { %v1135_v16 = vsel %vm12032_vm6, %v1127_v54, %v1134_v9  ;;  %v2195_v18 = vsel %vm12090_vm8, %v1066_v12, %v2194_v49  ;;  %v1141_v45 = vshll.u32 %v12278_v21, 16  ;;  %v3575_v61 = vrot.slane %v3573_v13, 1  ;;  %v2413_v20 = vld [vmem:[#allocation2 + $0x26c] sm:$0xf] }
  0xaf   : > { %v3571_v22 = vor.u32 %v3570_v3, %v3566_v60  ;;  %2211 = vst.msk [vmem:[#allocation2 + $0xac] sm:$0xf] %vm170_vm0, %v1135_v16  ;;  %2196 = vst [vmem:[#allocation2 + $0x88] sm:$0x1] %v2195_v18  ;;  %v12317_v1 = vor.u32 %v3557_v10, %v3555_v25  ;;  %v1146_v62 = vshrl.u32 %v12280_v29, 16  ;;  %v1140_v24 = vrot.slane %v1138_v52, 7 }
  0xb0   : > { %v1149_v58 = vshll.u32 %v12280_v29, 16  ;;  %v1155_v26 = vshrl.u32 %v12282_v30, 16  ;;  %v1158_v27 = vshll.u32 %v12282_v30, 16  ;;  %v1164_v5 = vshrl.u32 %v10665_v14, 16  ;;  %v2203_v25 = vld [vmem:[#allocation2 + $0x9c] sm:$0x1] }
  0xb1   : > { %v3576_v0 = vsel %vm3424_vm2, %v3571_v22, %v3575_v61  ;;  %v1148_v21 = vrot.slane %v1146_v62, 7  ;;  %v1167_v32 = vshll.u32 %v10665_v14, 16  ;;  %v1143_v33 = vor.u32 %v1141_v45, %v1140_v24  ;;  %v381_v29 = vld [vmem:[%s12020_s28 + $0x138] sm:$0xff] }
  0xb2   : > { %4093 = vrot.lane.b32.xlu0 %v3576_v0, %s11595_s29  ;;  %v1144_v34 = vrot.slane %v1140_v24, 4  ;;  %v1157_v15 = vrot.slane %v1155_v26, 7  ;;  %v1101_v35 = vrot.slane %v12247_v48, 4  ;;  %v2464_v39 = vld [vmem:[#allocation2 + $0xa4] sm:$0xf]  ;;  %v12329_v30 = vrot.slane %v1164_v5, 7 }
  0xb3   : > { %v1151_v40 = vor.u32 %v1149_v58, %v1148_v21  ;;  %v1153_v41 = vrot.slane %v1148_v21, 4  ;;  %v10666_v43 = vpack.c.bf16 %v378_v56, %v378_v56  ;;  %v2216_v51 = vsel %vm12038_vm7, %v1143_v33, %v2215_v23  ;;  %v2224_v26 = vld [vmem:[#allocation2 + $0xc8] sm:$0xf] }
  0xb4   : > { %v2463_v44 = vld [vmem:[#allocation2 + $0xa0] sm:$0xf]  ;;  %v1160_v19 = vor.u32 %v1158_v27, %v1157_v15  ;;  %v1162_v49 = vrot.slane %v1157_v15, 4  ;;  %v2204_v53 = vsel %vm12090_vm8, %v1101_v35, %v2203_v25  ;;  %v1169_v7 = vor.u32 %v1167_v32, %v12329_v30  ;;  %2217 = vst [vmem:[#allocation2 + $0xb4] sm:$0xf] %v2216_v51 }
  0xb5   : > { %v12335_v54 = vcombine.low %v2463_v44, %v2464_v39  ;;  %v1152_v48 = vsel %vm12032_vm6, %v1144_v34, %v1151_v40  ;;  %2205 = vst [vmem:[#allocation2 + $0x9c] sm:$0x1] %v2204_v53  ;;  %v3577_v60 = vshrl.u32 %v12291_v59, 16  ;;  %v10667_v4 = vpack.c.bf16 %v379_v37, %v379_v37  ;;  %v2212_v15 = vld [vmem:[#allocation2 + $0xb0] sm:$0x1] }
  0xb6   : > { %v12341_v63 = vld [vmem:[#allocation2 + $0xa8] sm:$0xff]   ;;  %v1161_v2 = vsel %vm12032_vm6, %v1153_v41, %v1160_v19  ;;  %2218 = vst.msk [vmem:[#allocation2 + $0xb8] sm:$0xf] %vm170_vm0, %v1152_v48  ;;  %v10668_v6 = vpack.c.bf16 %v380_v38, %v380_v38  ;;  %v10669_v9 = vpack.c.bf16 %v381_v29, %v381_v29  ;;  %v1170_v13 = vsel %vm12032_vm6, %v1162_v49, %v1169_v7 }
  0xb7   : > { %17158 = vst [vmem:[#allocation14_spill] sm:$0xff] %v12335_v54  ;;  %v3586_v11 = vshrl.u32 %v12335_v54, 16  ;;  %v3588_v12 = vshll.u32 %v12335_v54, 16  ;;  %v11036_v3 = vld [vmem:[#allocation2 + $0x88] ss:$0 sps:$4 sm:$0x11]   ;;  %v12351_v59 = vor.u32 %v3577_v60, %v3575_v61 }
  0xb8   : > { %2219 = vst.msk [vmem:[#allocation2 + $0xbc] sm:$0xf] %vm170_vm0, %v1161_v2  ;;  %v3593_v10 = vshll.u32 %v12341_v63, 16  ;;  %2220 = vst.msk [vmem:[#allocation2 + $0xc0] sm:$0xf] %vm170_vm0, %v1170_v13  ;;  %v1173_v14 = vshrl.u32 %v10666_v43, 16 }
  0xb9   : > { %v1176_v16 = vshll.u32 %v10666_v43, 16  ;;  %v1181_v18 = vshrl.u32 %v10667_v4, 16  ;;  %v3590_v52 = vrot.slane %v3588_v12, 1  ;;  %v3561_v45 = vshll.u32 %v11036_v3, 16  ;;  %v383_v60 = vld [vmem:[%s12020_s28 + $0x148] sm:$0xff]  ;;  %v385_v12 = vld [vmem:[%s12020_s28 + $0x158] sm:$0xff] }
  0xba   : > { %v1184_v56 = vshll.u32 %v10667_v4, 16  ;;  %v1190_v22 = vshrl.u32 %v10668_v6, 16  ;;  %v3595_v62 = vrot.slane %v3593_v10, 1  ;;  %v1175_v23 = vrot.slane %v1173_v14, 7 }
  0xbb   : > { %v1183_v24 = vrot.slane %v1181_v18, 7  ;;  %v1193_v58 = vshll.u32 %v10668_v6, 16  ;;  %v3591_v27 = vor.u32 %v3590_v52, %v3586_v11  ;;  %v3563_v0 = vrot.slane %v3561_v45, 1  ;;  %v2467_v5 = vld [vmem:[#allocation2 + $0xb4] sm:$0xf] }
  0xbc   : > { %v1192_v61 = vrot.slane %v1190_v22, 7  ;;  %v1199_v21 = vshrl.u32 %v10669_v9, 16  ;;  %v1178_v32 = vor.u32 %v1176_v16, %v1175_v23  ;;  %v1179_v25 = vrot.slane %v1175_v23, 4  ;;  %v11039_v29 = vld [vmem:[#allocation2 + $0x9c] ss:$0 sps:$4 sm:$0x11]  }
  0xbd   : > { %v1186_v33 = vor.u32 %v1184_v56, %v1183_v24  ;;  %v1188_v34 = vrot.slane %v1183_v24, 4  ;;  %v3596_v35 = vsel %vm3424_vm2, %v3591_v27, %v3595_v62  ;;  %v3564_v37 = vsel %vm3424_vm2, %v12317_v1, %v3563_v0  ;;  %v2468_v38 = vld [vmem:[#allocation2 + $0xb8] sm:$0xf]  ;;  %v382_v1 = vld [vmem:[%s12020_s28 + $0x140] sm:$0xff]  ;;  %v384_v11 = vld [vmem:[%s12020_s28 + $0x150] sm:$0xff] }
  0xbe   : > { %v1195_v39 = vor.u32 %v1193_v58, %v1192_v61  ;;  %v1197_v40 = vrot.slane %v1192_v61, 4  ;;  %4097 = vrot.lane.b32.xlu0 %v3596_v35, %s11595_s29  ;;  %4091 = vrot.lane.b32.xlu1 %v3564_v37, %s11595_s29  ;;  %v12360_v41 = vcombine.low %v2467_v5, %v2468_v38  ;;  %v12364_v44 = vrot.slane %v1199_v21, 7  ;;  %v386_v27 = vld [vmem:[%s12020_s28 + $0x160] sm:$0xff] }
  0xbf   : > { %v1187_v43 = vsel %vm12032_vm6, %v1179_v25, %v1186_v33  ;;  %v1202_v19 = vshll.u32 %v10669_v9, 16  ;;  %v12367_v49 = vld [vmem:[#allocation2 + $0xbc] sm:$0xff]   ;;  %v3581_v51 = vshll.u32 %v11039_v29, 16  ;;  %v2225_v48 = vsel %vm12038_vm7, %v1178_v32, %v2224_v26 }
  0xc0   : > { %17159 = vst [vmem:[#allocation15_spill] sm:$0xff] %v12360_v41  ;;  %v1196_v53 = vsel %vm12032_vm6, %v1188_v34, %v1195_v39  ;;  %2227 = vst.msk [vmem:[#allocation2 + $0xcc] sm:$0xf] %vm170_vm0, %v1187_v43  ;;  %v1136_v7 = vrot.slane %v12289_v57, 4  ;;  %v3606_v2 = vshrl.u32 %v12360_v41, 16  ;;  %v3608_v4 = vshll.u32 %v12360_v41, 16 }
  0xc1   : > { %v1204_v6 = vor.u32 %v1202_v19, %v12364_v44  ;;  %2226 = vst [vmem:[#allocation2 + $0xc8] sm:$0xf] %v2225_v48  ;;  %2228 = vst.msk [vmem:[#allocation2 + $0xd0] sm:$0xf] %vm170_vm0, %v1196_v53  ;;  %v3597_v9 = vshrl.u32 %v12341_v63, 16  ;;  %v3613_v3 = vshll.u32 %v12367_v49, 16  ;;  %v10670_v10 = vpack.c.bf16 %v382_v1, %v382_v1 }
  0xc2   : > { %v3583_v13 = vrot.slane %v3581_v51, 1  ;;  %v2213_v57 = vsel %vm12090_vm8, %v1136_v7, %v2212_v15  ;;  %v3610_v14 = vrot.slane %v3608_v4, 1  ;;  %v10671_v52 = vpack.c.bf16 %v383_v60, %v383_v60  ;;  %v388_v15 = vld [vmem:[%s12020_s28 + $0x170] sm:$0xff]  ;;  %v2233_v51 = vld [vmem:[#allocation2 + $0xdc] sm:$0xf] }
  0xc3   : > { %v1205_v16 = vsel %vm12032_vm6, %v1197_v40, %v1204_v6  ;;  %2214 = vst [vmem:[#allocation2 + $0xb0] sm:$0x1] %v2213_v57  ;;  %v12388_v18 = vor.u32 %v3597_v9, %v3595_v62  ;;  %v12390_v63 = vrot.slane %v3613_v3, 1  ;;  %v10672_v56 = vpack.c.bf16 %v384_v11, %v384_v11  ;;  %v387_v62 = vld [vmem:[%s12020_s28 + $0x168] sm:$0xff]  ;;  %v2221_v53 = vld [vmem:[#allocation2 + $0xc4] sm:$0x1] }
  0xc4   : > { %v3584_v45 = vsel %vm3424_vm2, %v12351_v59, %v3583_v13  ;;  %2229 = vst.msk [vmem:[#allocation2 + $0xd4] sm:$0xf] %vm170_vm0, %v1205_v16  ;;  %v10673_v22 = vpack.c.bf16 %v385_v12, %v385_v12  ;;  %v3611_v23 = vor.u32 %v3610_v14, %v3606_v2  ;;  %v1208_v24 = vshrl.u32 %v10670_v10, 16  ;;  %v389_v48 = vld [vmem:[%s12020_s28 + $0x178] sm:$0xff] }
  0xc5   : > { %4095 = vrot.lane.b32.xlu1 %v3584_v45, %s11595_s29  ;;  %v1211_v58 = vshll.u32 %v10670_v10, 16  ;;  %v1216_v26 = vshrl.u32 %v10671_v52, 16  ;;  %v1219_v0 = vshll.u32 %v10671_v52, 16  ;;  %v1225_v61 = vshrl.u32 %v10672_v56, 16 }
  0xc6   : > { %v1228_v21 = vshll.u32 %v10672_v56, 16  ;;  %v1234_v5 = vshrl.u32 %v10673_v22, 16  ;;  %v3616_v59 = vsel %vm3424_vm2, %v3611_v23, %v12390_v63  ;;  %v1210_v25 = vrot.slane %v1208_v24, 7 }
  0xc7   : > { %v2472_v32 = vld [vmem:[#allocation2 + $0xcc] sm:$0xf]  ;;  %v1218_v33 = vrot.slane %v1216_v26, 7  ;;  %v1237_v34 = vshll.u32 %v10673_v22, 16  ;;  %4101 = vrot.lane.b32.xlu0 %v3616_v59, %s11595_s29  ;;  %v1227_v37 = vrot.slane %v1225_v61, 7  ;;  %v10674_v29 = vpack.c.bf16 %v386_v27, %v386_v27 }
  0xc8   : > { %v2471_v35 = vld [vmem:[#allocation2 + $0xc8] sm:$0xf]  ;;  %v12402_v38 = vrot.slane %v1234_v5, 7  ;;  %v12404_v39 = vpack.c.bf16 %v387_v62, %v387_v62  ;;  %v1213_v43 = vor.u32 %v1211_v58, %v1210_v25  ;;  %v1214_v19 = vrot.slane %v1210_v25, 4  ;;  %v2242_v61 = vld [vmem:[#allocation2 + $0xf0] sm:$0xf] }
  0xc9   : > { %v12406_v40 = vcombine.low %v2471_v35, %v2472_v32  ;;  %v1221_v1 = vor.u32 %v1219_v0, %v1218_v33  ;;  %v1223_v60 = vrot.slane %v1218_v33, 4  ;;  %v1230_v2 = vor.u32 %v1228_v21, %v1227_v37 }
  0xca   : > { %v11042_v7 = vld [vmem:[#allocation2 + $0xb0] ss:$0 sps:$4 sm:$0x11]   ;;  %v1239_v4 = vor.u32 %v1237_v34, %v12402_v38  ;;  %v10676_v6 = vpack.c.bf16 %v388_v15, %v388_v15  ;;  %v1232_v13 = vrot.slane %v1227_v37, 4  ;;  %v2234_v14 = vsel %vm12038_vm7, %v1213_v43, %v2233_v51  ;;  %v391_v43 = vld [vmem:[%s12020_s28 + $0x188] sm:$0xff] }
  0xcb   : > { %17160 = vst [vmem:[#allocation16_spill] sm:$0xff] %v12406_v40  ;;  %v12410_v9 = vld [vmem:[#allocation2 + $0xd0] sm:$0xff]   ;;  %v3626_v11 = vshrl.u32 %v12406_v40, 16  ;;  %v3628_v12 = vshll.u32 %v12406_v40, 16  ;;  %v1222_v3 = vsel %vm12032_vm6, %v1214_v19, %v1221_v1  ;;  %v3601_v57 = vshll.u32 %v11042_v7, 16 }
  0xcc   : > { %v1231_v10 = vsel %vm12032_vm6, %v1223_v60, %v1230_v2  ;;  %2236 = vst.msk [vmem:[#allocation2 + $0xe0] sm:$0xf] %vm170_vm0, %v1222_v3  ;;  %v1171_v16 = vrot.slane %v12329_v30, 4  ;;  %v3633_v45 = vshll.u32 %v12410_v9, 16  ;;  %v1240_v56 = vsel %vm12032_vm6, %v1232_v13, %v1239_v4  ;;  %2235 = vst [vmem:[#allocation2 + $0xdc] sm:$0xf] %v2234_v14 }
  0xcd   : > { %v3630_v52 = vrot.slane %v3628_v12, 1  ;;  %2237 = vst.msk [vmem:[#allocation2 + $0xe4] sm:$0xf] %vm170_vm0, %v1231_v10  ;;  %v3617_v22 = vshrl.u32 %v12367_v49, 16  ;;  %v3603_v23 = vrot.slane %v3601_v57, 1  ;;  %v10677_v58 = vpack.c.bf16 %v389_v48, %v389_v48  ;;  %v392_v4 = vld [vmem:[%s12020_s28 + $0x190] sm:$0xff] }
  0xce   : > { %2238 = vst.msk [vmem:[#allocation2 + $0xe8] sm:$0xf] %vm170_vm0, %v1240_v56  ;;  %v2222_v24 = vsel %vm12090_vm8, %v1171_v16, %v2221_v53  ;;  %v1243_v26 = vshrl.u32 %v10674_v29, 16  ;;  %v3635_v27 = vrot.slane %v3633_v45, 1  ;;  %v1246_v0 = vshll.u32 %v10674_v29, 16 }
  0xcf   : > { %v3631_v30 = vor.u32 %v3630_v52, %v3626_v11  ;;  %2223 = vst [vmem:[#allocation2 + $0xc4] sm:$0x1] %v2222_v24  ;;  %v12431_v62 = vor.u32 %v3617_v22, %v12390_v63  ;;  %v3604_v49 = vsel %vm3424_vm2, %v12388_v18, %v3603_v23  ;;  %v1251_v5 = vshrl.u32 %v12404_v39, 16  ;;  %v390_v63 = vld [vmem:[%s12020_s28 + $0x180] sm:$0xff]  ;;  %v2230_v29 = vld [vmem:[#allocation2 + $0xd8] sm:$0x1] }
  0xd0   : > { %v1245_v21 = vrot.slane %v1243_v26, 7  ;;  %v1254_v59 = vshll.u32 %v12404_v39, 16  ;;  %4099 = vrot.lane.b32.xlu1 %v3604_v49, %s11595_s29  ;;  %v1260_v25 = vshrl.u32 %v10676_v6, 16  ;;  %v1263_v33 = vshll.u32 %v10676_v6, 16 }
  0xd1   : > { %v3636_v32 = vsel %vm3424_vm2, %v3631_v30, %v3635_v27  ;;  %v1269_v34 = vshrl.u32 %v10677_v58, 16  ;;  %v1253_v18 = vrot.slane %v1251_v5, 7  ;;  %v1272_v37 = vshll.u32 %v10677_v58, 16 }
  0xd2   : > { %4105 = vrot.lane.b32.xlu0 %v3636_v32, %s11595_s29  ;;  %v1248_v15 = vor.u32 %v1246_v0, %v1245_v21  ;;  %v1249_v35 = vrot.slane %v1245_v21, 4  ;;  %v1262_v1 = vrot.slane %v1260_v25, 7  ;;  %v1206_v51 = vrot.slane %v12364_v44, 4  ;;  %v393_v44 = vld [vmem:[%s12020_s28 + $0x198] sm:$0xff]  ;;  %v2251_v25 = vld [vmem:[#allocation2 + $0x104] sm:$0xf] }
  0xd3   : > { %v2476_v19 = vld [vmem:[#allocation2 + $0xe0] sm:$0xf]  ;;  %v12442_v39 = vrot.slane %v1269_v34, 7  ;;  %v3637_v53 = vshrl.u32 %v12410_v9, 16  ;;  %v2475_v48 = vld [vmem:[#allocation2 + $0xdc] sm:$0xf]  ;;  %v1256_v7 = vor.u32 %v1254_v59, %v1253_v18  ;;  %v10678_v6 = vpack.c.bf16 %v390_v63, %v390_v63 }
  0xd4   : > { %v1258_v60 = vrot.slane %v1253_v18, 4  ;;  %v2243_v2 = vsel %vm12038_vm7, %v1248_v15, %v2242_v61  ;;  %v12449_v11 = vcombine.low %v2475_v48, %v2476_v19  ;;  %v1265_v3 = vor.u32 %v1263_v33, %v1262_v1  ;;  %v2239_v48 = vld [vmem:[#allocation2 + $0xec] sm:$0x1] }
  0xd5   : > { %v12451_v12 = vld [vmem:[#allocation2 + $0xe4] sm:$0xff]   ;;  %v1267_v13 = vrot.slane %v1262_v1, 4  ;;  %v1274_v57 = vor.u32 %v1272_v37, %v12442_v39  ;;  %2244 = vst [vmem:[#allocation2 + $0xf0] sm:$0xf] %v2243_v2  ;;  %v1257_v9 = vsel %vm12032_vm6, %v1249_v35, %v1256_v7  ;;  %v2231_v14 = vsel %vm12090_vm8, %v1206_v51, %v2230_v29 }
  0xd6   : > { %17161 = vst [vmem:[#allocation17_spill] sm:$0xff] %v12449_v11  ;;  %v11045_v10 = vld [vmem:[#allocation2 + $0xc4] ss:$0 sps:$4 sm:$0x11]   ;;  %v12459_v16 = vor.u32 %v3637_v53, %v3635_v27  ;;  %v10679_v52 = vpack.c.bf16 %v391_v43, %v391_v43  ;;  %v3646_v45 = vshrl.u32 %v12449_v11, 16  ;;  %v3648_v56 = vshll.u32 %v12449_v11, 16 }
  0xd7   : > { %v3653_v22 = vshll.u32 %v12451_v12, 16  ;;  %v1266_v23 = vsel %vm12032_vm6, %v1258_v60, %v1265_v3  ;;  %2245 = vst.msk [vmem:[#allocation2 + $0xf4] sm:$0xf] %vm170_vm0, %v1257_v9  ;;  %2232 = vst [vmem:[#allocation2 + $0xd8] sm:$0x1] %v2231_v14  ;;  %v3621_v24 = vshll.u32 %v11045_v10, 16  ;;  %v1275_v58 = vsel %vm12032_vm6, %v1267_v13, %v1274_v57 }
  0xd8   : > { %2246 = vst.msk [vmem:[#allocation2 + $0xf8] sm:$0xf] %vm170_vm0, %v1266_v23  ;;  %v10680_v26 = vpack.c.bf16 %v392_v4, %v392_v4  ;;  %v10681_v30 = vpack.c.bf16 %v393_v44, %v393_v44  ;;  %v3650_v27 = vrot.slane %v3648_v56, 1  ;;  %2247 = vst.msk [vmem:[#allocation2 + $0xfc] sm:$0xf] %vm170_vm0, %v1275_v58  ;;  %v1278_v61 = vshrl.u32 %v10678_v6, 16 }
  0xd9   : > { %v3655_v0 = vrot.slane %v3653_v22, 1  ;;  %v1281_v49 = vshll.u32 %v10678_v6, 16  ;;  %v3623_v21 = vrot.slane %v3621_v24, 1  ;;  %v1286_v5 = vshrl.u32 %v10679_v52, 16  ;;  %v394_v7 = vld [vmem:[%s12020_s28 + $0x1a0] sm:$0xff]  ;;  %v395_v60 = vld [vmem:[%s12020_s28 + $0x1a8] sm:$0xff] }
  0xda   : > { %v1289_v59 = vshll.u32 %v10679_v52, 16  ;;  %v1295_v32 = vshrl.u32 %v10680_v26, 16  ;;  %v3651_v33 = vor.u32 %v3650_v27, %v3646_v45  ;;  %v1280_v34 = vrot.slane %v1278_v61, 7  ;;  %v396_v13 = vld [vmem:[%s12020_s28 + $0x1b0] sm:$0xff]  ;;  %v397_v23 = vld [vmem:[%s12020_s28 + $0x1b8] sm:$0xff] }
  0xdb   : > { %v1298_v63 = vshll.u32 %v10680_v26, 16  ;;  %v1304_v15 = vshrl.u32 %v10681_v30, 16  ;;  %v3624_v35 = vsel %vm3424_vm2, %v12431_v62, %v3623_v21  ;;  %v1288_v37 = vrot.slane %v1286_v5, 7 }
  0xdc   : > { %v2479_v18 = vld [vmem:[#allocation2 + $0xf0] sm:$0xf]  ;;  %v1297_v29 = vrot.slane %v1295_v32, 7  ;;  %v1307_v43 = vshll.u32 %v10681_v30, 16  ;;  %v3656_v19 = vsel %vm3424_vm2, %v3651_v33, %v3655_v0  ;;  %4103 = vrot.lane.b32.xlu1 %v3624_v35, %s11595_s29  ;;  %v1283_v1 = vor.u32 %v1281_v49, %v1280_v34 }
  0xdd   : > { %v1284_v51 = vrot.slane %v1280_v34, 4  ;;  %v12475_v53 = vrot.slane %v1304_v15, 7  ;;  %4109 = vrot.lane.b32.xlu0 %v3656_v19, %s11595_s29  ;;  %v1291_v62 = vor.u32 %v1289_v59, %v1288_v37  ;;  %v1293_v4 = vrot.slane %v1288_v37, 4 }
  0xde   : > { %v2480_v2 = vld [vmem:[#allocation2 + $0xf4] sm:$0xf]  ;;  %v1300_v6 = vor.u32 %v1298_v63, %v1297_v29  ;;  %v1302_v3 = vrot.slane %v1297_v29, 4  ;;  %v11048_v44 = vld [vmem:[#allocation2 + $0xd8] ss:$0 sps:$4 sm:$0x11]   ;;  %v2252_v9 = vsel %vm12038_vm7, %v1283_v1, %v2251_v25  ;;  %v10682_v24 = vpack.c.bf16 %v394_v7, %v394_v7 }
  0xdf   : > { %v12481_v57 = vcombine.low %v2479_v18, %v2480_v2  ;;  %v1309_v10 = vor.u32 %v1307_v43, %v12475_v53  ;;  %v1241_v14 = vrot.slane %v12402_v38, 4  ;;  %v12487_v52 = vld [vmem:[#allocation2 + $0xf8] sm:$0xff]   ;;  %v1292_v45 = vsel %vm12032_vm6, %v1284_v51, %v1291_v62  ;;  %2253 = vst [vmem:[#allocation2 + $0x104] sm:$0xf] %v2252_v9  ;;  %v2248_v51 = vld [vmem:[#allocation2 + $0x100] sm:$0x1] }
  0xe0   : > { %v1301_v56 = vsel %vm12032_vm6, %v1293_v4, %v1300_v6  ;;  %v3657_v22 = vshrl.u32 %v12451_v12, 16  ;;  %v3641_v30 = vshll.u32 %v11048_v44, 16  ;;  %2254 = vst.msk [vmem:[#allocation2 + $0x108] sm:$0xf] %vm170_vm0, %v1292_v45  ;;  %v3673_v27 = vshll.u32 %v12487_v52, 16 }
  0xe1   : > { %17162 = vst [vmem:[#allocation18_spill] sm:$0xff] %v12481_v57  ;;  %v3666_v58 = vshrl.u32 %v12481_v57, 16  ;;  %v3668_v26 = vshll.u32 %v12481_v57, 16  ;;  %v1310_v38 = vsel %vm12032_vm6, %v1302_v3, %v1309_v10  ;;  %2255 = vst.msk [vmem:[#allocation2 + $0x10c] sm:$0xf] %vm170_vm0, %v1301_v56  ;;  %v2240_v12 = vsel %vm12090_vm8, %v1241_v14, %v2239_v48  ;;  %v399_v10 = vld [vmem:[%s12020_s28 + $0x1c8] sm:$0xff] }
  0xe2   : > { %2256 = vst.msk [vmem:[#allocation2 + $0x110] sm:$0xf] %vm170_vm0, %v1310_v38  ;;  %v12505_v61 = vor.u32 %v3657_v22, %v3655_v0  ;;  %v10683_v49 = vpack.c.bf16 %v395_v60, %v395_v60  ;;  %v3643_v5 = vrot.slane %v3641_v30, 1  ;;  %2241 = vst [vmem:[#allocation2 + $0xec] sm:$0x1] %v2240_v12  ;;  %v10684_v59 = vpack.c.bf16 %v396_v13, %v396_v13  ;;  %v457_v57 = vld [vmem:[%s12020_s28 + $0x398] sm:$0xff] }
  0xe3   : > { %v3670_v21 = vrot.slane %v3668_v26, 1  ;;  %v10685_v32 = vpack.c.bf16 %v397_v23, %v397_v23  ;;  %v3675_v25 = vrot.slane %v3673_v27, 1  ;;  %v1313_v33 = vshrl.u32 %v10682_v24, 16  ;;  %v2260_v29 = vld [vmem:[#allocation2 + $0x118] sm:$0xf]  ;;  %v400_v23 = vld [vmem:[%s12020_s28 + $0x1d0] sm:$0xff] }
  0xe4   : > { %v1316_v34 = vshll.u32 %v10682_v24, 16  ;;  %v1321_v63 = vshrl.u32 %v10683_v49, 16  ;;  %v3644_v35 = vsel %vm3424_vm2, %v12459_v16, %v3643_v5  ;;  %v1324_v18 = vshll.u32 %v10683_v49, 16  ;;  %v398_v16 = vld [vmem:[%s12020_s28 + $0x1c0] sm:$0xff] }
  0xe5   : > { %v3671_v15 = vor.u32 %v3670_v21, %v3666_v58  ;;  %v1330_v37 = vshrl.u32 %v10684_v59, 16  ;;  %4107 = vrot.lane.b32.xlu1 %v3644_v35, %s11595_s29  ;;  %v1315_v0 = vrot.slane %v1313_v33, 7  ;;  %v1333_v19 = vshll.u32 %v10684_v59, 16  ;;  %v401_v21 = vld [vmem:[%s12020_s28 + $0x1d8] sm:$0xff] }
  0xe6   : > { %v1323_v43 = vrot.slane %v1321_v63, 7  ;;  %v1339_v1 = vshrl.u32 %v10685_v32, 16  ;;  %v2483_v7 = vld [vmem:[#allocation2 + $0x104] sm:$0xf]  ;;  %v1342_v2 = vshll.u32 %v10685_v32, 16  ;;  %v1276_v62 = vrot.slane %v12442_v39, 4 }
  0xe7   : > { %v3676_v48 = vsel %vm3424_vm2, %v3671_v15, %v3675_v25  ;;  %v1332_v60 = vrot.slane %v1330_v37, 7  ;;  %v2484_v4 = vld [vmem:[#allocation2 + $0x108] sm:$0xf]  ;;  %v1318_v6 = vor.u32 %v1316_v34, %v1315_v0  ;;  %v1319_v3 = vrot.slane %v1315_v0, 4 }
  0xe8   : > { %4113 = vrot.lane.b32.xlu0 %v3676_v48, %s11595_s29  ;;  %v1326_v13 = vor.u32 %v1324_v18, %v1323_v43  ;;  %v1328_v44 = vrot.slane %v1323_v43, 4  ;;  %v12515_v9 = vcombine.low %v2483_v7, %v2484_v4  ;;  %v12519_v22 = vrot.slane %v1339_v1, 7  ;;  %v2269_v1 = vld [vmem:[#allocation2 + $0x12c] sm:$0xf]  ;;  %v404_v7 = vld [vmem:[%s12020_s28 + $0x1f0] sm:$0xff]  ;;  %v405_v4 = vld [vmem:[%s12020_s28 + $0x1f8] sm:$0xff] }
  0xe9   : > { %v12517_v14 = vld [vmem:[#allocation2 + $0x10c] sm:$0xff]   ;;  %v1335_v45 = vor.u32 %v1333_v19, %v1332_v60  ;;  %v1337_v56 = vrot.slane %v1332_v60, 4  ;;  %v2261_v58 = vsel %vm12038_vm7, %v1318_v6, %v2260_v29  ;;  %v2249_v26 = vsel %vm12090_vm8, %v1276_v62, %v2248_v51  ;;  %v402_v51 = vld [vmem:[%s12020_s28 + $0x1e0] sm:$0xff] }
  0xea   : > { %17163 = vst [vmem:[#allocation19_spill] sm:$0xff] %v12515_v9  ;;  %v11051_v39 = vld [vmem:[#allocation2 + $0xec] ss:$0 sps:$4 sm:$0x11]   ;;  %v1327_v24 = vsel %vm12032_vm6, %v1319_v3, %v1326_v13  ;;  %v3677_v30 = vshrl.u32 %v12487_v52, 16  ;;  %v3686_v38 = vshrl.u32 %v12515_v9, 16  ;;  %v1344_v59 = vor.u32 %v1342_v2, %v12519_v22 }
  0xeb   : > { %v3688_v27 = vshll.u32 %v12515_v9, 16  ;;  %v3693_v12 = vshll.u32 %v12517_v14, 16  ;;  %v1336_v49 = vsel %vm12032_vm6, %v1328_v44, %v1335_v45  ;;  %2262 = vst [vmem:[#allocation2 + $0x118] sm:$0xf] %v2261_v58  ;;  %2263 = vst.msk [vmem:[#allocation2 + $0x11c] sm:$0xf] %vm170_vm0, %v1327_v24  ;;  %v10686_v32 = vpack.c.bf16 %v398_v16, %v398_v16 }
  0xec   : > { %2250 = vst [vmem:[#allocation2 + $0x100] sm:$0x1] %v2249_v26  ;;  %v3661_v5 = vshll.u32 %v11051_v39, 16  ;;  %2264 = vst.msk [vmem:[#allocation2 + $0x120] sm:$0xf] %vm170_vm0, %v1336_v49  ;;  %v12538_v52 = vor.u32 %v3677_v30, %v3675_v25  ;;  %v10687_v63 = vpack.c.bf16 %v399_v10, %v399_v10  ;;  %v10688_v15 = vpack.c.bf16 %v400_v23, %v400_v23  ;;  %v403_v48 = vld [vmem:[%s12020_s28 + $0x1e8] sm:$0xff] }
  0xed   : > { %v3690_v33 = vrot.slane %v3688_v27, 1  ;;  %v12540_v34 = vrot.slane %v3693_v12, 1  ;;  %v1345_v18 = vsel %vm12032_vm6, %v1337_v56, %v1344_v59  ;;  %v10689_v37 = vpack.c.bf16 %v401_v21, %v401_v21  ;;  %v456_v9 = vld [vmem:[%s12020_s28 + $0x390] sm:$0xff] }
  0xee   : > { %v3663_v35 = vrot.slane %v3661_v5, 1  ;;  %v1348_v29 = vshrl.u32 %v10686_v32, 16  ;;  %2265 = vst.msk [vmem:[#allocation2 + $0x124] sm:$0xf] %vm170_vm0, %v1345_v18  ;;  %v1351_v25 = vshll.u32 %v10686_v32, 16  ;;  %v1356_v43 = vshrl.u32 %v10687_v63, 16 }
  0xef   : > { %v3691_v0 = vor.u32 %v3690_v33, %v3686_v38  ;;  %v1359_v19 = vshll.u32 %v10687_v63, 16  ;;  %v1365_v62 = vshrl.u32 %v10688_v15, 16  ;;  %v1368_v16 = vshll.u32 %v10688_v15, 16  ;;  %v2257_v5 = vld [vmem:[#allocation2 + $0x114] sm:$0x1] }
  0xf0   : > { %v3664_v60 = vsel %vm3424_vm2, %v12505_v61, %v3663_v35  ;;  %v1350_v2 = vrot.slane %v1348_v29, 7  ;;  %v1358_v3 = vrot.slane %v1356_v43, 7  ;;  %v1374_v13 = vshrl.u32 %v10689_v37, 16 }
  0xf1   : > { %v3696_v6 = vsel %vm3424_vm2, %v3691_v0, %v12540_v34  ;;  %4111 = vrot.lane.b32.xlu1 %v3664_v60, %s11595_s29  ;;  %v1377_v44 = vshll.u32 %v10689_v37, 16  ;;  %v10690_v23 = vpack.c.bf16 %v402_v51, %v402_v51  ;;  %v12555_v39 = vpack.c.bf16 %v403_v48, %v403_v48 }
  0xf2   : > { %4117 = vrot.lane.b32.xlu0 %v3696_v6, %s11595_s29  ;;  %v2487_v10 = vld [vmem:[#allocation2 + $0x118] sm:$0xf]  ;;  %v2488_v45 = vld [vmem:[#allocation2 + $0x11c] sm:$0xf]  ;;  %v1353_v56 = vor.u32 %v1351_v25, %v1350_v2  ;;  %v12557_v61 = vpack.c.bf16 %v404_v7, %v404_v7  ;;  %v1354_v26 = vrot.slane %v1350_v2, 4  ;;  %v1361_v30 = vor.u32 %v1359_v19, %v1358_v3 }
  0xf3   : > { %v12559_v24 = vcombine.low %v2487_v10, %v2488_v45  ;;  %v11054_v58 = vld [vmem:[#allocation2 + $0x100] ss:$0 sps:$4 sm:$0x11]   ;;  %v12561_v38 = vpack.c.bf16 %v405_v4, %v405_v4  ;;  %v1363_v27 = vrot.slane %v1358_v3, 4  ;;  %v1367_v12 = vrot.slane %v1365_v62, 7 }
  0xf4   : > { %v12563_v49 = vrot.slane %v1374_v13, 7  ;;  %v2270_v21 = vsel %vm12038_vm7, %v1353_v56, %v2269_v1  ;;  %v3681_v33 = vshll.u32 %v11054_v58, 16  ;;  %v1362_v63 = vsel %vm12032_vm6, %v1354_v26, %v1361_v30  ;;  %v2278_v62 = vld [vmem:[#allocation2 + $0x140] sm:$0xf] }
  0xf5   : > { %17164 = vst [vmem:[#allocation20_spill] sm:$0xff] %v12559_v24  ;;  %v3706_v59 = vshrl.u32 %v12559_v24, 16  ;;  %v3708_v32 = vshll.u32 %v12559_v24, 16  ;;  %2271 = vst [vmem:[#allocation2 + $0x12c] sm:$0xf] %v2270_v21  ;;  %v11053_v15 = vld [vmem:[#allocation2 + $0x120] sm:$0xff]   ;;  %v1370_v35 = vor.u32 %v1368_v16, %v1367_v12 }
  0xf6   : > { %v1372_v18 = vrot.slane %v1367_v12, 4  ;;  %v1379_v37 = vor.u32 %v1377_v44, %v12563_v49  ;;  %2272 = vst.msk [vmem:[#allocation2 + $0x130] sm:$0xf] %vm170_vm0, %v1362_v63  ;;  %v1311_v29 = vrot.slane %v12475_v53, 4  ;;  %v3683_v25 = vrot.slane %v3681_v33, 1  ;;  %v406_v30 = vld [vmem:[%s12020_s28 + $0x200] sm:$0xff] }
  0xf7   : > { %v3710_v0 = vrot.slane %v3708_v32, 1  ;;  %v3697_v43 = vshrl.u32 %v12517_v14, 16  ;;  %v1383_v19 = vshrl.u32 %v10690_v23, 16  ;;  %v3713_v1 = vshll.u32 %v11053_v15, 16  ;;  %v407_v63 = vld [vmem:[%s12020_s28 + $0x208] sm:$0xff]  ;;  %v11372_v46 = vld [vmem:[#allocation2 + $0x120] sm:$0xff]  }
  0xf8   : > { %v1371_v51 = vsel %vm12032_vm6, %v1363_v27, %v1370_v35  ;;  %v1380_v48 = vsel %vm12032_vm6, %v1372_v18, %v1379_v37  ;;  %v2258_v7 = vsel %vm12090_vm8, %v1311_v29, %v2257_v5  ;;  %v3684_v2 = vsel %vm3424_vm2, %v12538_v52, %v3683_v25  ;;  %v2266_v52 = vld [vmem:[#allocation2 + $0x128] sm:$0x1] }
  0xf9   : > { %v3711_v60 = vor.u32 %v3710_v0, %v3706_v59  ;;  %2273 = vst.msk [vmem:[#allocation2 + $0x134] sm:$0xf] %vm170_vm0, %v1371_v51  ;;  %2274 = vst.msk [vmem:[#allocation2 + $0x138] sm:$0xf] %vm170_vm0, %v1380_v48  ;;  %v12586_v53 = vor.u32 %v3697_v43, %v12540_v34  ;;  %v1385_v14 = vrot.slane %v1383_v19, 7  ;;  %v3715_v16 = vrot.slane %v3713_v1, 1  ;;  %4115 = vrot.lane.b32.xlu1 %v3684_v2, %s11595_s29 }
  0xfa   : > { %2259 = vst [vmem:[#allocation2 + $0x114] sm:$0x1] %v2258_v7  ;;  %v1386_v4 = vshll.u32 %v10690_v23, 16  ;;  %v1391_v6 = vshrl.u32 %v12555_v39, 16  ;;  %v1394_v3 = vshll.u32 %v12555_v39, 16  ;;  %v1400_v44 = vshrl.u32 %v12557_v61, 16 }
  0xfb   : > { %v1389_v13 = vrot.slane %v1385_v14, 4  ;;  %v1403_v10 = vshll.u32 %v12557_v61, 16  ;;  %v1409_v34 = vshrl.u32 %v12561_v38, 16  ;;  %v3716_v45 = vsel %vm3424_vm2, %v3711_v60, %v3715_v16  ;;  %v409_v0 = vld [vmem:[%s12020_s28 + $0x218] sm:$0xff] }
  0xfc   : > { %v2491_v56 = vld [vmem:[#allocation2 + $0x12c] sm:$0xf]  ;;  %v1388_v58 = vor.u32 %v1386_v4, %v1385_v14  ;;  %v1393_v26 = vrot.slane %v1391_v6, 7  ;;  %v1412_v23 = vshll.u32 %v12561_v38, 16  ;;  %4121 = vrot.lane.b32.xlu0 %v3716_v45, %s11595_s29  ;;  %v1402_v27 = vrot.slane %v1400_v44, 7  ;;  %v408_v38 = vld [vmem:[%s12020_s28 + $0x210] sm:$0xff] }
  0xfd   : > { %v2492_v39 = vld [vmem:[#allocation2 + $0x130] sm:$0xf]  ;;  %v12598_v12 = vrot.slane %v1409_v34, 7  ;;  %v1346_v61 = vrot.slane %v12519_v22, 4  ;;  %v3717_v21 = vshrl.u32 %v11053_v15, 16  ;;  %v10694_v19 = vpack.c.bf16 %v406_v30, %v406_v30 }
  0xfe   : > { %v12601_v5 = vcombine.low %v2491_v56, %v2492_v39  ;;  %v1396_v59 = vor.u32 %v1394_v3, %v1393_v26  ;;  %v1398_v32 = vrot.slane %v1393_v26, 4  ;;  %v2279_v33 = vsel %vm12038_vm7, %v1388_v58, %v2278_v62 }
  0xff   : > { %v1405_v35 = vor.u32 %v1403_v10, %v1402_v27  ;;  %v1407_v18 = vrot.slane %v1402_v27, 4  ;;  %v1414_v37 = vor.u32 %v1412_v23, %v12598_v12  ;;  %2280 = vst [vmem:[#allocation2 + $0x140] sm:$0xf] %v2279_v33  ;;  %v2267_v29 = vsel %vm12090_vm8, %v1346_v61, %v2266_v52  ;;  %v2287_v23 = vld [vmem:[#allocation2 + $0x154] sm:$0xf] }
 0x100   : > { %17165 = vst [vmem:[#allocation21_spill] sm:$0xff] %v12601_v5  ;;  %v12611_v22 = vld [vmem:[#allocation2 + $0x134] sm:$0xff]   ;;  %v3726_v15 = vshrl.u32 %v12601_v5, 16  ;;  %v1397_v25 = vsel %vm12032_vm6, %v1389_v13, %v1396_v59  ;;  %2268 = vst [vmem:[#allocation2 + $0x128] sm:$0x1] %v2267_v29  ;;  %v12616_v43 = vor.u32 %v3717_v21, %v3715_v16  ;;  %v3728_v1 = vshll.u32 %v12601_v5, 16 }
 0x101   : > { %v11057_v51 = vld [vmem:[#allocation2 + $0x114] ss:$0 sps:$4 sm:$0x11]   ;;  %v1406_v48 = vsel %vm12032_vm6, %v1398_v32, %v1405_v35  ;;  %v1415_v7 = vsel %vm12032_vm6, %v1407_v18, %v1414_v37  ;;  %2281 = vst.msk [vmem:[#allocation2 + $0x144] sm:$0xf] %vm170_vm0, %v1397_v25  ;;  %v10695_v60 = vpack.c.bf16 %v407_v63, %v407_v63  ;;  %v3733_v2 = vshll.u32 %v12611_v22, 16 }
 0x102   : > { %2282 = vst.msk [vmem:[#allocation2 + $0x148] sm:$0xf] %vm170_vm0, %v1406_v48  ;;  %2283 = vst.msk [vmem:[#allocation2 + $0x14c] sm:$0xf] %vm170_vm0, %v1415_v7  ;;  %v10696_v14 = vpack.c.bf16 %v408_v38, %v408_v38  ;;  %v10697_v62 = vpack.c.bf16 %v409_v0, %v409_v0  ;;  %v1418_v16 = vshrl.u32 %v10694_v19, 16  ;;  %v3730_v4 = vrot.slane %v3728_v1, 1 }
 0x103   : > { %v3701_v6 = vshll.u32 %v11057_v51, 16  ;;  %v1421_v3 = vshll.u32 %v10694_v19, 16  ;;  %v1426_v52 = vshrl.u32 %v10695_v60, 16  ;;  %v3735_v13 = vrot.slane %v3733_v2, 1  ;;  %v2275_v35 = vld [vmem:[#allocation2 + $0x13c] sm:$0x1] }
 0x104   : > { %v1420_v44 = vrot.slane %v1418_v16, 7  ;;  %v1429_v10 = vshll.u32 %v10695_v60, 16  ;;  %v1435_v34 = vshrl.u32 %v10696_v14, 16  ;;  %v3731_v45 = vor.u32 %v3730_v4, %v3726_v15  ;;  %v410_v25 = vld [vmem:[%s12020_s28 + $0x220] sm:$0xff]  ;;  %v455_v5 = vld [vmem:[%s12020_s28 + $0x388] sm:$0xff] }
 0x105   : > { %v3703_v56 = vrot.slane %v3701_v6, 1  ;;  %v1428_v58 = vrot.slane %v1426_v52, 7  ;;  %v1438_v26 = vshll.u32 %v10696_v14, 16  ;;  %v1444_v21 = vshrl.u32 %v10697_v62, 16  ;;  %v412_v52 = vld [vmem:[%s12020_s28 + $0x230] sm:$0xff] }
 0x106   : > { %v2495_v30 = vld [vmem:[#allocation2 + $0x140] sm:$0xf]  ;;  %v1423_v39 = vor.u32 %v1421_v3, %v1420_v44  ;;  %v1424_v27 = vrot.slane %v1420_v44, 4  ;;  %v1437_v61 = vrot.slane %v1435_v34, 7  ;;  %v3736_v59 = vsel %vm3424_vm2, %v3731_v45, %v3735_v13  ;;  %v413_v44 = vld [vmem:[%s12020_s28 + $0x238] sm:$0xff] }
 0x107   : > { %v3704_v32 = vsel %vm3424_vm2, %v12586_v53, %v3703_v56  ;;  %v11060_v33 = vld [vmem:[#allocation2 + $0x128] ss:$0 sps:$4 sm:$0x11]   ;;  %v1431_v63 = vor.u32 %v1429_v10, %v1428_v58  ;;  %v1433_v38 = vrot.slane %v1428_v58, 4  ;;  %4125 = vrot.lane.b32.xlu0 %v3736_v59, %s11595_s29  ;;  %v12632_v0 = vrot.slane %v1444_v21, 7 }
 0x108   : > { %4119 = vrot.lane.b32.xlu1 %v3704_v32, %s11595_s29  ;;  %v2496_v18 = vld [vmem:[#allocation2 + $0x144] sm:$0xf]  ;;  %v1440_v37 = vor.u32 %v1438_v26, %v1437_v61  ;;  %v1442_v29 = vrot.slane %v1437_v61, 4  ;;  %v1447_v15 = vshll.u32 %v10697_v62, 16  ;;  %v3721_v53 = vshll.u32 %v11060_v33, 16  ;;  %v411_v62 = vld [vmem:[%s12020_s28 + $0x228] sm:$0xff] }
 0x109   : > { %v12635_v19 = vcombine.low %v2495_v30, %v2496_v18  ;;  %v12637_v1 = vld [vmem:[#allocation2 + $0x148] sm:$0xff]   ;;  %v1432_v51 = vsel %vm12032_vm6, %v1424_v27, %v1431_v63  ;;  %v2288_v48 = vsel %vm12038_vm7, %v1423_v39, %v2287_v23  ;;  %v1381_v2 = vrot.slane %v12563_v49, 4  ;;  %v2284_v45 = vld [vmem:[#allocation2 + $0x150] sm:$0x1] }
 0x10a   : > { %v1441_v7 = vsel %vm12032_vm6, %v1433_v38, %v1440_v37  ;;  %v1449_v60 = vor.u32 %v1447_v15, %v12632_v0  ;;  %2289 = vst [vmem:[#allocation2 + $0x154] sm:$0xf] %v2288_v48  ;;  %2290 = vst.msk [vmem:[#allocation2 + $0x158] sm:$0xf] %vm170_vm0, %v1432_v51  ;;  %v3737_v14 = vshrl.u32 %v12611_v22, 16  ;;  %v3753_v6 = vshll.u32 %v12637_v1, 16 }
 0x10b   : > { %17166 = vst [vmem:[#allocation22_spill] sm:$0xff] %v12635_v19  ;;  %v3746_v16 = vshrl.u32 %v12635_v19, 16  ;;  %v3748_v4 = vshll.u32 %v12635_v19, 16  ;;  %v3723_v3 = vrot.slane %v3721_v53, 1  ;;  %2291 = vst.msk [vmem:[#allocation2 + $0x15c] sm:$0xf] %vm170_vm0, %v1441_v7  ;;  %v2276_v49 = vsel %vm12090_vm8, %v1381_v2, %v2275_v35 }
 0x10c   : > { %v1450_v10 = vsel %vm12032_vm6, %v1442_v29, %v1449_v60  ;;  %v12660_v34 = vor.u32 %v3737_v14, %v3735_v13  ;;  %v10698_v22 = vpack.c.bf16 %v410_v25, %v410_v25  ;;  %v3755_v58 = vrot.slane %v3753_v6, 1  ;;  %2277 = vst [vmem:[#allocation2 + $0x13c] sm:$0x1] %v2276_v49  ;;  %v2296_v35 = vld [vmem:[#allocation2 + $0x168] sm:$0xf]  ;;  %v414_v60 = vld [vmem:[%s12020_s28 + $0x240] sm:$0xff] }
 0x10d   : > { %v3750_v56 = vrot.slane %v3748_v4, 1  ;;  %v3724_v26 = vsel %vm3424_vm2, %v12616_v43, %v3723_v3  ;;  %2292 = vst.msk [vmem:[#allocation2 + $0x160] sm:$0xf] %vm170_vm0, %v1450_v10  ;;  %v10699_v23 = vpack.c.bf16 %v411_v62, %v411_v62  ;;  %v10700_v30 = vpack.c.bf16 %v412_v52, %v412_v52  ;;  %v415_v4 = vld [vmem:[%s12020_s28 + $0x248] sm:$0xff]  ;;  %v416_v6 = vld [vmem:[%s12020_s28 + $0x250] sm:$0xff]  ;;  %v417_v3 = vld [vmem:[%s12020_s28 + $0x258] sm:$0xff] }
 0x10e   : > { %4123 = vrot.lane.b32.xlu1 %v3724_v26, %s11595_s29  ;;  %v10701_v39 = vpack.c.bf16 %v413_v44, %v413_v44  ;;  %v1453_v27 = vshrl.u32 %v10698_v22, 16  ;;  %v1456_v61 = vshll.u32 %v10698_v22, 16  ;;  %v1416_v32 = vrot.slane %v12598_v12, 4 }
 0x10f   : > { %v3751_v21 = vor.u32 %v3750_v56, %v3746_v16  ;;  %v1461_v13 = vshrl.u32 %v10699_v23, 16  ;;  %v1464_v59 = vshll.u32 %v10699_v23, 16  ;;  %v1470_v63 = vshrl.u32 %v10700_v30, 16 }
 0x110   : > { %v1455_v33 = vrot.slane %v1453_v27, 7  ;;  %v1473_v38 = vshll.u32 %v10700_v30, 16  ;;  %v1479_v43 = vshrl.u32 %v10701_v39, 16  ;;  %v1482_v25 = vshll.u32 %v10701_v39, 16  ;;  %v418_v30 = vld [vmem:[%s12020_s28 + $0x260] sm:$0xff] }
 0x111   : > { %v3756_v18 = vsel %vm3424_vm2, %v3751_v21, %v3755_v58  ;;  %v2499_v37 = vld [vmem:[#allocation2 + $0x154] sm:$0xf]  ;;  %v2500_v29 = vld [vmem:[#allocation2 + $0x158] sm:$0xf]  ;;  %v1463_v15 = vrot.slane %v1461_v13, 7  ;;  %v2285_v53 = vsel %vm12090_vm8, %v1416_v32, %v2284_v45  ;;  %v1472_v7 = vrot.slane %v1470_v63, 7 }
 0x112   : > { %4129 = vrot.lane.b32.xlu0 %v3756_v18, %s11595_s29  ;;  %v12671_v12 = vcombine.low %v2499_v37, %v2500_v29  ;;  %v1458_v51 = vor.u32 %v1456_v61, %v1455_v33  ;;  %v1459_v48 = vrot.slane %v1455_v33, 4  ;;  %2286 = vst [vmem:[#allocation2 + $0x150] sm:$0x1] %v2285_v53  ;;  %v12674_v62 = vrot.slane %v1479_v43, 7  ;;  %v419_v13 = vld [vmem:[%s12020_s28 + $0x268] sm:$0xff]  ;;  %v421_v37 = vld [vmem:[%s12020_s28 + $0x278] sm:$0xff] }
 0x113   : > { %v1466_v2 = vor.u32 %v1464_v59, %v1463_v15  ;;  %v1468_v14 = vrot.slane %v1463_v15, 4  ;;  %v3757_v16 = vshrl.u32 %v12637_v1, 16  ;;  %v1475_v49 = vor.u32 %v1473_v38, %v1472_v7  ;;  %v11063_v45 = vld [vmem:[#allocation2 + $0x13c] ss:$0 sps:$4 sm:$0x11]   ;;  %v420_v59 = vld [vmem:[%s12020_s28 + $0x270] sm:$0xff] }
 0x114   : > { %17167 = vst [vmem:[#allocation23_spill] sm:$0xff] %v12671_v12  ;;  %v12680_v52 = vld [vmem:[#allocation2 + $0x15c] sm:$0xff]   ;;  %v3766_v44 = vshrl.u32 %v12671_v12, 16  ;;  %v3768_v10 = vshll.u32 %v12671_v12, 16  ;;  %v1477_v22 = vrot.slane %v1472_v7, 4  ;;  %v1484_v26 = vor.u32 %v1482_v25, %v12674_v62 }
 0x115   : > { %v1467_v56 = vsel %vm12032_vm6, %v1459_v48, %v1466_v2  ;;  %v2297_v1 = vsel %vm12038_vm7, %v1458_v51, %v2296_v35  ;;  %v3759_v23 = vor.u32 %v3757_v16, %v3755_v58  ;;  %v3773_v27 = vshll.u32 %v12680_v52, 16 }
 0x116   : > { %v3770_v39 = vrot.slane %v3768_v10, 1  ;;  %v1476_v61 = vsel %vm12032_vm6, %v1468_v14, %v1475_v49  ;;  %2298 = vst [vmem:[#allocation2 + $0x168] sm:$0xf] %v2297_v1  ;;  %2299 = vst.msk [vmem:[#allocation2 + $0x16c] sm:$0xf] %vm170_vm0, %v1467_v56  ;;  %v10702_v21 = vpack.c.bf16 %v414_v60, %v414_v60  ;;  %v3741_v32 = vshll.u32 %v11063_v45, 16 }
 0x117   : > { %v1485_v33 = vsel %vm12032_vm6, %v1477_v22, %v1484_v26  ;;  %2300 = vst.msk [vmem:[#allocation2 + $0x170] sm:$0xf] %vm170_vm0, %v1476_v61  ;;  %v10703_v58 = vpack.c.bf16 %v415_v4, %v415_v4  ;;  %v10704_v63 = vpack.c.bf16 %v416_v6, %v416_v6  ;;  %v12699_v43 = vrot.slane %v3773_v27, 1  ;;  %v422_v14 = vld [vmem:[%s12020_s28 + $0x280] sm:$0xff]  ;;  %v2305_v45 = vld [vmem:[#allocation2 + $0x17c] sm:$0xf] }
 0x118   : > { %v3771_v38 = vor.u32 %v3770_v39, %v3766_v44  ;;  %2301 = vst.msk [vmem:[#allocation2 + $0x174] sm:$0xf] %vm170_vm0, %v1485_v33  ;;  %v10705_v35 = vpack.c.bf16 %v417_v3, %v417_v3  ;;  %v1488_v18 = vshrl.u32 %v10702_v21, 16  ;;  %v3743_v29 = vrot.slane %v3741_v32, 1 }
 0x119   : > { %v11066_v15 = vld [vmem:[#allocation2 + $0x150] ss:$0 sps:$4 sm:$0x11]   ;;  %v12703_v25 = vpack.c.bf16 %v418_v30, %v418_v30  ;;  %v12705_v53 = vpack.c.bf16 %v419_v13, %v419_v13  ;;  %v12707_v51 = vpack.c.bf16 %v420_v59, %v420_v59  ;;  %v1491_v60 = vshll.u32 %v10702_v21, 16 }
 0x11a   : > { %v3776_v48 = vsel %vm3424_vm2, %v3771_v38, %v12699_v43  ;;  %v1490_v7 = vrot.slane %v1488_v18, 7  ;;  %v1496_v2 = vshrl.u32 %v10703_v58, 16  ;;  %v3744_v16 = vsel %vm3424_vm2, %v12660_v34, %v3743_v29 }
 0x11b   : > { %4133 = vrot.lane.b32.xlu0 %v3776_v48, %s11595_s29  ;;  %v3761_v4 = vshll.u32 %v11066_v15, 16  ;;  %v1499_v6 = vshll.u32 %v10703_v58, 16  ;;  %v1505_v3 = vshrl.u32 %v10704_v63, 16  ;;  %4127 = vrot.lane.b32.xlu1 %v3744_v16, %s11595_s29  ;;  %v1508_v22 = vshll.u32 %v10704_v63, 16  ;;  %v2293_v15 = vld [vmem:[#allocation2 + $0x164] sm:$0x1] }
 0x11c   : > { %v1493_v44 = vor.u32 %v1491_v60, %v1490_v7  ;;  %v1494_v10 = vrot.slane %v1490_v7, 4  ;;  %v1498_v49 = vrot.slane %v1496_v2, 7  ;;  %v12716_v39 = vpack.c.bf16 %v421_v37, %v421_v37 }
 0x11d   : > { %v2503_v56 = vld [vmem:[#allocation2 + $0x168] sm:$0xf]  ;;  %v2504_v26 = vld [vmem:[#allocation2 + $0x16c] sm:$0xf]  ;;  %v3763_v1 = vrot.slane %v3761_v4, 1  ;;  %v1507_v30 = vrot.slane %v1505_v3, 7  ;;  %v12718_v27 = vpack.c.bf16 %v422_v14, %v422_v14 }
 0x11e   : > { %v12720_v61 = vcombine.low %v2503_v56, %v2504_v26  ;;  %v1501_v34 = vor.u32 %v1499_v6, %v1498_v49  ;;  %v1503_v21 = vrot.slane %v1498_v49, 4  ;;  %v1514_v13 = vshrl.u32 %v10705_v35, 16 }
 0x11f   : > { %v12722_v59 = vld [vmem:[#allocation2 + $0x170] sm:$0xff]   ;;  %v3764_v32 = vsel %vm3424_vm2, %v3759_v23, %v3763_v1  ;;  %v1510_v33 = vor.u32 %v1508_v22, %v1507_v30  ;;  %v1512_v58 = vrot.slane %v1507_v30, 4  ;;  %v1517_v63 = vshll.u32 %v10705_v35, 16 }
 0x120   : > { %17168 = vst [vmem:[#allocation24_spill] sm:$0xff] %v12720_v61  ;;  %v3786_v38 = vshrl.u32 %v12720_v61, 16  ;;  %v3788_v18 = vshll.u32 %v12720_v61, 16  ;;  %4131 = vrot.lane.b32.xlu1 %v3764_v32, %s11595_s29  ;;  %v1502_v37 = vsel %vm12032_vm6, %v1494_v10, %v1501_v34  ;;  %v12730_v29 = vrot.slane %v1514_v13, 7 }
 0x121   : > { %v3793_v48 = vshll.u32 %v12722_v59, 16  ;;  %v1511_v23 = vsel %vm12032_vm6, %v1503_v21, %v1510_v33  ;;  %v2306_v35 = vsel %vm12038_vm7, %v1493_v44, %v2305_v45  ;;  %2308 = vst.msk [vmem:[#allocation2 + $0x180] sm:$0xf] %vm170_vm0, %v1502_v37  ;;  %v1451_v7 = vrot.slane %v12632_v0, 4  ;;  %v2314_v0 = vld [vmem:[#allocation2 + $0x190] sm:$0xf] }
 0x122   : > { %v3790_v60 = vrot.slane %v3788_v18, 1  ;;  %v1519_v2 = vor.u32 %v1517_v63, %v12730_v29  ;;  %2307 = vst [vmem:[#allocation2 + $0x17c] sm:$0xf] %v2306_v35  ;;  %2309 = vst.msk [vmem:[#allocation2 + $0x184] sm:$0xf] %vm170_vm0, %v1511_v23  ;;  %v3777_v14 = vshrl.u32 %v12680_v52, 16 }
 0x123   : > { %v1523_v16 = vshrl.u32 %v12703_v25, 16  ;;  %v3795_v4 = vrot.slane %v3793_v48, 1  ;;  %v2294_v6 = vsel %vm12090_vm8, %v1451_v7, %v2293_v15  ;;  %v1526_v3 = vshll.u32 %v12703_v25, 16  ;;  %v423_v45 = vld [vmem:[%s12020_s28 + $0x288] sm:$0xff]  ;;  %v2302_v63 = vld [vmem:[#allocation2 + $0x178] sm:$0x1] }
 0x124   : > { %v1531_v44 = vshrl.u32 %v12705_v53, 16  ;;  %v3791_v10 = vor.u32 %v3790_v60, %v3786_v38  ;;  %v1520_v49 = vsel %vm12032_vm6, %v1512_v58, %v1519_v2  ;;  %2295 = vst [vmem:[#allocation2 + $0x164] sm:$0x1] %v2294_v6  ;;  %v12750_v22 = vor.u32 %v3777_v14, %v12699_v43  ;;  %v425_v48 = vld [vmem:[%s12020_s28 + $0x298] sm:$0xff] }
 0x125   : > { %v1525_v52 = vrot.slane %v1523_v16, 7  ;;  %2310 = vst.msk [vmem:[#allocation2 + $0x188] sm:$0xf] %vm170_vm0, %v1520_v49  ;;  %v1534_v26 = vshll.u32 %v12705_v53, 16  ;;  %v1540_v25 = vshrl.u32 %v12707_v51, 16  ;;  %v1543_v1 = vshll.u32 %v12707_v51, 16 }
 0x126   : > { %v1533_v56 = vrot.slane %v1531_v44, 7  ;;  %v3796_v30 = vsel %vm3424_vm2, %v3791_v10, %v3795_v4  ;;  %v1549_v43 = vshrl.u32 %v12716_v39, 16  ;;  %v1552_v58 = vshll.u32 %v12716_v39, 16  ;;  %v424_v53 = vld [vmem:[%s12020_s28 + $0x290] sm:$0xff] }
 0x127   : > { %v1528_v34 = vor.u32 %v1526_v3, %v1525_v52  ;;  %v1529_v21 = vrot.slane %v1525_v52, 4  ;;  %4137 = vrot.lane.b32.xlu0 %v3796_v30, %s11595_s29  ;;  %v1542_v33 = vrot.slane %v1540_v25, 7  ;;  %v1486_v37 = vrot.slane %v12674_v62, 4 }
 0x128   : > { %v1536_v13 = vor.u32 %v1534_v26, %v1533_v56  ;;  %v1538_v32 = vrot.slane %v1533_v56, 4  ;;  %v2508_v38 = vld [vmem:[#allocation2 + $0x180] sm:$0xf]  ;;  %v12762_v18 = vrot.slane %v1549_v43, 7  ;;  %v3797_v15 = vshrl.u32 %v12722_v59, 16 }
 0x129   : > { %v2315_v51 = vsel %vm12038_vm7, %v1528_v34, %v2314_v0  ;;  %v2507_v23 = vld [vmem:[#allocation2 + $0x17c] sm:$0xf]  ;;  %v1545_v7 = vor.u32 %v1543_v1, %v1542_v33  ;;  %v1547_v60 = vrot.slane %v1542_v33, 4  ;;  %v10711_v39 = vpack.c.bf16 %v423_v45, %v423_v45 }
 0x12a   : > { %v1537_v35 = vsel %vm12032_vm6, %v1529_v21, %v1536_v13  ;;  %2316 = vst [vmem:[#allocation2 + $0x190] sm:$0xf] %v2315_v51  ;;  %v12771_v2 = vcombine.low %v2507_v23, %v2508_v38  ;;  %v1554_v14 = vor.u32 %v1552_v58, %v12762_v18  ;;  %v2303_v62 = vsel %vm12090_vm8, %v1486_v37, %v2302_v63  ;;  %v2323_v13 = vld [vmem:[#allocation2 + $0x1a4] sm:$0xf] }
 0x12b   : > { %2317 = vst.msk [vmem:[#allocation2 + $0x194] sm:$0xf] %vm170_vm0, %v1537_v35  ;;  %v12777_v16 = vor.u32 %v3797_v15, %v3795_v4  ;;  %v11069_v59 = vld [vmem:[#allocation2 + $0x164] ss:$0 sps:$4 sm:$0x11]   ;;  %v1546_v6 = vsel %vm12032_vm6, %v1538_v32, %v1545_v7  ;;  %v10712_v3 = vpack.c.bf16 %v424_v53, %v424_v53  ;;  %v10713_v44 = vpack.c.bf16 %v425_v48, %v425_v48 }
 0x12c   : > { %17169 = vst [vmem:[#allocation25_spill] sm:$0xff] %v12771_v2  ;;  %2304 = vst [vmem:[#allocation2 + $0x178] sm:$0x1] %v2303_v62  ;;  %v1558_v0 = vshrl.u32 %v12718_v27, 16  ;;  %v12782_v10 = vld [vmem:[#allocation2 + $0x184] sm:$0xff]   ;;  %v3806_v49 = vshrl.u32 %v12771_v2, 16  ;;  %v1555_v45 = vsel %vm12032_vm6, %v1547_v60, %v1554_v14 }
 0x12d   : > { %v3808_v52 = vshll.u32 %v12771_v2, 16  ;;  %2318 = vst.msk [vmem:[#allocation2 + $0x198] sm:$0xf] %vm170_vm0, %v1546_v6  ;;  %v1561_v4 = vshll.u32 %v12718_v27, 16  ;;  %v3781_v56 = vshll.u32 %v11069_v59, 16  ;;  %v1566_v25 = vshrl.u32 %v10711_v39, 16 }
 0x12e   : > { %2319 = vst.msk [vmem:[#allocation2 + $0x19c] sm:$0xf] %vm170_vm0, %v1555_v45  ;;  %v1560_v26 = vrot.slane %v1558_v0, 7  ;;  %v1569_v1 = vshll.u32 %v10711_v39, 16  ;;  %v3813_v34 = vshll.u32 %v12782_v10, 16  ;;  %v1575_v21 = vshrl.u32 %v10712_v3, 16 }
 0x12f   : > { %v3810_v30 = vrot.slane %v3808_v52, 1  ;;  %v1578_v43 = vshll.u32 %v10712_v3, 16  ;;  %v3783_v32 = vrot.slane %v3781_v56, 1  ;;  %v1568_v63 = vrot.slane %v1566_v25, 7  ;;  %v426_v15 = vld [vmem:[%s12020_s28 + $0x2a0] sm:$0xff]  ;;  %v427_v14 = vld [vmem:[%s12020_s28 + $0x2a8] sm:$0xff] }
 0x130   : > { %v1563_v33 = vor.u32 %v1561_v4, %v1560_v26  ;;  %v1564_v58 = vrot.slane %v1560_v26, 4  ;;  %v3815_v27 = vrot.slane %v3813_v34, 1  ;;  %v1577_v51 = vrot.slane %v1575_v21, 7  ;;  %v2311_v39 = vld [vmem:[#allocation2 + $0x18c] sm:$0x1]  ;;  %v428_v45 = vld [vmem:[%s12020_s28 + $0x2b0] sm:$0xff] }
 0x131   : > { %v3811_v53 = vor.u32 %v3810_v30, %v3806_v49  ;;  %v2511_v38 = vld [vmem:[#allocation2 + $0x190] sm:$0xf]  ;;  %v1584_v37 = vshrl.u32 %v10713_v44, 16  ;;  %v3784_v48 = vsel %vm3424_vm2, %v12750_v22, %v3783_v32  ;;  %v1571_v35 = vor.u32 %v1569_v1, %v1568_v63  ;;  %v429_v4 = vld [vmem:[%s12020_s28 + $0x2b8] sm:$0xff] }
 0x132   : > { %v2512_v23 = vld [vmem:[#allocation2 + $0x194] sm:$0xf]  ;;  %v1573_v7 = vrot.slane %v1568_v63, 4  ;;  %v1587_v60 = vshll.u32 %v10713_v44, 16  ;;  %4135 = vrot.lane.b32.xlu1 %v3784_v48, %s11595_s29  ;;  %v1580_v3 = vor.u32 %v1578_v43, %v1577_v51  ;;  %v1582_v0 = vrot.slane %v1577_v51, 4  ;;  %v430_v63 = vld [vmem:[%s12020_s28 + $0x2c0] sm:$0xff] }
 0x133   : > { %v3816_v62 = vsel %vm3424_vm2, %v3811_v53, %v3815_v27  ;;  %v12798_v59 = vcombine.low %v2511_v38, %v2512_v23  ;;  %v11072_v6 = vld [vmem:[#allocation2 + $0x178] ss:$0 sps:$4 sm:$0x11]   ;;  %v1572_v22 = vsel %vm12032_vm6, %v1564_v58, %v1571_v35  ;;  %v12803_v49 = vrot.slane %v1584_v37, 7  ;;  %v431_v53 = vld [vmem:[%s12020_s28 + $0x2c8] sm:$0xff] }
 0x134   : > { %4141 = vrot.lane.b32.xlu0 %v3816_v62, %s11595_s29  ;;  %v2324_v44 = vsel %vm12038_vm7, %v1563_v33, %v2323_v13  ;;  %v1521_v52 = vrot.slane %v12730_v29, 4  ;;  %v3801_v1 = vshll.u32 %v11072_v6, 16  ;;  %v1581_v30 = vsel %vm12032_vm6, %v1573_v7, %v1580_v3  ;;  %2326 = vst.msk [vmem:[#allocation2 + $0x1a8] sm:$0xf] %vm170_vm0, %v1572_v22  ;;  %v432_v22 = vld [vmem:[%s12020_s28 + $0x2d0] sm:$0xff] }
 0x135   : > { %17170 = vst [vmem:[#allocation26_spill] sm:$0xff] %v12798_v59  ;;  %v12810_v56 = vld [vmem:[#allocation2 + $0x198] sm:$0xff]   ;;  %v3826_v26 = vshrl.u32 %v12798_v59, 16  ;;  %v3828_v25 = vshll.u32 %v12798_v59, 16  ;;  %2325 = vst [vmem:[#allocation2 + $0x1a4] sm:$0xf] %v2324_v44  ;;  %v1589_v34 = vor.u32 %v1587_v60, %v12803_v49  ;;  %v10714_v43 = vpack.c.bf16 %v426_v15, %v426_v15 }
 0x136   : > { %2327 = vst.msk [vmem:[#allocation2 + $0x1ac] sm:$0xf] %vm170_vm0, %v1581_v30  ;;  %v2312_v29 = vsel %vm12090_vm8, %v1521_v52, %v2311_v39  ;;  %v3817_v21 = vshrl.u32 %v12782_v10, 16  ;;  %v3833_v32 = vshll.u32 %v12810_v56, 16  ;;  %v3803_v33 = vrot.slane %v3801_v1, 1 }
 0x137   : > { %v3830_v13 = vrot.slane %v3828_v25, 1  ;;  %2313 = vst [vmem:[#allocation2 + $0x18c] sm:$0x1] %v2312_v29  ;;  %v10715_v58 = vpack.c.bf16 %v427_v14, %v427_v14  ;;  %v1590_v38 = vsel %vm12032_vm6, %v1582_v0, %v1589_v34  ;;  %v10716_v37 = vpack.c.bf16 %v428_v45, %v428_v45  ;;  %v2332_v0 = vld [vmem:[#allocation2 + $0x1b8] sm:$0xf] }
 0x138   : > { %v12827_v51 = vor.u32 %v3817_v21, %v3815_v27  ;;  %v10717_v48 = vpack.c.bf16 %v429_v4, %v429_v4  ;;  %v3835_v35 = vrot.slane %v3833_v32, 1  ;;  %v3804_v10 = vsel %vm3424_vm2, %v12777_v16, %v3803_v33  ;;  %2328 = vst.msk [vmem:[#allocation2 + $0x1b0] sm:$0xf] %vm170_vm0, %v1590_v38  ;;  %v2320_v32 = vld [vmem:[#allocation2 + $0x1a0] sm:$0x1] }
 0x139   : > { %v3831_v23 = vor.u32 %v3830_v13, %v3826_v26  ;;  %v1593_v15 = vshrl.u32 %v10714_v43, 16  ;;  %4139 = vrot.lane.b32.xlu1 %v3804_v10, %s11595_s29  ;;  %v1596_v7 = vshll.u32 %v10714_v43, 16  ;;  %v1601_v60 = vshrl.u32 %v10715_v58, 16 }
 0x13a   : > { %v1604_v39 = vshll.u32 %v10715_v58, 16  ;;  %v1610_v14 = vshrl.u32 %v10716_v37, 16  ;;  %v1613_v6 = vshll.u32 %v10716_v37, 16  ;;  %v1619_v3 = vshrl.u32 %v10717_v48, 16 }
 0x13b   : > { %v3836_v27 = vsel %vm3424_vm2, %v3831_v23, %v3835_v35  ;;  %v1595_v62 = vrot.slane %v1593_v15, 7  ;;  %v2516_v16 = vld [vmem:[#allocation2 + $0x1a8] sm:$0xf]  ;;  %v1603_v52 = vrot.slane %v1601_v60, 7  ;;  %v10718_v4 = vpack.c.bf16 %v430_v63, %v430_v63 }
 0x13c   : > { %4145 = vrot.lane.b32.xlu0 %v3836_v27, %s11595_s29  ;;  %v2515_v44 = vld [vmem:[#allocation2 + $0x1a4] sm:$0xf]  ;;  %v1612_v45 = vrot.slane %v1610_v14, 7  ;;  %v12836_v26 = vpack.c.bf16 %v431_v53, %v431_v53  ;;  %v12840_v34 = vrot.slane %v1619_v3, 7  ;;  %v10720_v33 = vpack.c.bf16 %v432_v22, %v432_v22  ;;  %v433_v53 = vld [vmem:[%s12020_s28 + $0x2d8] sm:$0xff] }
 0x13d   : > { %v12838_v25 = vcombine.low %v2515_v44, %v2516_v16  ;;  %v1598_v1 = vor.u32 %v1596_v7, %v1595_v62  ;;  %v1599_v30 = vrot.slane %v1595_v62, 4  ;;  %v1606_v21 = vor.u32 %v1604_v39, %v1603_v52 }
 0x13e   : > { %v11075_v29 = vld [vmem:[#allocation2 + $0x18c] ss:$0 sps:$4 sm:$0x11]   ;;  %v1608_v43 = vrot.slane %v1603_v52, 4  ;;  %v1615_v13 = vor.u32 %v1613_v6, %v1612_v45  ;;  %v1617_v63 = vrot.slane %v1612_v45, 4  ;;  %v1622_v37 = vshll.u32 %v10717_v48, 16 }
 0x13f   : > { %17171 = vst [vmem:[#allocation27_spill] sm:$0xff] %v12838_v25  ;;  %v3846_v58 = vshrl.u32 %v12838_v25, 16  ;;  %v3848_v38 = vshll.u32 %v12838_v25, 16  ;;  %v12845_v23 = vld [vmem:[#allocation2 + $0x1ac] sm:$0xff]   ;;  %v3821_v10 = vshll.u32 %v11075_v29, 16  ;;  %v1607_v15 = vsel %vm12032_vm6, %v1599_v30, %v1606_v21 }
 0x140   : > { %v1616_v7 = vsel %vm12032_vm6, %v1608_v43, %v1615_v13  ;;  %v2333_v60 = vsel %vm12038_vm7, %v1598_v1, %v2332_v0  ;;  %v1624_v14 = vor.u32 %v1622_v37, %v12840_v34  ;;  %2335 = vst.msk [vmem:[#allocation2 + $0x1bc] sm:$0xf] %vm170_vm0, %v1607_v15  ;;  %v1556_v48 = vrot.slane %v12762_v18, 4  ;;  %v2341_v45 = vld [vmem:[#allocation2 + $0x1cc] sm:$0xf]  ;;  %v434_v1 = vld [vmem:[%s12020_s28 + $0x2e0] sm:$0xff] }
 0x141   : > { %v3850_v39 = vrot.slane %v3848_v38, 1  ;;  %2334 = vst [vmem:[#allocation2 + $0x1b8] sm:$0xf] %v2333_v60  ;;  %2336 = vst.msk [vmem:[#allocation2 + $0x1c0] sm:$0xf] %vm170_vm0, %v1616_v7  ;;  %v3837_v27 = vshrl.u32 %v12810_v56, 16  ;;  %v10721_v3 = vpack.c.bf16 %v433_v53, %v433_v53 }
 0x142   : > { %v3853_v62 = vshll.u32 %v12845_v23, 16  ;;  %v3823_v6 = vrot.slane %v3821_v10, 1  ;;  %v1628_v0 = vshrl.u32 %v10718_v4, 16  ;;  %v1625_v44 = vsel %vm12032_vm6, %v1617_v63, %v1624_v14  ;;  %v435_v18 = vld [vmem:[%s12020_s28 + $0x2e8] sm:$0xff]  ;;  %v436_v43 = vld [vmem:[%s12020_s28 + $0x2f0] sm:$0xff] }
 0x143   : > { %v3851_v22 = vor.u32 %v3850_v39, %v3846_v58  ;;  %v2321_v16 = vsel %vm12090_vm8, %v1556_v48, %v2320_v32  ;;  %v12863_v52 = vor.u32 %v3837_v27, %v3835_v35  ;;  %2337 = vst.msk [vmem:[#allocation2 + $0x1c4] sm:$0xf] %vm170_vm0, %v1625_v44  ;;  %v1631_v21 = vshll.u32 %v10718_v4, 16 }
 0x144   : > { %v3855_v30 = vrot.slane %v3853_v62, 1  ;;  %v3824_v56 = vsel %vm3424_vm2, %v12827_v51, %v3823_v6  ;;  %2322 = vst [vmem:[#allocation2 + $0x1a0] sm:$0x1] %v2321_v16  ;;  %v1630_v29 = vrot.slane %v1628_v0, 7  ;;  %v1636_v13 = vshrl.u32 %v12836_v26, 16 }
 0x145   : > { %4143 = vrot.lane.b32.xlu1 %v3824_v56, %s11595_s29  ;;  %v1639_v35 = vshll.u32 %v12836_v26, 16  ;;  %v1645_v32 = vshrl.u32 %v10720_v33, 16  ;;  %v1648_v58 = vshll.u32 %v10720_v33, 16  ;;  %v1654_v53 = vshrl.u32 %v10721_v3, 16  ;;  %v2329_v51 = vld [vmem:[#allocation2 + $0x1b4] sm:$0x1] }
 0x146   : > { %v3856_v38 = vsel %vm3424_vm2, %v3851_v22, %v3855_v30  ;;  %v1633_v63 = vor.u32 %v1631_v21, %v1630_v29  ;;  %v1634_v37 = vrot.slane %v1630_v29, 4  ;;  %v1638_v10 = vrot.slane %v1636_v13, 7  ;;  %v437_v22 = vld [vmem:[%s12020_s28 + $0x2f8] sm:$0xff] }
 0x147   : > { %4149 = vrot.lane.b32.xlu0 %v3856_v38, %s11595_s29  ;;  %v1647_v4 = vrot.slane %v1645_v32, 7  ;;  %v1657_v15 = vshll.u32 %v10721_v3, 16  ;;  %v1591_v7 = vrot.slane %v12803_v49, 4  ;;  %v2520_v39 = vld [vmem:[#allocation2 + $0x1bc] sm:$0xf]  ;;  %v10722_v33 = vpack.c.bf16 %v434_v1, %v434_v1 }
 0x148   : > { %v2519_v60 = vld [vmem:[#allocation2 + $0x1b8] sm:$0xf]  ;;  %v2342_v26 = vsel %vm12038_vm7, %v1633_v63, %v2341_v45  ;;  %v10723_v14 = vpack.c.bf16 %v435_v18, %v435_v18  ;;  %v10724_v48 = vpack.c.bf16 %v436_v43, %v436_v43  ;;  %v1641_v62 = vor.u32 %v1639_v35, %v1638_v10 }
 0x149   : > { %v12879_v27 = vcombine.low %v2519_v60, %v2520_v39  ;;  %v1643_v6 = vrot.slane %v1638_v10, 4  ;;  %v1650_v0 = vor.u32 %v1648_v58, %v1647_v4  ;;  %2343 = vst [vmem:[#allocation2 + $0x1cc] sm:$0xf] %v2342_v26  ;;  %v1652_v44 = vrot.slane %v1647_v4, 4  ;;  %v2350_v4 = vld [vmem:[#allocation2 + $0x1e0] sm:$0xf] }
 0x14a   : > { %v12882_v16 = vrot.slane %v1654_v53, 7  ;;  %v2330_v49 = vsel %vm12090_vm8, %v1591_v7, %v2329_v51  ;;  %v3857_v3 = vshrl.u32 %v12845_v23, 16  ;;  %v12887_v56 = vld [vmem:[#allocation2 + $0x1c0] sm:$0xff]   ;;  %v1642_v18 = vsel %vm12032_vm6, %v1634_v37, %v1641_v62 }
 0x14b   : > { %17172 = vst [vmem:[#allocation28_spill] sm:$0xff] %v12879_v27  ;;  %v3866_v45 = vshrl.u32 %v12879_v27, 16  ;;  %v3868_v1 = vshll.u32 %v12879_v27, 16  ;;  %v1651_v29 = vsel %vm12032_vm6, %v1643_v6, %v1650_v0  ;;  %2331 = vst [vmem:[#allocation2 + $0x1b4] sm:$0x1] %v2330_v49  ;;  %v10725_v13 = vpack.c.bf16 %v437_v22, %v437_v22  ;;  %v438_v39 = vld [vmem:[%s12020_s28 + $0x300] sm:$0xff] }
 0x14c   : > { %v11078_v21 = vld [vmem:[#allocation2 + $0x1a0] ss:$0 sps:$4 sm:$0x11]   ;;  %v1659_v43 = vor.u32 %v1657_v15, %v12882_v16  ;;  %2344 = vst.msk [vmem:[#allocation2 + $0x1d0] sm:$0xf] %vm170_vm0, %v1642_v18  ;;  %v12898_v23 = vor.u32 %v3857_v3, %v3855_v30  ;;  %v1663_v35 = vshrl.u32 %v10722_v33, 16 }
 0x14d   : > { %2345 = vst.msk [vmem:[#allocation2 + $0x1d4] sm:$0xf] %vm170_vm0, %v1651_v29  ;;  %v3870_v32 = vrot.slane %v3868_v1, 1  ;;  %v3873_v58 = vshll.u32 %v12887_v56, 16  ;;  %v1666_v38 = vshll.u32 %v10722_v33, 16  ;;  %v1671_v63 = vshrl.u32 %v10723_v14, 16 }
 0x14e   : > { %v3841_v37 = vshll.u32 %v11078_v21, 16  ;;  %v1660_v53 = vsel %vm12032_vm6, %v1652_v44, %v1659_v43  ;;  %v1665_v51 = vrot.slane %v1663_v35, 7  ;;  %v1674_v10 = vshll.u32 %v10723_v14, 16  ;;  %v439_v22 = vld [vmem:[%s12020_s28 + $0x308] sm:$0xff]  ;;  %v440_v49 = vld [vmem:[%s12020_s28 + $0x310] sm:$0xff] }
 0x14f   : > { %v3871_v15 = vor.u32 %v3870_v32, %v3866_v45  ;;  %v12903_v30 = vrot.slane %v3873_v58, 1  ;;  %2346 = vst.msk [vmem:[#allocation2 + $0x1d8] sm:$0xf] %vm170_vm0, %v1660_v53  ;;  %v1673_v7 = vrot.slane %v1671_v63, 7  ;;  %v1680_v60 = vshrl.u32 %v10724_v48, 16  ;;  %v11363_v27 = vld [vmem:[#allocation2 + $0xe4] sm:$0xff]  }
 0x150   : > { %v3843_v26 = vrot.slane %v3841_v37, 1  ;;  %v2523_v33 = vld [vmem:[#allocation2 + $0x1cc] sm:$0xf]  ;;  %v1668_v62 = vor.u32 %v1666_v38, %v1665_v51  ;;  %v1669_v6 = vrot.slane %v1665_v51, 4  ;;  %v1683_v0 = vshll.u32 %v10724_v48, 16 }
 0x151   : > { %v3876_v44 = vsel %vm3424_vm2, %v3871_v15, %v12903_v30  ;;  %v1676_v14 = vor.u32 %v1674_v10, %v1673_v7  ;;  %v1678_v3 = vrot.slane %v1673_v7, 4  ;;  %v1682_v45 = vrot.slane %v1680_v60, 7  ;;  %v2338_v51 = vld [vmem:[#allocation2 + $0x1c8] sm:$0x1]  ;;  %v441_v10 = vld [vmem:[%s12020_s28 + $0x318] sm:$0xff] }
 0x152   : > { %4153 = vrot.lane.b32.xlu0 %v3876_v44, %s11595_s29  ;;  %v3844_v1 = vsel %vm3424_vm2, %v12863_v52, %v3843_v26  ;;  %v11081_v18 = vld [vmem:[#allocation2 + $0x1b4] ss:$0 sps:$4 sm:$0x11]   ;;  %v1689_v29 = vshrl.u32 %v10725_v13, 16  ;;  %v2351_v21 = vsel %vm12038_vm7, %v1668_v62, %v2350_v4  ;;  %v10726_v48 = vpack.c.bf16 %v438_v39, %v438_v39 }
 0x153   : > { %4147 = vrot.lane.b32.xlu1 %v3844_v1, %s11595_s29  ;;  %v2524_v43 = vld [vmem:[#allocation2 + $0x1d0] sm:$0xf]  ;;  %v1677_v35 = vsel %vm12032_vm6, %v1669_v6, %v1676_v14  ;;  %v1685_v32 = vor.u32 %v1683_v0, %v1682_v45  ;;  %v1687_v58 = vrot.slane %v1682_v45, 4  ;;  %v1692_v38 = vshll.u32 %v10725_v13, 16  ;;  %2352 = vst [vmem:[#allocation2 + $0x1e0] sm:$0xf] %v2351_v21 }
 0x154   : > { %v12919_v63 = vcombine.low %v2523_v33, %v2524_v43  ;;  %v3861_v52 = vshll.u32 %v11081_v18, 16  ;;  %v12921_v37 = vrot.slane %v1689_v29, 7  ;;  %2353 = vst.msk [vmem:[#allocation2 + $0x1e4] sm:$0xf] %vm170_vm0, %v1677_v35  ;;  %v1626_v53 = vrot.slane %v12840_v34, 4 }
 0x155   : > { %v1686_v4 = vsel %vm12032_vm6, %v1678_v3, %v1685_v32  ;;  %v10727_v15 = vpack.c.bf16 %v439_v22, %v439_v22  ;;  %v10728_v7 = vpack.c.bf16 %v440_v49, %v440_v49  ;;  %v3877_v62 = vshrl.u32 %v12887_v56, 16  ;;  %v2359_v3 = vld [vmem:[#allocation2 + $0x1f4] sm:$0xf] }
 0x156   : > { %17173 = vst [vmem:[#allocation29_spill] sm:$0xff] %v12919_v63  ;;  %v12928_v60 = vld [vmem:[#allocation2 + $0x1d4] sm:$0xff]   ;;  %v3886_v13 = vshrl.u32 %v12919_v63, 16  ;;  %v3888_v39 = vshll.u32 %v12919_v63, 16  ;;  %v3863_v26 = vrot.slane %v3861_v52, 1  ;;  %v1694_v33 = vor.u32 %v1692_v38, %v12921_v37 }
 0x157   : > { %2354 = vst.msk [vmem:[#allocation2 + $0x1e8] sm:$0xf] %vm170_vm0, %v1686_v4  ;;  %v2339_v34 = vsel %vm12090_vm8, %v1626_v53, %v2338_v51  ;;  %v10729_v6 = vpack.c.bf16 %v441_v10, %v441_v10  ;;  %v1698_v0 = vshrl.u32 %v10726_v48, 16  ;;  %v3893_v49 = vshll.u32 %v12928_v60, 16  ;;  %v442_v51 = vld [vmem:[%s12020_s28 + $0x320] sm:$0xff] }
 0x158   : > { %v3890_v22 = vrot.slane %v3888_v39, 1  ;;  %v3864_v44 = vsel %vm3424_vm2, %v12898_v23, %v3863_v26  ;;  %v1695_v14 = vsel %vm12032_vm6, %v1687_v58, %v1694_v33  ;;  %2340 = vst [vmem:[#allocation2 + $0x1c8] sm:$0x1] %v2339_v34  ;;  %v1701_v56 = vshll.u32 %v10726_v48, 16  ;;  %v444_v39 = vld [vmem:[%s12020_s28 + $0x330] sm:$0xff] }
 0x159   : > { %4151 = vrot.lane.b32.xlu1 %v3864_v44, %s11595_s29  ;;  %2355 = vst.msk [vmem:[#allocation2 + $0x1ec] sm:$0xf] %vm170_vm0, %v1695_v14  ;;  %v1700_v45 = vrot.slane %v1698_v0, 7  ;;  %v1706_v1 = vshrl.u32 %v10727_v15, 16  ;;  %v1709_v18 = vshll.u32 %v10727_v15, 16  ;;  %v12944_v21 = vrot.slane %v3893_v49, 1 }
 0x15a   : > { %v3891_v29 = vor.u32 %v3890_v22, %v3886_v13  ;;  %v2527_v23 = vld [vmem:[#allocation2 + $0x1e0] sm:$0xf]  ;;  %v1715_v43 = vshrl.u32 %v10728_v7, 16  ;;  %v1718_v35 = vshll.u32 %v10728_v7, 16  ;;  %v1724_v53 = vshrl.u32 %v10729_v6, 16  ;;  %v443_v13 = vld [vmem:[%s12020_s28 + $0x328] sm:$0xff] }
 0x15b   : > { %v2528_v32 = vld [vmem:[#allocation2 + $0x1e4] sm:$0xf]  ;;  %v1703_v58 = vor.u32 %v1701_v56, %v1700_v45  ;;  %v1704_v38 = vrot.slane %v1700_v45, 4  ;;  %v1708_v52 = vrot.slane %v1706_v1, 7  ;;  %v1727_v15 = vshll.u32 %v10729_v6, 16  ;;  %v445_v6 = vld [vmem:[%s12020_s28 + $0x338] sm:$0xff] }
 0x15c   : > { %v3896_v10 = vsel %vm3424_vm2, %v3891_v29, %v12944_v21  ;;  %v12949_v48 = vcombine.low %v2527_v23, %v2528_v32  ;;  %v1717_v4 = vrot.slane %v1715_v43, 7  ;;  %v12954_v33 = vrot.slane %v1724_v53, 7  ;;  %v2347_v14 = vld [vmem:[#allocation2 + $0x1dc] sm:$0x1] }
 0x15d   : > { %4157 = vrot.lane.b32.xlu0 %v3896_v10, %s11595_s29  ;;  %v1711_v26 = vor.u32 %v1709_v18, %v1708_v52  ;;  %v1713_v7 = vrot.slane %v1708_v52, 4  ;;  %v2360_v34 = vsel %vm12038_vm7, %v1703_v58, %v2359_v3  ;;  %v1661_v18 = vrot.slane %v12882_v16, 4 }
 0x15e   : > { %17174 = vst [vmem:[#allocation30_spill] sm:$0xff] %v12949_v48  ;;  %v3906_v0 = vshrl.u32 %v12949_v48, 16  ;;  %v3908_v22 = vshll.u32 %v12949_v48, 16  ;;  %v1720_v49 = vor.u32 %v1718_v35, %v1717_v4  ;;  %v1722_v44 = vrot.slane %v1717_v4, 4  ;;  %2361 = vst [vmem:[#allocation2 + $0x1f4] sm:$0xf] %v2360_v34 }
 0x15f   : > { %v11084_v45 = vld [vmem:[#allocation2 + $0x1c8] ss:$0 sps:$4 sm:$0x11]   ;;  %v1712_v56 = vsel %vm12032_vm6, %v1704_v38, %v1711_v26  ;;  %v1729_v1 = vor.u32 %v1727_v15, %v12954_v33  ;;  %v10730_v29 = vpack.c.bf16 %v442_v51, %v442_v51  ;;  %v3879_v43 = vor.u32 %v3877_v62, %v12903_v30 }
 0x160   : > { %v12965_v23 = vld [vmem:[#allocation2 + $0x1e8] sm:$0xff]   ;;  %v3910_v3 = vrot.slane %v3908_v22, 1  ;;  %v1721_v35 = vsel %vm12032_vm6, %v1713_v7, %v1720_v49  ;;  %2362 = vst.msk [vmem:[#allocation2 + $0x1f8] sm:$0xf] %vm170_vm0, %v1712_v56  ;;  %v10731_v32 = vpack.c.bf16 %v443_v13, %v443_v13  ;;  %v3881_v58 = vshll.u32 %v11084_v45, 16 }
 0x161   : > { %v1730_v38 = vsel %vm12032_vm6, %v1722_v44, %v1729_v1  ;;  %2363 = vst.msk [vmem:[#allocation2 + $0x1fc] sm:$0xf] %vm170_vm0, %v1721_v35  ;;  %v2348_v16 = vsel %vm12090_vm8, %v1661_v18, %v2347_v14  ;;  %v10732_v52 = vpack.c.bf16 %v444_v39, %v444_v39  ;;  %v3913_v51 = vshll.u32 %v12965_v23, 16  ;;  %v2356_v18 = vld [vmem:[#allocation2 + $0x1f0] sm:$0x1] }
 0x162   : > { %v3911_v53 = vor.u32 %v3910_v3, %v3906_v0  ;;  %2364 = vst.msk [vmem:[#allocation2 + $0x200] sm:$0xf] %vm170_vm0, %v1730_v38  ;;  %2349 = vst [vmem:[#allocation2 + $0x1dc] sm:$0x1] %v2348_v16  ;;  %v3897_v30 = vshrl.u32 %v12928_v60, 16  ;;  %v10733_v62 = vpack.c.bf16 %v445_v6, %v445_v6  ;;  %v3883_v10 = vrot.slane %v3881_v58, 1 }
 0x163   : > { %v1733_v4 = vshrl.u32 %v10730_v29, 16  ;;  %v1736_v15 = vshll.u32 %v10730_v29, 16  ;;  %v1741_v13 = vshrl.u32 %v10731_v32, 16  ;;  %v12979_v26 = vrot.slane %v3913_v51, 1  ;;  %v2368_v0 = vld [vmem:[#allocation2 + $0x208] sm:$0xf] }
 0x164   : > { %v1744_v7 = vshll.u32 %v10731_v32, 16  ;;  %v1750_v34 = vshrl.u32 %v10732_v52, 16  ;;  %v1753_v39 = vshll.u32 %v10732_v52, 16  ;;  %v3884_v22 = vsel %vm3424_vm2, %v3879_v43, %v3883_v10  ;;  %v446_v29 = vld [vmem:[%s12020_s28 + $0x340] sm:$0xff]  ;;  %v447_v3 = vld [vmem:[%s12020_s28 + $0x348] sm:$0xff]  ;;  %v448_v16 = vld [vmem:[%s12020_s28 + $0x350] sm:$0xff] }
 0x165   : > { %v2531_v49 = vld [vmem:[#allocation2 + $0x1f4] sm:$0xf]  ;;  %v1735_v44 = vrot.slane %v1733_v4, 7  ;;  %v1743_v14 = vrot.slane %v1741_v13, 7  ;;  %v1759_v60 = vshrl.u32 %v10733_v62, 16  ;;  %v3916_v6 = vsel %vm3424_vm2, %v3911_v53, %v12979_v26  ;;  %4155 = vrot.lane.b32.xlu1 %v3884_v22, %s11595_s29 }
 0x166   : > { %v1752_v45 = vrot.slane %v1750_v34, 7  ;;  %v1762_v56 = vshll.u32 %v10733_v62, 16  ;;  %v1696_v1 = vrot.slane %v12921_v37, 4  ;;  %4161 = vrot.lane.b32.xlu0 %v3916_v6, %s11595_s29  ;;  %v3899_v37 = vor.u32 %v3897_v30, %v12944_v21  ;;  %v449_v21 = vld [vmem:[%s12020_s28 + $0x358] sm:$0xff] }
 0x167   : > { %v2532_v43 = vld [vmem:[#allocation2 + $0x1f8] sm:$0xf]  ;;  %v1738_v35 = vor.u32 %v1736_v15, %v1735_v44  ;;  %v1739_v32 = vrot.slane %v1735_v44, 4  ;;  %v1746_v58 = vor.u32 %v1744_v7, %v1743_v14  ;;  %v1748_v38 = vrot.slane %v1743_v14, 4 }
 0x168   : > { %v12990_v52 = vcombine.low %v2531_v49, %v2532_v43  ;;  %v1755_v53 = vor.u32 %v1753_v39, %v1752_v45  ;;  %v1757_v51 = vrot.slane %v1752_v45, 4  ;;  %v12992_v10 = vrot.slane %v1759_v60, 7 }
 0x169   : > { %v12994_v62 = vld [vmem:[#allocation2 + $0x1fc] sm:$0xff]   ;;  %v1747_v4 = vsel %vm12032_vm6, %v1739_v32, %v1746_v58  ;;  %v2369_v15 = vsel %vm12038_vm7, %v1738_v35, %v2368_v0  ;;  %v2357_v13 = vsel %vm12090_vm8, %v1696_v1, %v2356_v18  ;;  %v3917_v0 = vshrl.u32 %v12965_v23, 16  ;;  %v13015_v1 = vpop.permute.xlu0 %4065 }
 0x16a   : > { %17175 = vst [vmem:[#allocation31_spill] sm:$0xff] %v12990_v52  ;;  %v3926_v7 = vshrl.u32 %v12990_v52, 16  ;;  %v3928_v34 = vshll.u32 %v12990_v52, 16  ;;  %v11087_v39 = vld [vmem:[#allocation2 + $0x1dc] ss:$0 sps:$4 sm:$0x11]   ;;  %v1756_v22 = vsel %vm12032_vm6, %v1748_v38, %v1755_v53  ;;  %v1764_v49 = vor.u32 %v1762_v56, %v12992_v10 }
 0x16b   : > { %2370 = vst [vmem:[#allocation2 + $0x208] sm:$0xf] %v2369_v15  ;;  %2371 = vst.msk [vmem:[#allocation2 + $0x20c] sm:$0xf] %vm170_vm0, %v1747_v4  ;;  %v3933_v30 = vshll.u32 %v12994_v62, 16  ;;  %v10734_v44 = vpack.c.bf16 %v446_v29, %v446_v29  ;;  %v10735_v14 = vpack.c.bf16 %v447_v3, %v447_v3  ;;  %v3901_v6 = vshll.u32 %v11087_v39, 16 }
 0x16c   : > { %2358 = vst [vmem:[#allocation2 + $0x1f0] sm:$0x1] %v2357_v13  ;;  %2372 = vst.msk [vmem:[#allocation2 + $0x210] sm:$0xf] %vm170_vm0, %v1756_v22  ;;  %v3930_v60 = vrot.slane %v3928_v34, 1  ;;  %v1765_v45 = vsel %vm12032_vm6, %v1757_v51, %v1764_v49  ;;  %v10736_v56 = vpack.c.bf16 %v448_v16, %v448_v16  ;;  %v10737_v43 = vpack.c.bf16 %v449_v21, %v449_v21  ;;  %v450_v58 = vld [vmem:[%s12020_s28 + $0x360] sm:$0xff] }
 0x16d   : > { %17176 = vst [vmem:[#allocation32_spill] sm:$0xff] %v13015_v1  ;;  %v13017_v18 = vrot.slane %v3933_v30, 1  ;;  %2373 = vst.msk [vmem:[#allocation2 + $0x214] sm:$0xf] %vm170_vm0, %v1765_v45  ;;  %v1768_v35 = vshrl.u32 %v10734_v44, 16  ;;  %v1771_v32 = vshll.u32 %v10734_v44, 16  ;;  %v3919_v30 = vor.u32 %v3917_v0, %v12979_v26 }
 0x16e   : > { %v3931_v23 = vor.u32 %v3930_v60, %v3926_v7  ;;  %v3903_v29 = vrot.slane %v3901_v6, 1  ;;  %v1776_v3 = vshrl.u32 %v10735_v14, 16  ;;  %v1779_v38 = vshll.u32 %v10735_v14, 16  ;;  %v2377_v53 = vld [vmem:[#allocation2 + $0x21c] sm:$0xf]  ;;  %v451_v4 = vld [vmem:[%s12020_s28 + $0x368] sm:$0xff] }
 0x16f   : > { %v1770_v15 = vrot.slane %v1768_v35, 7  ;;  %v1785_v51 = vshrl.u32 %v10736_v56, 16  ;;  %v1788_v16 = vshll.u32 %v10736_v56, 16  ;;  %v1794_v13 = vshrl.u32 %v10737_v43, 16  ;;  %v452_v14 = vld [vmem:[%s12020_s28 + $0x370] sm:$0xff]  ;;  %v453_v0 = vld [vmem:[%s12020_s28 + $0x378] sm:$0xff] }
 0x170   : > { %v3936_v34 = vsel %vm3424_vm2, %v3931_v23, %v13017_v18  ;;  %v3904_v39 = vsel %vm3424_vm2, %v3899_v37, %v3903_v29  ;;  %v1778_v22 = vrot.slane %v1776_v3, 7  ;;  %v1797_v49 = vshll.u32 %v10737_v43, 16  ;;  %v13033_v43 = vpop.permute.xlu0 %4067  ;;  %v2365_v26 = vld [vmem:[#allocation2 + $0x204] sm:$0x1] }
 0x171   : > { %4165 = vrot.lane.b32.xlu0 %v3936_v34, %s11595_s29  ;;  %4159 = vrot.lane.b32.xlu1 %v3904_v39, %s11595_s29  ;;  %v1773_v44 = vor.u32 %v1771_v32, %v1770_v15  ;;  %v13029_v60 = vpack.c.bf16 %v450_v58, %v450_v58  ;;  %v1774_v56 = vrot.slane %v1770_v15, 4  ;;  %v10739_v35 = vpack.c.bf16 %v451_v4, %v451_v4 }
 0x172   : > { %v2535_v7 = vld [vmem:[#allocation2 + $0x208] sm:$0xf]  ;;  %v2536_v21 = vld [vmem:[#allocation2 + $0x20c] sm:$0xf]  ;;  %v1781_v37 = vor.u32 %v1779_v38, %v1778_v22  ;;  %17178 = vst [vmem:[#allocation34_spill] sm:$0xff] %v13033_v43  ;;  %v1783_v23 = vrot.slane %v1778_v22, 4 }
 0x173   : > { %v13031_v6 = vcombine.low %v2535_v7, %v2536_v21  ;;  %v11090_v45 = vld [vmem:[#allocation2 + $0x1f0] ss:$0 sps:$4 sm:$0x11]   ;;  %v1787_v29 = vrot.slane %v1785_v51, 7  ;;  %v13035_v3 = vrot.slane %v1794_v13, 7  ;;  %v2378_v34 = vsel %vm12038_vm7, %v1773_v44, %v2377_v53 }
 0x174   : > { %v13040_v32 = vld [vmem:[#allocation2 + $0x210] sm:$0xff]   ;;  %v3921_v15 = vshll.u32 %v11090_v45, 16  ;;  %v1782_v38 = vsel %vm12032_vm6, %v1774_v56, %v1781_v37  ;;  %2379 = vst [vmem:[#allocation2 + $0x21c] sm:$0xf] %v2378_v34  ;;  %v1731_v53 = vrot.slane %v12954_v33, 4  ;;  %v10740_v44 = vpack.c.bf16 %v452_v14, %v452_v14  ;;  %v13063_v14 = vpop.permute.xlu0 %4073 }
 0x175   : > { %17177 = vst [vmem:[#allocation33_spill] sm:$0xff] %v13031_v6  ;;  %v3946_v58 = vshrl.u32 %v13031_v6, 16  ;;  %v3948_v39 = vshll.u32 %v13031_v6, 16  ;;  %v1790_v4 = vor.u32 %v1788_v16, %v1787_v29  ;;  %v1792_v51 = vrot.slane %v1787_v29, 4  ;;  %2380 = vst.msk [vmem:[#allocation2 + $0x220] sm:$0xf] %vm170_vm0, %v1782_v38 }
 0x176   : > { %v1799_v13 = vor.u32 %v1797_v49, %v13035_v3  ;;  %v3953_v7 = vshll.u32 %v13040_v32, 16  ;;  %v3923_v21 = vrot.slane %v3921_v15, 1  ;;  %v2366_v16 = vsel %vm12090_vm8, %v1731_v53, %v2365_v26  ;;  %v13056_v49 = vpop.permute.xlu1 %4069  ;;  %17180 = vst [vmem:[#allocation36_spill] sm:$0xff] %v13063_v14 }
 0x177   : > { %v3950_v22 = vrot.slane %v3948_v39, 1  ;;  %v1791_v45 = vsel %vm12032_vm6, %v1783_v23, %v1790_v4  ;;  %v10741_v37 = vpack.c.bf16 %v453_v0, %v453_v0  ;;  %17179 = vst [vmem:[#allocation35_spill] sm:$0xff] %v13056_v49  ;;  %2367 = vst [vmem:[#allocation2 + $0x204] sm:$0x1] %v2366_v16  ;;  %v1803_v23 = vshrl.u32 %v13029_v60, 16 }
 0x178   : > { %v1800_v56 = vsel %vm12032_vm6, %v1792_v51, %v1799_v13  ;;  %v13058_v34 = vrot.slane %v3953_v7, 1  ;;  %v3924_v33 = vsel %vm3424_vm2, %v3919_v30, %v3923_v21  ;;  %2381 = vst.msk [vmem:[#allocation2 + $0x224] sm:$0xf] %vm170_vm0, %v1791_v45  ;;  %v1806_v26 = vshll.u32 %v13029_v60, 16  ;;  %v2386_v4 = vld [vmem:[#allocation2 + $0x230] sm:$0xf] }
 0x179   : > { %v3951_v29 = vor.u32 %v3950_v22, %v3946_v58  ;;  %2382 = vst.msk [vmem:[#allocation2 + $0x228] sm:$0xf] %vm170_vm0, %v1800_v56  ;;  %4163 = vrot.lane.b32.xlu1 %v3924_v33, %s11595_s29  ;;  %v1811_v0 = vshrl.u32 %v10739_v35, 16  ;;  %v1814_v39 = vshll.u32 %v10739_v35, 16  ;;  %v1820_v30 = vshrl.u32 %v10740_v44, 16 }
 0x17a   : > { %v1823_v15 = vshll.u32 %v10740_v44, 16  ;;  %v1829_v38 = vshrl.u32 %v10741_v37, 16  ;;  %v2374_v51 = vld [vmem:[#allocation2 + $0x218] sm:$0x1]  ;;  %v1805_v53 = vrot.slane %v1803_v23, 7  ;;  %v1832_v7 = vshll.u32 %v10741_v37, 16  ;;  %v13079_v23 = vpop.permute.xlu1 %4071 }
 0x17b   : > { %v3956_v58 = vsel %vm3424_vm2, %v3951_v29, %v13058_v34  ;;  %v2539_v13 = vld [vmem:[#allocation2 + $0x21c] sm:$0xf]  ;;  %v1813_v22 = vrot.slane %v1811_v0, 7  ;;  %v1766_v60 = vrot.slane %v12992_v10, 4  ;;  %v3937_v21 = vshrl.u32 %v12994_v62, 16  ;;  %v454_v44 = vld [vmem:[%s12020_s28 + $0x380] sm:$0xff]  ;;  %v13084_v62 = vpop.permute.xlu0 %4077 }
 0x17c   : > { %4169 = vrot.lane.b32.xlu0 %v3956_v58, %s11595_s29  ;;  %v2540_v35 = vld [vmem:[#allocation2 + $0x220] sm:$0xf]  ;;  %v1822_v45 = vrot.slane %v1820_v30, 7  ;;  %v13073_v56 = vrot.slane %v1829_v38, 7  ;;  %v1808_v29 = vor.u32 %v1806_v26, %v1805_v53  ;;  %v1809_v33 = vrot.slane %v1805_v53, 4  ;;  %17182 = vst [vmem:[#allocation38_spill] sm:$0xff] %v13079_v23 }
 0x17d   : > { %v13076_v16 = vcombine.low %v2539_v13, %v2540_v35  ;;  %v1816_v58 = vor.u32 %v1814_v39, %v1813_v22  ;;  %v1818_v37 = vrot.slane %v1813_v22, 4  ;;  %17183 = vst [vmem:[#allocation39_spill] sm:$0xff] %v13084_v62  ;;  %v3939_v22 = vor.u32 %v3937_v21, %v13017_v18 }
 0x17e   : > { %v1825_v0 = vor.u32 %v1823_v15, %v1822_v45  ;;  %v1827_v10 = vrot.slane %v1822_v45, 4  ;;  %v1834_v24 = vor.u32 %v1832_v7, %v13073_v56  ;;  %v2387_v39 = vsel %vm12038_vm7, %v1808_v29, %v2386_v4  ;;  %v11093_v53 = vld [vmem:[#allocation2 + $0x204] ss:$0 sps:$4 sm:$0x11]  }
 0x17f   : > { %17181 = vst [vmem:[#allocation37_spill] sm:$0xff] %v13076_v16  ;;  %v3966_v38 = vshrl.u32 %v13076_v16, 16  ;;  %v1817_v26 = vsel %vm12032_vm6, %v1809_v33, %v1816_v58  ;;  %v2375_v15 = vsel %vm12090_vm8, %v1766_v60, %v2374_v51  ;;  %v3968_v13 = vshll.u32 %v13076_v16, 16  ;;  %2388 = vst [vmem:[#allocation2 + $0x230] sm:$0xf] %v2387_v39 }
 0x180   : > { %v13086_v30 = vld [vmem:[#allocation2 + $0x224] sm:$0xff]   ;;  %v1826_v7 = vsel %vm12032_vm6, %v1818_v37, %v1825_v0  ;;  %v1835_v35 = vsel %vm12032_vm6, %v1827_v10, %v1834_v24  ;;  %2389 = vst.msk [vmem:[#allocation2 + $0x234] sm:$0xf] %vm170_vm0, %v1817_v26  ;;  %2376 = vst [vmem:[#allocation2 + $0x218] sm:$0x1] %v2375_v15  ;;  %v3957_v51 = vshrl.u32 %v13040_v32, 16  ;;  %v10742_v18 = vpack.c.bf16 %v454_v44, %v454_v44  ;;  %v13108_v10 = vpop.permute.xlu1 %4075  ;;  %v13111_v32 = vpop.permute.xlu0 %4081 }
 0x181   : > { %v3973_v4 = vshll.u32 %v13086_v30, 16  ;;  %2390 = vst.msk [vmem:[#allocation2 + $0x238] sm:$0xf] %vm170_vm0, %v1826_v7  ;;  %2391 = vst.msk [vmem:[#allocation2 + $0x23c] sm:$0xf] %vm170_vm0, %v1835_v35  ;;  %v10743_v60 = vpack.c.bf16 %v455_v5, %v455_v5  ;;  %v3970_v21 = vrot.slane %v3968_v13, 1  ;;  %v10744_v29 = vpack.c.bf16 %v456_v9, %v456_v9 }
 0x182   : > { %v3941_v45 = vshll.u32 %v11093_v53, 16  ;;  %v10745_v33 = vpack.c.bf16 %v457_v57, %v457_v57  ;;  %v1838_v58 = vshrl.u32 %v10742_v18, 16  ;;  %v1841_v37 = vshll.u32 %v10742_v18, 16  ;;  %17184 = vst [vmem:[#allocation40_spill] sm:$0xff] %v13108_v10  ;;  %v458_v35 = vld [vmem:[%s12020_s28 + $0x3a0] sm:$0xff]  ;;  %17185 = vst [vmem:[#allocation41_spill] sm:$0xff] %v13111_v32 }
 0x183   : > { %v13106_v24 = vrot.slane %v3973_v4, 1  ;;  %v1846_v0 = vshrl.u32 %v10743_v60, 16  ;;  %v3971_v26 = vor.u32 %v3970_v21, %v3966_v38  ;;  %v1849_v15 = vshll.u32 %v10743_v60, 16  ;;  %v2395_v38 = vld [vmem:[#allocation2 + $0x244] sm:$0xf] }
 0x184   : > { %v3943_v39 = vrot.slane %v3941_v45, 1  ;;  %v1855_v7 = vshrl.u32 %v10744_v29, 16  ;;  %v1840_v44 = vrot.slane %v1838_v58, 7  ;;  %v1858_v13 = vshll.u32 %v10744_v29, 16 }
 0x185   : > { %v1848_v5 = vrot.slane %v1846_v0, 7  ;;  %v1864_v9 = vshrl.u32 %v10745_v33, 16  ;;  %v3976_v57 = vsel %vm3424_vm2, %v3971_v26, %v13106_v24  ;;  %v1867_v18 = vshll.u32 %v10745_v33, 16  ;;  %v459_v0 = vld [vmem:[%s12020_s28 + $0x3a8] sm:$0xff]  ;;  %v460_v33 = vld [vmem:[%s12020_s28 + $0x3b0] sm:$0xff] }
 0x186   : > { %v3944_v53 = vsel %vm3424_vm2, %v3939_v22, %v3943_v39  ;;  %v1857_v4 = vrot.slane %v1855_v7, 7  ;;  %4173 = vrot.lane.b32.xlu0 %v3976_v57, %s11595_s29  ;;  %v2543_v60 = vld [vmem:[#allocation2 + $0x230] sm:$0xf]  ;;  %v3959_v45 = vor.u32 %v3957_v51, %v13058_v34  ;;  %v1843_v58 = vor.u32 %v1841_v37, %v1840_v44  ;;  %v13129_v51 = vpop.permute.xlu1 %4079 }
 0x187   : > { %4167 = vrot.lane.b32.xlu1 %v3944_v53, %s11595_s29  ;;  %v2544_v21 = vld [vmem:[#allocation2 + $0x234] sm:$0xf]  ;;  %v1851_v29 = vor.u32 %v1849_v15, %v1848_v5  ;;  %v1844_v22 = vrot.slane %v1840_v44, 4  ;;  %v10746_v7 = vpack.c.bf16 %v458_v35, %v458_v35  ;;  %v11096_v11 = vld [vmem:[#allocation2 + $0x218] ss:$0 sps:$4 sm:$0x11]  }
 0x188   : > { %v13120_v16 = vcombine.low %v2543_v60, %v2544_v21  ;;  %v13122_v26 = vld [vmem:[#allocation2 + $0x238] sm:$0xff]   ;;  %v1860_v39 = vor.u32 %v1858_v13, %v1857_v4  ;;  %v1853_v57 = vrot.slane %v1848_v5, 4  ;;  %v1862_v6 = vrot.slane %v1857_v4, 4  ;;  %17187 = vst [vmem:[#allocation43_spill] sm:$0xff] %v13129_v51  ;;  %v2383_v35 = vld [vmem:[#allocation2 + $0x22c] sm:$0x1]  ;;  %v13137_v4 = vpop.permute.xlu0 %4085 }
 0x189   : > { %v13125_v53 = vrot.slane %v1864_v9, 7  ;;  %v2396_v34 = vsel %vm12038_vm7, %v1843_v58, %v2395_v38  ;;  %v3993_v44 = vshll.u32 %v13122_v26, 16  ;;  %v1852_v13 = vsel %vm12032_vm6, %v1844_v22, %v1851_v29  ;;  %v461_v5 = vld [vmem:[%s12020_s28 + $0x3b8] sm:$0xff]  ;;  %17188 = vst [vmem:[#allocation44_spill] sm:$0xff] %v13137_v4 }
 0x18a   : > { %17186 = vst [vmem:[#allocation42_spill] sm:$0xff] %v13120_v16  ;;  %v3986_v37 = vshrl.u32 %v13120_v16, 16  ;;  %v3988_v15 = vshll.u32 %v13120_v16, 16  ;;  %2397 = vst [vmem:[#allocation2 + $0x244] sm:$0xf] %v2396_v34  ;;  %v3961_v9 = vshll.u32 %v11096_v11, 16  ;;  %v1861_v38 = vsel %vm12032_vm6, %v1853_v57, %v1860_v39 }
 0x18b   : > { %v1869_v60 = vor.u32 %v1867_v18, %v13125_v53  ;;  %2398 = vst.msk [vmem:[#allocation2 + $0x248] sm:$0xf] %vm170_vm0, %v1852_v13  ;;  %v1801_v21 = vrot.slane %v13035_v3, 4  ;;  %v13144_v16 = vrot.slane %v3993_v44, 1  ;;  %2399 = vst.msk [vmem:[#allocation2 + $0x24c] sm:$0xf] %vm170_vm0, %v1861_v38  ;;  %v10747_v29 = vpack.c.bf16 %v459_v0, %v459_v0 }
 0x18c   : > { %v3990_v58 = vrot.slane %v3988_v15, 1  ;;  %v3963_v22 = vrot.slane %v3961_v9, 1  ;;  %v10748_v39 = vpack.c.bf16 %v460_v33, %v460_v33  ;;  %v10749_v18 = vpack.c.bf16 %v461_v5, %v461_v5  ;;  %v2404_v0 = vld [vmem:[#allocation2 + $0x258] sm:$0xf]  ;;  %v13153_v9 = vpop.permute.xlu1 %4083 }
 0x18d   : > { %v1870_v34 = vsel %vm12032_vm6, %v1862_v6, %v1869_v60  ;;  %v2384_v11 = vsel %vm12090_vm8, %v1801_v21, %v2383_v35  ;;  %v1873_v3 = vshrl.u32 %v10746_v7, 16  ;;  %v1876_v44 = vshll.u32 %v10746_v7, 16  ;;  %17189 = vst [vmem:[#allocation45_spill] sm:$0xff] %v13153_v9  ;;  %v2392_v60 = vld [vmem:[#allocation2 + $0x240] sm:$0x1]  ;;  %v13158_v21 = vpop.permute.xlu0 %4089 }
 0x18e   : > { %v3991_v57 = vor.u32 %v3990_v58, %v3986_v37  ;;  %2400 = vst.msk [vmem:[#allocation2 + $0x250] sm:$0xf] %vm170_vm0, %v1870_v34  ;;  %2385 = vst [vmem:[#allocation2 + $0x22c] sm:$0x1] %v2384_v11  ;;  %v3964_v15 = vsel %vm3424_vm2, %v3959_v45, %v3963_v22  ;;  %v1881_v13 = vshrl.u32 %v10747_v29, 16  ;;  %v1884_v38 = vshll.u32 %v10747_v29, 16 }
 0x18f   : > { %4171 = vrot.lane.b32.xlu1 %v3964_v15, %s11595_s29  ;;  %v1875_v33 = vrot.slane %v1873_v3, 7  ;;  %v1890_v37 = vshrl.u32 %v10748_v39, 16  ;;  %v1893_v35 = vshll.u32 %v10748_v39, 16  ;;  %17190 = vst [vmem:[#allocation46_spill] sm:$0xff] %v13158_v21  ;;  %v1899_v5 = vshrl.u32 %v10749_v18, 16 }
 0x190   : > { %v3996_v6 = vsel %vm3424_vm2, %v3991_v57, %v13144_v16  ;;  %v1883_v7 = vrot.slane %v1881_v13, 7  ;;  %v1902_v58 = vshll.u32 %v10749_v18, 16  ;;  %v1836_v29 = vrot.slane %v13073_v56, 4  ;;  %v462_v13 = vld [vmem:[%s12020_s28 + $0x3c0] sm:$0xff]  ;;  %v463_v18 = vld [vmem:[%s12020_s28 + $0x3c8] sm:$0xff] }
 0x191   : > { %4177 = vrot.lane.b32.xlu0 %v3996_v6, %s11595_s29  ;;  %v2547_v45 = vld [vmem:[#allocation2 + $0x244] sm:$0xf]  ;;  %v3977_v34 = vshrl.u32 %v13086_v30, 16  ;;  %v1878_v11 = vor.u32 %v1876_v44, %v1875_v33  ;;  %v1879_v39 = vrot.slane %v1875_v33, 4  ;;  %v1892_v57 = vrot.slane %v1890_v37, 7  ;;  %v464_v44 = vld [vmem:[%s12020_s28 + $0x3d0] sm:$0xff] }
 0x192   : > { %v13162_v22 = vld [vmem:[#allocation2 + $0x248] sm:$0xf]  ;;  %v1886_v15 = vor.u32 %v1884_v38, %v1883_v7  ;;  %v1888_v6 = vrot.slane %v1883_v7, 4  ;;  %v13168_v40 = vrot.slane %v1899_v5, 7  ;;  %v2393_v30 = vsel %vm12090_vm8, %v1836_v29, %v2392_v60  ;;  %v13185_v5 = vpop.permute.xlu1 %4087 }
 0x193   : > { %v13166_v3 = vcombine.low %v2547_v45, %v13162_v22  ;;  %v1895_v52 = vor.u32 %v1893_v35, %v1892_v57  ;;  %v1897_v56 = vrot.slane %v1892_v57, 4  ;;  %v2405_v41 = vsel %vm12038_vm7, %v1878_v11, %v2404_v0  ;;  %2394 = vst [vmem:[#allocation2 + $0x240] sm:$0x1] %v2393_v30  ;;  %v465_v35 = vld [vmem:[%s12020_s28 + $0x3d8] sm:$0xff]  ;;  %17192 = vst [vmem:[#allocation48_spill] sm:$0xff] %v13185_v5  ;;  %v13194_v57 = vpop.permute.xlu0 %4093 }
 0x194   : > { %v1887_v45 = vsel %vm12032_vm6, %v1879_v39, %v1886_v15  ;;  %v1904_v7 = vor.u32 %v1902_v58, %v13168_v40  ;;  %2406 = vst [vmem:[#allocation2 + $0x258] sm:$0xf] %v2405_v41  ;;  %v3979_v60 = vor.u32 %v3977_v34, %v13106_v24  ;;  %v3997_v11 = vshrl.u32 %v13122_v26, 16  ;;  %17193 = vst [vmem:[#allocation49_spill] sm:$0xff] %v13194_v57  ;;  %v11370_v5 = vld [vmem:[#allocation2 + $0x11c] sm:$0xf] }
 0x195   : > { %17191 = vst [vmem:[#allocation47_spill] sm:$0xff] %v13166_v3  ;;  %v13177_v33 = vld [vmem:[#allocation2 + $0x24c] sm:$0xff]   ;;  %v4006_v37 = vshrl.u32 %v13166_v3, 16  ;;  %v4008_v38 = vshll.u32 %v13166_v3, 16  ;;  %v1896_v29 = vsel %vm12032_vm6, %v1888_v6, %v1895_v52  ;;  %2407 = vst.msk [vmem:[#allocation2 + $0x25c] sm:$0xf] %vm170_vm0, %v1887_v45  ;;  %v10750_v15 = vpack.c.bf16 %v462_v13, %v462_v13 }
 0x196   : > { %v13187_v0 = vld [vmem:[#allocation2 + $0x22c] ss:$0 sps:$4 sm:$0x11]   ;;  %v4013_v41 = vshll.u32 %v13177_v33, 16  ;;  %v1905_v58 = vsel %vm12032_vm6, %v1897_v56, %v1904_v7  ;;  %2408 = vst.msk [vmem:[#allocation2 + $0x260] sm:$0xf] %vm170_vm0, %v1896_v29  ;;  %v10751_v52 = vpack.c.bf16 %v463_v18, %v463_v18  ;;  %v10752_v34 = vpack.c.bf16 %v464_v44, %v464_v44 }
 0x197   : > { %v4010_v39 = vrot.slane %v4008_v38, 1  ;;  %v3981_v24 = vshll.u32 %v13187_v0, 16  ;;  %2409 = vst.msk [vmem:[#allocation2 + $0x264] sm:$0xf] %vm170_vm0, %v1905_v58  ;;  %v10753_v6 = vpack.c.bf16 %v465_v35, %v465_v35  ;;  %v1908_v45 = vshrl.u32 %v10750_v15, 16  ;;  %v13206_v58 = vpop.permute.xlu1 %4091 }
 0x198   : > { %v13202_v26 = vrot.slane %v4013_v41, 1  ;;  %v1911_v38 = vshll.u32 %v10750_v15, 16  ;;  %v1916_v54 = vshrl.u32 %v10751_v52, 16  ;;  %v1919_v48 = vshll.u32 %v10751_v52, 16  ;;  %17194 = vst [vmem:[#allocation50_spill] sm:$0xff] %v13206_v58 }
 0x199   : > { %v4011_v30 = vor.u32 %v4010_v39, %v4006_v37  ;;  %v3983_v3 = vrot.slane %v3981_v24, 1  ;;  %v1925_v63 = vshrl.u32 %v10752_v34, 16  ;;  %v1910_v13 = vrot.slane %v1908_v45, 7  ;;  %v13210_v39 = vpop.permute.xlu0 %4097 }
 0x19a   : > { %v1928_v7 = vshll.u32 %v10752_v34, 16  ;;  %v1934_v29 = vshrl.u32 %v10753_v6, 16  ;;  %v1918_v37 = vrot.slane %v1916_v54, 7  ;;  %17195 = vst [vmem:[#allocation51_spill] sm:$0xff] %v13210_v39  ;;  %v3999_v24 = vor.u32 %v3997_v11, %v13144_v16  ;;  %v2401_v54 = vld [vmem:[#allocation2 + $0x254] sm:$0x1] }
 0x19b   : > { %v4016_v56 = vsel %vm3424_vm2, %v4011_v30, %v13202_v26  ;;  %v3984_v18 = vsel %vm3424_vm2, %v3979_v60, %v3983_v3  ;;  %v2551_v44 = vld [vmem:[#allocation2 + $0x258] sm:$0xf]  ;;  %v1927_v35 = vrot.slane %v1925_v63, 7  ;;  %v13215_v15 = vld [vmem:[#allocation2 + $0x240] ss:$0 sps:$4 sm:$0x11]   ;;  %v1913_v52 = vor.u32 %v1911_v38, %v1910_v13 }
 0x19c   : > { %4181 = vrot.lane.b32.xlu0 %v4016_v56, %s11595_s29  ;;  %4175 = vrot.lane.b32.xlu1 %v3984_v18, %s11595_s29  ;;  %v13213_v41 = vld [vmem:[#allocation2 + $0x25c] sm:$0xf]  ;;  %v1914_v34 = vrot.slane %v1910_v13, 4  ;;  %v1921_v45 = vor.u32 %v1919_v48, %v1918_v37  ;;  %v1923_v3 = vrot.slane %v1918_v37, 4  ;;  %v4001_v56 = vshll.u32 %v13215_v15, 16 }
 0x19d   : > { %v13219_v30 = vcombine.low %v2551_v44, %v13213_v41  ;;  %v1930_v60 = vor.u32 %v1928_v7, %v1927_v35  ;;  %v1932_v18 = vrot.slane %v1927_v35, 4  ;;  %v1936_v39 = vrot.slane %v1934_v29, 7  ;;  %v13236_v29 = vpop.permute.xlu1 %4095  ;;  %v2410_v35 = vld [vmem:[#allocation2 + $0x268] sm:$0x1] }
 0x19e   : > { %v13221_v63 = vld [vmem:[#allocation2 + $0x260] sm:$0xff]   ;;  %v2414_v57 = vsel %vm12038_vm7, %v1913_v52, %v2413_v20  ;;  %v1922_v38 = vsel %vm12032_vm6, %v1914_v34, %v1921_v45  ;;  %v4003_v7 = vrot.slane %v4001_v56, 1  ;;  %v1937_v44 = vshll.u32 %v10753_v6, 16  ;;  %17197 = vst [vmem:[#allocation53_spill] sm:$0xff] %v13236_v29  ;;  %v13238_v52 = vpop.permute.xlu0 %4101 }
 0x19f   : > { %17196 = vst [vmem:[#allocation52_spill] sm:$0xff] %v13219_v30  ;;  %v4026_v16 = vshrl.u32 %v13219_v30, 16  ;;  %v4028_v11 = vshll.u32 %v13219_v30, 16  ;;  %v1931_v48 = vsel %vm12032_vm6, %v1923_v3, %v1930_v60  ;;  %2415 = vst [vmem:[#allocation2 + $0x26c] sm:$0xf] %v2414_v57  ;;  %v4033_v13 = vshll.u32 %v13221_v63, 16 }
 0x1a0   : > { %2416 = vst.msk [vmem:[#allocation2 + $0x270] sm:$0xf] %vm170_vm0, %v1922_v38  ;;  %2417 = vst.msk [vmem:[#allocation2 + $0x274] sm:$0xf] %vm170_vm0, %v1931_v48  ;;  %v1871_v20 = vrot.slane %v13125_v53, 4  ;;  %v4004_v45 = vsel %vm3424_vm2, %v3999_v24, %v4003_v7  ;;  %v1939_v57 = vor.u32 %v1937_v44, %v1936_v39  ;;  %v1906_v60 = vrot.slane %v13168_v40, 4 }
 0x1a1   : > { %v4030_v37 = vrot.slane %v4028_v11, 1  ;;  %17198 = vst [vmem:[#allocation54_spill] sm:$0xff] %v13238_v52  ;;  %v4035_v34 = vrot.slane %v4033_v13, 1  ;;  %4179 = vrot.lane.b32.xlu1 %v4004_v45, %s11595_s29  ;;  %v2419_v11 = vld [vmem:[#allocation2 + $0x27c] sm:$0x1]  ;;  %v13252_v38 = vpop.permute.xlu1 %4099  ;;  %v4017_v44 = vshrl.u32 %v13177_v33, 16 }
 0x1a2   : > { %v2402_v3 = vsel %vm12090_vm8, %v1871_v20, %v2401_v54  ;;  %v1940_v53 = vsel %vm12032_vm6, %v1932_v18, %v1939_v57  ;;  %v2411_v24 = vsel %vm12090_vm8, %v1906_v60, %v2410_v35  ;;  %17199 = vst [vmem:[#allocation55_spill] sm:$0xff] %v13252_v38  ;;  %v2591_v40 = vld [vmem:[#allocation2] sm:$0xe]  ;;  %v13256_v13 = vpop.permute.xlu0 %4105  ;;  %v4037_v57 = vshrl.u32 %v13221_v63, 16  ;;  %v2593_v52 = vld [vmem:[#allocation2 + $0x28] sm:$0xe] }
 0x1a3   : > { %v4031_v6 = vor.u32 %v4030_v37, %v4026_v16  ;;  %2403 = vst [vmem:[#allocation2 + $0x254] sm:$0x1] %v2402_v3  ;;  %2418 = vst.msk [vmem:[#allocation2 + $0x278] sm:$0xf] %vm170_vm0, %v1940_v53  ;;  %v1941_v16 = vrot.slane %v1936_v39, 4  ;;  %v4346_v47 = vrot.slane %v11363_v27, 1 }
 0x1a4   : > { %2412 = vst [vmem:[#allocation2 + $0x268] sm:$0x1] %v2411_v24  ;;  %17200 = vst [vmem:[#allocation56_spill] sm:$0xff] %v13256_v13  ;;  %v11330_v37 = vld [vmem:[#allocation2 + $0x4] sm:$0xf]  ;;  %v4039_v13 = vor.u32 %v4037_v57, %v4035_v34  ;;  %v4361_v4 = vrot.slane %v11372_v46, 1 }
 0x1a5   : > { %v4036_v56 = vsel %vm3424_vm2, %v4031_v6, %v4035_v34  ;;  %v2420_v7 = vsel %vm12090_vm8, %v1941_v16, %v2419_v11  ;;  %v10269_v35 = vcombine.low %v2591_v40, %v11330_v37  ;;  %v2592_v3 = vld [vmem:[#allocation2 + $0x14] sm:$0xe]  ;;  %v13271_v53 = vpop.permute.xlu1 %4103  ;;  %v11331_v37 = vld [vmem:[#allocation2 + $0x8] sm:$0xff]   ;;  %vm8615_vm1 = vcmask 146432  }
 0x1a6   : > { %4185 = vrot.lane.b32.xlu0 %v4036_v56, %s11595_s29  ;;  %v2555_v54 = vld [vmem:[#allocation2 + $0x26c] sm:$0xf]  ;;  %2421 = vst [vmem:[#allocation2 + $0x27c] sm:$0x1] %v2420_v7  ;;  %17202 = vst [vmem:[#allocation58_spill] sm:$0xff] %v13271_v53  ;;  %v4019_v56 = vor.u32 %v4017_v44, %v13202_v26  ;;  %vm8744_vm3 = vcmask 171008  }
 0x1a7   : > { %v13254_v48 = vld [vmem:[#allocation2 + $0x270] sm:$0xf]  ;;  %v4290_v7 = vrot.slane %v10269_v35, 1  ;;  %v11332_v44 = vld [vmem:[#allocation2 + $0x18] sm:$0xf]  ;;  %vm9024_vm5 = vcmask 220160  }
 0x1a8   : > { %v13259_v18 = vcombine.low %v2555_v54, %v13254_v48  ;;  %v13277_v54 = vpop.permute.xlu0 %4109  ;;  %v10270_v38 = vcombine.low %v2592_v3, %v11332_v44 }
 0x1a9   : > { %17203 = vst [vmem:[#allocation59_spill] sm:$0xff] %v13277_v54  ;;  %v13288_v34 = vpop.permute.xlu1 %4107 }
 0x1aa   : > { %17201 = vst [vmem:[#allocation57_spill] sm:$0xff] %v13259_v18  ;;  %v4046_v20 = vshrl.u32 %v13259_v18, 16  ;;  %v4048_v39 = vshll.u32 %v13259_v18, 16  ;;  %v13266_v45 = vld [vmem:[#allocation2 + $0x254] ss:$0 sps:$4 sm:$0x11]  }
 0x1ab   : > { %v13269_v6 = vld [vmem:[#allocation2 + $0x274] sm:$0xff]   ;;  %v4021_v24 = vshll.u32 %v13266_v45, 16  ;;  %v13275_v11 = vld [vmem:[#allocation2 + $0x268] ss:$0 sps:$4 sm:$0x11]   ;;  %v4291_v18 = vrot.slane %v11331_v37, 1 }
 0x1ac   : > { %v4050_v60 = vrot.slane %v4048_v39, 1  ;;  %v4053_v40 = vshll.u32 %v13269_v6, 16  ;;  %v4041_v39 = vshll.u32 %v13275_v11, 16  ;;  %v4057_v53 = vshrl.u32 %v13269_v6, 16  ;;  %17204 = vst [vmem:[#allocation60_spill] sm:$0xff] %v13288_v34 }
 0x1ad   : > { %v4023_v30 = vrot.slane %v4021_v24, 1  ;;  %v13282_v29 = vld [vmem:[#allocation2 + $0x27c] ss:$0 sps:$4 sm:$0x11]   ;;  %v4292_v57 = vsel %vm4289_vm9, %v4290_v7, %v4291_v18  ;;  %v4295_v37 = vrot.slane %v10270_v38, 1 }
 0x1ae   : > { %v4051_v16 = vor.u32 %v4050_v60, %v4046_v20  ;;  %v4055_v26 = vrot.slane %v4053_v40, 1  ;;  %v4043_v20 = vrot.slane %v4041_v39, 1  ;;  %v4061_v35 = vshll.u32 %v13282_v29, 16  ;;  %v13293_v40 = vpop.permute.xlu0 %4113  ;;  %v11335_v7 = vld [vmem:[#allocation2 + $0x10] ss:$0 sps:$4 sm:$0x11]  }
 0x1af   : > { %v4024_v54 = vsel %vm3424_vm2, %v4019_v56, %v4023_v30  ;;  %17205 = vst [vmem:[#allocation61_spill] sm:$0xff] %v13293_v40  ;;  %v11333_v30 = vld [vmem:[#allocation2 + $0x1c] sm:$0xff]   ;;  %v4293_v34 = vrot.slane %v11335_v7, 1 }
 0x1b0   : > { %v4056_v60 = vsel %vm3424_vm2, %v4051_v16, %v4055_v26  ;;  %4183 = vrot.lane.b32.xlu1 %v4024_v54, %s11595_s29  ;;  %v4044_v24 = vsel %vm3424_vm2, %v4039_v13, %v4043_v20  ;;  %v4059_v3 = vor.u32 %v4057_v53, %v4055_v26  ;;  %v4296_v56 = vrot.slane %v11333_v30, 1  ;;  %v11334_v16 = vld [vmem:[#allocation2 + $0x2c] sm:$0xf]  ;;  %v2594_v54 = vld [vmem:[#allocation2 + $0x3c] sm:$0xe]  ;;  %v11336_v26 = vld [vmem:[#allocation2 + $0x30] sm:$0xff]  }
 0x1b1   : > { %4189 = vrot.lane.b32.xlu0 %v4056_v60, %s11595_s29  ;;  %v4063_v39 = vrot.slane %v4061_v35, 1  ;;  %v10271_v44 = vcombine.low %v2593_v52, %v11334_v16  ;;  %v4301_v38 = vrot.slane %v11336_v26, 1  ;;  %v11337_v20 = vld [vmem:[#allocation2 + $0x40] sm:$0xf]  ;;  %v13299_v35 = vpop.permute.xlu1 %4111  ;;  %v2595_v52 = vld [vmem:[#allocation2 + $0x50] sm:$0xe] }
 0x1b2   : > { %v4297_v13 = vsel %vm4289_vm9, %v4295_v37, %v4296_v56  ;;  %v10272_v30 = vcombine.low %v2594_v54, %v11337_v20  ;;  %17206 = vst [vmem:[#allocation62_spill] sm:$0xff] %v13299_v35  ;;  %v13301_v16 = vpop.permute.xlu0 %4117  ;;  %v11340_v26 = vld [vmem:[#allocation2 + $0x54] sm:$0xf]  ;;  %v2596_v20 = vld [vmem:[#allocation2 + $0x64] sm:$0xe] }
 0x1b3   : > { %v4064_v60 = vsel %vm3424_vm2, %v4059_v3, %v4063_v39  ;;  %v4300_v53 = vrot.slane %v10271_v44, 1  ;;  %17207 = vst [vmem:[#allocation63_spill] sm:$0xff] %v13301_v16  ;;  %v11339_v44 = vld [vmem:[#allocation2 + $0x44] sm:$0xff]   ;;  %v10273_v54 = vcombine.low %v2595_v52, %v11340_v26  ;;  %v2597_v26 = vld [vmem:[#allocation2 + $0x78] sm:$0xe] }
 0x1b4   : > { %4187 = vrot.lane.b32.xlu1 %v4044_v24, %s11595_s29  ;;  %v11338_v24 = vld [vmem:[#allocation2 + $0x24] ss:$0 sps:$4 sm:$0x11]   ;;  %v4305_v39 = vrot.slane %v10272_v30, 1  ;;  %v4306_v7 = vrot.slane %v11339_v44, 1 }
 0x1b5   : > { %4450 = vrot.lane.b32.xlu0 %v4292_v57, %s11596_s30  ;;  %v4294_v57 = vsel %vm4289_vm9, %v4291_v18, %v4293_v34  ;;  %v4298_v3 = vrot.slane %v11338_v24, 1  ;;  %v4302_v37 = vsel %vm4289_vm9, %v4300_v53, %v4301_v38  ;;  %v13308_v40 = vpop.permute.xlu1 %4115  ;;  %v4310_v30 = vrot.slane %v10273_v54, 1  ;;  %v11342_v24 = vld [vmem:[#allocation2 + $0x58] sm:$0xff]   ;;  %v11343_v16 = vld [vmem:[#allocation2 + $0x68] sm:$0xf] }
 0x1b6   : > { %17208 = vst [vmem:[#allocation64_spill] sm:$0xff] %v13308_v40  ;;  %v13312_v34 = vpop.permute.xlu0 %4121  ;;  %v4307_v53 = vsel %vm4289_vm9, %v4305_v39, %v4306_v7  ;;  %v4311_v44 = vrot.slane %v11342_v24, 1  ;;  %v10274_v52 = vcombine.low %v2596_v20, %v11343_v16  ;;  %v11346_v39 = vld [vmem:[#allocation2 + $0x7c] sm:$0xf]  ;;  %v2598_v24 = vld [vmem:[#allocation2 + $0x8c] sm:$0xe] }
 0x1b7   : > { %17209 = vst [vmem:[#allocation65_spill] sm:$0xff] %v13312_v34  ;;  %v11345_v34 = vld [vmem:[#allocation2 + $0x6c] sm:$0xff]   ;;  %v10275_v54 = vcombine.low %v2597_v26, %v11346_v39  ;;  %v11347_v20 = vld [vmem:[#allocation2 + $0x60] ss:$0 sps:$4 sm:$0x11]  }
 0x1b8   : > { %4191 = vrot.lane.b32.xlu1 %v4064_v60, %s11595_s29  ;;  %v4299_v60 = vsel %vm4289_vm9, %v4296_v56, %v4298_v3  ;;  %v4312_v3 = vsel %vm4289_vm9, %v4310_v30, %v4311_v44  ;;  %v4316_v40 = vrot.slane %v11345_v34, 1  ;;  %v11348_v30 = vld [vmem:[#allocation2 + $0x80] sm:$0xff]  }
 0x1b9   : > { %4454 = vrot.lane.b32.xlu0 %v4297_v13, %s11596_s30  ;;  %v11341_v13 = vld [vmem:[#allocation2 + $0x38] ss:$0 sps:$4 sm:$0x11]   ;;  %v13319_v35 = vpop.permute.xlu1 %4119  ;;  %v4321_v34 = vrot.slane %v11348_v30, 1 }
 0x1ba   : > { %v4303_v18 = vrot.slane %v11341_v13, 1  ;;  %v4315_v13 = vrot.slane %v10274_v52, 1  ;;  %17210 = vst [vmem:[#allocation66_spill] sm:$0xff] %v13319_v35  ;;  %v13321_v16 = vpop.permute.xlu0 %4125  ;;  %v11349_v52 = vld [vmem:[#allocation2 + $0x90] sm:$0xf] }
 0x1bb   : > { %17211 = vst [vmem:[#allocation67_spill] sm:$0xff] %v13321_v16  ;;  %v10276_v26 = vcombine.low %v2598_v24, %v11349_v52  ;;  %v11352_v16 = vld [vmem:[#allocation2 + $0xa4] sm:$0xf]  ;;  %v2600_v52 = vld [vmem:[#allocation2 + $0xb4] sm:$0xe] }
 0x1bc   : > { %4452 = vrot.lane.b32.xlu1 %v4294_v57, %s11596_s30  ;;  %v4304_v57 = vsel %vm4289_vm9, %v4301_v38, %v4303_v18  ;;  %v4317_v18 = vsel %vm4289_vm9, %v4315_v13, %v4316_v40 }
 0x1bd   : > { %4458 = vrot.lane.b32.xlu0 %v4302_v37, %s11596_s30  ;;  %v11344_v37 = vld [vmem:[#allocation2 + $0x4c] ss:$0 sps:$4 sm:$0x11]   ;;  %v13328_v39 = vpop.permute.xlu1 %4123 }
 0x1be   : > { %v4308_v56 = vrot.slane %v11344_v37, 1  ;;  %v2599_v37 = vld [vmem:[#allocation2 + $0xa0] sm:$0xe]  ;;  %17212 = vst [vmem:[#allocation68_spill] sm:$0xff] %v13328_v39  ;;  %v11354_v39 = vld [vmem:[#allocation2 + $0xa8] sm:$0xff]  }
 0x1bf   : > { %v10277_v24 = vcombine.low %v2599_v37, %v11352_v16  ;;  %v4331_v35 = vrot.slane %v11354_v39, 1  ;;  %v11356_v37 = vld [vmem:[#allocation2 + $0x9c] ss:$0 sps:$4 sm:$0x11]  }
 0x1c0   : > { %4456 = vrot.lane.b32.xlu1 %v4299_v60, %s11596_s30  ;;  %v4309_v38 = vsel %vm4289_vm9, %v4306_v7, %v4308_v56  ;;  %v4313_v60 = vrot.slane %v11347_v20, 1  ;;  %v13332_v56 = vpop.permute.xlu0 %4129  ;;  %v11351_v20 = vld [vmem:[#allocation2 + $0x94] sm:$0xff]  }
 0x1c1   : > { %4462 = vrot.lane.b32.xlu0 %v4307_v53, %s11596_s30  ;;  %v4320_v53 = vrot.slane %v10275_v54, 1  ;;  %17213 = vst [vmem:[#allocation69_spill] sm:$0xff] %v13332_v56  ;;  %v4325_v54 = vrot.slane %v10276_v26, 1  ;;  %v4326_v30 = vrot.slane %v11351_v20, 1  ;;  %v13339_v58 = vpop.permute.xlu1 %4127  ;;  %v2601_v20 = vld [vmem:[#allocation2 + $0xc8] sm:$0xe] }
 0x1c2   : > { %17214 = vst [vmem:[#allocation70_spill] sm:$0xff] %v13339_v58  ;;  %v11361_v58 = vld [vmem:[#allocation2 + $0xe0] sm:$0xf] }
 0x1c3   : > { %v4322_v13 = vsel %vm4289_vm9, %v4320_v53, %v4321_v34  ;;  %v11355_v53 = vld [vmem:[#allocation2 + $0xb8] sm:$0xf] }
 0x1c4   : > { %4460 = vrot.lane.b32.xlu1 %v4304_v57, %s11596_s30  ;;  %v4314_v57 = vsel %vm4289_vm9, %v4311_v44, %v4313_v60  ;;  %v4327_v60 = vsel %vm4289_vm9, %v4325_v54, %v4326_v30  ;;  %v10278_v26 = vcombine.low %v2600_v52, %v11355_v53  ;;  %v13341_v16 = vpop.permute.xlu0 %4133  ;;  %v11357_v54 = vld [vmem:[#allocation2 + $0xbc] sm:$0xff]  }
 0x1c5   : > { %4466 = vrot.lane.b32.xlu0 %v4312_v3, %s11596_s30  ;;  %v11350_v3 = vld [vmem:[#allocation2 + $0x74] ss:$0 sps:$4 sm:$0x11]   ;;  %17215 = vst [vmem:[#allocation71_spill] sm:$0xff] %v13341_v16  ;;  %v4336_v39 = vrot.slane %v11357_v54, 1  ;;  %v13348_v53 = vpop.permute.xlu1 %4131 }
 0x1c6   : > { %v4318_v7 = vrot.slane %v11350_v3, 1  ;;  %v4330_v3 = vrot.slane %v10277_v24, 1  ;;  %v11358_v24 = vld [vmem:[#allocation2 + $0xcc] sm:$0xf]  ;;  %17216 = vst [vmem:[#allocation72_spill] sm:$0xff] %v13348_v53 }
 0x1c7   : > { %v10279_v52 = vcombine.low %v2601_v20, %v11358_v24  ;;  %v2603_v24 = vld [vmem:[#allocation2 + $0xf0] sm:$0xe] }
 0x1c8   : > { %4464 = vrot.lane.b32.xlu1 %v4309_v38, %s11596_s30  ;;  %v4319_v38 = vsel %vm4289_vm9, %v4316_v40, %v4318_v7  ;;  %v4332_v7 = vsel %vm4289_vm9, %v4330_v3, %v4331_v35 }
 0x1c9   : > { %4470 = vrot.lane.b32.xlu0 %v4317_v18, %s11596_s30  ;;  %v11353_v18 = vld [vmem:[#allocation2 + $0x88] ss:$0 sps:$4 sm:$0x11]   ;;  %v13359_v21 = vpop.permute.xlu1 %4135 }
 0x1ca   : > { %v4323_v44 = vrot.slane %v11353_v18, 1  ;;  %v2602_v18 = vld [vmem:[#allocation2 + $0xdc] sm:$0xe]  ;;  %17218 = vst [vmem:[#allocation74_spill] sm:$0xff] %v13359_v21 }
 0x1cb   : > { %v10280_v20 = vcombine.low %v2602_v18, %v11361_v58  ;;  %v11365_v18 = vld [vmem:[#allocation2 + $0xd8] ss:$0 sps:$4 sm:$0x11]  }
 0x1cc   : > { %4468 = vrot.lane.b32.xlu1 %v4314_v57, %s11596_s30  ;;  %v4324_v40 = vsel %vm4289_vm9, %v4321_v34, %v4323_v44  ;;  %v4328_v57 = vrot.slane %v11356_v37, 1  ;;  %v13352_v44 = vpop.permute.xlu0 %4137  ;;  %v11360_v37 = vld [vmem:[#allocation2 + $0xd0] sm:$0xff]  }
 0x1cd   : > { %4474 = vrot.lane.b32.xlu0 %v4322_v13, %s11596_s30  ;;  %v4335_v13 = vrot.slane %v10278_v26, 1  ;;  %17217 = vst [vmem:[#allocation73_spill] sm:$0xff] %v13352_v44  ;;  %v4340_v26 = vrot.slane %v10279_v52, 1  ;;  %v4341_v54 = vrot.slane %v11360_v37, 1  ;;  %v2604_v37 = vld [vmem:[#allocation2 + $0x104] sm:$0xe] }
 0x1cf   : > { %v4337_v3 = vsel %vm4289_vm9, %v4335_v13, %v4336_v39  ;;  %v11364_v13 = vld [vmem:[#allocation2 + $0xf4] sm:$0xf] }
 0x1d0   : > { %4472 = vrot.lane.b32.xlu1 %v4319_v38, %s11596_s30  ;;  %v4329_v38 = vsel %vm4289_vm9, %v4326_v30, %v4328_v57  ;;  %v4342_v57 = vsel %vm4289_vm9, %v4340_v26, %v4341_v54  ;;  %v10281_v52 = vcombine.low %v2603_v24, %v11364_v13  ;;  %v13361_v58 = vpop.permute.xlu0 %4141  ;;  %v11366_v26 = vld [vmem:[#allocation2 + $0xf8] sm:$0xff]   ;;  %v13368_v13 = vpop.permute.xlu1 %4139 }
 0x1d1   : > { %4478 = vrot.lane.b32.xlu0 %v4327_v60, %s11596_s30  ;;  %v11359_v60 = vld [vmem:[#allocation2 + $0xb0] ss:$0 sps:$4 sm:$0x11]   ;;  %17219 = vst [vmem:[#allocation75_spill] sm:$0xff] %v13361_v58  ;;  %v4351_v27 = vrot.slane %v11366_v26, 1  ;;  %17220 = vst [vmem:[#allocation76_spill] sm:$0xff] %v13368_v13 }
 0x1d2   : > { %v4333_v34 = vrot.slane %v11359_v60, 1  ;;  %v4345_v60 = vrot.slane %v10280_v20, 1  ;;  %v11367_v20 = vld [vmem:[#allocation2 + $0x108] sm:$0xf] }
 0x1d3   : > { %v10282_v24 = vcombine.low %v2604_v37, %v11367_v20  ;;  %v2606_v20 = vld [vmem:[#allocation2 + $0x12c] sm:$0xe] }
 0x1d4   : > { %4476 = vrot.lane.b32.xlu1 %v4324_v40, %s11596_s30  ;;  %v4334_v40 = vsel %vm4289_vm9, %v4331_v35, %v4333_v34  ;;  %v4347_v34 = vsel %vm4289_vm9, %v4345_v60, %v4346_v47  ;;  %v13379_v25 = vpop.permute.xlu1 %4143 }
 0x1d5   : > { %4482 = vrot.lane.b32.xlu0 %v4332_v7, %s11596_s30  ;;  %v11362_v7 = vld [vmem:[#allocation2 + $0xc4] ss:$0 sps:$4 sm:$0x11]   ;;  %17222 = vst [vmem:[#allocation78_spill] sm:$0xff] %v13379_v25 }
 0x1d6   : > { %v4338_v30 = vrot.slane %v11362_v7, 1  ;;  %v2605_v7 = vld [vmem:[#allocation2 + $0x118] sm:$0xe] }
 0x1d7   : > { %v10283_v37 = vcombine.low %v2605_v7, %v11370_v5  ;;  %v11374_v7 = vld [vmem:[#allocation2 + $0x114] ss:$0 sps:$4 sm:$0x11]  }
 0x1d8   : > { %4480 = vrot.lane.b32.xlu1 %v4329_v38, %s11596_s30  ;;  %v4339_v35 = vsel %vm4289_vm9, %v4336_v39, %v4338_v30  ;;  %v4343_v38 = vrot.slane %v11365_v18, 1  ;;  %v13372_v30 = vpop.permute.xlu0 %4145  ;;  %v11369_v18 = vld [vmem:[#allocation2 + $0x10c] sm:$0xff]  }
 0x1d9   : > { %4486 = vrot.lane.b32.xlu0 %v4337_v3, %s11596_s30  ;;  %v4350_v3 = vrot.slane %v10281_v52, 1  ;;  %17221 = vst [vmem:[#allocation77_spill] sm:$0xff] %v13372_v30  ;;  %v4355_v52 = vrot.slane %v10282_v24, 1  ;;  %v4356_v26 = vrot.slane %v11369_v18, 1  ;;  %v2607_v18 = vld [vmem:[#allocation2 + $0x140] sm:$0xe] }
 0x1db   : > { %v4352_v60 = vsel %vm4289_vm9, %v4350_v3, %v4351_v27  ;;  %v11373_v3 = vld [vmem:[#allocation2 + $0x130] sm:$0xf] }
 0x1dc   : > { %4484 = vrot.lane.b32.xlu1 %v4334_v40, %s11596_s30  ;;  %v4344_v40 = vsel %vm4289_vm9, %v4341_v54, %v4343_v38  ;;  %v4357_v38 = vsel %vm4289_vm9, %v4355_v52, %v4356_v26  ;;  %v10284_v24 = vcombine.low %v2606_v20, %v11373_v3  ;;  %v13381_v5 = vpop.permute.xlu0 %4149  ;;  %v11375_v52 = vld [vmem:[#allocation2 + $0x134] sm:$0xff]   ;;  %v13388_v3 = vpop.permute.xlu1 %4147 }
 0x1dd   : > { %4490 = vrot.lane.b32.xlu0 %v4342_v57, %s11596_s30  ;;  %v11368_v57 = vld [vmem:[#allocation2 + $0xec] ss:$0 sps:$4 sm:$0x11]   ;;  %17223 = vst [vmem:[#allocation79_spill] sm:$0xff] %v13381_v5  ;;  %v4366_v46 = vrot.slane %v11375_v52, 1  ;;  %17224 = vst [vmem:[#allocation80_spill] sm:$0xff] %v13388_v3 }
 0x1de   : > { %v4348_v39 = vrot.slane %v11368_v57, 1  ;;  %v4360_v57 = vrot.slane %v10283_v37, 1  ;;  %v11376_v37 = vld [vmem:[#allocation2 + $0x144] sm:$0xf]  ;;  %v11379_v5 = vld [vmem:[#allocation2 + $0x158] sm:$0xf] }
 0x1df   : > { %v10285_v20 = vcombine.low %v2607_v18, %v11376_v37  ;;  %v2609_v37 = vld [vmem:[#allocation2 + $0x168] sm:$0xe] }
 0x1e0   : > { %4488 = vrot.lane.b32.xlu1 %v4339_v35, %s11596_s30  ;;  %v4349_v35 = vsel %vm4289_vm9, %v4346_v47, %v4348_v39  ;;  %v4362_v39 = vsel %vm4289_vm9, %v4360_v57, %v4361_v4  ;;  %v13399_v9 = vpop.permute.xlu1 %4151 }
 0x1e1   : > { %4494 = vrot.lane.b32.xlu0 %v4347_v34, %s11596_s30  ;;  %v11371_v34 = vld [vmem:[#allocation2 + $0x100] ss:$0 sps:$4 sm:$0x11]   ;;  %17226 = vst [vmem:[#allocation82_spill] sm:$0xff] %v13399_v9 }
 0x1e2   : > { %v4353_v54 = vrot.slane %v11371_v34, 1  ;;  %v2608_v34 = vld [vmem:[#allocation2 + $0x154] sm:$0xe] }
 0x1e3   : > { %v10286_v18 = vcombine.low %v2608_v34, %v11379_v5  ;;  %v11383_v34 = vld [vmem:[#allocation2 + $0x150] ss:$0 sps:$4 sm:$0x11]  }
 0x1e4   : > { %4492 = vrot.lane.b32.xlu1 %v4344_v40, %s11596_s30  ;;  %v4354_v47 = vsel %vm4289_vm9, %v4351_v27, %v4353_v54  ;;  %v4358_v40 = vrot.slane %v11374_v7, 1  ;;  %v13392_v54 = vpop.permute.xlu0 %4153  ;;  %v11378_v7 = vld [vmem:[#allocation2 + $0x148] sm:$0xff]  }
 0x1e5   : > { %4498 = vrot.lane.b32.xlu0 %v4352_v60, %s11596_s30  ;;  %v4365_v60 = vrot.slane %v10284_v24, 1  ;;  %17225 = vst [vmem:[#allocation81_spill] sm:$0xff] %v13392_v54  ;;  %v4370_v24 = vrot.slane %v10285_v20, 1  ;;  %v4371_v52 = vrot.slane %v11378_v7, 1  ;;  %v11381_v54 = vld [vmem:[#allocation2 + $0x15c] sm:$0xff]  }
 0x1e6   : > { %v4376_v3 = vrot.slane %v11381_v54, 1  ;;  %v2610_v7 = vld [vmem:[#allocation2 + $0x17c] sm:$0xe] }
 0x1e7   : > { %v4367_v57 = vsel %vm4289_vm9, %v4365_v60, %v4366_v46  ;;  %v11382_v60 = vld [vmem:[#allocation2 + $0x16c] sm:$0xf] }
 0x1e8   : > { %4496 = vrot.lane.b32.xlu1 %v4349_v35, %s11596_s30  ;;  %v4359_v35 = vsel %vm4289_vm9, %v4356_v26, %v4358_v40  ;;  %v4372_v40 = vsel %vm4289_vm9, %v4370_v24, %v4371_v52  ;;  %v10287_v20 = vcombine.low %v2609_v37, %v11382_v60  ;;  %v13401_v5 = vpop.permute.xlu0 %4157  ;;  %v11384_v24 = vld [vmem:[#allocation2 + $0x170] sm:$0xff]   ;;  %v13408_v60 = vpop.permute.xlu1 %4155 }
 0x1e9   : > { %4502 = vrot.lane.b32.xlu0 %v4357_v38, %s11596_s30  ;;  %v11377_v38 = vld [vmem:[#allocation2 + $0x128] ss:$0 sps:$4 sm:$0x11]   ;;  %17227 = vst [vmem:[#allocation83_spill] sm:$0xff] %v13401_v5  ;;  %v4381_v54 = vrot.slane %v11384_v24, 1  ;;  %17228 = vst [vmem:[#allocation84_spill] sm:$0xff] %v13408_v60 }
 0x1ea   : > { %v4363_v27 = vrot.slane %v11377_v38, 1  ;;  %v4375_v38 = vrot.slane %v10286_v18, 1  ;;  %v11385_v18 = vld [vmem:[#allocation2 + $0x180] sm:$0xf]  ;;  %v11388_v5 = vld [vmem:[#allocation2 + $0x194] sm:$0xf] }
 0x1eb   : > { %v10288_v37 = vcombine.low %v2610_v7, %v11385_v18  ;;  %v2612_v18 = vld [vmem:[#allocation2 + $0x1a4] sm:$0xe] }
 0x1ec   : > { %4500 = vrot.lane.b32.xlu1 %v4354_v47, %s11596_s30  ;;  %v4364_v47 = vsel %vm4289_vm9, %v4361_v4, %v4363_v27  ;;  %v4377_v27 = vsel %vm4289_vm9, %v4375_v38, %v4376_v3  ;;  %v13419_v9 = vpop.permute.xlu1 %4159 }
 0x1ed   : > { %4506 = vrot.lane.b32.xlu0 %v4362_v39, %s11596_s30  ;;  %v11380_v39 = vld [vmem:[#allocation2 + $0x13c] ss:$0 sps:$4 sm:$0x11]   ;;  %17230 = vst [vmem:[#allocation86_spill] sm:$0xff] %v13419_v9 }
 0x1ee   : > { %v4368_v26 = vrot.slane %v11380_v39, 1  ;;  %v2611_v39 = vld [vmem:[#allocation2 + $0x190] sm:$0xe] }
 0x1ef   : > { %v10289_v7 = vcombine.low %v2611_v39, %v11388_v5  ;;  %v2613_v5 = vld [vmem:[#allocation2 + $0x1b8] sm:$0xe]  ;;  %v11392_v39 = vld [vmem:[#allocation2 + $0x18c] ss:$0 sps:$4 sm:$0x11]  }
 0x1f0   : > { %4504 = vrot.lane.b32.xlu1 %v4359_v35, %s11596_s30  ;;  %v4369_v4 = vsel %vm4289_vm9, %v4366_v46, %v4368_v26  ;;  %v4373_v35 = vrot.slane %v11383_v34, 1  ;;  %v13412_v26 = vpop.permute.xlu0 %4161  ;;  %v11387_v34 = vld [vmem:[#allocation2 + $0x184] sm:$0xff]  }
 0x1f1   : > { %4510 = vrot.lane.b32.xlu0 %v4367_v57, %s11596_s30  ;;  %v4380_v57 = vrot.slane %v10287_v20, 1  ;;  %17229 = vst [vmem:[#allocation85_spill] sm:$0xff] %v13412_v26  ;;  %v4385_v20 = vrot.slane %v10288_v37, 1  ;;  %v4386_v24 = vrot.slane %v11387_v34, 1  ;;  %v11390_v26 = vld [vmem:[#allocation2 + $0x198] sm:$0xff]  }
 0x1f2   : > { %v4391_v60 = vrot.slane %v11390_v26, 1 }
 0x1f3   : > { %v4382_v38 = vsel %vm4289_vm9, %v4380_v57, %v4381_v54  ;;  %v11391_v57 = vld [vmem:[#allocation2 + $0x1a8] sm:$0xf] }
 0x1f4   : > { %4508 = vrot.lane.b32.xlu1 %v4364_v47, %s11596_s30  ;;  %v4374_v47 = vsel %vm4289_vm9, %v4371_v52, %v4373_v35  ;;  %v4387_v35 = vsel %vm4289_vm9, %v4385_v20, %v4386_v24  ;;  %v10290_v37 = vcombine.low %v2612_v18, %v11391_v57  ;;  %v13421_v34 = vpop.permute.xlu0 %4165  ;;  %v11393_v20 = vld [vmem:[#allocation2 + $0x1ac] sm:$0xff]   ;;  %v13428_v57 = vpop.permute.xlu1 %4163 }
 0x1f5   : > { %4514 = vrot.lane.b32.xlu0 %v4372_v40, %s11596_s30  ;;  %v11386_v40 = vld [vmem:[#allocation2 + $0x164] ss:$0 sps:$4 sm:$0x11]   ;;  %17231 = vst [vmem:[#allocation87_spill] sm:$0xff] %v13421_v34  ;;  %v4396_v26 = vrot.slane %v11393_v20, 1  ;;  %17232 = vst [vmem:[#allocation88_spill] sm:$0xff] %v13428_v57 }
 0x1f6   : > { %v4378_v46 = vrot.slane %v11386_v40, 1  ;;  %v4390_v40 = vrot.slane %v10289_v7, 1  ;;  %v11394_v7 = vld [vmem:[#allocation2 + $0x1bc] sm:$0xf]  ;;  %v11397_v34 = vld [vmem:[#allocation2 + $0x1d0] sm:$0xf] }
 0x1f7   : > { %v10291_v18 = vcombine.low %v2613_v5, %v11394_v7  ;;  %v2615_v7 = vld [vmem:[#allocation2 + $0x1e0] sm:$0xe] }
 0x1f8   : > { %4512 = vrot.lane.b32.xlu1 %v4369_v4, %s11596_s30  ;;  %v4379_v4 = vsel %vm4289_vm9, %v4376_v3, %v4378_v46  ;;  %v4392_v46 = vsel %vm4289_vm9, %v4390_v40, %v4391_v60 }
 0x1f9   : > { %4518 = vrot.lane.b32.xlu0 %v4377_v27, %s11596_s30  ;;  %v11389_v27 = vld [vmem:[#allocation2 + $0x178] ss:$0 sps:$4 sm:$0x11]  }
 0x1fa   : > { %v4383_v52 = vrot.slane %v11389_v27, 1  ;;  %v2614_v27 = vld [vmem:[#allocation2 + $0x1cc] sm:$0xe] }
 0x1fb   : > { %v10292_v5 = vcombine.low %v2614_v27, %v11397_v34  ;;  %v2616_v34 = vld [vmem:[#allocation2 + $0x1f4] sm:$0xe]  ;;  %v11401_v27 = vld [vmem:[#allocation2 + $0x1c8] ss:$0 sps:$4 sm:$0x11]  }
 0x1fc   : > { %4516 = vrot.lane.b32.xlu1 %v4374_v47, %s11596_s30  ;;  %v4384_v3 = vsel %vm4289_vm9, %v4381_v54, %v4383_v52  ;;  %v4388_v47 = vrot.slane %v11392_v39, 1  ;;  %v13432_v52 = vpop.permute.xlu0 %4169  ;;  %v11396_v39 = vld [vmem:[#allocation2 + $0x1c0] sm:$0xff]  }
 0x1fd   : > { %4522 = vrot.lane.b32.xlu0 %v4382_v38, %s11596_s30  ;;  %v4395_v38 = vrot.slane %v10290_v37, 1  ;;  %17233 = vst [vmem:[#allocation89_spill] sm:$0xff] %v13432_v52  ;;  %v4400_v37 = vrot.slane %v10291_v18, 1  ;;  %v4401_v20 = vrot.slane %v11396_v39, 1  ;;  %v11399_v52 = vld [vmem:[#allocation2 + $0x1d4] sm:$0xff]  }
 0x1fe   : > { %v4406_v57 = vrot.slane %v11399_v52, 1  ;;  %v11400_v18 = vld [vmem:[#allocation2 + $0x1e4] sm:$0xf] }
 0x1ff   : > { %v4397_v40 = vsel %vm4289_vm9, %v4395_v38, %v4396_v26  ;;  %v13439_v38 = vpop.permute.xlu1 %4167  ;;  %v10293_v39 = vcombine.low %v2615_v7, %v11400_v18 }
 0x200   : > { %4520 = vrot.lane.b32.xlu1 %v4379_v4, %s11596_s30  ;;  %v4389_v4 = vsel %vm4289_vm9, %v4386_v24, %v4388_v47  ;;  %v4402_v47 = vsel %vm4289_vm9, %v4400_v37, %v4401_v20  ;;  %17234 = vst [vmem:[#allocation90_spill] sm:$0xff] %v13439_v38  ;;  %v13441_v9 = vpop.permute.xlu0 %4173  ;;  %v11402_v37 = vld [vmem:[#allocation2 + $0x1e8] sm:$0xff]  }
 0x201   : > { %4526 = vrot.lane.b32.xlu0 %v4387_v35, %s11596_s30  ;;  %v11395_v35 = vld [vmem:[#allocation2 + $0x1a0] ss:$0 sps:$4 sm:$0x11]   ;;  %17235 = vst [vmem:[#allocation91_spill] sm:$0xff] %v13441_v9  ;;  %v4411_v52 = vrot.slane %v11402_v37, 1 }
 0x202   : > { %v4393_v54 = vrot.slane %v11395_v35, 1  ;;  %v4405_v35 = vrot.slane %v10292_v5, 1  ;;  %v11403_v5 = vld [vmem:[#allocation2 + $0x1f8] sm:$0xf]  ;;  %v2617_v38 = vld [vmem:[#allocation2 + $0x208] sm:$0xe] }
 0x203   : > { %v13448_v7 = vpop.permute.xlu1 %4171  ;;  %v11406_v37 = vld [vmem:[#allocation2 + $0x20c] sm:$0xf] }
 0x204   : > { %4524 = vrot.lane.b32.xlu1 %v4384_v3, %s11596_s30  ;;  %v4394_v3 = vsel %vm4289_vm9, %v4391_v60, %v4393_v54  ;;  %v4407_v54 = vsel %vm4289_vm9, %v4405_v35, %v4406_v57  ;;  %17236 = vst [vmem:[#allocation92_spill] sm:$0xff] %v13448_v7 }
 0x205   : > { %4530 = vrot.lane.b32.xlu0 %v4392_v46, %s11596_s30  ;;  %v11398_v46 = vld [vmem:[#allocation2 + $0x1b4] ss:$0 sps:$4 sm:$0x11]  }
 0x206   : > { %v4398_v24 = vrot.slane %v11398_v46, 1  ;;  %v10294_v46 = vcombine.low %v2616_v34, %v11403_v5  ;;  %v10295_v34 = vcombine.low %v2617_v38, %v11406_v37  ;;  %v2618_v5 = vld [vmem:[#allocation2 + $0x21c] sm:$0xe]  ;;  %v2619_v38 = vld [vmem:[#allocation2 + $0x230] sm:$0xe] }
 0x207   : > { %v11411_v37 = vld [vmem:[#allocation2 + $0x204] ss:$0 sps:$4 sm:$0x11]  }
 0x208   : > { %4528 = vrot.lane.b32.xlu1 %v4389_v4, %s11596_s30  ;;  %v4399_v60 = vsel %vm4289_vm9, %v4396_v26, %v4398_v24  ;;  %v4403_v4 = vrot.slane %v11401_v27, 1  ;;  %v11404_v26 = vld [vmem:[#allocation2 + $0x1dc] ss:$0 sps:$4 sm:$0x11]   ;;  %v4415_v18 = vrot.slane %v10294_v46, 1  ;;  %v11409_v46 = vld [vmem:[#allocation2 + $0x210] sm:$0xff]  }
 0x209   : > { %4534 = vrot.lane.b32.xlu0 %v4397_v40, %s11596_s30  ;;  %v4410_v40 = vrot.slane %v10293_v39, 1  ;;  %v4408_v24 = vrot.slane %v11404_v26, 1  ;;  %v11405_v39 = vld [vmem:[#allocation2 + $0x1fc] sm:$0xff]  }
 0x20a   : > { %v4416_v27 = vrot.slane %v11405_v39, 1  ;;  %v4421_v39 = vrot.slane %v11409_v46, 1 }
 0x20b   : > { %v4412_v35 = vsel %vm4289_vm9, %v4410_v40, %v4411_v52  ;;  %v4420_v40 = vrot.slane %v10295_v34, 1 }
 0x20c   : > { %4532 = vrot.lane.b32.xlu1 %v4394_v3, %s11596_s30  ;;  %v4404_v3 = vsel %vm4289_vm9, %v4401_v20, %v4403_v4  ;;  %v11408_v4 = vld [vmem:[#allocation2 + $0x220] sm:$0xf]  ;;  %v4417_v26 = vsel %vm4289_vm9, %v4415_v18, %v4416_v27  ;;  %v4418_v18 = vrot.slane %v11411_v37, 1 }
 0x20d   : > { %4538 = vrot.lane.b32.xlu0 %v4402_v47, %s11596_s30  ;;  %v13452_v47 = vpop.permute.xlu0 %4177  ;;  %v4422_v34 = vsel %vm4289_vm9, %v4420_v40, %v4421_v39  ;;  %v466_v40 = vld [vmem:[%s12020_s28 + $0x3e0] sm:$0xff] }
 0x20e   : > { %17237 = vst [vmem:[#allocation93_spill] sm:$0xff] %v13452_v47  ;;  %v10296_v47 = vcombine.low %v2618_v5, %v11408_v4  ;;  %v13459_v9 = vpop.permute.xlu1 %4175  ;;  %v11412_v5 = vld [vmem:[#allocation2 + $0x234] sm:$0xf]  ;;  %v2620_v4 = vld [vmem:[#allocation2 + $0x244] sm:$0xe] }
 0x20f   : > { %17238 = vst [vmem:[#allocation94_spill] sm:$0xff] %v13459_v9  ;;  %v10754_v9 = vpack.c.bf16 %v466_v40, %v466_v40  ;;  %v2622_v40 = vld [vmem:[#allocation2 + $0x26c] sm:$0xe] }
 0x210   : > { %4536 = vrot.lane.b32.xlu1 %v4399_v60, %s11596_s30  ;;  %v4409_v60 = vsel %vm4289_vm9, %v4406_v57, %v4408_v24  ;;  %v11410_v24 = vld [vmem:[#allocation2 + $0x224] sm:$0xff]  }
 0x211   : > { %4542 = vrot.lane.b32.xlu0 %v4407_v54, %s11596_s30  ;;  %v11407_v54 = vld [vmem:[#allocation2 + $0x1f0] ss:$0 sps:$4 sm:$0x11]   ;;  %v13461_v7 = vpop.permute.xlu0 %4181 }
 0x212   : > { %v4413_v20 = vrot.slane %v11407_v54, 1  ;;  %17239 = vst [vmem:[#allocation95_spill] sm:$0xff] %v13461_v7  ;;  %v10297_v54 = vcombine.low %v2619_v38, %v11412_v5  ;;  %v467_v7 = vld [vmem:[%s12020_s28 + $0x3e8] sm:$0xff]  ;;  %v10298_v5 = vcombine.low %v2620_v4, %v13162_v22 }
 0x213   : > { %v13468_v46 = vpop.permute.xlu1 %4179 }
 0x214   : > { %4540 = vrot.lane.b32.xlu1 %v4404_v3, %s11596_s30  ;;  %v4414_v57 = vsel %vm4289_vm9, %v4411_v52, %v4413_v20  ;;  %v4425_v3 = vrot.slane %v10296_v47, 1  ;;  %17240 = vst [vmem:[#allocation96_spill] sm:$0xff] %v13468_v46  ;;  %v4419_v47 = vsel %vm4289_vm9, %v4416_v27, %v4418_v18  ;;  %v11413_v20 = vld [vmem:[#allocation2 + $0x238] sm:$0xff]   ;;  %v4430_v38 = vrot.slane %v10297_v54, 1 }
 0x215   : > { %4546 = vrot.lane.b32.xlu0 %v4412_v35, %s11596_s30  ;;  %v4426_v35 = vrot.slane %v11410_v24, 1  ;;  %v11414_v24 = vld [vmem:[#allocation2 + $0x218] ss:$0 sps:$4 sm:$0x11]   ;;  %v10755_v46 = vpack.c.bf16 %v467_v7, %v467_v7  ;;  %v4428_v18 = vrot.slane %v13187_v0, 1  ;;  %v4435_v4 = vrot.slane %v10298_v5, 1 }
 0x216   : > { %v4423_v37 = vrot.slane %v11414_v24, 1  ;;  %v1946_v24 = vshll.u32 %v10754_v9, 16 }
 0x217   : > { %v4427_v52 = vsel %vm4289_vm9, %v4425_v3, %v4426_v35  ;;  %v4436_v3 = vrot.slane %v13177_v33, 1  ;;  %v4429_v0 = vsel %vm4289_vm9, %v4426_v35, %v4428_v18  ;;  %v4438_v18 = vrot.slane %v13266_v45, 1 }
 0x218   : > { %4544 = vrot.lane.b32.xlu1 %v4409_v60, %s11596_s30  ;;  %v13471_v60 = vpop.permute.xlu0 %4185  ;;  %v4424_v27 = vsel %vm4289_vm9, %v4421_v39, %v4423_v37  ;;  %v4433_v37 = vrot.slane %v13215_v15, 1  ;;  %v469_v15 = vld [vmem:[%s12020_s28 + $0x3f8] sm:$0xff] }
 0x219   : > { %4550 = vrot.lane.b32.xlu0 %v4417_v26, %s11596_s30  ;;  %17241 = vst [vmem:[#allocation97_spill] sm:$0xff] %v13471_v60  ;;  %v4431_v26 = vrot.slane %v11413_v20, 1  ;;  %v1951_v60 = vshrl.u32 %v10755_v46, 16 }
 0x21b   : > { %v4432_v22 = vsel %vm4289_vm9, %v4430_v38, %v4431_v26  ;;  %v1953_v42 = vrot.slane %v1951_v60, 7  ;;  %v2422_v38 = vld [vmem:[#allocation2 + $0x280] sm:$0xf]  ;;  %v4437_v60 = vsel %vm4289_vm9, %v4435_v4, %v4436_v3  ;;  %v4434_v36 = vsel %vm4289_vm9, %v4431_v26, %v4433_v37 }
 0x21c   : > { %4548 = vrot.lane.b32.xlu1 %v4414_v57, %s11596_s30  ;;  %v2621_v57 = vld [vmem:[#allocation2 + $0x258] sm:$0xe]  ;;  %v4443_v37 = vrot.slane %v13275_v11, 1 }
 0x21d   : > { %4554 = vrot.lane.b32.xlu0 %v4422_v34, %s11596_s30  ;;  %v1943_v34 = vshrl.u32 %v10754_v9, 16  ;;  %v10299_v20 = vcombine.low %v2621_v57, %v13213_v41  ;;  %v4441_v41 = vrot.slane %v13221_v63, 1  ;;  %v10300_v57 = vcombine.low %v2622_v40, %v13254_v48 }
 0x21e   : > { %v4446_v40 = vrot.slane %v13269_v6, 1 }
 0x21f   : > { %v1945_v7 = vrot.slane %v1943_v34, 7  ;;  %v4444_v11 = vsel %vm4289_vm9, %v4441_v41, %v4443_v37  ;;  %v2635_v37 = vld [vmem:[#allocation2 + $0x50] sm:$0xf] }
 0x220   : > { %4552 = vrot.lane.b32.xlu1 %v4419_v47, %s11596_s30 }
 0x221   : > { %4558 = vrot.lane.b32.xlu0 %v4427_v52, %s11596_s30  ;;  %v1954_v52 = vshll.u32 %v10755_v46, 16  ;;  %v1948_v33 = vor.u32 %v1946_v24, %v1945_v7  ;;  %v1949_v39 = vrot.slane %v1945_v7, 4  ;;  %v4440_v46 = vrot.slane %v10299_v20, 1 }
 0x222   : > { %v13484_v54 = vpop.permute.xlu1 %4183  ;;  %v10757_v20 = vpack.c.bf16 %v469_v15, %v469_v15  ;;  %v4445_v24 = vrot.slane %v10300_v57, 1 }
 0x223   : > { %17242 = vst [vmem:[#allocation98_spill] sm:$0xff] %v13484_v54  ;;  %v13487_v47 = vpop.permute.xlu0 %4189  ;;  %v1956_v9 = vor.u32 %v1954_v52, %v1953_v42  ;;  %v2423_v34 = vsel %vm12038_vm7, %v1948_v33, %v2422_v38  ;;  %v4442_v7 = vsel %vm4289_vm9, %v4440_v46, %v4441_v41  ;;  %v1958_v38 = vrot.slane %v1953_v42, 4  ;;  %v13616_v54 = vld [vmem:[#allocation2 + $0x80] sm:$0xff]  }
 0x224   : > { %17243 = vst [vmem:[#allocation99_spill] sm:$0xff] %v13487_v47  ;;  %4556 = vrot.lane.b32.xlu1 %v4424_v27, %s11596_s30  ;;  %v468_v27 = vld [vmem:[%s12020_s28 + $0x3f0] sm:$0xff]  ;;  %2424 = vst [vmem:[#allocation2 + $0x280] sm:$0xf] %v2423_v34  ;;  %v1969_v52 = vshrl.u32 %v10757_v20, 16  ;;  %v1972_v26 = vshll.u32 %v10757_v20, 16  ;;  %v4447_v57 = vsel %vm4289_vm9, %v4445_v24, %v4446_v40 }
 0x225   : > { %4562 = vrot.lane.b32.xlu0 %v4432_v22, %s11596_s30  ;;  %v1957_v63 = vsel %vm12032_vm6, %v1949_v39, %v1956_v9  ;;  %v10756_v35 = vpack.c.bf16 %v468_v27, %v468_v27  ;;  %v2623_v34 = vld [vmem:[#allocation2 + $0x14] sm:$0xf]  ;;  %v2624_v27 = vld [vmem:[#allocation2 + $0x18] sm:$0xf]  ;;  %v2631_v24 = vld [vmem:[#allocation2 + $0x3c] sm:$0xf] }
 0x226   : > { %v13494_v5 = vpop.permute.xlu1 %4187  ;;  %2425 = vst.msk [vmem:[#allocation2 + $0x284] sm:$0xf] %vm170_vm0, %v1957_v63  ;;  %v13519_v9 = vrot.slane %v1969_v52, 7  ;;  %v13534_v42 = vcombine.low %v2623_v34, %v2624_v27  ;;  %v2632_v52 = vld [vmem:[#allocation2 + $0x40] sm:$0xf] }
 0x227   : > { %17244 = vst [vmem:[#allocation100_spill] sm:$0xff] %v13494_v5  ;;  %v13501_v22 = vpop.permute.xlu0 %4450  ;;  %v1960_v48 = vshrl.u32 %v10756_v35, 16  ;;  %v1963_v45 = vshll.u32 %v10756_v35, 16  ;;  %v4448_v35 = vrot.slane %v13282_v29, 1  ;;  %v2639_v34 = vld [vmem:[#allocation2 + $0x64] sm:$0xf] }
 0x228   : > { %17245 = vst [vmem:[#allocation101_spill] sm:$0xff] %v13501_v22  ;;  %4560 = vrot.lane.b32.xlu1 %v4429_v0, %s11596_s30  ;;  %v4439_v0 = vsel %vm4289_vm9, %v4436_v3, %v4438_v18  ;;  %v1974_v63 = vor.u32 %v1972_v26, %v13519_v9  ;;  %v2640_v27 = vld [vmem:[#allocation2 + $0x68] sm:$0xf] }
 0x229   : > { %4566 = vrot.lane.b32.xlu0 %v4437_v60, %s11596_s30  ;;  %v1962_v39 = vrot.slane %v1960_v48, 7  ;;  %v2628_v48 = vld [vmem:[#allocation2 + $0x2c] sm:$0xf]  ;;  %v4449_v29 = vsel %vm4289_vm9, %v4446_v40, %v4448_v35 }
 0x22a   : > { %v13511_v4 = vpop.permute.xlu1 %4191 }
 0x22b   : > { %17246 = vst [vmem:[#allocation102_spill] sm:$0xff] %v13511_v4  ;;  %v13515_v33 = vpop.permute.xlu0 %4454  ;;  %v1965_v60 = vor.u32 %v1963_v45, %v1962_v39  ;;  %v1967_v46 = vrot.slane %v1962_v39, 4  ;;  %v13556_v45 = vld [vmem:[#allocation2 + $0x1c] sm:$0xff]  }
 0x22c   : > { %17247 = vst [vmem:[#allocation103_spill] sm:$0xff] %v13515_v33  ;;  %4564 = vrot.lane.b32.xlu1 %v4434_v36, %s11596_s30  ;;  %v2627_v36 = vld [vmem:[#allocation2 + $0x28] sm:$0xf] }
 0x22d   : > { %4570 = vrot.lane.b32.xlu0 %v4442_v7, %s11596_s30  ;;  %v1966_v3 = vsel %vm12032_vm6, %v1958_v38, %v1965_v60  ;;  %v1975_v18 = vsel %vm12032_vm6, %v1967_v46, %v1974_v63  ;;  %v13548_v41 = vcombine.low %v2627_v36, %v2628_v48  ;;  %v2636_v38 = vld [vmem:[#allocation2 + $0x54] sm:$0xf]  ;;  %v2644_v36 = vld [vmem:[#allocation2 + $0x7c] sm:$0xf]  ;;  %vm9833_vm6 = vcmask 523264  }
 0x22e   : > { %v13523_v6 = vpop.permute.xlu1 %4452  ;;  %2426 = vst.msk [vmem:[#allocation2 + $0x288] sm:$0xf] %vm170_vm0, %v1966_v3  ;;  %2427 = vst.msk [vmem:[#allocation2 + $0x28c] sm:$0xf] %vm170_vm0, %v1975_v18  ;;  %v13568_v60 = vld [vmem:[#allocation2 + $0x30] sm:$0xff]   ;;  %v13572_v46 = vcombine.low %v2635_v37, %v2636_v38  ;;  %v13580_v3 = vld [vmem:[#allocation2 + $0x44] sm:$0xff]  }
 0x22f   : > { %17248 = vst [vmem:[#allocation104_spill] sm:$0xff] %v13523_v6  ;;  %v13527_v15 = vpop.permute.xlu0 %4458  ;;  %v2643_v18 = vld [vmem:[#allocation2 + $0x78] sm:$0xf]  ;;  %v2647_v37 = vld [vmem:[#allocation2 + $0x8c] sm:$0xf]  ;;  %vm8486_vm0 = vcmask 121856  }
 0x230   : > { %17249 = vst [vmem:[#allocation105_spill] sm:$0xff] %v13527_v15  ;;  %4568 = vrot.lane.b32.xlu1 %v4439_v0, %s11596_s30  ;;  %v13560_v0 = vcombine.low %v2631_v24, %v2632_v52  ;;  %v13596_v24 = vcombine.low %v2643_v18, %v2644_v36  ;;  %v2648_v38 = vld [vmem:[#allocation2 + $0x90] sm:$0xf]  ;;  %v2651_v18 = vld [vmem:[#allocation2 + $0xa0] sm:$0xf]  ;;  %v5185_v55 = vshll.u32 %v13572_v46, 16 }
 0x231   : > { %4574 = vrot.lane.b32.xlu0 %v4447_v57, %s11596_s30  ;;  %v13608_v4 = vcombine.low %v2647_v37, %v2648_v38  ;;  %v2652_v36 = vld [vmem:[#allocation2 + $0xa4] sm:$0xf]  ;;  %v2655_v37 = vld [vmem:[#allocation2 + $0xb4] sm:$0xf]  ;;  %v2656_v38 = vld [vmem:[#allocation2 + $0xb8] sm:$0xf] }
 0x232   : > { %v13540_v20 = vpop.permute.xlu1 %4456 }
 0x233   : > { %17250 = vst [vmem:[#allocation106_spill] sm:$0xff] %v13540_v20  ;;  %v13543_v7 = vpop.permute.xlu0 %4462 }
 0x234   : > { %17251 = vst [vmem:[#allocation107_spill] sm:$0xff] %v13543_v7  ;;  %4572 = vrot.lane.b32.xlu1 %v4444_v11, %s11596_s30  ;;  %v13584_v11 = vcombine.low %v2639_v34, %v2640_v27  ;;  %v13604_v27 = vld [vmem:[#allocation2 + $0x6c] sm:$0xff]  }
 0x235   : > { %4898 = vrot.lane.b32.xlu0 %v13534_v42, %s11597_s4 }
 0x236   : > { %v13551_v28 = vpop.permute.xlu1 %4460 }
 0x237   : > { %17252 = vst [vmem:[#allocation108_spill] sm:$0xff] %v13551_v28  ;;  %v13553_v39 = vpop.permute.xlu0 %4466 }
 0x238   : > { %17253 = vst [vmem:[#allocation109_spill] sm:$0xff] %v13553_v39  ;;  %4576 = vrot.lane.b32.xlu1 %v4449_v29, %s11596_s30  ;;  %v13592_v29 = vld [vmem:[#allocation2 + $0x58] sm:$0xff]   ;;  %s10758_s30 = sshll.u32 %s11648_s16, 14  ;;  %s17022_s16 = scalar_lea.sflag [#allocation4], %s161_s20 }
 0x239   : > { %4902 = vrot.lane.b32.xlu0 %v13548_v41, %s11597_s4  ;;  %s17010_s7 = scalar_lea.hbm %s17066_s3, %s10758_s30 }
 0x23a   : > { %v13562_v26 = vpop.permute.xlu1 %4464 }
 0x23b   : > { %17254 = vst [vmem:[#allocation110_spill] sm:$0xff] %v13562_v26  ;;  %v13564_v40 = vpop.permute.xlu0 %4470 }
 0x23c   : > { %17255 = vst [vmem:[#allocation111_spill] sm:$0xff] %v13564_v40  ;;  %4900 = vrot.lane.b32.xlu1 %v13556_v45, %s11597_s4 }
 0x23d   : > { %4906 = vrot.lane.b32.xlu0 %v13560_v0, %s11597_s4 }
 0x23e   : > { %v13574_v57 = vpop.permute.xlu1 %4468 }
 0x23f   : > { %17256 = vst [vmem:[#allocation112_spill] sm:$0xff] %v13574_v57  ;;  %v13576_v63 = vpop.permute.xlu0 %4474 }
 0x240   : > { %17257 = vst [vmem:[#allocation113_spill] sm:$0xff] %v13576_v63  ;;  %4904 = vrot.lane.b32.xlu1 %v13568_v60, %s11597_s4 }
 0x241   : > { %4910 = vrot.lane.b32.xlu0 %v13572_v46, %s11597_s4 }
 0x242   : > { %v13586_v35 = vpop.permute.xlu1 %4472 }
 0x243   : > { %17258 = vst [vmem:[#allocation114_spill] sm:$0xff] %v13586_v35  ;;  %v13588_v48 = vpop.permute.xlu0 %4478 }
 0x244   : > { %17259 = vst [vmem:[#allocation115_spill] sm:$0xff] %v13588_v48  ;;  %4908 = vrot.lane.b32.xlu1 %v13580_v3, %s11597_s4 }
 0x245   : > { %4914 = vrot.lane.b32.xlu0 %v13584_v11, %s11597_s4 }
 0x246   : > { %v13598_v52 = vpop.permute.xlu1 %4476 }
 0x247   : > { %17260 = vst [vmem:[#allocation116_spill] sm:$0xff] %v13598_v52  ;;  %v13600_v34 = vpop.permute.xlu0 %4482 }
 0x248   : > { %17261 = vst [vmem:[#allocation117_spill] sm:$0xff] %v13600_v34  ;;  %4912 = vrot.lane.b32.xlu1 %v13592_v29, %s11597_s4  ;;  %v13620_v34 = vcombine.low %v2651_v18, %v2652_v36  ;;  %v2659_v18 = vld [vmem:[#allocation2 + $0xc8] sm:$0xf]  ;;  %v2660_v36 = vld [vmem:[#allocation2 + $0xcc] sm:$0xf] }
 0x249   : > { %4918 = vrot.lane.b32.xlu0 %v13596_v24, %s11597_s4 }
 0x24a   : > { %v13610_v47 = vpop.permute.xlu1 %4480 }
 0x24b   : > { %17262 = vst [vmem:[#allocation118_spill] sm:$0xff] %v13610_v47  ;;  %v13612_v5 = vpop.permute.xlu0 %4486  ;;  %v13632_v47 = vcombine.low %v2655_v37, %v2656_v38  ;;  %v2663_v37 = vld [vmem:[#allocation2 + $0xdc] sm:$0xf]  ;;  %v2664_v38 = vld [vmem:[#allocation2 + $0xe0] sm:$0xf] }
 0x24c   : > { %17263 = vst [vmem:[#allocation119_spill] sm:$0xff] %v13612_v5  ;;  %4916 = vrot.lane.b32.xlu1 %v13604_v27, %s11597_s4  ;;  %v13628_v5 = vld [vmem:[#allocation2 + $0x94] sm:$0xff]  }
 0x24d   : > { %4922 = vrot.lane.b32.xlu0 %v13608_v4, %s11597_s4 }
 0x24e   : > { %v13622_v48 = vpop.permute.xlu1 %4484 }
 0x24f   : > { %17264 = vst [vmem:[#allocation120_spill] sm:$0xff] %v13622_v48  ;;  %v13624_v52 = vpop.permute.xlu0 %4490  ;;  %v13644_v48 = vcombine.low %v2659_v18, %v2660_v36  ;;  %v2667_v18 = vld [vmem:[#allocation2 + $0xf0] sm:$0xf]  ;;  %v2668_v36 = vld [vmem:[#allocation2 + $0xf4] sm:$0xf] }
 0x250   : > { %17265 = vst [vmem:[#allocation121_spill] sm:$0xff] %v13624_v52  ;;  %4920 = vrot.lane.b32.xlu1 %v13616_v54, %s11597_s4  ;;  %v13640_v52 = vld [vmem:[#allocation2 + $0xa8] sm:$0xff]  }
 0x251   : > { %4926 = vrot.lane.b32.xlu0 %v13620_v34, %s11597_s4 }
 0x252   : > { %v13634_v63 = vpop.permute.xlu1 %4488 }
 0x253   : > { %17266 = vst [vmem:[#allocation122_spill] sm:$0xff] %v13634_v63  ;;  %v13636_v35 = vpop.permute.xlu0 %4494  ;;  %v13656_v63 = vcombine.low %v2663_v37, %v2664_v38  ;;  %v2671_v37 = vld [vmem:[#allocation2 + $0x104] sm:$0xf]  ;;  %v2672_v38 = vld [vmem:[#allocation2 + $0x108] sm:$0xf] }
 0x254   : > { %17267 = vst [vmem:[#allocation123_spill] sm:$0xff] %v13636_v35  ;;  %4924 = vrot.lane.b32.xlu1 %v13628_v5, %s11597_s4  ;;  %v13652_v35 = vld [vmem:[#allocation2 + $0xbc] sm:$0xff]  }
 0x255   : > { %4930 = vrot.lane.b32.xlu0 %v13632_v47, %s11597_s4 }
 0x256   : > { %v13646_v40 = vpop.permute.xlu1 %4492 }
 0x257   : > { %17268 = vst [vmem:[#allocation124_spill] sm:$0xff] %v13646_v40  ;;  %v13648_v57 = vpop.permute.xlu0 %4498  ;;  %v13668_v40 = vcombine.low %v2667_v18, %v2668_v36  ;;  %v2675_v18 = vld [vmem:[#allocation2 + $0x118] sm:$0xf]  ;;  %v2676_v36 = vld [vmem:[#allocation2 + $0x11c] sm:$0xf] }
 0x258   : > { %17269 = vst [vmem:[#allocation125_spill] sm:$0xff] %v13648_v57  ;;  %4928 = vrot.lane.b32.xlu1 %v13640_v52, %s11597_s4  ;;  %v13664_v57 = vld [vmem:[#allocation2 + $0xd0] sm:$0xff]  }
 0x259   : > { %4934 = vrot.lane.b32.xlu0 %v13644_v48, %s11597_s4 }
 0x25a   : > { %v13658_v39 = vpop.permute.xlu1 %4496 }
 0x25b   : > { %17270 = vst [vmem:[#allocation126_spill] sm:$0xff] %v13658_v39  ;;  %v13660_v32 = vpop.permute.xlu0 %4502  ;;  %v13680_v39 = vcombine.low %v2671_v37, %v2672_v38  ;;  %v2679_v37 = vld [vmem:[#allocation2 + $0x12c] sm:$0xf]  ;;  %v2680_v38 = vld [vmem:[#allocation2 + $0x130] sm:$0xf] }
 0x25c   : > { %17271 = vst [vmem:[#allocation127_spill] sm:$0xff] %v13660_v32  ;;  %4932 = vrot.lane.b32.xlu1 %v13652_v35, %s11597_s4  ;;  %v13676_v32 = vld [vmem:[#allocation2 + $0xe4] sm:$0xff]  }
 0x25d   : > { %4938 = vrot.lane.b32.xlu0 %v13656_v63, %s11597_s4 }
 0x25e   : > { %v13670_v59 = vpop.permute.xlu1 %4500 }
 0x25f   : > { %17272 = vst [vmem:[#allocation128_spill] sm:$0xff] %v13670_v59  ;;  %v13672_v30 = vpop.permute.xlu0 %4506  ;;  %v13692_v59 = vcombine.low %v2675_v18, %v2676_v36  ;;  %v2683_v18 = vld [vmem:[#allocation2 + $0x140] sm:$0xf]  ;;  %v2684_v36 = vld [vmem:[#allocation2 + $0x144] sm:$0xf] }
 0x260   : > { %17273 = vst [vmem:[#allocation129_spill] sm:$0xff] %v13672_v30  ;;  %4936 = vrot.lane.b32.xlu1 %v13664_v57, %s11597_s4  ;;  %v13688_v30 = vld [vmem:[#allocation2 + $0xf8] sm:$0xff]   ;;  %v13716_v50 = vcombine.low %v2683_v18, %v2684_v36  ;;  %v2691_v18 = vld [vmem:[#allocation2 + $0x168] sm:$0xf]  ;;  %v2692_v36 = vld [vmem:[#allocation2 + $0x16c] sm:$0xf] }
 0x261   : > { %4942 = vrot.lane.b32.xlu0 %v13668_v40, %s11597_s4  ;;  %v13740_v61 = vcombine.low %v2691_v18, %v2692_v36  ;;  %v2699_v18 = vld [vmem:[#allocation2 + $0x190] sm:$0xf]  ;;  %v2700_v36 = vld [vmem:[#allocation2 + $0x194] sm:$0xf] }
 0x262   : > { %v13682_v26 = vpop.permute.xlu1 %4504 }
 0x263   : > { %17274 = vst [vmem:[#allocation130_spill] sm:$0xff] %v13682_v26  ;;  %v13684_v7 = vpop.permute.xlu0 %4510  ;;  %v13704_v26 = vcombine.low %v2679_v37, %v2680_v38  ;;  %v2687_v37 = vld [vmem:[#allocation2 + $0x154] sm:$0xf]  ;;  %v2688_v38 = vld [vmem:[#allocation2 + $0x158] sm:$0xf] }
 0x264   : > { %17275 = vst [vmem:[#allocation131_spill] sm:$0xff] %v13684_v7  ;;  %4940 = vrot.lane.b32.xlu1 %v13676_v32, %s11597_s4  ;;  %v13700_v7 = vld [vmem:[#allocation2 + $0x10c] sm:$0xff]   ;;  %v13728_v15 = vcombine.low %v2687_v37, %v2688_v38  ;;  %v2695_v37 = vld [vmem:[#allocation2 + $0x17c] sm:$0xf]  ;;  %v2696_v38 = vld [vmem:[#allocation2 + $0x180] sm:$0xf] }
 0x265   : > { %4946 = vrot.lane.b32.xlu0 %v13680_v39, %s11597_s4  ;;  %v13752_v14 = vcombine.low %v2695_v37, %v2696_v38  ;;  %v2703_v37 = vld [vmem:[#allocation2 + $0x1a4] sm:$0xf]  ;;  %v2704_v38 = vld [vmem:[#allocation2 + $0x1a8] sm:$0xf] }
 0x266   : > { %v13694_v25 = vpop.permute.xlu1 %4508 }
 0x267   : > { %17276 = vst [vmem:[#allocation132_spill] sm:$0xff] %v13694_v25  ;;  %v13696_v51 = vpop.permute.xlu0 %4514  ;;  %v13712_v25 = vld [vmem:[#allocation2 + $0x120] sm:$0xff]  }
 0x268   : > { %17277 = vst [vmem:[#allocation133_spill] sm:$0xff] %v13696_v51  ;;  %4944 = vrot.lane.b32.xlu1 %v13688_v30, %s11597_s4 }
 0x269   : > { %4950 = vrot.lane.b32.xlu0 %v13692_v59, %s11597_s4 }
 0x26a   : > { %v13706_v2 = vpop.permute.xlu1 %4512 }
 0x26b   : > { %17278 = vst [vmem:[#allocation134_spill] sm:$0xff] %v13706_v2  ;;  %v13708_v58 = vpop.permute.xlu0 %4518  ;;  %v13724_v2 = vld [vmem:[#allocation2 + $0x134] sm:$0xff]  }
 0x26c   : > { %17279 = vst [vmem:[#allocation135_spill] sm:$0xff] %v13708_v58  ;;  %4948 = vrot.lane.b32.xlu1 %v13700_v7, %s11597_s4 }
 0x26d   : > { %4954 = vrot.lane.b32.xlu0 %v13704_v26, %s11597_s4 }
 0x26e   : > { %v13718_v62 = vpop.permute.xlu1 %4516 }
 0x26f   : > { %17280 = vst [vmem:[#allocation136_spill] sm:$0xff] %v13718_v62  ;;  %v13720_v28 = vpop.permute.xlu0 %4522 }
 0x270   : > { %17281 = vst [vmem:[#allocation137_spill] sm:$0xff] %v13720_v28  ;;  %4952 = vrot.lane.b32.xlu1 %v13712_v25, %s11597_s4  ;;  %v13736_v28 = vld [vmem:[#allocation2 + $0x148] sm:$0xff]  }
 0x271   : > { %4958 = vrot.lane.b32.xlu0 %v13716_v50, %s11597_s4 }
 0x272   : > { %v13730_v13 = vpop.permute.xlu1 %4520 }
 0x273   : > { %17282 = vst [vmem:[#allocation138_spill] sm:$0xff] %v13730_v13  ;;  %v13732_v10 = vpop.permute.xlu0 %4526 }
 0x274   : > { %17283 = vst [vmem:[#allocation139_spill] sm:$0xff] %v13732_v10  ;;  %4956 = vrot.lane.b32.xlu1 %v13724_v2, %s11597_s4  ;;  %v13748_v10 = vld [vmem:[#allocation2 + $0x15c] sm:$0xff]  }
 0x275   : > { %4962 = vrot.lane.b32.xlu0 %v13728_v15, %s11597_s4 }
 0x276   : > { %v13742_v44 = vpop.permute.xlu1 %4524 }
 0x277   : > { %17284 = vst [vmem:[#allocation140_spill] sm:$0xff] %v13742_v44  ;;  %v13744_v31 = vpop.permute.xlu0 %4530  ;;  %v13764_v44 = vcombine.low %v2699_v18, %v2700_v36  ;;  %v2707_v18 = vld [vmem:[#allocation2 + $0x1b8] sm:$0xf]  ;;  %v2708_v36 = vld [vmem:[#allocation2 + $0x1bc] sm:$0xf] }
 0x278   : > { %17285 = vst [vmem:[#allocation141_spill] sm:$0xff] %v13744_v31  ;;  %4960 = vrot.lane.b32.xlu1 %v13736_v28, %s11597_s4  ;;  %v13760_v31 = vld [vmem:[#allocation2 + $0x170] sm:$0xff]  }
 0x279   : > { %4966 = vrot.lane.b32.xlu0 %v13740_v61, %s11597_s4 }
 0x27a   : > { %v13754_v13 = vpop.permute.xlu1 %4528 }
 0x27b   : > { %17286 = vst [vmem:[#allocation142_spill] sm:$0xff] %v13754_v13  ;;  %v13756_v20 = vpop.permute.xlu0 %4534  ;;  %v13776_v13 = vcombine.low %v2703_v37, %v2704_v38  ;;  %v2711_v37 = vld [vmem:[#allocation2 + $0x1cc] sm:$0xf]  ;;  %v2712_v38 = vld [vmem:[#allocation2 + $0x1d0] sm:$0xf] }
 0x27c   : > { %17287 = vst [vmem:[#allocation143_spill] sm:$0xff] %v13756_v20  ;;  %4964 = vrot.lane.b32.xlu1 %v13748_v10, %s11597_s4  ;;  %v13772_v20 = vld [vmem:[#allocation2 + $0x184] sm:$0xff]  }
 0x27d   : > { %4970 = vrot.lane.b32.xlu0 %v13752_v14, %s11597_s4 }
 0x27e   : > { %v13766_v33 = vpop.permute.xlu1 %4532 }
 0x27f   : > { %17288 = vst [vmem:[#allocation144_spill] sm:$0xff] %v13766_v33  ;;  %v13768_v21 = vpop.permute.xlu0 %4538  ;;  %v13788_v33 = vcombine.low %v2707_v18, %v2708_v36  ;;  %v2715_v18 = vld [vmem:[#allocation2 + $0x1e0] sm:$0xf]  ;;  %v2716_v36 = vld [vmem:[#allocation2 + $0x1e4] sm:$0xf] }
 0x280   : > { %17289 = vst [vmem:[#allocation145_spill] sm:$0xff] %v13768_v21  ;;  %4968 = vrot.lane.b32.xlu1 %v13760_v31, %s11597_s4  ;;  %v13784_v21 = vld [vmem:[#allocation2 + $0x198] sm:$0xff]  }
 0x281   : > { %4974 = vrot.lane.b32.xlu0 %v13764_v44, %s11597_s4  ;;  %17292 = vst [vmem:[#allocation148_spill] sm:$0xff] %v13788_v33 }
 0x282   : > { %v13778_v58 = vpop.permute.xlu1 %4536 }
 0x283   : > { %17290 = vst [vmem:[#allocation146_spill] sm:$0xff] %v13778_v58  ;;  %v13780_v23 = vpop.permute.xlu0 %4542  ;;  %v13800_v58 = vcombine.low %v2711_v37, %v2712_v38  ;;  %v2719_v37 = vld [vmem:[#allocation2 + $0x1f4] sm:$0xf]  ;;  %v2720_v38 = vld [vmem:[#allocation2 + $0x1f8] sm:$0xf] }
 0x284   : > { %17291 = vst [vmem:[#allocation147_spill] sm:$0xff] %v13780_v23  ;;  %4972 = vrot.lane.b32.xlu1 %v13772_v20, %s11597_s4  ;;  %v13796_v23 = vld [vmem:[#allocation2 + $0x1ac] sm:$0xff]  }
 0x285   : > { %4978 = vrot.lane.b32.xlu0 %v13776_v13, %s11597_s4  ;;  %17295 = vst [vmem:[#allocation151_spill] sm:$0xff] %v13800_v58 }
 0x286   : > { %v13790_v12 = vpop.permute.xlu1 %4540 }
 0x287   : > { %17293 = vst [vmem:[#allocation149_spill] sm:$0xff] %v13790_v12  ;;  %v13792_v16 = vpop.permute.xlu0 %4546  ;;  %v13812_v12 = vcombine.low %v2715_v18, %v2716_v36  ;;  %v2723_v18 = vld [vmem:[#allocation2 + $0x208] sm:$0xf]  ;;  %v2724_v36 = vld [vmem:[#allocation2 + $0x20c] sm:$0xf] }
 0x288   : > { %17294 = vst [vmem:[#allocation150_spill] sm:$0xff] %v13792_v16  ;;  %4976 = vrot.lane.b32.xlu1 %v13784_v21, %s11597_s4  ;;  %v13808_v16 = vld [vmem:[#allocation2 + $0x1c0] sm:$0xff]  }
 0x289   : > { %4982 = vrot.lane.b32.xlu0 %v13788_v33, %s11597_s4  ;;  %17298 = vst [vmem:[#allocation154_spill] sm:$0xff] %v13808_v16  ;;  %17299 = vst [vmem:[#allocation155_spill] sm:$0xff] %v13812_v12  ;;  %v5163_v33 = vshrl.u32 %v13560_v0, 16 }
 0x28a   : > { %v13802_v17 = vpop.permute.xlu1 %4544 }
 0x28b   : > { %17296 = vst [vmem:[#allocation152_spill] sm:$0xff] %v13802_v17  ;;  %v13804_v49 = vpop.permute.xlu0 %4550  ;;  %v13824_v17 = vcombine.low %v2719_v37, %v2720_v38  ;;  %v2727_v37 = vld [vmem:[#allocation2 + $0x21c] sm:$0xf]  ;;  %v2728_v38 = vld [vmem:[#allocation2 + $0x220] sm:$0xf] }
 0x28c   : > { %17297 = vst [vmem:[#allocation153_spill] sm:$0xff] %v13804_v49  ;;  %4980 = vrot.lane.b32.xlu1 %v13796_v23, %s11597_s4  ;;  %v13820_v49 = vld [vmem:[#allocation2 + $0x1d4] sm:$0xff]  }
 0x28d   : > { %4986 = vrot.lane.b32.xlu0 %v13800_v58, %s11597_s4  ;;  %17302 = vst [vmem:[#allocation158_spill] sm:$0xff] %v13820_v49  ;;  %17303 = vst [vmem:[#allocation159_spill] sm:$0xff] %v13824_v17  ;;  %v5150_v58 = vshll.u32 %v13568_v60, 16 }
 0x28e   : > { %v13814_v62 = vpop.permute.xlu1 %4548 }
 0x28f   : > { %17300 = vst [vmem:[#allocation156_spill] sm:$0xff] %v13814_v62  ;;  %v13816_v51 = vpop.permute.xlu0 %4554  ;;  %v13836_v62 = vcombine.low %v2723_v18, %v2724_v36  ;;  %v2731_v18 = vld [vmem:[#allocation2 + $0x230] sm:$0xf]  ;;  %v2732_v36 = vld [vmem:[#allocation2 + $0x234] sm:$0xf] }
 0x290   : > { %17301 = vst [vmem:[#allocation157_spill] sm:$0xff] %v13816_v51  ;;  %4984 = vrot.lane.b32.xlu1 %v13808_v16, %s11597_s4  ;;  %v13832_v51 = vld [vmem:[#allocation2 + $0x1e8] sm:$0xff]  }
 0x291   : > { %4990 = vrot.lane.b32.xlu0 %v13812_v12, %s11597_s4  ;;  %17306 = vst [vmem:[#allocation162_spill] sm:$0xff] %v13832_v51  ;;  %17307 = vst [vmem:[#allocation163_spill] sm:$0xff] %v13836_v62 }
 0x292   : > { %v13826_v6 = vpop.permute.xlu1 %4552 }
 0x293   : > { %17304 = vst [vmem:[#allocation160_spill] sm:$0xff] %v13826_v6  ;;  %v13828_v22 = vpop.permute.xlu0 %4558  ;;  %v13848_v6 = vcombine.low %v2727_v37, %v2728_v38  ;;  %v2735_v37 = vld [vmem:[#allocation2 + $0x244] sm:$0xf]  ;;  %v2736_v38 = vld [vmem:[#allocation2 + $0x248] sm:$0xf] }
 0x294   : > { %17305 = vst [vmem:[#allocation161_spill] sm:$0xff] %v13828_v22  ;;  %4988 = vrot.lane.b32.xlu1 %v13820_v49, %s11597_s4  ;;  %v13844_v22 = vld [vmem:[#allocation2 + $0x1fc] sm:$0xff]   ;;  %v2428_v49 = vld [vmem:[#allocation2 + $0x290] sm:$0x1] }
 0x295   : > { %4994 = vrot.lane.b32.xlu0 %v13824_v17, %s11597_s4  ;;  %17310 = vst [vmem:[#allocation166_spill] sm:$0xff] %v13844_v22  ;;  %17311 = vst [vmem:[#allocation167_spill] sm:$0xff] %v13848_v6  ;;  %v2748_v17 = vld [vmem:[#allocation2 + $0x284] sm:$0xf] }
 0x296   : > { %v13838_v53 = vpop.permute.xlu1 %4556 }
 0x297   : > { %17308 = vst [vmem:[#allocation164_spill] sm:$0xff] %v13838_v53  ;;  %v13840_v19 = vpop.permute.xlu0 %4562  ;;  %v13860_v53 = vcombine.low %v2731_v18, %v2732_v36  ;;  %v2739_v18 = vld [vmem:[#allocation2 + $0x258] sm:$0xf]  ;;  %v2740_v36 = vld [vmem:[#allocation2 + $0x25c] sm:$0xf] }
 0x298   : > { %17309 = vst [vmem:[#allocation165_spill] sm:$0xff] %v13840_v19  ;;  %4992 = vrot.lane.b32.xlu1 %v13832_v51, %s11597_s4  ;;  %v13856_v19 = vld [vmem:[#allocation2 + $0x210] sm:$0xff]  }
 0x299   : > { %4998 = vrot.lane.b32.xlu0 %v13836_v62, %s11597_s4  ;;  %17314 = vst [vmem:[#allocation170_spill] sm:$0xff] %v13856_v19  ;;  %17315 = vst [vmem:[#allocation171_spill] sm:$0xff] %v13860_v53 }
 0x29a   : > { %v13850_v56 = vpop.permute.xlu1 %4560 }
 0x29b   : > { %17312 = vst [vmem:[#allocation168_spill] sm:$0xff] %v13850_v56  ;;  %v13852_v43 = vpop.permute.xlu0 %4566  ;;  %v13872_v56 = vcombine.low %v2735_v37, %v2736_v38  ;;  %v2743_v38 = vld [vmem:[#allocation2 + $0x26c] sm:$0xf] }
 0x29c   : > { %17313 = vst [vmem:[#allocation169_spill] sm:$0xff] %v13852_v43  ;;  %4996 = vrot.lane.b32.xlu1 %v13844_v22, %s11597_s4  ;;  %v13868_v43 = vld [vmem:[#allocation2 + $0x224] sm:$0xff]   ;;  %v2747_v22 = vld [vmem:[#allocation2 + $0x280] sm:$0xf] }
 0x29d   : > { %5002 = vrot.lane.b32.xlu0 %v13848_v6, %s11597_s4  ;;  %17318 = vst [vmem:[#allocation174_spill] sm:$0xff] %v13868_v43  ;;  %17319 = vst [vmem:[#allocation175_spill] sm:$0xff] %v13872_v56 }
 0x29e   : > { %v13862_v8 = vpop.permute.xlu1 %4564 }
 0x29f   : > { %17316 = vst [vmem:[#allocation172_spill] sm:$0xff] %v13862_v8  ;;  %v13864_v1 = vpop.permute.xlu0 %4570  ;;  %v13884_v8 = vcombine.low %v2739_v18, %v2740_v36  ;;  %v5123_v18 = vshrl.u32 %v13534_v42, 16 }
 0x2a0   : > { %17317 = vst [vmem:[#allocation173_spill] sm:$0xff] %v13864_v1  ;;  %5000 = vrot.lane.b32.xlu1 %v13856_v19, %s11597_s4  ;;  %v13880_v1 = vld [vmem:[#allocation2 + $0x238] sm:$0xff]  }
 0x2a1   : > { %5006 = vrot.lane.b32.xlu0 %v13860_v53, %s11597_s4  ;;  %17322 = vst [vmem:[#allocation178_spill] sm:$0xff] %v13880_v1  ;;  %17323 = vst [vmem:[#allocation179_spill] sm:$0xff] %v13884_v8  ;;  %v5125_v53 = vshll.u32 %v13534_v42, 16  ;;  %v11172_v42 = vld [vmem:[#allocation2 + $0x24] ss:$0 sps:$4 sm:$0x11]  }
 0x2a2   : > { %v13874_v62 = vpop.permute.xlu1 %4568 }
 0x2a3   : > { %17320 = vst [vmem:[#allocation176_spill] sm:$0xff] %v13874_v62  ;;  %v13876_v6 = vpop.permute.xlu0 %4574  ;;  %v2744_v62 = vld [vmem:[#allocation2 + $0x270] sm:$0xf]  ;;  %v5127_v36 = vrot.slane %v5125_v53, 1  ;;  %v5165_v53 = vshll.u32 %v13560_v0, 16 }
 0x2a4   : > { %17321 = vst [vmem:[#allocation177_spill] sm:$0xff] %v13876_v6  ;;  %5004 = vrot.lane.b32.xlu1 %v13868_v43, %s11597_s4  ;;  %v13893_v6 = vld [vmem:[#allocation2 + $0x24c] sm:$0xff]   ;;  %v13897_v43 = vcombine.low %v2743_v38, %v2744_v62  ;;  %v13909_v62 = vld [vmem:[#allocation2 + $0x260] sm:$0xff]   ;;  %v13914_v38 = vcombine.low %v2747_v22, %v2748_v17  ;;  %v13927_v17 = vld [vmem:[#allocation2 + $0x274] sm:$0xff]   ;;  %v5170_v22 = vshll.u32 %v13580_v3, 16 }
 0x2a5   : > { %5010 = vrot.lane.b32.xlu0 %v13872_v56, %s11597_s4  ;;  %17326 = vst [vmem:[#allocation182_spill] sm:$0xff] %v13893_v6  ;;  %v5130_v56 = vshll.u32 %v13556_v45, 16  ;;  %17330 = vst [vmem:[#allocation186_spill] sm:$0xff] %v13909_v62 }
 0x2a6   : > { %v13887_v37 = vpop.permute.xlu1 %4572  ;;  %17327 = vst [vmem:[#allocation183_spill] sm:$0xff] %v13897_v43  ;;  %17331 = vst [vmem:[#allocation187_spill] sm:$0xff] %v13914_v38 }
 0x2a7   : > { %17324 = vst [vmem:[#allocation180_spill] sm:$0xff] %v13887_v37  ;;  %v13889_v19 = vpop.permute.xlu0 %4898  ;;  %17334 = vst [vmem:[#allocation190_spill] sm:$0xff] %v13927_v17 }
 0x2a8   : > { %17325 = vst [vmem:[#allocation181_spill] sm:$0xff] %v13889_v19  ;;  %5008 = vrot.lane.b32.xlu1 %v13880_v1, %s11597_s4  ;;  %v5145_v19 = vshll.u32 %v13548_v41, 16  ;;  %v1976_v1 = vrot.slane %v13519_v9, 4  ;;  %v5143_v9 = vshrl.u32 %v13548_v41, 16  ;;  %v5138_v41 = vshll.u32 %v11172_v42, 16 }
 0x2a9   : > { %5014 = vrot.lane.b32.xlu0 %v13884_v8, %s11597_s4  ;;  %v5132_v8 = vrot.slane %v5130_v56, 1  ;;  %v5167_v56 = vrot.slane %v5165_v53, 1  ;;  %v11174_v53 = vld [vmem:[#allocation2 + $0x4c] ss:$0 sps:$4 sm:$0x11]  }
 0x2aa   : > { %v13901_v37 = vpop.permute.xlu1 %4576 }
 0x2ab   : > { %17328 = vst [vmem:[#allocation184_spill] sm:$0xff] %v13901_v37  ;;  %v13905_v51 = vpop.permute.xlu0 %4902  ;;  %v5128_v37 = vor.u32 %v5127_v36, %v5123_v18  ;;  %v5152_v18 = vrot.slane %v5150_v58, 1  ;;  %v5168_v42 = vor.u32 %v5167_v56, %v5163_v33  ;;  %v5205_v33 = vshll.u32 %v13584_v11, 16 }
 0x2ac   : > { %17329 = vst [vmem:[#allocation185_spill] sm:$0xff] %v13905_v51  ;;  %5012 = vrot.lane.b32.xlu1 %v13893_v6, %s11597_s4  ;;  %v5147_v51 = vrot.slane %v5145_v19, 1  ;;  %v2429_v6 = vsel %vm12090_vm8, %v1976_v1, %v2428_v49  ;;  %v5134_v19 = vshrl.u32 %v13556_v45, 16  ;;  %v11173_v1 = vld [vmem:[#allocation2 + $0x38] ss:$0 sps:$4 sm:$0x11]  }
 0x2ad   : > { %5018 = vrot.lane.b32.xlu0 %v13897_v43, %s11597_s4  ;;  %2430 = vst [vmem:[#allocation2 + $0x290] sm:$0x1] %v2429_v6  ;;  %v5133_v6 = vsel %vm3424_vm2, %v5128_v37, %v5132_v8  ;;  %v13941_v45 = vld [vmem:[#allocation2 + $0x288] sm:$0xff]   ;;  %v5187_v37 = vrot.slane %v5185_v55, 1  ;;  %v5158_v58 = vshll.u32 %v11173_v1, 16 }
 0x2ae   : > { %v13916_v12 = vpop.permute.xlu1 %4900  ;;  %v5148_v0 = vor.u32 %v5147_v51, %v5143_v9  ;;  %17337 = vst [vmem:[#allocation193_spill] sm:$0xff] %v13941_v45  ;;  %v5154_v51 = vshrl.u32 %v13568_v60, 16  ;;  %v5225_v60 = vshll.u32 %v13596_v24, 16 }
 0x2af   : > { %17332 = vst [vmem:[#allocation188_spill] sm:$0xff] %v13916_v12  ;;  %v13922_v16 = vpop.permute.xlu0 %4906  ;;  %v5136_v12 = vor.u32 %v5134_v19, %v5132_v8  ;;  %v5174_v8 = vshrl.u32 %v13580_v3, 16  ;;  %v11175_v19 = vld [vmem:[#allocation2 + $0x60] ss:$0 sps:$4 sm:$0x11]   ;;  %v5203_v3 = vshrl.u32 %v13584_v11, 16 }
 0x2b0   : > { %17333 = vst [vmem:[#allocation189_spill] sm:$0xff] %v13922_v16  ;;  %5016 = vrot.lane.b32.xlu1 %v13909_v62, %s11597_s4  ;;  %v5172_v16 = vrot.slane %v5170_v22, 1  ;;  %v5178_v22 = vshll.u32 %v11174_v53, 16  ;;  %v5156_v1 = vor.u32 %v5154_v51, %v5152_v18  ;;  %v5207_v53 = vrot.slane %v5205_v33, 1 }
 0x2b1   : > { %5022 = vrot.lane.b32.xlu0 %v13914_v38, %s11597_s4  ;;  %v5140_v38 = vrot.slane %v5138_v41, 1  ;;  %v5223_v62 = vshrl.u32 %v13596_v24, 16 }
 0x2b2   : > { %v13934_v49 = vpop.permute.xlu1 %4904  ;;  %v5180_v43 = vrot.slane %v5178_v22, 1  ;;  %v5208_v24 = vor.u32 %v5207_v53, %v5203_v3  ;;  %v5265_v3 = vshll.u32 %v13620_v34, 16 }
 0x2b3   : > { %17335 = vst [vmem:[#allocation191_spill] sm:$0xff] %v13934_v49  ;;  %v13937_v36 = vpop.permute.xlu0 %4910  ;;  %v5183_v49 = vshrl.u32 %v13572_v46, 16  ;;  %v5173_v46 = vsel %vm3424_vm2, %v5168_v42, %v5172_v16  ;;  %v5141_v41 = vsel %vm3424_vm2, %v5136_v12, %v5140_v38  ;;  %v5176_v42 = vor.u32 %v5174_v8, %v5172_v16  ;;  %v11177_v8 = vld [vmem:[#allocation2 + $0x88] ss:$0 sps:$4 sm:$0x11]  }
 0x2b4   : > { %17336 = vst [vmem:[#allocation192_spill] sm:$0xff] %v13937_v36  ;;  %5020 = vrot.lane.b32.xlu1 %v13927_v17, %s11597_s4  ;;  %v5153_v36 = vsel %vm3424_vm2, %v5148_v0, %v5152_v18  ;;  %v5190_v17 = vshll.u32 %v13592_v29, 16  ;;  %v5227_v12 = vrot.slane %v5225_v60, 1  ;;  %v5230_v38 = vshll.u32 %v13616_v54, 16 }
 0x2b5   : > { %5762 = vrot.lane.b32.xlu0 %v5133_v6, %s11598_s5  ;;  %v5188_v55 = vor.u32 %v5187_v37, %v5183_v49  ;;  %v5160_v6 = vrot.slane %v5158_v58, 1  ;;  %v5194_v49 = vshrl.u32 %v13592_v29, 16  ;;  %v5198_v18 = vshll.u32 %v11175_v19, 16 }
 0x2b6   : > { %v13946_v9 = vpop.permute.xlu1 %4908  ;;  %v5181_v33 = vsel %vm3424_vm2, %v5176_v42, %v5180_v43  ;;  %v5228_v29 = vor.u32 %v5227_v12, %v5223_v62  ;;  %v5232_v22 = vrot.slane %v5230_v38, 1  ;;  %v5243_v19 = vshrl.u32 %v13608_v4, 16  ;;  %v11178_v42 = vld [vmem:[#allocation2 + $0x9c] ss:$0 sps:$4 sm:$0x11]  }
 0x2b7   : > { %17338 = vst [vmem:[#allocation194_spill] sm:$0xff] %v13946_v9  ;;  %v13951_v56 = vpop.permute.xlu0 %4914  ;;  %v5210_v9 = vshll.u32 %v13604_v27, 16  ;;  %v5161_v11 = vsel %vm3424_vm2, %v5156_v1, %v5160_v6  ;;  %v5200_v60 = vrot.slane %v5198_v18, 1  ;;  %v5250_v43 = vshll.u32 %v13628_v5, 16 }
 0x2b8   : > { %17339 = vst [vmem:[#allocation195_spill] sm:$0xff] %v13951_v56  ;;  %5024 = vrot.lane.b32.xlu1 %v13941_v45, %s11597_s4  ;;  %v5192_v56 = vrot.slane %v5190_v17, 1  ;;  %v5245_v17 = vshll.u32 %v13608_v4, 16  ;;  %v5238_v53 = vshll.u32 %v11177_v8, 16  ;;  %v5233_v4 = vsel %vm3424_vm2, %v5228_v29, %v5232_v22  ;;  %s9976_s4 = sshll.u32 %s16129_s27, 4  ;;  %s17012_s4 = int_to_ptr.vmem [resolvable:$true] %s9976_s4 }
 0x2b9   : > { %5766 = vrot.lane.b32.xlu0 %v5153_v36, %s11598_s5  ;;  %v11176_v36 = vld [vmem:[#allocation2 + $0x74] ss:$0 sps:$4 sm:$0x11]   ;;  %v5212_v51 = vrot.slane %v5210_v9, 1  ;;  %v5283_v29 = vshrl.u32 %v13632_v47, 16  ;;  %s11530_s8 = scalar_lea.vmem %s17012_s4, 16384 }
 0x2ba   : > { %v13960_v0 = vpop.permute.xlu1 %4912  ;;  %v5193_v16 = vsel %vm3424_vm2, %v5188_v55, %v5192_v56  ;;  %v5214_v55 = vshrl.u32 %v13604_v27, 16  ;;  %v5218_v1 = vshll.u32 %v11176_v36, 16  ;;  %v5285_v27 = vshll.u32 %v13632_v47, 16  ;;  %p11531_p11 = scmp.ne.s32.totalorder %s17012_s4, %s11530_s8 }
 0x2bb   : > { %17340 = vst [vmem:[#allocation196_spill] sm:$0xff] %v13960_v0  ;;  %v13964_v45 = vpop.permute.xlu0 %4918  ;;  %v5213_v6 = vsel %vm3424_vm2, %v5208_v24, %v5212_v51  ;;  %v5267_v36 = vrot.slane %v5265_v3, 1  ;;  %v5240_v8 = vrot.slane %v5238_v53, 1 }
 0x2bc   : > { %17341 = vst [vmem:[#allocation197_spill] sm:$0xff] %v13964_v45  ;;  %5764 = vrot.lane.b32.xlu1 %v5141_v41, %s11598_s5  ;;  %v5247_v41 = vrot.slane %v5245_v17, 1  ;;  %v5220_v18 = vrot.slane %v5218_v1, 1  ;;  %v5252_v17 = vrot.slane %v5250_v43, 1  ;;  %p11532_p12 = pnand %p11531_p11, %p11665_p5 }
 0x2bd   : > { %5770 = vrot.lane.b32.xlu0 %v5173_v46, %s11598_s5  ;;  %v5196_v46 = vor.u32 %v5194_v49, %v5192_v56  ;;  %v5234_v56 = vshrl.u32 %v13616_v54, 16  ;;  %v5216_v49 = vor.u32 %v5214_v55, %v5212_v51  ;;  %v5263_v54 = vshrl.u32 %v13620_v34, 16  ;;  %v11179_v55 = vld [vmem:[#allocation2 + $0xb0] ss:$0 sps:$4 sm:$0x11]  }
 0x2be   : > { %v13973_v37 = vpop.permute.xlu1 %4916  ;;  %v5248_v38 = vor.u32 %v5247_v41, %v5243_v19  ;;  %v5290_v51 = vshll.u32 %v13652_v35, 16  ;;  %v5258_v19 = vshll.u32 %v11178_v42, 16  ;;  %v5305_v41 = vshll.u32 %v13644_v48, 16  ;;  %p11533_p13 = pneg %p11532_p12 }
 0x2bf   : > { %17342 = vst [vmem:[#allocation198_spill] sm:$0xff] %v13973_v37  ;;  %v13976_v58 = vpop.permute.xlu0 %4922  ;;  %v5201_v12 = vsel %vm3424_vm2, %v5196_v46, %v5200_v60  ;;  %v5287_v46 = vrot.slane %v5285_v27, 1  ;;  %v5254_v60 = vshrl.u32 %v13628_v5, 16  ;;  %v5221_v34 = vsel %vm3424_vm2, %v5216_v49, %v5220_v18 }
 0x2c0   : > { %17343 = vst [vmem:[#allocation199_spill] sm:$0xff] %v13976_v58  ;;  %5768 = vrot.lane.b32.xlu1 %v5161_v11, %s11598_s5  ;;  %v5268_v47 = vor.u32 %v5267_v36, %v5263_v54  ;;  %v5292_v53 = vrot.slane %v5290_v51, 1  ;;  %v5260_v27 = vrot.slane %v5258_v19, 1  ;;  %v5303_v42 = vshrl.u32 %v13644_v48, 16 }
 0x2c1   : > { %5774 = vrot.lane.b32.xlu0 %v5193_v16, %s11598_s5  ;;  %v5270_v16 = vshll.u32 %v13640_v52, 16  ;;  %v5288_v5 = vor.u32 %v5287_v46, %v5283_v29  ;;  %v5278_v49 = vshll.u32 %v11179_v55, 16  ;;  %v5310_v36 = vshll.u32 %v13664_v57, 16  ;;  %v11181_v29 = vld [vmem:[#allocation2 + $0xd8] ss:$0 sps:$4 sm:$0x11]  }
 0x2c2   : > { %v13983_v9 = vpop.permute.xlu1 %4920 }
 0x2c3   : > { %17344 = vst [vmem:[#allocation200_spill] sm:$0xff] %v13983_v9  ;;  %v13988_v62 = vpop.permute.xlu0 %4926  ;;  %v5293_v48 = vsel %vm3424_vm2, %v5288_v5, %v5292_v53  ;;  %v5280_v19 = vrot.slane %v5278_v49, 1  ;;  %v5343_v5 = vshrl.u32 %v13668_v40, 16 }
 0x2c4   : > { %17345 = vst [vmem:[#allocation201_spill] sm:$0xff] %v13988_v62  ;;  %5772 = vrot.lane.b32.xlu1 %v5181_v33, %s11598_s5  ;;  %v5236_v33 = vor.u32 %v5234_v56, %v5232_v22  ;;  %v5253_v22 = vsel %vm3424_vm2, %v5248_v38, %v5252_v17  ;;  %v11180_v56 = vld [vmem:[#allocation2 + $0xc4] ss:$0 sps:$4 sm:$0x11]   ;;  %v5274_v38 = vshrl.u32 %v13640_v52, 16  ;;  %v5345_v52 = vshll.u32 %v13668_v40, 16 }
 0x2c5   : > { %5778 = vrot.lane.b32.xlu0 %v5213_v6, %s11598_s5  ;;  %v5272_v6 = vrot.slane %v5270_v16, 1  ;;  %v5325_v16 = vshll.u32 %v13656_v63, 16 }
 0x2c6   : > { %v13996_v11 = vpop.permute.xlu1 %4924  ;;  %v5241_v3 = vsel %vm3424_vm2, %v5236_v33, %v5240_v8  ;;  %v5298_v8 = vshll.u32 %v11180_v56, 16 }
 0x2c7   : > { %17346 = vst [vmem:[#allocation202_spill] sm:$0xff] %v13996_v11  ;;  %v14000_v24 = vpop.permute.xlu0 %4930  ;;  %v5273_v54 = vsel %vm3424_vm2, %v5268_v47, %v5272_v6  ;;  %v5327_v55 = vrot.slane %v5325_v16, 1 }
 0x2c8   : > { %17347 = vst [vmem:[#allocation203_spill] sm:$0xff] %v14000_v24  ;;  %5776 = vrot.lane.b32.xlu1 %v5201_v12, %s11598_s5  ;;  %v5307_v12 = vrot.slane %v5305_v41, 1  ;;  %v5312_v41 = vrot.slane %v5310_v36, 1  ;;  %v5300_v56 = vrot.slane %v5298_v8, 1 }
 0x2c9   : > { %5782 = vrot.lane.b32.xlu0 %v5233_v4, %s11598_s5  ;;  %v5256_v4 = vor.u32 %v5254_v60, %v5252_v17  ;;  %v5294_v17 = vshrl.u32 %v13652_v35, 16  ;;  %v5276_v60 = vor.u32 %v5274_v38, %v5272_v6  ;;  %v5323_v35 = vshrl.u32 %v13656_v63, 16  ;;  %v14045_v38 = vld [vmem:[#allocation2 + $0xec] ss:$0 sps:$4 sm:$0x11]  }
 0x2ca   : > { %v14009_v1 = vpop.permute.xlu1 %4928  ;;  %v5308_v51 = vor.u32 %v5307_v12, %v5303_v42  ;;  %v5350_v6 = vshll.u32 %v13688_v30, 16  ;;  %v5318_v42 = vshll.u32 %v11181_v29, 16  ;;  %v5365_v12 = vshll.u32 %v13680_v39, 16 }
 0x2cb   : > { %17348 = vst [vmem:[#allocation204_spill] sm:$0xff] %v14009_v1  ;;  %v14012_v43 = vpop.permute.xlu0 %4934  ;;  %v5261_v46 = vsel %vm3424_vm2, %v5256_v4, %v5260_v27  ;;  %v5347_v4 = vrot.slane %v5345_v52, 1  ;;  %v5314_v27 = vshrl.u32 %v13664_v57, 16  ;;  %v5281_v63 = vsel %vm3424_vm2, %v5276_v60, %v5280_v19  ;;  %v14053_v57 = vld [vmem:[#allocation2 + $0x100] ss:$0 sps:$4 sm:$0x11]  }
 0x2cc   : > { %17349 = vst [vmem:[#allocation205_spill] sm:$0xff] %v14012_v43  ;;  %5780 = vrot.lane.b32.xlu1 %v5221_v34, %s11598_s5  ;;  %v5313_v40 = vsel %vm3424_vm2, %v5308_v51, %v5312_v41  ;;  %v5328_v49 = vor.u32 %v5327_v55, %v5323_v35  ;;  %v5352_v8 = vrot.slane %v5350_v6, 1  ;;  %v5320_v52 = vrot.slane %v5318_v42, 1 }
 0x2cd   : > { %5786 = vrot.lane.b32.xlu0 %v5253_v22, %s11598_s5  ;;  %v5330_v22 = vshll.u32 %v13676_v32, 16  ;;  %v5363_v29 = vshrl.u32 %v13680_v39, 16  ;;  %v5334_v51 = vshrl.u32 %v13676_v32, 16  ;;  %v5338_v60 = vshll.u32 %v14045_v38, 16 }
 0x2ce   : > { %v14019_v18 = vpop.permute.xlu1 %4932  ;;  %v5370_v55 = vshll.u32 %v13700_v7, 16  ;;  %v5405_v39 = vshll.u32 %v13704_v26, 16 }
 0x2cf   : > { %17350 = vst [vmem:[#allocation206_spill] sm:$0xff] %v14019_v18  ;;  %v14024_v33 = vpop.permute.xlu0 %4938  ;;  %v5340_v42 = vrot.slane %v5338_v60, 1 }
 0x2d0   : > { %17351 = vst [vmem:[#allocation207_spill] sm:$0xff] %v14024_v33  ;;  %5784 = vrot.lane.b32.xlu1 %v5241_v3, %s11598_s5  ;;  %v5296_v3 = vor.u32 %v5294_v17, %v5292_v53  ;;  %v5348_v17 = vor.u32 %v5347_v4, %v5343_v5  ;;  %v14072_v5 = vld [vmem:[#allocation2 + $0x114] ss:$0 sps:$4 sm:$0x11]  }
 0x2d1   : > { %5790 = vrot.lane.b32.xlu0 %v5273_v54, %s11598_s5  ;;  %v5332_v54 = vrot.slane %v5330_v22, 1  ;;  %v5385_v22 = vshll.u32 %v13692_v59, 16 }
 0x2d2   : > { %v14032_v34 = vpop.permute.xlu1 %4936  ;;  %v5301_v16 = vsel %vm3424_vm2, %v5296_v3, %v5300_v56  ;;  %v5358_v56 = vshll.u32 %v14053_v57, 16  ;;  %v5353_v32 = vsel %vm3424_vm2, %v5348_v17, %v5352_v8 }
 0x2d3   : > { %17352 = vst [vmem:[#allocation208_spill] sm:$0xff] %v14032_v34  ;;  %v14036_v47 = vpop.permute.xlu0 %4942  ;;  %v5333_v35 = vsel %vm3424_vm2, %v5328_v49, %v5332_v54  ;;  %v5390_v49 = vshll.u32 %v13712_v25, 16 }
 0x2d4   : > { %17353 = vst [vmem:[#allocation209_spill] sm:$0xff] %v14036_v47  ;;  %5788 = vrot.lane.b32.xlu1 %v5261_v46, %s11598_s5  ;;  %v5367_v46 = vrot.slane %v5365_v12, 1  ;;  %v5383_v12 = vshrl.u32 %v13692_v59, 16 }
 0x2d5   : > { %5794 = vrot.lane.b32.xlu0 %v5293_v48, %s11598_s5  ;;  %v5316_v48 = vor.u32 %v5314_v27, %v5312_v41  ;;  %v5354_v41 = vshrl.u32 %v13688_v30, 16  ;;  %v5336_v27 = vor.u32 %v5334_v51, %v5332_v54  ;;  %v5372_v30 = vrot.slane %v5370_v55, 1  ;;  %v14090_v51 = vld [vmem:[#allocation2 + $0x128] ss:$0 sps:$4 sm:$0x11]  }
 0x2d6   : > { %v14047_v53 = vpop.permute.xlu1 %4940  ;;  %v5368_v6 = vor.u32 %v5367_v46, %v5363_v29  ;;  %v5410_v54 = vshll.u32 %v13724_v2, 16  ;;  %v5378_v29 = vshll.u32 %v14072_v5, 16  ;;  %v5425_v46 = vshll.u32 %v13716_v50, 16 }
 0x2d7   : > { %17354 = vst [vmem:[#allocation210_spill] sm:$0xff] %v14047_v53  ;;  %v14050_v36 = vpop.permute.xlu0 %4946  ;;  %v5321_v4 = vsel %vm3424_vm2, %v5316_v48, %v5320_v52  ;;  %v5356_v17 = vor.u32 %v5354_v41, %v5352_v8  ;;  %v5407_v48 = vrot.slane %v5405_v39, 1  ;;  %v5374_v52 = vshrl.u32 %v13700_v7, 16 }
 0x2d8   : > { %17355 = vst [vmem:[#allocation211_spill] sm:$0xff] %v14050_v36  ;;  %5792 = vrot.lane.b32.xlu1 %v5281_v63, %s11598_s5  ;;  %v5403_v36 = vshrl.u32 %v13704_v26, 16  ;;  %v5341_v59 = vsel %vm3424_vm2, %v5336_v27, %v5340_v42  ;;  %v5373_v26 = vsel %vm3424_vm2, %v5368_v6, %v5372_v30  ;;  %v5380_v39 = vrot.slane %v5378_v29, 1 }
 0x2d9   : > { %5798 = vrot.lane.b32.xlu0 %v5313_v40, %s11598_s5  ;;  %v5387_v40 = vrot.slane %v5385_v22, 1  ;;  %v14098_v22 = vld [vmem:[#allocation2 + $0x13c] ss:$0 sps:$4 sm:$0x11]   ;;  %v5427_v27 = vrot.slane %v5425_v46, 1  ;;  %v5394_v6 = vshrl.u32 %v13712_v25, 16 }
 0x2da   : > { %v14060_v19 = vpop.permute.xlu1 %4944  ;;  %v5408_v41 = vor.u32 %v5407_v48, %v5403_v36  ;;  %v5398_v42 = vshll.u32 %v14090_v51, 16  ;;  %v5445_v36 = vshll.u32 %v13728_v15, 16  ;;  %v5465_v25 = vshll.u32 %v13740_v61, 16  ;;  %v14117_v48 = vld [vmem:[#allocation2 + $0x150] ss:$0 sps:$4 sm:$0x11]  }
 0x2db   : > { %17356 = vst [vmem:[#allocation212_spill] sm:$0xff] %v14060_v19  ;;  %v14065_v3 = vpop.permute.xlu0 %4950  ;;  %v5388_v60 = vor.u32 %v5387_v40, %v5383_v12  ;;  %v5430_v40 = vshll.u32 %v13736_v28, 16 }
 0x2dc   : > { %17357 = vst [vmem:[#allocation213_spill] sm:$0xff] %v14065_v3  ;;  %5796 = vrot.lane.b32.xlu1 %v5301_v16, %s11598_s5  ;;  %v5360_v3 = vrot.slane %v5358_v56, 1  ;;  %v5412_v56 = vrot.slane %v5410_v54, 1 }
 0x2dd   : > { %5802 = vrot.lane.b32.xlu0 %v5333_v35, %s11598_s5  ;;  %v5392_v35 = vrot.slane %v5390_v49, 1 }
 0x2de   : > { %v14076_v63 = vpop.permute.xlu1 %4948  ;;  %v5361_v7 = vsel %vm3424_vm2, %v5356_v17, %v5360_v3  ;;  %v5418_v17 = vshll.u32 %v14098_v22, 16 }
 0x2df   : > { %17358 = vst [vmem:[#allocation214_spill] sm:$0xff] %v14076_v63  ;;  %v14080_v16 = vpop.permute.xlu0 %4954  ;;  %v5393_v3 = vsel %vm3424_vm2, %v5388_v60, %v5392_v35  ;;  %v5396_v29 = vor.u32 %v5394_v6, %v5392_v35  ;;  %v5447_v60 = vrot.slane %v5445_v36, 1  ;;  %v5470_v35 = vshll.u32 %v13760_v31, 16  ;;  %v14135_v6 = vld [vmem:[#allocation2 + $0x164] ss:$0 sps:$4 sm:$0x11]  }
 0x2e0   : > { %17359 = vst [vmem:[#allocation215_spill] sm:$0xff] %v14080_v16  ;;  %5800 = vrot.lane.b32.xlu1 %v5321_v4, %s11598_s5  ;;  %v5423_v4 = vshrl.u32 %v13716_v50, 16  ;;  %v5413_v50 = vsel %vm3424_vm2, %v5408_v41, %v5412_v56  ;;  %v5463_v16 = vshrl.u32 %v13740_v61, 16  ;;  %v14143_v36 = vld [vmem:[#allocation2 + $0x178] ss:$0 sps:$4 sm:$0x11]  }
 0x2e1   : > { %5806 = vrot.lane.b32.xlu0 %v5353_v32, %s11598_s5  ;;  %v5376_v32 = vor.u32 %v5374_v52, %v5372_v30  ;;  %v5414_v30 = vshrl.u32 %v13724_v2, 16  ;;  %v5432_v2 = vrot.slane %v5430_v40, 1  ;;  %v5523_v63 = vshrl.u32 %v13776_v13, 16 }
 0x2e2   : > { %v14092_v8 = vpop.permute.xlu1 %4952  ;;  %v5428_v52 = vor.u32 %v5427_v27, %v5423_v4  ;;  %v5438_v4 = vshll.u32 %v14117_v48, 16  ;;  %v5485_v27 = vshll.u32 %v13752_v14, 16 }
 0x2e3   : > { %17360 = vst [vmem:[#allocation216_spill] sm:$0xff] %v14092_v8  ;;  %v14095_v55 = vpop.permute.xlu0 %4958  ;;  %v5381_v54 = vsel %vm3424_vm2, %v5376_v32, %v5380_v39  ;;  %v5467_v32 = vrot.slane %v5465_v25, 1  ;;  %v5434_v39 = vshrl.u32 %v13736_v28, 16 }
 0x2e4   : > { %17361 = vst [vmem:[#allocation217_spill] sm:$0xff] %v14095_v55  ;;  %5804 = vrot.lane.b32.xlu1 %v5341_v59, %s11598_s5  ;;  %v5400_v59 = vrot.slane %v5398_v42, 1  ;;  %v5416_v55 = vor.u32 %v5414_v30, %v5412_v56  ;;  %v5433_v61 = vsel %vm3424_vm2, %v5428_v52, %v5432_v2  ;;  %v5440_v25 = vrot.slane %v5438_v4, 1 }
 0x2e5   : > { %5810 = vrot.lane.b32.xlu0 %v5373_v26, %s11598_s5  ;;  %v5443_v26 = vshrl.u32 %v13728_v15, 16  ;;  %v5468_v30 = vor.u32 %v5467_v32, %v5463_v16  ;;  %v5454_v52 = vshrl.u32 %v13748_v10, 16  ;;  %v5505_v16 = vshll.u32 %v13764_v44, 16  ;;  %v14162_v32 = vld [vmem:[#allocation2 + $0x18c] ss:$0 sps:$4 sm:$0x11]  }
 0x2e6   : > { %v14105_v12 = vpop.permute.xlu1 %4956  ;;  %v5401_v15 = vsel %vm3424_vm2, %v5396_v29, %v5400_v59  ;;  %v5487_v29 = vrot.slane %v5485_v27, 1  ;;  %v5458_v59 = vshll.u32 %v14135_v6, 16 }
 0x2e7   : > { %17362 = vst [vmem:[#allocation218_spill] sm:$0xff] %v14105_v12  ;;  %v14110_v49 = vpop.permute.xlu0 %4962  ;;  %v5420_v12 = vrot.slane %v5418_v17, 1  ;;  %v5448_v42 = vor.u32 %v5447_v60, %v5443_v26  ;;  %v5472_v17 = vrot.slane %v5470_v35, 1 }
 0x2e8   : > { %5808 = vrot.lane.b32.xlu1 %v5361_v7, %s11598_s5  ;;  %v5450_v7 = vshll.u32 %v13748_v10, 16  ;;  %v5525_v10 = vshll.u32 %v13776_v13, 16 }
 0x2e9   : > { %5814 = vrot.lane.b32.xlu0 %v5393_v3, %s11598_s5  ;;  %v5421_v28 = vsel %vm3424_vm2, %v5416_v55, %v5420_v12  ;;  %v5490_v12 = vshll.u32 %v13772_v20, 16 }
 0x2ea   : > { %v14121_v46 = vpop.permute.xlu1 %4960  ;;  %v5452_v3 = vrot.slane %v5450_v7, 1  ;;  %v5478_v7 = vshll.u32 %v14143_v36, 16 }
 0x2eb   : > { %17363 = vst [vmem:[#allocation219_spill] sm:$0xff] %v14121_v46  ;;  %v14125_v41 = vpop.permute.xlu0 %4966 }
 0x2ec   : > { %5812 = vrot.lane.b32.xlu1 %v5381_v54, %s11598_s5  ;;  %v5483_v54 = vshrl.u32 %v13752_v14, 16  ;;  %v5453_v55 = vsel %vm3424_vm2, %v5448_v42, %v5452_v3  ;;  %v5473_v14 = vsel %vm3424_vm2, %v5468_v30, %v5472_v17  ;;  %v5456_v4 = vor.u32 %v5454_v52, %v5452_v3 }
 0x2ed   : > { %5818 = vrot.lane.b32.xlu0 %v5413_v50, %s11598_s5  ;;  %v5436_v50 = vor.u32 %v5434_v39, %v5432_v2  ;;  %v5474_v2 = vshrl.u32 %v13760_v31, 16  ;;  %v5492_v31 = vrot.slane %v5490_v12, 1  ;;  %v5507_v42 = vrot.slane %v5505_v16, 1 }
 0x2ee   : > { %v14137_v56 = vpop.permute.xlu1 %4964  ;;  %v5488_v39 = vor.u32 %v5487_v29, %v5483_v54  ;;  %v5480_v8 = vrot.slane %v5478_v7, 1  ;;  %v5530_v3 = vshll.u32 %v13796_v23, 16  ;;  %v5498_v54 = vshll.u32 %v14162_v32, 16  ;;  %v17366_v29 = vld [vmem:[#allocation148_spill] sm:$0xff] }
 0x2ef   : > { %v14140_v40 = vpop.permute.xlu0 %4970  ;;  %v5441_v35 = vsel %vm3424_vm2, %v5436_v50, %v5440_v25  ;;  %v5476_v46 = vor.u32 %v5474_v2, %v5472_v17  ;;  %v5527_v50 = vrot.slane %v5525_v10, 1  ;;  %v5494_v25 = vshrl.u32 %v13772_v20, 16  ;;  %v14188_v2 = vld [vmem:[#allocation2 + $0x1b4] ss:$0 sps:$4 sm:$0x11]  }
 0x2f0   : > { %5816 = vrot.lane.b32.xlu1 %v5401_v15, %s11598_s5  ;;  %v5460_v15 = vrot.slane %v5458_v59, 1  ;;  %v5545_v52 = vshll.u32 %v17366_v29, 16  ;;  %v14180_v59 = vld [vmem:[#allocation2 + $0x1a0] ss:$0 sps:$4 sm:$0x11]   ;;  %v5493_v13 = vsel %vm3424_vm2, %v5488_v39, %v5492_v31  ;;  %v5514_v39 = vshrl.u32 %v13784_v21, 16 }
 0x2f1   : > { %5822 = vrot.lane.b32.xlu0 %v5433_v61, %s11598_s5  ;;  %v5503_v61 = vshrl.u32 %v13764_v44, 16  ;;  %v5481_v20 = vsel %vm3424_vm2, %v5476_v46, %v5480_v8  ;;  %v5528_v7 = vor.u32 %v5527_v50, %v5523_v63  ;;  %v5496_v10 = vor.u32 %v5494_v25, %v5492_v31  ;;  %v17370_v46 = vld [vmem:[#allocation154_spill] sm:$0xff]  ;;  %v17373_v25 = vld [vmem:[#allocation155_spill] sm:$0xff] }
 0x2f2   : > { %v14150_v26 = vpop.permute.xlu1 %4968  ;;  %v5461_v44 = vsel %vm3424_vm2, %v5456_v4, %v5460_v15  ;;  %v5543_v4 = vshrl.u32 %v17366_v29, 16  ;;  %v5547_v15 = vrot.slane %v5545_v52, 1  ;;  %v5534_v31 = vshrl.u32 %v13796_v23, 16  ;;  %v14207_v29 = vld [vmem:[#allocation2 + $0x1c8] ss:$0 sps:$4 sm:$0x11]  }
 0x2f3   : > { %v14155_v60 = vpop.permute.xlu0 %4974  ;;  %v5583_v24 = vshrl.u32 %v17373_v25, 16 }
 0x2f4   : > { %17364 = vst [vmem:[#allocation220_spill] sm:$0xff] %v14155_v60  ;;  %5820 = vrot.lane.b32.xlu1 %v5421_v28, %s11598_s5  ;;  %v5510_v28 = vshll.u32 %v13784_v21, 16 }
 0x2f5   : > { %5826 = vrot.lane.b32.xlu0 %v5453_v55, %s11598_s5  ;;  %v5508_v55 = vor.u32 %v5507_v42, %v5503_v61  ;;  %v5518_v61 = vshll.u32 %v14180_v59, 16 }
 0x2f6   : > { %v14166_v27 = vpop.permute.xlu1 %4972  ;;  %v5512_v12 = vrot.slane %v5510_v28, 1  ;;  %v5550_v28 = vshll.u32 %v17370_v46, 16 }
 0x2f7   : > { %v14170_v30 = vpop.permute.xlu0 %4978  ;;  %v5520_v19 = vrot.slane %v5518_v61, 1  ;;  %v17378_v61 = vld [vmem:[#allocation159_spill] sm:$0xff] }
 0x2f8   : > { %17365 = vst [vmem:[#allocation221_spill] sm:$0xff] %v14170_v30  ;;  %5824 = vrot.lane.b32.xlu1 %v5441_v35, %s11598_s5  ;;  %v5500_v35 = vrot.slane %v5498_v54, 1  ;;  %v5513_v8 = vsel %vm3424_vm2, %v5508_v55, %v5512_v12  ;;  %v5585_v54 = vshll.u32 %v17373_v25, 16  ;;  %v5516_v55 = vor.u32 %v5514_v39, %v5512_v12  ;;  %v14233_v25 = vld [vmem:[#allocation2 + $0x1f0] ss:$0 sps:$4 sm:$0x11]  }
 0x2f9   : > { %5830 = vrot.lane.b32.xlu0 %v5473_v14, %s11598_s5  ;;  %v5532_v14 = vrot.slane %v5530_v3, 1  ;;  %v5538_v3 = vshll.u32 %v14188_v2, 16  ;;  %v5552_v23 = vrot.slane %v5550_v28, 1  ;;  %v14225_v28 = vld [vmem:[#allocation2 + $0x1dc] ss:$0 sps:$4 sm:$0x11]  }
 0x2fa   : > { %v14182_v17 = vpop.permute.xlu1 %4976  ;;  %v5501_v52 = vsel %vm3424_vm2, %v5496_v10, %v5500_v35  ;;  %v5587_v10 = vrot.slane %v5585_v54, 1  ;;  %v17377_v35 = vld [vmem:[#allocation162_spill] sm:$0xff]  ;;  %v5521_v39 = vsel %vm3424_vm2, %v5516_v55, %v5520_v19  ;;  %v5603_v55 = vshrl.u32 %v17378_v61, 16 }
 0x2fb   : > { %17367 = vst [vmem:[#allocation148_spill] sm:$0xff] %v14182_v17  ;;  %v14185_v16 = vpop.permute.xlu0 %4982  ;;  %v5533_v21 = vsel %vm3424_vm2, %v5528_v7, %v5532_v14  ;;  %v5536_v43 = vor.u32 %v5534_v31, %v5532_v14  ;;  %v5540_v18 = vrot.slane %v5538_v3, 1  ;;  %v5590_v12 = vshll.u32 %v17377_v35, 16  ;;  %v17516_v17 = vld [vmem:[#allocation101_spill] sm:$0xff] }
 0x2fc   : > { %17368 = vst [vmem:[#allocation222_spill] sm:$0xff] %v14185_v16  ;;  %5828 = vrot.lane.b32.xlu1 %v5461_v44, %s11598_s5  ;;  %v17371_v44 = vld [vmem:[#allocation151_spill] sm:$0xff] }
 0x2fd   : > { %5834 = vrot.lane.b32.xlu0 %v5493_v13, %s11598_s5  ;;  %v5565_v63 = vshll.u32 %v17371_v44, 16  ;;  %v5548_v13 = vor.u32 %v5547_v15, %v5543_v4  ;;  %v5563_v53 = vshrl.u32 %v17371_v44, 16  ;;  %v5554_v4 = vshrl.u32 %v17370_v46, 16 }
 0x2fe   : > { %v14195_v42 = vpop.permute.xlu1 %4980  ;;  %v5558_v15 = vshll.u32 %v14207_v29, 16  ;;  %v5541_v46 = vsel %vm3424_vm2, %v5536_v43, %v5540_v18  ;;  %v5592_v19 = vrot.slane %v5590_v12, 1  ;;  %v17382_v18 = vld [vmem:[#allocation166_spill] sm:$0xff]  ;;  %v5598_v12 = vshll.u32 %v14233_v25, 16 }
 0x2ff   : > { %17369 = vst [vmem:[#allocation223_spill] sm:$0xff] %v14195_v42  ;;  %v14200_v50 = vpop.permute.xlu0 %4986  ;;  %v5567_v33 = vrot.slane %v5565_v63, 1  ;;  %v5553_v44 = vsel %vm3424_vm2, %v5548_v13, %v5552_v23  ;;  %v5556_v54 = vor.u32 %v5554_v4, %v5552_v23  ;;  %v5610_v13 = vshll.u32 %v17382_v18, 16  ;;  %v17385_v4 = vld [vmem:[#allocation167_spill] sm:$0xff]  ;;  %v2979_v42 = vld [vmem:[#allocation2 + $0x64] sm:$0xe] }
 0x300   : > { %17372 = vst [vmem:[#allocation154_spill] sm:$0xff] %v14200_v50  ;;  %5832 = vrot.lane.b32.xlu1 %v5481_v20, %s11598_s5  ;;  %v17375_v20 = vld [vmem:[#allocation158_spill] sm:$0xff]  ;;  %v5594_v23 = vshrl.u32 %v17377_v35, 16  ;;  %v5643_v50 = vshrl.u32 %v17385_v4, 16 }
 0x301   : > { %5838 = vrot.lane.b32.xlu0 %v5513_v8, %s11598_s5  ;;  %v5570_v34 = vshll.u32 %v17375_v20, 16  ;;  %v5605_v8 = vshll.u32 %v17378_v61, 16  ;;  %v5568_v63 = vor.u32 %v5567_v33, %v5563_v53  ;;  %v5574_v33 = vshrl.u32 %v17375_v20, 16  ;;  %v14252_v61 = vld [vmem:[#allocation2 + $0x204] ss:$0 sps:$4 sm:$0x11]  }
 0x302   : > { %v14211_v47 = vpop.permute.xlu1 %4984  ;;  %v5612_v35 = vrot.slane %v5610_v13, 1  ;;  %v5596_v11 = vor.u32 %v5594_v23, %v5592_v19  ;;  %v14270_v13 = vld [vmem:[#allocation2 + $0x218] ss:$0 sps:$4 sm:$0x11]  }
 0x303   : > { %17374 = vst [vmem:[#allocation151_spill] sm:$0xff] %v14211_v47  ;;  %v14215_v7 = vpop.permute.xlu0 %4990  ;;  %v5572_v31 = vrot.slane %v5570_v34, 1  ;;  %v5607_v1 = vrot.slane %v5605_v8, 1  ;;  %v5578_v34 = vshll.u32 %v14225_v28, 16 }
 0x304   : > { %17376 = vst [vmem:[#allocation155_spill] sm:$0xff] %v14215_v7  ;;  %5836 = vrot.lane.b32.xlu1 %v5501_v52, %s11598_s5  ;;  %v5560_v52 = vrot.slane %v5558_v15, 1  ;;  %v5645_v15 = vshll.u32 %v17385_v4, 16  ;;  %v14278_v4 = vld [vmem:[#allocation2 + $0x22c] ss:$0 sps:$4 sm:$0x11]  }
 0x305   : > { %5842 = vrot.lane.b32.xlu0 %v5533_v21, %s11598_s5  ;;  %v5588_v21 = vor.u32 %v5587_v10, %v5583_v24  ;;  %v5573_v43 = vsel %vm3424_vm2, %v5568_v63, %v5572_v31  ;;  %v5576_v63 = vor.u32 %v5574_v33, %v5572_v31 }
 0x306   : > { %v14227_v14 = vpop.permute.xlu1 %4988  ;;  %v5561_v8 = vsel %vm3424_vm2, %v5556_v54, %v5560_v52  ;;  %v5647_v54 = vrot.slane %v5645_v15, 1  ;;  %v5614_v52 = vshrl.u32 %v17382_v18, 16 }
 0x307   : > { %17379 = vst [vmem:[#allocation158_spill] sm:$0xff] %v14227_v14  ;;  %v14230_v3 = vpop.permute.xlu0 %4994  ;;  %v5593_v20 = vsel %vm3424_vm2, %v5588_v21, %v5592_v19  ;;  %v5600_v14 = vrot.slane %v5598_v12, 1 }
 0x308   : > { %17380 = vst [vmem:[#allocation162_spill] sm:$0xff] %v14230_v3  ;;  %5840 = vrot.lane.b32.xlu1 %v5521_v39, %s11598_s5  ;;  %v17383_v39 = vld [vmem:[#allocation163_spill] sm:$0xff]  ;;  %v5580_v3 = vrot.slane %v5578_v34, 1  ;;  %v5616_v15 = vor.u32 %v5614_v52, %v5612_v35 }
 0x309   : > { %5846 = vrot.lane.b32.xlu0 %v5553_v44, %s11598_s5  ;;  %v5625_v24 = vshll.u32 %v17383_v39, 16  ;;  %v5608_v44 = vor.u32 %v5607_v1, %v5603_v55  ;;  %v17389_v1 = vld [vmem:[#allocation174_spill] sm:$0xff]  ;;  %v5618_v55 = vshll.u32 %v14252_v61, 16  ;;  %v17390_v34 = vld [vmem:[#allocation171_spill] sm:$0xff]  ;;  %v5601_v18 = vsel %vm3424_vm2, %v5596_v11, %v5600_v14 }
 0x30a   : > { %v14240_v53 = vpop.permute.xlu1 %4992  ;;  %v5650_v31 = vshll.u32 %v17389_v1, 16  ;;  %v5581_v33 = vsel %vm3424_vm2, %v5576_v63, %v5580_v3  ;;  %v5663_v63 = vshrl.u32 %v17390_v34, 16  ;;  %v17394_v14 = vld [vmem:[#allocation178_spill] sm:$0xff]  ;;  %v17397_v52 = vld [vmem:[#allocation179_spill] sm:$0xff] }
 0x30b   : > { %17381 = vst [vmem:[#allocation159_spill] sm:$0xff] %v14240_v53  ;;  %v14245_v10 = vpop.permute.xlu0 %4998  ;;  %v5623_v53 = vshrl.u32 %v17383_v39, 16  ;;  %v5627_v7 = vrot.slane %v5625_v24, 1  ;;  %v5613_v39 = vsel %vm3424_vm2, %v5608_v44, %v5612_v35  ;;  %v5670_v44 = vshll.u32 %v17394_v14, 16 }
 0x30c   : > { %17384 = vst [vmem:[#allocation166_spill] sm:$0xff] %v14245_v10  ;;  %5844 = vrot.lane.b32.xlu1 %v5541_v46, %s11598_s5  ;;  %v17387_v46 = vld [vmem:[#allocation170_spill] sm:$0xff]  ;;  %v5652_v3 = vrot.slane %v5650_v31, 1  ;;  %v5654_v35 = vshrl.u32 %v17389_v1, 16  ;;  %v5658_v31 = vshll.u32 %v14278_v4, 16  ;;  %v5703_v47 = vshrl.u32 %v17397_v52, 16 }
 0x30d   : > { %5850 = vrot.lane.b32.xlu0 %v5573_v43, %s11598_s5  ;;  %v5630_v62 = vshll.u32 %v17387_v46, 16  ;;  %v5665_v43 = vshll.u32 %v17390_v34, 16  ;;  %v5628_v24 = vor.u32 %v5627_v7, %v5623_v53  ;;  %v5634_v7 = vshrl.u32 %v17387_v46, 16  ;;  %v11199_v34 = vld [vmem:[#allocation2 + $0x240] ss:$0 sps:$4 sm:$0x11]  }
 0x30e   : > { %v14256_v10 = vpop.permute.xlu1 %4996  ;;  %v5660_v9 = vrot.slane %v5658_v31, 1 }
 0x30f   : > { %17386 = vst [vmem:[#allocation163_spill] sm:$0xff] %v14256_v10  ;;  %v14260_v21 = vpop.permute.xlu0 %5002  ;;  %v5632_v23 = vrot.slane %v5630_v62, 1  ;;  %v5638_v62 = vshll.u32 %v14270_v13, 16  ;;  %v17399_v10 = vld [vmem:[#allocation182_spill] sm:$0xff] }
 0x310   : > { %17388 = vst [vmem:[#allocation167_spill] sm:$0xff] %v14260_v21  ;;  %5848 = vrot.lane.b32.xlu1 %v5561_v8, %s11598_s5  ;;  %v5620_v8 = vrot.slane %v5618_v55, 1  ;;  %v5667_v21 = vrot.slane %v5665_v43, 1  ;;  %v5705_v55 = vshll.u32 %v17397_v52, 16 }
 0x311   : > { %5854 = vrot.lane.b32.xlu0 %v5593_v20, %s11598_s5  ;;  %v5648_v20 = vor.u32 %v5647_v54, %v5643_v50  ;;  %v5633_v11 = vsel %vm3424_vm2, %v5628_v24, %v5632_v23  ;;  %v5636_v24 = vor.u32 %v5634_v7, %v5632_v23 }
 0x312   : > { %v14272_v19 = vpop.permute.xlu1 %5000  ;;  %v5621_v43 = vsel %vm3424_vm2, %v5616_v15, %v5620_v8  ;;  %v5707_v15 = vrot.slane %v5705_v55, 1  ;;  %v5674_v8 = vshrl.u32 %v17394_v14, 16 }
 0x313   : > { %17391 = vst [vmem:[#allocation170_spill] sm:$0xff] %v14272_v19  ;;  %v14275_v12 = vpop.permute.xlu0 %5006  ;;  %v5653_v46 = vsel %vm3424_vm2, %v5648_v20, %v5652_v3  ;;  %v5656_v20 = vor.u32 %v5654_v35, %v5652_v3 }
 0x314   : > { %17392 = vst [vmem:[#allocation174_spill] sm:$0xff] %v14275_v12  ;;  %5852 = vrot.lane.b32.xlu1 %v5581_v33, %s11598_s5  ;;  %v17395_v33 = vld [vmem:[#allocation175_spill] sm:$0xff]  ;;  %v5640_v12 = vrot.slane %v5638_v62, 1  ;;  %v5708_v14 = vor.u32 %v5707_v15, %v5703_v47 }
 0x315   : > { %5858 = vrot.lane.b32.xlu0 %v5613_v39, %s11598_s5  ;;  %v5685_v50 = vshll.u32 %v17395_v33, 16  ;;  %v5668_v39 = vor.u32 %v5667_v21, %v5663_v63  ;;  %v5683_v1 = vshrl.u32 %v17395_v33, 16  ;;  %v17401_v21 = vld [vmem:[#allocation186_spill] sm:$0xff]  ;;  %v5678_v63 = vshll.u32 %v11199_v34, 16  ;;  %v17402_v62 = vld [vmem:[#allocation183_spill] sm:$0xff] }
 0x316   : > { %v14285_v53 = vpop.permute.xlu1 %5004  ;;  %v5710_v23 = vshll.u32 %v17401_v21, 16  ;;  %v5641_v7 = vsel %vm3424_vm2, %v5636_v24, %v5640_v12  ;;  %v5661_v31 = vsel %vm3424_vm2, %v5656_v20, %v5660_v9  ;;  %v11201_v12 = vld [vmem:[#allocation2 + $0x268] ss:$0 sps:$4 sm:$0x11]   ;;  %v5723_v34 = vshrl.u32 %v17402_v62, 16  ;;  %v11415_v24 = vld [vmem:[#allocation2 + $0x24c] sm:$0xff]  }
 0x317   : > { %17393 = vst [vmem:[#allocation171_spill] sm:$0xff] %v14285_v53  ;;  %v14290_v54 = vpop.permute.xlu0 %5010  ;;  %v5687_v19 = vrot.slane %v5685_v50, 1  ;;  %v5680_v55 = vrot.slane %v5678_v63, 1  ;;  %v17406_v9 = vld [vmem:[#allocation190_spill] sm:$0xff] }
 0x318   : > { %17396 = vst [vmem:[#allocation178_spill] sm:$0xff] %v14290_v54  ;;  %5856 = vrot.lane.b32.xlu1 %v5601_v18, %s11598_s5  ;;  %v5672_v54 = vrot.slane %v5670_v44, 1  ;;  %v5690_v18 = vshll.u32 %v17399_v10, 16  ;;  %v5725_v10 = vshll.u32 %v17402_v62, 16  ;;  %v5712_v52 = vrot.slane %v5710_v23, 1 }
 0x319   : > { %5862 = vrot.lane.b32.xlu0 %v5633_v11, %s11598_s5  ;;  %v11200_v11 = vld [vmem:[#allocation2 + $0x254] ss:$0 sps:$4 sm:$0x11]   ;;  %v5688_v33 = vor.u32 %v5687_v19, %v5683_v1  ;;  %v5730_v20 = vshll.u32 %v17406_v9, 16  ;;  %v5714_v23 = vshrl.u32 %v17401_v21, 16 }
 0x31a   : > { %v14299_v53 = vpop.permute.xlu1 %5008  ;;  %v5673_v3 = vsel %vm3424_vm2, %v5668_v39, %v5672_v54  ;;  %v5692_v50 = vrot.slane %v5690_v18, 1  ;;  %v5694_v39 = vshrl.u32 %v11415_v24, 16  ;;  %v5698_v19 = vshll.u32 %v11200_v11, 16  ;;  %v2783_v21 = vld [vmem:[#allocation2 + $0x14] sm:$0xe] }
 0x31b   : > { %17398 = vst [vmem:[#allocation175_spill] sm:$0xff] %v14299_v53  ;;  %v14303_v58 = vpop.permute.xlu0 %5014  ;;  %v5732_v24 = vrot.slane %v5730_v20, 1  ;;  %v2790_v53 = vld [vmem:[#allocation2 + $0xa0] sm:$0xe] }
 0x31c   : > { %17400 = vst [vmem:[#allocation179_spill] sm:$0xff] %v14303_v58  ;;  %5860 = vrot.lane.b32.xlu1 %v5621_v43, %s11598_s5  ;;  %v5727_v43 = vrot.slane %v5725_v10, 1  ;;  %v5693_v18 = vsel %vm3424_vm2, %v5688_v33, %v5692_v50  ;;  %v5696_v10 = vor.u32 %v5694_v39, %v5692_v50  ;;  %v5700_v11 = vrot.slane %v5698_v19, 1  ;;  %v2789_v58 = vld [vmem:[#allocation2 + $0x8c] sm:$0xe] }
 0x31d   : > { %5866 = vrot.lane.b32.xlu0 %v5653_v46, %s11598_s5  ;;  %v5676_v46 = vor.u32 %v5674_v8, %v5672_v54  ;;  %v5713_v54 = vsel %vm3424_vm2, %v5708_v14, %v5712_v52  ;;  %v5718_v8 = vshll.u32 %v11201_v12, 16  ;;  %v5716_v12 = vor.u32 %v5714_v23, %v5712_v52  ;;  %v2784_v52 = vld [vmem:[#allocation2 + $0x28] sm:$0xe] }
 0x31e   : > { %v14312_v44 = vpop.permute.xlu1 %5012  ;;  %v5728_v62 = vor.u32 %v5727_v43, %v5723_v34  ;;  %v5701_v50 = vsel %vm3424_vm2, %v5696_v10, %v5700_v11  ;;  %v11203_v43 = vld [vmem:[#allocation2 + $0x290] ss:$0 sps:$4 sm:$0x11]  }
 0x31f   : > { %17403 = vst [vmem:[#allocation182_spill] sm:$0xff] %v14312_v44  ;;  %v14315_v35 = vpop.permute.xlu0 %5018  ;;  %v5681_v63 = vsel %vm3424_vm2, %v5676_v46, %v5680_v55  ;;  %v11416_v46 = vld [vmem:[#allocation2 + $0x274] sm:$0xff]   ;;  %v5758_v11 = vshll.u32 %v11203_v43, 16  ;;  %v11434_v44 = vld [vmem:[#allocation2 + $0x90] sm:$0xf] }
 0x320   : > { %17404 = vst [vmem:[#allocation186_spill] sm:$0xff] %v14315_v35  ;;  %5864 = vrot.lane.b32.xlu1 %v5641_v7, %s11598_s5  ;;  %v17407_v7 = vld [vmem:[#allocation187_spill] sm:$0xff]  ;;  %v5734_v55 = vshrl.u32 %v11416_v46, 16  ;;  %v5733_v19 = vsel %vm3424_vm2, %v5728_v62, %v5732_v24  ;;  %v11419_v62 = vld [vmem:[#allocation2 + $0x1c] sm:$0xff]  }
 0x321   : > { %5870 = vrot.lane.b32.xlu0 %v5673_v3, %s11598_s5  ;;  %v5745_v47 = vshll.u32 %v17407_v7, 16  ;;  %v11202_v3 = vld [vmem:[#allocation2 + $0x27c] ss:$0 sps:$4 sm:$0x11]   ;;  %v5743_v9 = vshrl.u32 %v17407_v7, 16 }
 0x322   : > { %v14321_v1 = vpop.permute.xlu1 %5016  ;;  %v5738_v34 = vshll.u32 %v11202_v3, 16  ;;  %v5736_v23 = vor.u32 %v5734_v55, %v5732_v24 }
 0x323   : > { %17405 = vst [vmem:[#allocation183_spill] sm:$0xff] %v14321_v1  ;;  %v14326_v15 = vpop.permute.xlu0 %5022  ;;  %v11431_v1 = vld [vmem:[#allocation2 + $0x7c] sm:$0xf] }
 0x324   : > { %17408 = vst [vmem:[#allocation190_spill] sm:$0xff] %v14326_v15  ;;  %5868 = vrot.lane.b32.xlu1 %v5661_v31, %s11598_s5  ;;  %v5747_v15 = vrot.slane %v5745_v47, 1  ;;  %v17410_v31 = vld [vmem:[#allocation193_spill] sm:$0xff]  ;;  %v11417_v47 = vld [vmem:[#allocation2 + $0x18] sm:$0xf] }
 0x325   : > { %5874 = vrot.lane.b32.xlu0 %v5693_v18, %s11598_s5  ;;  %v5750_v35 = vshll.u32 %v17410_v31, 16  ;;  %v5720_v18 = vrot.slane %v5718_v8, 1  ;;  %v10397_v31 = vcombine.low %v2783_v21, %v11417_v47  ;;  %v5740_v8 = vrot.slane %v5738_v34, 1  ;;  %v11420_v21 = vld [vmem:[#allocation2 + $0x2c] sm:$0xf] }
 0x326   : > { %v14333_v33 = vpop.permute.xlu1 %5020  ;;  %v5748_v20 = vor.u32 %v5747_v15, %v5743_v9  ;;  %v5987_v9 = vrot.slane %v11419_v62, 1  ;;  %v10398_v46 = vcombine.low %v2784_v52, %v11420_v21  ;;  %v2786_v62 = vld [vmem:[#allocation2 + $0x50] sm:$0xe]  ;;  %v11425_v21 = vld [vmem:[#allocation2 + $0x54] sm:$0xf] }
 0x327   : > { %17409 = vst [vmem:[#allocation187_spill] sm:$0xff] %v14333_v33  ;;  %v14337_v14 = vpop.permute.xlu0 %5762  ;;  %v5752_v7 = vrot.slane %v5750_v35, 1  ;;  %v5986_v15 = vrot.slane %v10397_v31, 1  ;;  %v5741_v24 = vsel %vm3424_vm2, %v5736_v23, %v5740_v8  ;;  %v11422_v31 = vld [vmem:[#allocation2 + $0x40] sm:$0xf] }
 0x328   : > { %5872 = vrot.lane.b32.xlu1 %v5681_v63, %s11598_s5  ;;  %v11418_v63 = vld [vmem:[#allocation2 + $0x288] sm:$0xff]   ;;  %v5991_v43 = vrot.slane %v10398_v46, 1  ;;  %v10400_v46 = vcombine.low %v2786_v62, %v11425_v21 }
 0x329   : > { %5878 = vrot.lane.b32.xlu0 %v5713_v54, %s11598_s5  ;;  %v5721_v54 = vsel %vm3424_vm2, %v5716_v12, %v5720_v18  ;;  %v5754_v10 = vshrl.u32 %v11418_v63, 16  ;;  %v5753_v35 = vsel %vm3424_vm2, %v5748_v20, %v5752_v7  ;;  %v5760_v18 = vrot.slane %v5758_v11, 1 }
 0x32a   : > { %v14342_v39 = vpop.permute.xlu1 %5024  ;;  %v5988_v34 = vsel %vm4289_vm9, %v5986_v15, %v5987_v9 }
 0x32b   : > { %17411 = vst [vmem:[#allocation193_spill] sm:$0xff] %v14342_v39  ;;  %v14345_v33 = vpop.permute.xlu0 %5766  ;;  %v5756_v12 = vor.u32 %v5754_v10, %v5752_v7  ;;  %v2788_v39 = vld [vmem:[#allocation2 + $0x78] sm:$0xe] }
 0x32c   : > { %5876 = vrot.lane.b32.xlu1 %v5701_v50, %s11598_s5  ;;  %v2785_v50 = vld [vmem:[#allocation2 + $0x3c] sm:$0xe] }
 0x32d   : > { %5882 = vrot.lane.b32.xlu0 %v5733_v19, %s11598_s5  ;;  %v11421_v19 = vld [vmem:[#allocation2 + $0x30] sm:$0xff]   ;;  %v10399_v52 = vcombine.low %v2785_v50, %v11422_v31  ;;  %v5761_v7 = vsel %vm3424_vm2, %v5756_v12, %v5760_v18  ;;  %v11426_v12 = vld [vmem:[#allocation2 + $0x38] ss:$0 sps:$4 sm:$0x11]   ;;  %v6001_v31 = vrot.slane %v10400_v46, 1 }
 0x32e   : > { %v14350_v3 = vpop.permute.xlu1 %5764  ;;  %v5992_v20 = vrot.slane %v11421_v19, 1  ;;  %v2787_v19 = vld [vmem:[#allocation2 + $0x64] sm:$0xe]  ;;  %v5994_v18 = vrot.slane %v11426_v12, 1  ;;  %v11430_v12 = vld [vmem:[#allocation2 + $0x6c] sm:$0xff]  }
 0x32f   : > { %v14353_v47 = vpop.permute.xlu0 %5770  ;;  %v5996_v11 = vrot.slane %v10399_v52, 1  ;;  %v11427_v52 = vld [vmem:[#allocation2 + $0x58] sm:$0xff]  }
 0x330   : > { %5880 = vrot.lane.b32.xlu1 %v5721_v54, %s11598_s5  ;;  %v11423_v54 = vld [vmem:[#allocation2 + $0x24] ss:$0 sps:$4 sm:$0x11]   ;;  %v5993_v10 = vsel %vm4289_vm9, %v5991_v43, %v5992_v20 }
 0x331   : > { %5886 = vrot.lane.b32.xlu0 %v5753_v35, %s11598_s5  ;;  %v5989_v23 = vrot.slane %v11423_v54, 1  ;;  %v11424_v35 = vld [vmem:[#allocation2 + $0x44] sm:$0xff]   ;;  %v6002_v54 = vrot.slane %v11427_v52, 1  ;;  %v6007_v52 = vrot.slane %v11430_v12, 1 }
 0x332   : > { %v14358_v55 = vpop.permute.xlu1 %5768  ;;  %v5997_v15 = vrot.slane %v11424_v35, 1  ;;  %v11428_v35 = vld [vmem:[#allocation2 + $0x68] sm:$0xf] }
 0x333   : > { %v14361_v63 = vpop.permute.xlu0 %5774  ;;  %v10401_v62 = vcombine.low %v2787_v19, %v11428_v35  ;;  %v10402_v19 = vcombine.low %v2788_v39, %v11431_v1  ;;  %v10403_v1 = vcombine.low %v2789_v58, %v11434_v44 }
 0x334   : > { %17412 = vst [vmem:[#allocation224_spill] sm:$0xff] %v14361_v63  ;;  %5884 = vrot.lane.b32.xlu1 %v5741_v24, %s11598_s5  ;;  %v5990_v24 = vsel %vm4289_vm9, %v5987_v9, %v5989_v23  ;;  %v5998_v43 = vsel %vm4289_vm9, %v5996_v11, %v5997_v15  ;;  %v5995_v9 = vsel %vm4289_vm9, %v5992_v20, %v5994_v18 }
 0x335   : > { %6146 = vrot.lane.b32.xlu0 %v5988_v34, %s11599_s6  ;;  %v6003_v11 = vsel %vm4289_vm9, %v6001_v31, %v6002_v54  ;;  %v6006_v46 = vrot.slane %v10401_v62, 1  ;;  %v6011_v62 = vrot.slane %v10402_v19, 1  ;;  %v6016_v19 = vrot.slane %v10403_v1, 1 }
 0x336   : > { %v14366_v8 = vpop.permute.xlu1 %5772 }
 0x337   : > { %17413 = vst [vmem:[#allocation225_spill] sm:$0xff] %v14366_v8  ;;  %v14369_v50 = vpop.permute.xlu0 %5778  ;;  %v6008_v31 = vsel %vm4289_vm9, %v6006_v46, %v6007_v52 }
 0x338   : > { %17414 = vst [vmem:[#allocation226_spill] sm:$0xff] %v14369_v50  ;;  %5888 = vrot.lane.b32.xlu1 %v5761_v7, %s11598_s5  ;;  %v11429_v7 = vld [vmem:[#allocation2 + $0x4c] ss:$0 sps:$4 sm:$0x11]  }
 0x339   : > { %6150 = vrot.lane.b32.xlu0 %v5993_v10, %s11599_s6  ;;  %v5999_v23 = vrot.slane %v11429_v7, 1  ;;  %v11433_v7 = vld [vmem:[#allocation2 + $0x80] sm:$0xff]  }
 0x33a   : > { %v14374_v34 = vpop.permute.xlu1 %5776  ;;  %v6012_v12 = vrot.slane %v11433_v7, 1 }
 0x33b   : > { %17415 = vst [vmem:[#allocation227_spill] sm:$0xff] %v14374_v34  ;;  %v14377_v21 = vpop.permute.xlu0 %5782  ;;  %v6000_v20 = vsel %vm4289_vm9, %v5997_v15, %v5999_v23 }
 0x33c   : > { %17416 = vst [vmem:[#allocation228_spill] sm:$0xff] %v14377_v21  ;;  %6148 = vrot.lane.b32.xlu1 %v5990_v24, %s11599_s6  ;;  %v11432_v24 = vld [vmem:[#allocation2 + $0x60] ss:$0 sps:$4 sm:$0x11]   ;;  %v6013_v46 = vsel %vm4289_vm9, %v6011_v62, %v6012_v12 }
 0x33d   : > { %6154 = vrot.lane.b32.xlu0 %v5998_v43, %s11599_s6  ;;  %v6004_v18 = vrot.slane %v11432_v24, 1  ;;  %v11436_v24 = vld [vmem:[#allocation2 + $0x94] sm:$0xff]  }
 0x33e   : > { %v14382_v10 = vpop.permute.xlu1 %5780  ;;  %v6017_v7 = vrot.slane %v11436_v24, 1 }
 0x33f   : > { %17417 = vst [vmem:[#allocation229_spill] sm:$0xff] %v14382_v10  ;;  %v14385_v35 = vpop.permute.xlu0 %5786  ;;  %v6005_v15 = vsel %vm4289_vm9, %v6002_v54, %v6004_v18  ;;  %v2993_v10 = vld [vmem:[#allocation2 + $0x17c] sm:$0xe] }
 0x340   : > { %17418 = vst [vmem:[#allocation230_spill] sm:$0xff] %v14385_v35  ;;  %6152 = vrot.lane.b32.xlu1 %v5995_v9, %s11599_s6  ;;  %v11435_v9 = vld [vmem:[#allocation2 + $0x74] ss:$0 sps:$4 sm:$0x11]   ;;  %v11437_v35 = vld [vmem:[#allocation2 + $0xa4] sm:$0xf]  ;;  %v6018_v62 = vsel %vm4289_vm9, %v6016_v19, %v6017_v7 }
 0x341   : > { %6158 = vrot.lane.b32.xlu0 %v6003_v11, %s11599_s6  ;;  %v6009_v23 = vrot.slane %v11435_v9, 1  ;;  %v10404_v58 = vcombine.low %v2790_v53, %v11437_v35  ;;  %v11439_v9 = vld [vmem:[#allocation2 + $0xa8] sm:$0xff]  }
 0x342   : > { %v14390_v43 = vpop.permute.xlu1 %5784  ;;  %v6022_v24 = vrot.slane %v11439_v9, 1 }
 0x343   : > { %17419 = vst [vmem:[#allocation231_spill] sm:$0xff] %v14390_v43  ;;  %v14393_v39 = vpop.permute.xlu0 %5790  ;;  %v6010_v54 = vsel %vm4289_vm9, %v6007_v52, %v6009_v23  ;;  %v6021_v1 = vrot.slane %v10404_v58, 1  ;;  %v2805_v43 = vld [vmem:[#allocation2 + $0x1cc] sm:$0xe] }
 0x344   : > { %17420 = vst [vmem:[#allocation232_spill] sm:$0xff] %v14393_v39  ;;  %6156 = vrot.lane.b32.xlu1 %v6000_v20, %s11599_s6  ;;  %v2791_v39 = vld [vmem:[#allocation2 + $0xb4] sm:$0xe]  ;;  %v11438_v20 = vld [vmem:[#allocation2 + $0x88] ss:$0 sps:$4 sm:$0x11]  }
 0x345   : > { %6162 = vrot.lane.b32.xlu0 %v6008_v31, %s11599_s6  ;;  %v6014_v18 = vrot.slane %v11438_v20, 1  ;;  %v6023_v19 = vsel %vm4289_vm9, %v6021_v1, %v6022_v24  ;;  %v11442_v20 = vld [vmem:[#allocation2 + $0xbc] sm:$0xff]  }
 0x346   : > { %v14398_v11 = vpop.permute.xlu1 %5788  ;;  %v6027_v9 = vrot.slane %v11442_v20, 1 }
 0x347   : > { %17421 = vst [vmem:[#allocation233_spill] sm:$0xff] %v14398_v11  ;;  %v14401_v44 = vpop.permute.xlu0 %5794  ;;  %v11440_v11 = vld [vmem:[#allocation2 + $0xb8] sm:$0xf]  ;;  %v6015_v52 = vsel %vm4289_vm9, %v6012_v12, %v6014_v18 }
 0x348   : > { %17422 = vst [vmem:[#allocation234_spill] sm:$0xff] %v14401_v44  ;;  %6160 = vrot.lane.b32.xlu1 %v6005_v15, %s11599_s6  ;;  %v10405_v53 = vcombine.low %v2791_v39, %v11440_v11  ;;  %v2792_v44 = vld [vmem:[#allocation2 + $0xc8] sm:$0xe]  ;;  %v11441_v15 = vld [vmem:[#allocation2 + $0x9c] ss:$0 sps:$4 sm:$0x11]  }
 0x349   : > { %6166 = vrot.lane.b32.xlu0 %v6013_v46, %s11599_s6  ;;  %v6019_v23 = vrot.slane %v11441_v15, 1  ;;  %v11445_v15 = vld [vmem:[#allocation2 + $0xd0] sm:$0xff]  }
 0x34a   : > { %v14406_v31 = vpop.permute.xlu1 %5792  ;;  %v6026_v58 = vrot.slane %v10405_v53, 1  ;;  %v6032_v20 = vrot.slane %v11445_v15, 1 }
 0x34b   : > { %17423 = vst [vmem:[#allocation235_spill] sm:$0xff] %v14406_v31  ;;  %v14409_v35 = vpop.permute.xlu0 %5798  ;;  %v11443_v31 = vld [vmem:[#allocation2 + $0xcc] sm:$0xf]  ;;  %v6020_v12 = vsel %vm4289_vm9, %v6017_v7, %v6019_v23 }
 0x34c   : > { %17424 = vst [vmem:[#allocation236_spill] sm:$0xff] %v14409_v35  ;;  %6164 = vrot.lane.b32.xlu1 %v6010_v54, %s11599_s6  ;;  %v10406_v39 = vcombine.low %v2792_v44, %v11443_v31  ;;  %v2793_v35 = vld [vmem:[#allocation2 + $0xdc] sm:$0xe]  ;;  %v11444_v54 = vld [vmem:[#allocation2 + $0xb0] ss:$0 sps:$4 sm:$0x11]   ;;  %v6028_v1 = vsel %vm4289_vm9, %v6026_v58, %v6027_v9 }
 0x34d   : > { %6170 = vrot.lane.b32.xlu0 %v6018_v62, %s11599_s6  ;;  %v6024_v18 = vrot.slane %v11444_v54, 1  ;;  %v11448_v54 = vld [vmem:[#allocation2 + $0xe4] sm:$0xff]  }
 0x34e   : > { %v14414_v46 = vpop.permute.xlu1 %5796  ;;  %v6031_v53 = vrot.slane %v10406_v39, 1  ;;  %v6037_v15 = vrot.slane %v11448_v54, 1 }
 0x34f   : > { %17425 = vst [vmem:[#allocation237_spill] sm:$0xff] %v14414_v46  ;;  %v14417_v11 = vpop.permute.xlu0 %5802  ;;  %v11446_v46 = vld [vmem:[#allocation2 + $0xe0] sm:$0xf]  ;;  %v6025_v7 = vsel %vm4289_vm9, %v6022_v24, %v6024_v18 }
 0x350   : > { %17426 = vst [vmem:[#allocation238_spill] sm:$0xff] %v14417_v11  ;;  %6168 = vrot.lane.b32.xlu1 %v6015_v52, %s11599_s6  ;;  %v10407_v44 = vcombine.low %v2793_v35, %v11446_v46  ;;  %v2794_v11 = vld [vmem:[#allocation2 + $0xf0] sm:$0xe]  ;;  %v11447_v52 = vld [vmem:[#allocation2 + $0xc4] ss:$0 sps:$4 sm:$0x11]   ;;  %v6033_v58 = vsel %vm4289_vm9, %v6031_v53, %v6032_v20 }
 0x351   : > { %6174 = vrot.lane.b32.xlu0 %v6023_v19, %s11599_s6  ;;  %v6029_v23 = vrot.slane %v11447_v52, 1  ;;  %v11451_v52 = vld [vmem:[#allocation2 + $0xf8] sm:$0xff]  }
 0x352   : > { %v14422_v62 = vpop.permute.xlu1 %5800  ;;  %v6036_v39 = vrot.slane %v10407_v44, 1  ;;  %v6042_v54 = vrot.slane %v11451_v52, 1  ;;  %v11454_v52 = vld [vmem:[#allocation2 + $0x11c] sm:$0xf] }
 0x353   : > { %17427 = vst [vmem:[#allocation239_spill] sm:$0xff] %v14422_v62  ;;  %v14425_v31 = vpop.permute.xlu0 %5806  ;;  %v11449_v62 = vld [vmem:[#allocation2 + $0xf4] sm:$0xf]  ;;  %v6030_v24 = vsel %vm4289_vm9, %v6027_v9, %v6029_v23 }
 0x354   : > { %17428 = vst [vmem:[#allocation240_spill] sm:$0xff] %v14425_v31  ;;  %6172 = vrot.lane.b32.xlu1 %v6020_v12, %s11599_s6  ;;  %v10408_v35 = vcombine.low %v2794_v11, %v11449_v62  ;;  %v2795_v31 = vld [vmem:[#allocation2 + $0x104] sm:$0xe]  ;;  %v11450_v12 = vld [vmem:[#allocation2 + $0xd8] ss:$0 sps:$4 sm:$0x11]   ;;  %v6038_v53 = vsel %vm4289_vm9, %v6036_v39, %v6037_v15 }
 0x355   : > { %6178 = vrot.lane.b32.xlu0 %v6028_v1, %s11599_s6  ;;  %v6034_v18 = vrot.slane %v11450_v12, 1 }
 0x356   : > { %v14430_v19 = vpop.permute.xlu1 %5804  ;;  %v6041_v44 = vrot.slane %v10408_v35, 1  ;;  %v11453_v35 = vld [vmem:[#allocation2 + $0x10c] sm:$0xff]  }
 0x357   : > { %17429 = vst [vmem:[#allocation241_spill] sm:$0xff] %v14430_v19  ;;  %v14433_v46 = vpop.permute.xlu0 %5810  ;;  %v11452_v19 = vld [vmem:[#allocation2 + $0x108] sm:$0xf]  ;;  %v6035_v9 = vsel %vm4289_vm9, %v6032_v20, %v6034_v18  ;;  %v6047_v12 = vrot.slane %v11453_v35, 1  ;;  %v11456_v35 = vld [vmem:[#allocation2 + $0x130] sm:$0xf] }
 0x358   : > { %17430 = vst [vmem:[#allocation242_spill] sm:$0xff] %v14433_v46  ;;  %6176 = vrot.lane.b32.xlu1 %v6025_v7, %s11599_s6  ;;  %v10409_v11 = vcombine.low %v2795_v31, %v11452_v19  ;;  %v2796_v46 = vld [vmem:[#allocation2 + $0x118] sm:$0xe]  ;;  %v6039_v7 = vrot.slane %v14045_v38, 1  ;;  %v6044_v38 = vrot.slane %v14053_v57, 1  ;;  %v6049_v57 = vrot.slane %v14072_v5, 1 }
 0x359   : > { %6182 = vrot.lane.b32.xlu0 %v6033_v58, %s11599_s6  ;;  %v6043_v58 = vsel %vm4289_vm9, %v6041_v44, %v6042_v54  ;;  %v10410_v31 = vcombine.low %v2796_v46, %v11454_v52  ;;  %v11455_v44 = vld [vmem:[#allocation2 + $0x120] sm:$0xff]   ;;  %v6054_v5 = vrot.slane %v14090_v51, 1  ;;  %v6059_v51 = vrot.slane %v14098_v22, 1 }
 0x35a   : > { %v14438_v1 = vpop.permute.xlu1 %5808  ;;  %v6046_v39 = vrot.slane %v10409_v11, 1  ;;  %v6040_v20 = vsel %vm4289_vm9, %v6037_v15, %v6039_v7  ;;  %v6052_v11 = vrot.slane %v11455_v44, 1  ;;  %v6045_v15 = vsel %vm4289_vm9, %v6042_v54, %v6044_v38  ;;  %v11458_v44 = vld [vmem:[#allocation2 + $0x144] sm:$0xf] }
 0x35b   : > { %17431 = vst [vmem:[#allocation243_spill] sm:$0xff] %v14438_v1  ;;  %v14441_v62 = vpop.permute.xlu0 %5814  ;;  %v6050_v54 = vsel %vm4289_vm9, %v6047_v12, %v6049_v57  ;;  %v6064_v22 = vrot.slane %v14117_v48, 1  ;;  %v6069_v48 = vrot.slane %v14135_v6, 1  ;;  %v6074_v6 = vrot.slane %v14143_v36, 1  ;;  %v2804_v1 = vld [vmem:[#allocation2 + $0x1b8] sm:$0xe] }
 0x35c   : > { %17432 = vst [vmem:[#allocation244_spill] sm:$0xff] %v14441_v62  ;;  %6180 = vrot.lane.b32.xlu1 %v6030_v24, %s11599_s6  ;;  %v2797_v62 = vld [vmem:[#allocation2 + $0x12c] sm:$0xe]  ;;  %v6048_v18 = vsel %vm4289_vm9, %v6046_v39, %v6047_v12  ;;  %v11457_v39 = vld [vmem:[#allocation2 + $0x134] sm:$0xff]   ;;  %v6055_v12 = vsel %vm4289_vm9, %v6052_v11, %v6054_v5  ;;  %v6079_v36 = vrot.slane %v14162_v32, 1  ;;  %v6084_v32 = vrot.slane %v14180_v59, 1 }
 0x35d   : > { %6186 = vrot.lane.b32.xlu0 %v6038_v53, %s11599_s6  ;;  %v6051_v53 = vrot.slane %v10410_v31, 1  ;;  %v10411_v46 = vcombine.low %v2797_v62, %v11456_v35  ;;  %v6057_v31 = vrot.slane %v11457_v39, 1  ;;  %v11460_v39 = vld [vmem:[#allocation2 + $0x158] sm:$0xf]  ;;  %v6089_v59 = vrot.slane %v14188_v2, 1 }
 0x35e   : > { %v14447_v23 = vpop.permute.xlu1 %5812  ;;  %v6094_v2 = vrot.slane %v14207_v29, 1  ;;  %v6099_v29 = vrot.slane %v14225_v28, 1  ;;  %v6104_v28 = vrot.slane %v14233_v25, 1  ;;  %v6109_v25 = vrot.slane %v14252_v61, 1 }
 0x35f   : > { %17433 = vst [vmem:[#allocation245_spill] sm:$0xff] %v14447_v23  ;;  %v14450_v19 = vpop.permute.xlu0 %5818  ;;  %v6053_v7 = vsel %vm4289_vm9, %v6051_v53, %v6052_v11  ;;  %v11459_v53 = vld [vmem:[#allocation2 + $0x148] sm:$0xff]   ;;  %v6060_v11 = vsel %vm4289_vm9, %v6057_v31, %v6059_v51  ;;  %v2803_v23 = vld [vmem:[#allocation2 + $0x1a4] sm:$0xe] }
 0x360   : > { %17434 = vst [vmem:[#allocation246_spill] sm:$0xff] %v14450_v19  ;;  %6184 = vrot.lane.b32.xlu1 %v6035_v9, %s11599_s6  ;;  %v2798_v19 = vld [vmem:[#allocation2 + $0x140] sm:$0xe] }
 0x361   : > { %6190 = vrot.lane.b32.xlu0 %v6043_v58, %s11599_s6  ;;  %v6056_v58 = vrot.slane %v10411_v46, 1  ;;  %v10412_v62 = vcombine.low %v2798_v19, %v11458_v44  ;;  %v6062_v46 = vrot.slane %v11459_v53, 1  ;;  %v11462_v53 = vld [vmem:[#allocation2 + $0x16c] sm:$0xf] }
 0x362   : > { %v14456_v24 = vpop.permute.xlu1 %5816 }
 0x363   : > { %17435 = vst [vmem:[#allocation247_spill] sm:$0xff] %v14456_v24  ;;  %v14459_v52 = vpop.permute.xlu0 %5822  ;;  %v6058_v38 = vsel %vm4289_vm9, %v6056_v58, %v6057_v31  ;;  %v11461_v58 = vld [vmem:[#allocation2 + $0x15c] sm:$0xff]   ;;  %v2802_v24 = vld [vmem:[#allocation2 + $0x190] sm:$0xe]  ;;  %v6065_v31 = vsel %vm4289_vm9, %v6062_v46, %v6064_v22 }
 0x364   : > { %17436 = vst [vmem:[#allocation248_spill] sm:$0xff] %v14459_v52  ;;  %6188 = vrot.lane.b32.xlu1 %v6040_v20, %s11599_s6  ;;  %v2799_v52 = vld [vmem:[#allocation2 + $0x154] sm:$0xe] }
 0x365   : > { %6194 = vrot.lane.b32.xlu0 %v6048_v18, %s11599_s6  ;;  %v6061_v18 = vrot.slane %v10412_v62, 1  ;;  %v10413_v19 = vcombine.low %v2799_v52, %v11460_v39  ;;  %v6067_v62 = vrot.slane %v11461_v58, 1  ;;  %v11464_v58 = vld [vmem:[#allocation2 + $0x180] sm:$0xf] }
 0x366   : > { %v14465_v9 = vpop.permute.xlu1 %5820 }
 0x367   : > { %17437 = vst [vmem:[#allocation249_spill] sm:$0xff] %v14465_v9  ;;  %v14468_v35 = vpop.permute.xlu0 %5826  ;;  %v2800_v9 = vld [vmem:[#allocation2 + $0x168] sm:$0xe]  ;;  %v6063_v57 = vsel %vm4289_vm9, %v6061_v18, %v6062_v46  ;;  %v11463_v18 = vld [vmem:[#allocation2 + $0x170] sm:$0xff]   ;;  %v6070_v46 = vsel %vm4289_vm9, %v6067_v62, %v6069_v48 }
 0x368   : > { %6192 = vrot.lane.b32.xlu1 %v6045_v15, %s11599_s6  ;;  %v10414_v52 = vcombine.low %v2800_v9, %v11462_v53 }
 0x369   : > { %6198 = vrot.lane.b32.xlu0 %v6053_v7, %s11599_s6  ;;  %v6066_v7 = vrot.slane %v10413_v19, 1  ;;  %v6072_v19 = vrot.slane %v11463_v18, 1  ;;  %v11466_v18 = vld [vmem:[#allocation2 + $0x194] sm:$0xf] }
 0x36a   : > { %v14474_v20 = vpop.permute.xlu1 %5824 }
 0x36b   : > { %17438 = vst [vmem:[#allocation250_spill] sm:$0xff] %v14474_v20  ;;  %v14477_v44 = vpop.permute.xlu0 %5830  ;;  %v2801_v20 = vld [vmem:[#allocation2 + $0x17c] sm:$0xe]  ;;  %v6068_v5 = vsel %vm4289_vm9, %v6066_v7, %v6067_v62  ;;  %v11465_v7 = vld [vmem:[#allocation2 + $0x184] sm:$0xff]   ;;  %v6075_v62 = vsel %vm4289_vm9, %v6072_v19, %v6074_v6 }
 0x36c   : > { %6196 = vrot.lane.b32.xlu1 %v6050_v54, %s11599_s6  ;;  %v10415_v9 = vcombine.low %v2801_v20, %v11464_v58  ;;  %v10416_v20 = vcombine.low %v2802_v24, %v11466_v18 }
 0x36d   : > { %6202 = vrot.lane.b32.xlu0 %v6058_v38, %s11599_s6  ;;  %v6071_v38 = vrot.slane %v10414_v52, 1  ;;  %v6077_v52 = vrot.slane %v11465_v7, 1  ;;  %v11468_v7 = vld [vmem:[#allocation2 + $0x1a8] sm:$0xf] }
 0x36e   : > { %v14483_v15 = vpop.permute.xlu1 %5828  ;;  %v10417_v24 = vcombine.low %v2803_v23, %v11468_v7 }
 0x36f   : > { %v14486_v39 = vpop.permute.xlu0 %5834  ;;  %v6073_v51 = vsel %vm4289_vm9, %v6071_v38, %v6072_v19  ;;  %v11467_v38 = vld [vmem:[#allocation2 + $0x198] sm:$0xff]   ;;  %v6080_v19 = vsel %vm4289_vm9, %v6077_v52, %v6079_v36 }
 0x370   : > { %6200 = vrot.lane.b32.xlu1 %v6055_v12, %s11599_s6 }
 0x371   : > { %6206 = vrot.lane.b32.xlu0 %v6063_v57, %s11599_s6  ;;  %v6076_v57 = vrot.slane %v10415_v9, 1  ;;  %v6082_v9 = vrot.slane %v11467_v38, 1  ;;  %v11470_v38 = vld [vmem:[#allocation2 + $0x1bc] sm:$0xf] }
 0x372   : > { %v14492_v54 = vpop.permute.xlu1 %5832  ;;  %v10418_v23 = vcombine.low %v2804_v1, %v11470_v38 }
 0x373   : > { %v14495_v53 = vpop.permute.xlu0 %5838  ;;  %v6078_v22 = vsel %vm4289_vm9, %v6076_v57, %v6077_v52  ;;  %v11469_v57 = vld [vmem:[#allocation2 + $0x1ac] sm:$0xff]   ;;  %v6085_v52 = vsel %vm4289_vm9, %v6082_v9, %v6084_v32 }
 0x374   : > { %17439 = vst [vmem:[#allocation251_spill] sm:$0xff] %v14495_v53  ;;  %6204 = vrot.lane.b32.xlu1 %v6060_v11, %s11599_s6  ;;  %v17518_v53 = vld [vmem:[#allocation133_spill] sm:$0xff] }
 0x375   : > { %6210 = vrot.lane.b32.xlu0 %v6068_v5, %s11599_s6  ;;  %v6081_v5 = vrot.slane %v10416_v20, 1  ;;  %v6087_v20 = vrot.slane %v11469_v57, 1  ;;  %v11472_v57 = vld [vmem:[#allocation2 + $0x1d0] sm:$0xf] }
 0x376   : > { %v14501_v12 = vpop.permute.xlu1 %5836  ;;  %v10419_v1 = vcombine.low %v2805_v43, %v11472_v57 }
 0x377   : > { %v14504_v58 = vpop.permute.xlu0 %5842  ;;  %v6083_v48 = vsel %vm4289_vm9, %v6081_v5, %v6082_v9  ;;  %v11471_v5 = vld [vmem:[#allocation2 + $0x1c0] sm:$0xff]   ;;  %v6090_v9 = vsel %vm4289_vm9, %v6087_v20, %v6089_v59 }
 0x378   : > { %17440 = vst [vmem:[#allocation252_spill] sm:$0xff] %v14504_v58  ;;  %6208 = vrot.lane.b32.xlu1 %v6065_v31, %s11599_s6 }
 0x379   : > { %6214 = vrot.lane.b32.xlu0 %v6073_v51, %s11599_s6  ;;  %v6086_v51 = vrot.slane %v10417_v24, 1  ;;  %v6092_v24 = vrot.slane %v11471_v5, 1  ;;  %v11474_v5 = vld [vmem:[#allocation2 + $0x1e4] sm:$0xf] }
 0x37a   : > { %v14510_v11 = vpop.permute.xlu1 %5840 }
 0x37b   : > { %17441 = vst [vmem:[#allocation253_spill] sm:$0xff] %v14510_v11  ;;  %v14513_v18 = vpop.permute.xlu0 %5846  ;;  %v6088_v6 = vsel %vm4289_vm9, %v6086_v51, %v6087_v20  ;;  %v11473_v51 = vld [vmem:[#allocation2 + $0x1d4] sm:$0xff]   ;;  %v6095_v20 = vsel %vm4289_vm9, %v6092_v24, %v6094_v2 }
 0x37c   : > { %17442 = vst [vmem:[#allocation254_spill] sm:$0xff] %v14513_v18  ;;  %6212 = vrot.lane.b32.xlu1 %v6070_v46, %s11599_s6 }
 0x37d   : > { %6218 = vrot.lane.b32.xlu0 %v6078_v22, %s11599_s6  ;;  %v6091_v22 = vrot.slane %v10418_v23, 1  ;;  %v6097_v23 = vrot.slane %v11473_v51, 1  ;;  %v11476_v51 = vld [vmem:[#allocation2 + $0x1f8] sm:$0xf] }
 0x37e   : > { %v14519_v31 = vpop.permute.xlu1 %5844 }
 0x37f   : > { %17443 = vst [vmem:[#allocation255_spill] sm:$0xff] %v14519_v31  ;;  %v14522_v7 = vpop.permute.xlu0 %5850  ;;  %v6093_v36 = vsel %vm4289_vm9, %v6091_v22, %v6092_v24  ;;  %v11475_v22 = vld [vmem:[#allocation2 + $0x1e8] sm:$0xff]   ;;  %v6100_v24 = vsel %vm4289_vm9, %v6097_v23, %v6099_v29 }
 0x380   : > { %17444 = vst [vmem:[#allocation256_spill] sm:$0xff] %v14522_v7  ;;  %6216 = vrot.lane.b32.xlu1 %v6075_v62, %s11599_s6  ;;  %v2806_v7 = vld [vmem:[#allocation2 + $0x1e0] sm:$0xe]  ;;  %v14573_v29 = vld [vmem:[#allocation2 + $0x16c] sm:$0xf] }
 0x381   : > { %6222 = vrot.lane.b32.xlu0 %v6083_v48, %s11599_s6  ;;  %v6096_v48 = vrot.slane %v10419_v1, 1  ;;  %v10420_v43 = vcombine.low %v2806_v7, %v11474_v5  ;;  %v6102_v1 = vrot.slane %v11475_v22, 1  ;;  %v11478_v22 = vld [vmem:[#allocation2 + $0x20c] sm:$0xf] }
 0x382   : > { %v14528_v46 = vpop.permute.xlu1 %5848 }
 0x383   : > { %17445 = vst [vmem:[#allocation257_spill] sm:$0xff] %v14528_v46  ;;  %v14531_v38 = vpop.permute.xlu0 %5854  ;;  %v6098_v32 = vsel %vm4289_vm9, %v6096_v48, %v6097_v23  ;;  %v11477_v48 = vld [vmem:[#allocation2 + $0x1fc] sm:$0xff]   ;;  %v6105_v23 = vsel %vm4289_vm9, %v6102_v1, %v6104_v28 }
 0x384   : > { %17446 = vst [vmem:[#allocation258_spill] sm:$0xff] %v14531_v38  ;;  %6220 = vrot.lane.b32.xlu1 %v6080_v19, %s11599_s6  ;;  %v2807_v38 = vld [vmem:[#allocation2 + $0x1f4] sm:$0xe] }
 0x385   : > { %6226 = vrot.lane.b32.xlu0 %v6088_v6, %s11599_s6  ;;  %v6101_v6 = vrot.slane %v10420_v43, 1  ;;  %v10421_v7 = vcombine.low %v2807_v38, %v11476_v51  ;;  %v6107_v43 = vrot.slane %v11477_v48, 1  ;;  %v11480_v48 = vld [vmem:[#allocation2 + $0x220] sm:$0xf] }
 0x386   : > { %v14537_v62 = vpop.permute.xlu1 %5852 }
 0x387   : > { %17447 = vst [vmem:[#allocation259_spill] sm:$0xff] %v14537_v62  ;;  %v14540_v57 = vpop.permute.xlu0 %5858  ;;  %v6103_v59 = vsel %vm4289_vm9, %v6101_v6, %v6102_v1  ;;  %v11479_v6 = vld [vmem:[#allocation2 + $0x210] sm:$0xff]   ;;  %v6110_v61 = vsel %vm4289_vm9, %v6107_v43, %v6109_v25 }
 0x388   : > { %17448 = vst [vmem:[#allocation260_spill] sm:$0xff] %v14540_v57  ;;  %6224 = vrot.lane.b32.xlu1 %v6085_v52, %s11599_s6  ;;  %v2808_v57 = vld [vmem:[#allocation2 + $0x208] sm:$0xe] }
 0x389   : > { %6230 = vrot.lane.b32.xlu0 %v6093_v36, %s11599_s6  ;;  %v6106_v36 = vrot.slane %v10421_v7, 1  ;;  %v10422_v38 = vcombine.low %v2808_v57, %v11478_v22  ;;  %v6112_v7 = vrot.slane %v11479_v6, 1 }
 0x38a   : > { %v14546_v19 = vpop.permute.xlu1 %5856 }
 0x38b   : > { %17449 = vst [vmem:[#allocation261_spill] sm:$0xff] %v14546_v19  ;;  %v14549_v5 = vpop.permute.xlu0 %5862  ;;  %v6108_v2 = vsel %vm4289_vm9, %v6106_v36, %v6107_v43  ;;  %v6119_v43 = vrot.slane %v14278_v4, 1 }
 0x38c   : > { %17450 = vst [vmem:[#allocation262_spill] sm:$0xff] %v14549_v5  ;;  %6228 = vrot.lane.b32.xlu1 %v6090_v9, %s11599_s6  ;;  %v2809_v5 = vld [vmem:[#allocation2 + $0x21c] sm:$0xe] }
 0x38d   : > { %6234 = vrot.lane.b32.xlu0 %v6098_v32, %s11599_s6  ;;  %v6111_v32 = vrot.slane %v10422_v38, 1  ;;  %v10423_v57 = vcombine.low %v2809_v5, %v11480_v48  ;;  %v11481_v5 = vld [vmem:[#allocation2 + $0x224] sm:$0xff]   ;;  %v11482_v48 = vld [vmem:[#allocation2 + $0x234] sm:$0xf] }
 0x38e   : > { %v14555_v52 = vpop.permute.xlu1 %5860  ;;  %v6117_v6 = vrot.slane %v11481_v5, 1  ;;  %v2816_v5 = vld [vmem:[#allocation2 + $0x28] sm:$0xf] }
 0x38f   : > { %17451 = vst [vmem:[#allocation263_spill] sm:$0xff] %v14555_v52  ;;  %v14558_v51 = vpop.permute.xlu0 %5866  ;;  %v6113_v36 = vsel %vm4289_vm9, %v6111_v32, %v6112_v7  ;;  %v6116_v38 = vrot.slane %v10423_v57, 1  ;;  %v14588_v57 = vld [vmem:[#allocation2 + $0x238] sm:$0xff]  }
 0x390   : > { %17452 = vst [vmem:[#allocation264_spill] sm:$0xff] %v14558_v51  ;;  %6232 = vrot.lane.b32.xlu1 %v6095_v20, %s11599_s6  ;;  %v2810_v51 = vld [vmem:[#allocation2 + $0x230] sm:$0xe]  ;;  %v2880_v20 = vld [vmem:[#allocation2 + $0x168] sm:$0xf]  ;;  %17458 = vst [vmem:[#allocation270_spill] sm:$0xff] %v14588_v57  ;;  %v6120_v4 = vsel %vm4289_vm9, %v6117_v6, %v6119_v43 }
 0x391   : > { %6238 = vrot.lane.b32.xlu0 %v6103_v59, %s11599_s6  ;;  %v10461_v1 = vcombine.low %v2880_v20, %v14573_v29 }
 0x392   : > { %v14564_v9 = vpop.permute.xlu1 %5864 }
 0x393   : > { %17453 = vst [vmem:[#allocation265_spill] sm:$0xff] %v14564_v9  ;;  %v14567_v22 = vpop.permute.xlu0 %5870  ;;  %v7141_v20 = vshll.u32 %v10461_v1, 16 }
 0x394   : > { %17454 = vst [vmem:[#allocation266_spill] sm:$0xff] %v14567_v22  ;;  %6236 = vrot.lane.b32.xlu1 %v6100_v24, %s11599_s6  ;;  %v10424_v22 = vcombine.low %v2810_v51, %v11482_v48  ;;  %v6114_v24 = vrot.slane %v14270_v13, 1  ;;  %v17140_v51 = vrot.slane %v14588_v57, 1  ;;  %v14591_v48 = vld [vmem:[#allocation2 + $0x2c] sm:$0xf] }
 0x395   : > { %6242 = vrot.lane.b32.xlu0 %v6108_v2, %s11599_s6  ;;  %v6118_v2 = vsel %vm4289_vm9, %v6116_v38, %v6117_v6  ;;  %v14605_v38 = vld [vmem:[#allocation2 + $0x170] sm:$0xff]   ;;  %v14625_v6 = vld [vmem:[#allocation2 + $0x38] ss:$0 sps:$4 sm:$0x11]  }
 0x396   : > { %v14575_v59 = vpop.permute.xlu1 %5868  ;;  %v6121_v32 = vrot.slane %v10424_v22, 1  ;;  %v6115_v13 = vsel %vm4289_vm9, %v6112_v7, %v6114_v24  ;;  %v10429_v22 = vcombine.low %v2816_v5, %v14591_v48  ;;  %v14612_v7 = vld [vmem:[#allocation2 + $0x30] sm:$0xff]   ;;  %v6834_v19 = vshll.u32 %v14625_v6, 16 }
 0x397   : > { %17455 = vst [vmem:[#allocation267_spill] sm:$0xff] %v14575_v59  ;;  %v14578_v9 = vpop.permute.xlu0 %5874  ;;  %v2992_v59 = vld [vmem:[#allocation2 + $0x168] sm:$0xe] }
 0x398   : > { %17456 = vst [vmem:[#allocation268_spill] sm:$0xff] %v14578_v9  ;;  %6240 = vrot.lane.b32.xlu1 %v6105_v23, %s11599_s6  ;;  %v6821_v24 = vshll.u32 %v10429_v22, 16 }
 0x399   : > { %6246 = vrot.lane.b32.xlu0 %v6113_v36, %s11599_s6  ;;  %v6123_v36 = vsel %vm4289_vm9, %v6121_v32, %v17140_v51  ;;  %v14617_v32 = vld [vmem:[#allocation2 + $0x178] ss:$0 sps:$4 sm:$0x11]  }
 0x39a   : > { %v14585_v28 = vpop.permute.xlu1 %5872  ;;  %v6823_v43 = vrot.slane %v6821_v24, 1 }
 0x39b   : > { %17457 = vst [vmem:[#allocation269_spill] sm:$0xff] %v14585_v28  ;;  %v14593_v23 = vpop.permute.xlu0 %5878  ;;  %v7154_v28 = vshll.u32 %v14617_v32, 16 }
 0x39c   : > { %17459 = vst [vmem:[#allocation271_spill] sm:$0xff] %v14593_v23  ;;  %6244 = vrot.lane.b32.xlu1 %v6110_v61, %s11599_s6  ;;  %v7139_v61 = vshrl.u32 %v10461_v1, 16 }
 0x39d   : > { %6250 = vrot.lane.b32.xlu0 %v6118_v2, %s11599_s6  ;;  %v7143_v2 = vrot.slane %v7141_v20, 1  ;;  %v7156_v46 = vrot.slane %v7154_v28, 1 }
 0x39e   : > { %v14600_v25 = vpop.permute.xlu1 %5876 }
 0x39f   : > { %17460 = vst [vmem:[#allocation272_spill] sm:$0xff] %v14600_v25  ;;  %v14607_v23 = vpop.permute.xlu0 %5882  ;;  %v7146_v25 = vshll.u32 %v14605_v38, 16  ;;  %v7144_v20 = vor.u32 %v7143_v2, %v7139_v61  ;;  %v7150_v2 = vshrl.u32 %v14605_v38, 16 }
 0x3a0   : > { %17461 = vst [vmem:[#allocation273_spill] sm:$0xff] %v14607_v23  ;;  %6248 = vrot.lane.b32.xlu1 %v6115_v13, %s11599_s6  ;;  %v11247_v13 = vld [vmem:[%s17064_s1] sm:$0xff]   ;;  %v6826_v23 = vshll.u32 %v14612_v7, 16 }
 0x3a1   : > { %6254 = vrot.lane.b32.xlu0 %v6123_v36, %s11599_s6  ;;  %v6819_v36 = vshrl.u32 %v10429_v22, 16  ;;  %10957 = vmatprep.subr.bf16.mxu1 %v11247_v13  ;;  %v7148_v61 = vrot.slane %v7146_v25, 1  ;;  %v6830_v25 = vshrl.u32 %v14612_v7, 16 }
 0x3a2   : > { %v14614_v5 = vpop.permute.xlu1 %5880  ;;  %10959 = vmatpush3.bf16.msra.mxu1 %v11247_v13  ;;  %10825 = vmatprep.subr.bf16.mxu0 %v11247_v13 }
 0x3a3   : > { %17462 = vst [vmem:[#allocation274_spill] sm:$0xff] %v14614_v5  ;;  %v14619_v51 = vpop.permute.xlu0 %5886  ;;  %v11601_v5 = vmov 65535   ;;  %10826 = vmatpush3.bf16.msra.mxu0 %v11247_v13  ;;  %v7152_v57 = vor.u32 %v7150_v2, %v7148_v61  ;;  %v2976_v13 = vld [vmem:[#allocation2 + $0x28] sm:$0xe]  ;;  %v2884_v2 = vld [vmem:[#allocation2 + $0x17c] sm:$0xf] }
 0x3a4   : > { %17463 = vst [vmem:[#allocation275_spill] sm:$0xff] %v14619_v51  ;;  %6252 = vrot.lane.b32.xlu1 %v6120_v4, %s11599_s6  ;;  %v11249_v51 = vld [vmem:[%s17064_s1 + $0x8] sm:$0x3f]   ;;  %v9155_v9 = vsel %vm9153_vm10, 4294967295, %v11601_v5  ;;  %v6824_v5 = vor.u32 %v6823_v43, %v6819_v36  ;;  %v10525_v28 = vcombine.low %v2976_v13, %v14591_v48  ;;  %v7683_v48 = vrot.slane %v14612_v7, 1 }
 0x3a5   : > { %6658 = vrot.lane.b32.xlu0 %v10461_v1, %s11600_s9  ;;  %v9156_v1 = vsel %vm9154_vm11, %v9155_v9, 0  ;;  %v7149_v9 = vsel %vm3424_vm2, %v7144_v20, %v7148_v61  ;;  %v6836_v20 = vrot.slane %v6834_v19, 1  ;;  %v7763_v61 = vrot.slane %v14605_v38, 1 }
 0x3a6   : > { %v14632_v4 = vpop.permute.xlu1 %5884  ;;  %v9158_v52 = vand.u32 %v11249_v51, %v9156_v1  ;;  %v10541_v51 = vcombine.low %v2992_v59, %v14573_v29  ;;  %v7157_v29 = vsel %vm3424_vm2, %v7152_v57, %v7156_v46  ;;  %v14660_v1 = vld [vmem:[#allocation2 + $0x180] sm:$0xf]  ;;  %v7765_v57 = vrot.slane %v14617_v32, 1 }
 0x3a7   : > { %17464 = vst [vmem:[#allocation276_spill] sm:$0xff] %v14632_v4  ;;  %v14636_v24 = vpop.permute.xlu0 %6146  ;;  %v6828_v4 = vrot.slane %v6826_v23, 1  ;;  %v7685_v13 = vrot.slane %v14625_v6, 1 }
 0x3a8   : > { %6594 = vrot.lane.b32.xlu1 %v10429_v22, %s11600_s9  ;;  %10958 = vmatprep.subr.bf16.mxu1 %v9158_v52  ;;  %v7762_v59 = vrot.slane %v10541_v51, 1  ;;  %v7766_v32 = vsel %vm4289_vm9, %v7763_v61, %v7765_v57  ;;  %v11216_v57 = vld [vmem:[#allocation2 + $0x18c] ss:$0 sps:$4 sm:$0x11]  }
 0x3a9   : > { %6660 = vrot.lane.b32.xlu0 %v14605_v38, %s11600_s9  ;;  %10960 = vmatpush3.bf16.msra.mxu1 %v9158_v52  ;;  %v6829_v23 = vsel %vm3424_vm2, %v6824_v5, %v6828_v4  ;;  %v6832_v36 = vor.u32 %v6830_v25, %v6828_v4  ;;  %v7682_v4 = vrot.slane %v10525_v28, 1  ;;  %v10463_v38 = vcombine.low %v2884_v2, %v14660_v1  ;;  %v2820_v25 = vld [vmem:[#allocation2 + $0x3c] sm:$0xf]  ;;  %v14690_v2 = vld [vmem:[#allocation2 + $0x44] sm:$0xff]  }
 0x3aa   : > { %v14643_v62 = vpop.permute.xlu1 %5888  ;;  %10827 = vmatprep.subr.bf16.mxu0 %v9158_v52  ;;  %v7764_v46 = vsel %vm4289_vm9, %v7762_v59, %v7763_v61  ;;  %v7686_v59 = vsel %vm4289_vm9, %v7683_v48, %v7685_v13  ;;  %v11218_v13 = vld [vmem:[#allocation2 + $0x4c] ss:$0 sps:$4 sm:$0x11]   ;;  %v7174_v18 = vshll.u32 %v11216_v57, 16 }
 0x3ab   : > { %17465 = vst [vmem:[#allocation277_spill] sm:$0xff] %v14643_v62  ;;  %v14647_v22 = vpop.permute.xlu0 %6150  ;;  %10828 = vmatpush3.bf16.msra.mxu0 %v9158_v52  ;;  %v6837_v19 = vsel %vm3424_vm2, %v6832_v36, %v6836_v20  ;;  %v14683_v20 = vld [vmem:[#allocation2 + $0x184] sm:$0xff]   ;;  %v7161_v28 = vshll.u32 %v10463_v38, 16 }
 0x3ac   : > { %6596 = vrot.lane.b32.xlu1 %v14612_v7, %s11600_s9  ;;  %v7684_v7 = vsel %vm4289_vm9, %v7682_v4, %v7683_v48  ;;  %v7159_v4 = vshrl.u32 %v10463_v38, 16  ;;  %v7166_v61 = vshll.u32 %v14683_v20, 16  ;;  %v6846_v48 = vshll.u32 %v14690_v2, 16 }
 0x3ad   : > { %7522 = vrot.lane.b32.xlu0 %v7149_v9, %s11602_s17  ;;  %v14671_v9 = vld [vmem:[#allocation2 + $0x40] sm:$0xf] }
 0x3ae   : > { %v14654_v43 = vpop.permute.xlu1 %6148  ;;  %v7168_v45 = vrot.slane %v7166_v61, 1  ;;  %v7176_v61 = vrot.slane %v7174_v18, 1 }
 0x3af   : > { %v14658_v52 = vpop.permute.xlu0 %6154 }
 0x3b0   : > { %7458 = vrot.lane.b32.xlu1 %v6829_v23, %s11602_s17  ;;  %v10431_v23 = vcombine.low %v2820_v25, %v14671_v9 }
 0x3b1   : > { %7524 = vrot.lane.b32.xlu0 %v7157_v29, %s11602_s17 }
 0x3b2   : > { %v14666_v5 = vpop.permute.xlu1 %6152  ;;  %v6841_v6 = vshll.u32 %v10431_v23, 16 }
 0x3b3   : > { %v14673_v51 = vpop.permute.xlu0 %6158 }
 0x3b4   : > { %17466 = vst [vmem:[#allocation278_spill] sm:$0xff] %v14673_v51  ;;  %7460 = vrot.lane.b32.xlu1 %v6837_v19, %s11602_s17 }
 0x3b5   : > { %7906 = vrot.lane.b32.xlu0 %v7764_v46, %s11603_s19  ;;  %v7163_v46 = vrot.slane %v7161_v28, 1  ;;  %v7170_v28 = vshrl.u32 %v14683_v20, 16 }
 0x3b6   : > { %v14680_v36 = vpop.permute.xlu1 %6156 }
 0x3b7   : > { %17467 = vst [vmem:[#allocation279_spill] sm:$0xff] %v14680_v36  ;;  %v14685_v29 = vpop.permute.xlu0 %6162  ;;  %v7164_v21 = vor.u32 %v7163_v46, %v7159_v4  ;;  %v7172_v46 = vor.u32 %v7170_v28, %v7168_v45  ;;  %v14726_v28 = vld [vmem:[#allocation2 + $0x194] sm:$0xf] }
 0x3b8   : > { %17468 = vst [vmem:[#allocation280_spill] sm:$0xff] %v14685_v29  ;;  %7842 = vrot.lane.b32.xlu1 %v7684_v7, %s11603_s19  ;;  %v6839_v7 = vshrl.u32 %v10431_v23, 16 }
 0x3b9   : > { %7908 = vrot.lane.b32.xlu0 %v7766_v32, %s11603_s19  ;;  %v6843_v32 = vrot.slane %v6841_v6, 1  ;;  %v6850_v6 = vshrl.u32 %v14690_v2, 16  ;;  %v7169_v4 = vsel %vm3424_vm2, %v7164_v21, %v7168_v45  ;;  %v7177_v45 = vsel %vm3424_vm2, %v7172_v46, %v7176_v61 }
 0x3ba   : > { %v14692_v19 = vpop.permute.xlu1 %6160 }
 0x3bb   : > { %17469 = vst [vmem:[#allocation281_spill] sm:$0xff] %v14692_v19  ;;  %v14695_v25 = vpop.permute.xlu0 %6166  ;;  %v2996_v19 = vld [vmem:[#allocation2 + $0x1b8] sm:$0xe] }
 0x3bc   : > { %17470 = vst [vmem:[#allocation282_spill] sm:$0xff] %v14695_v25  ;;  %7844 = vrot.lane.b32.xlu1 %v7686_v59, %s11603_s19  ;;  %v6848_v59 = vrot.slane %v6846_v48, 1  ;;  %v6854_v25 = vshll.u32 %v11218_v13, 16 }
 0x3bd   : > { %6662 = vrot.lane.b32.xlu0 %v10463_v38, %s11600_s9  ;;  %v6844_v38 = vor.u32 %v6843_v32, %v6839_v7 }
 0x3be   : > { %v14700_v62 = vpop.permute.xlu1 %6164  ;;  %v6852_v7 = vor.u32 %v6850_v6, %v6848_v59  ;;  %v6856_v32 = vrot.slane %v6854_v25, 1  ;;  %v2824_v6 = vld [vmem:[#allocation2 + $0x50] sm:$0xf] }
 0x3bf   : > { %17471 = vst [vmem:[#allocation283_spill] sm:$0xff] %v14700_v62  ;;  %v14703_v16 = vpop.permute.xlu0 %6170  ;;  %v10542_v62 = vcombine.low %v2993_v10, %v14660_v1  ;;  %v7768_v10 = vrot.slane %v14683_v20, 1  ;;  %v2888_v1 = vld [vmem:[#allocation2 + $0x190] sm:$0xf] }
 0x3c0   : > { %17472 = vst [vmem:[#allocation284_spill] sm:$0xff] %v14703_v16  ;;  %6598 = vrot.lane.b32.xlu1 %v10431_v23, %s11600_s9  ;;  %v2977_v16 = vld [vmem:[#allocation2 + $0x3c] sm:$0xe]  ;;  %v6849_v23 = vsel %vm3424_vm2, %v6844_v38, %v6848_v59  ;;  %v6857_v25 = vsel %vm3424_vm2, %v6852_v7, %v6856_v32  ;;  %v7770_v59 = vrot.slane %v11216_v57, 1 }
 0x3c1   : > { %6664 = vrot.lane.b32.xlu0 %v14683_v20, %s11600_s9  ;;  %v10526_v48 = vcombine.low %v2977_v16, %v14671_v9  ;;  %v7767_v21 = vrot.slane %v10542_v62, 1  ;;  %v7688_v16 = vrot.slane %v14690_v2, 1  ;;  %v10465_v20 = vcombine.low %v2888_v1, %v14726_v28  ;;  %v14747_v32 = vld [vmem:[#allocation2 + $0x198] sm:$0xff]  }
 0x3c2   : > { %v14709_v29 = vpop.permute.xlu1 %6168  ;;  %v7771_v57 = vsel %vm4289_vm9, %v7768_v10, %v7770_v59  ;;  %v14754_v1 = vld [vmem:[#allocation2 + $0x58] sm:$0xff]   ;;  %v11224_v59 = vld [vmem:[#allocation2 + $0x1a0] ss:$0 sps:$4 sm:$0x11]  }
 0x3c3   : > { %17473 = vst [vmem:[#allocation285_spill] sm:$0xff] %v14709_v29  ;;  %v14713_v31 = vpop.permute.xlu0 %6174  ;;  %v7687_v38 = vrot.slane %v10526_v48, 1  ;;  %v7769_v62 = vsel %vm4289_vm9, %v7767_v21, %v7768_v10  ;;  %v7181_v48 = vshll.u32 %v10465_v20, 16  ;;  %v7186_v10 = vshll.u32 %v14747_v32, 16 }
 0x3c4   : > { %17474 = vst [vmem:[#allocation286_spill] sm:$0xff] %v14713_v31  ;;  %6600 = vrot.lane.b32.xlu1 %v14690_v2, %s11600_s9 }
 0x3c5   : > { %7526 = vrot.lane.b32.xlu0 %v7169_v4, %s11602_s17  ;;  %v14736_v4 = vld [vmem:[#allocation2 + $0x54] sm:$0xf]  ;;  %v7689_v61 = vsel %vm4289_vm9, %v7687_v38, %v7688_v16  ;;  %v7179_v38 = vshrl.u32 %v10465_v20, 16 }
 0x3c6   : > { %v14720_v29 = vpop.permute.xlu1 %6172  ;;  %v10433_v2 = vcombine.low %v2824_v6, %v14736_v4 }
 0x3c7   : > { %17475 = vst [vmem:[#allocation287_spill] sm:$0xff] %v14720_v29  ;;  %v14724_v18 = vpop.permute.xlu0 %6178 }
 0x3c8   : > { %17476 = vst [vmem:[#allocation288_spill] sm:$0xff] %v14724_v18  ;;  %7462 = vrot.lane.b32.xlu1 %v6849_v23, %s11602_s17  ;;  %v7690_v23 = vrot.slane %v11218_v13, 1  ;;  %v6861_v13 = vshll.u32 %v10433_v2, 16 }
 0x3c9   : > { %7528 = vrot.lane.b32.xlu0 %v7177_v45, %s11602_s17 }
 0x3ca   : > { %v14732_v9 = vpop.permute.xlu1 %6176  ;;  %v7691_v21 = vsel %vm4289_vm9, %v7688_v16, %v7690_v23  ;;  %v6866_v16 = vshll.u32 %v14754_v1, 16  ;;  %v11226_v23 = vld [vmem:[#allocation2 + $0x60] ss:$0 sps:$4 sm:$0x11]  }
 0x3cb   : > { %17477 = vst [vmem:[#allocation289_spill] sm:$0xff] %v14732_v9  ;;  %v14738_v46 = vpop.permute.xlu0 %6182  ;;  %v2994_v9 = vld [vmem:[#allocation2 + $0x190] sm:$0xe] }
 0x3cc   : > { %17478 = vst [vmem:[#allocation290_spill] sm:$0xff] %v14738_v46  ;;  %7464 = vrot.lane.b32.xlu1 %v6857_v25, %s11602_s17 }
 0x3cd   : > { %7910 = vrot.lane.b32.xlu0 %v7769_v62, %s11603_s19  ;;  %v7183_v62 = vrot.slane %v7181_v48, 1  ;;  %v7190_v48 = vshrl.u32 %v14747_v32, 16 }
 0x3ce   : > { %v14744_v7 = vpop.permute.xlu1 %6180 }
 0x3cf   : > { %17479 = vst [vmem:[#allocation291_spill] sm:$0xff] %v14744_v7  ;;  %v14749_v45 = vpop.permute.xlu0 %6186  ;;  %v7184_v46 = vor.u32 %v7183_v62, %v7179_v38  ;;  %v7194_v7 = vshll.u32 %v11224_v59, 16 }
 0x3d0   : > { %17480 = vst [vmem:[#allocation292_spill] sm:$0xff] %v14749_v45  ;;  %7846 = vrot.lane.b32.xlu1 %v7689_v61, %s11603_s19  ;;  %v6859_v61 = vshrl.u32 %v10433_v2, 16 }
 0x3d1   : > { %7912 = vrot.lane.b32.xlu0 %v7771_v57, %s11603_s19  ;;  %v6863_v57 = vrot.slane %v6861_v13, 1  ;;  %v6870_v13 = vshrl.u32 %v14754_v1, 16 }
 0x3d2   : > { %v14756_v25 = vpop.permute.xlu1 %6184 }
 0x3d3   : > { %17481 = vst [vmem:[#allocation293_spill] sm:$0xff] %v14756_v25  ;;  %v14759_v6 = vpop.permute.xlu0 %6190  ;;  %v7188_v25 = vrot.slane %v7186_v10, 1  ;;  %v7196_v10 = vrot.slane %v7194_v7, 1 }
 0x3d4   : > { %17482 = vst [vmem:[#allocation294_spill] sm:$0xff] %v14759_v6  ;;  %7848 = vrot.lane.b32.xlu1 %v7691_v21, %s11603_s19  ;;  %v6868_v21 = vrot.slane %v6866_v16, 1  ;;  %v6874_v6 = vshll.u32 %v11226_v23, 16 }
 0x3d5   : > { %6666 = vrot.lane.b32.xlu0 %v10465_v20, %s11600_s9  ;;  %v6864_v20 = vor.u32 %v6863_v57, %v6859_v61  ;;  %v7189_v38 = vsel %vm3424_vm2, %v7184_v46, %v7188_v25  ;;  %v7192_v62 = vor.u32 %v7190_v48, %v7188_v25  ;;  %v2892_v25 = vld [vmem:[#allocation2 + $0x1a4] sm:$0xf]  ;;  %v14790_v48 = vld [vmem:[#allocation2 + $0x1a8] sm:$0xf] }
 0x3d6   : > { %v14764_v45 = vpop.permute.xlu1 %6188  ;;  %v6872_v61 = vor.u32 %v6870_v13, %v6868_v21  ;;  %v6876_v57 = vrot.slane %v6874_v6, 1  ;;  %v2828_v13 = vld [vmem:[#allocation2 + $0x64] sm:$0xf] }
 0x3d7   : > { %17483 = vst [vmem:[#allocation295_spill] sm:$0xff] %v14764_v45  ;;  %v14767_v18 = vpop.permute.xlu0 %6194  ;;  %v10543_v45 = vcombine.low %v2994_v9, %v14726_v28  ;;  %v7197_v46 = vsel %vm3424_vm2, %v7192_v62, %v7196_v10  ;;  %v7773_v28 = vrot.slane %v14747_v32, 1 }
 0x3d8   : > { %17484 = vst [vmem:[#allocation296_spill] sm:$0xff] %v14767_v18  ;;  %6602 = vrot.lane.b32.xlu1 %v10433_v2, %s11600_s9  ;;  %v2978_v18 = vld [vmem:[#allocation2 + $0x50] sm:$0xe]  ;;  %v6869_v2 = vsel %vm3424_vm2, %v6864_v20, %v6868_v21  ;;  %v6877_v6 = vsel %vm3424_vm2, %v6872_v61, %v6876_v57  ;;  %v7775_v21 = vrot.slane %v11224_v59, 1 }
 0x3d9   : > { %6668 = vrot.lane.b32.xlu0 %v14747_v32, %s11600_s9  ;;  %v10527_v16 = vcombine.low %v2978_v18, %v14736_v4  ;;  %v7772_v7 = vrot.slane %v10543_v45, 1  ;;  %v7693_v18 = vrot.slane %v14754_v1, 1  ;;  %v10467_v32 = vcombine.low %v2892_v25, %v14790_v48  ;;  %v14811_v57 = vld [vmem:[#allocation2 + $0x1ac] sm:$0xff]  }
 0x3da   : > { %v14773_v31 = vpop.permute.xlu1 %6192  ;;  %v7776_v59 = vsel %vm4289_vm9, %v7773_v28, %v7775_v21  ;;  %v14818_v25 = vld [vmem:[#allocation2 + $0x6c] sm:$0xff]   ;;  %v11232_v21 = vld [vmem:[#allocation2 + $0x1b4] ss:$0 sps:$4 sm:$0x11]  }
 0x3db   : > { %17485 = vst [vmem:[#allocation297_spill] sm:$0xff] %v14773_v31  ;;  %v14777_v29 = vpop.permute.xlu0 %6198  ;;  %v7692_v20 = vrot.slane %v10527_v16, 1  ;;  %v7774_v45 = vsel %vm4289_vm9, %v7772_v7, %v7773_v28  ;;  %v7201_v16 = vshll.u32 %v10467_v32, 16  ;;  %v7206_v28 = vshll.u32 %v14811_v57, 16 }
 0x3dc   : > { %17486 = vst [vmem:[#allocation298_spill] sm:$0xff] %v14777_v29  ;;  %6604 = vrot.lane.b32.xlu1 %v14754_v1, %s11600_s9  ;;  %v2995_v29 = vld [vmem:[#allocation2 + $0x1a4] sm:$0xe] }
 0x3dd   : > { %7530 = vrot.lane.b32.xlu0 %v7189_v38, %s11602_s17  ;;  %v14800_v38 = vld [vmem:[#allocation2 + $0x68] sm:$0xf]  ;;  %v7694_v10 = vsel %vm4289_vm9, %v7692_v20, %v7693_v18  ;;  %v7199_v20 = vshrl.u32 %v10467_v32, 16  ;;  %v10544_v37 = vcombine.low %v2995_v29, %v14790_v48  ;;  %v7778_v29 = vrot.slane %v14811_v57, 1 }
 0x3de   : > { %v14784_v31 = vpop.permute.xlu1 %6196  ;;  %v10435_v1 = vcombine.low %v2828_v13, %v14800_v38 }
 0x3df   : > { %17487 = vst [vmem:[#allocation299_spill] sm:$0xff] %v14784_v31  ;;  %v14788_v9 = vpop.permute.xlu0 %6202 }
 0x3e0   : > { %17488 = vst [vmem:[#allocation300_spill] sm:$0xff] %v14788_v9  ;;  %7466 = vrot.lane.b32.xlu1 %v6869_v2, %s11602_s17  ;;  %v7695_v2 = vrot.slane %v11226_v23, 1  ;;  %v6881_v23 = vshll.u32 %v10435_v1, 16  ;;  %v7214_v9 = vshll.u32 %v11232_v21, 16 }
 0x3e1   : > { %7532 = vrot.lane.b32.xlu0 %v7197_v46, %s11602_s17 }
 0x3e2   : > { %v14796_v4 = vpop.permute.xlu1 %6200  ;;  %v7696_v7 = vsel %vm4289_vm9, %v7693_v18, %v7695_v2  ;;  %v6886_v18 = vshll.u32 %v14818_v25, 16  ;;  %v11234_v2 = vld [vmem:[#allocation2 + $0x74] ss:$0 sps:$4 sm:$0x11]  }
 0x3e3   : > { %17489 = vst [vmem:[#allocation301_spill] sm:$0xff] %v14796_v4  ;;  %v14802_v62 = vpop.permute.xlu0 %6206  ;;  %v6894_v31 = vshll.u32 %v11234_v2, 16 }
 0x3e4   : > { %17490 = vst [vmem:[#allocation302_spill] sm:$0xff] %v14802_v62  ;;  %7468 = vrot.lane.b32.xlu1 %v6877_v6, %s11602_s17 }
 0x3e5   : > { %7914 = vrot.lane.b32.xlu0 %v7774_v45, %s11603_s19  ;;  %v7203_v45 = vrot.slane %v7201_v16, 1  ;;  %v7210_v16 = vshrl.u32 %v14811_v57, 16 }
 0x3e6   : > { %v14808_v61 = vpop.permute.xlu1 %6204 }
 0x3e7   : > { %17491 = vst [vmem:[#allocation303_spill] sm:$0xff] %v14808_v61  ;;  %v14813_v46 = vpop.permute.xlu0 %6210  ;;  %v7204_v61 = vor.u32 %v7203_v45, %v7199_v20 }
 0x3e8   : > { %7850 = vrot.lane.b32.xlu1 %v7694_v10, %s11603_s19  ;;  %v6879_v10 = vshrl.u32 %v10435_v1, 16 }
 0x3e9   : > { %7916 = vrot.lane.b32.xlu0 %v7776_v59, %s11603_s19  ;;  %v6883_v59 = vrot.slane %v6881_v23, 1  ;;  %v6890_v23 = vshrl.u32 %v14818_v25, 16 }
 0x3ea   : > { %v14820_v6 = vpop.permute.xlu1 %6208 }
 0x3eb   : > { %17492 = vst [vmem:[#allocation304_spill] sm:$0xff] %v14820_v6  ;;  %v14823_v13 = vpop.permute.xlu0 %6214  ;;  %v7208_v6 = vrot.slane %v7206_v28, 1  ;;  %v7216_v28 = vrot.slane %v7214_v9, 1 }
 0x3ec   : > { %7852 = vrot.lane.b32.xlu1 %v7696_v7, %s11603_s19  ;;  %v6888_v7 = vrot.slane %v6886_v18, 1  ;;  %v10528_v18 = vcombine.low %v2979_v42, %v14800_v38  ;;  %v7698_v42 = vrot.slane %v14818_v25, 1 }
 0x3ed   : > { %6670 = vrot.lane.b32.xlu0 %v10467_v32, %s11600_s9  ;;  %v6884_v32 = vor.u32 %v6883_v59, %v6879_v10  ;;  %v7209_v20 = vsel %vm3424_vm2, %v7204_v61, %v7208_v6  ;;  %v7212_v45 = vor.u32 %v7210_v16, %v7208_v6  ;;  %v6896_v59 = vrot.slane %v6894_v31, 1  ;;  %v2896_v6 = vld [vmem:[#allocation2 + $0x1b8] sm:$0xf]  ;;  %v14854_v16 = vld [vmem:[#allocation2 + $0x1bc] sm:$0xf] }
 0x3ee   : > { %v14828_v62 = vpop.permute.xlu1 %6212  ;;  %v6892_v10 = vor.u32 %v6890_v23, %v6888_v7  ;;  %v7777_v61 = vrot.slane %v10544_v37, 1  ;;  %v2832_v23 = vld [vmem:[#allocation2 + $0x78] sm:$0xf] }
 0x3ef   : > { %v14831_v4 = vpop.permute.xlu0 %6218  ;;  %v7217_v9 = vsel %vm3424_vm2, %v7212_v45, %v7216_v28 }
 0x3f0   : > { %6606 = vrot.lane.b32.xlu1 %v10435_v1, %s11600_s9  ;;  %v6889_v1 = vsel %vm3424_vm2, %v6884_v32, %v6888_v7  ;;  %v6897_v31 = vsel %vm3424_vm2, %v6892_v10, %v6896_v59  ;;  %v7697_v32 = vrot.slane %v10528_v18, 1  ;;  %v7779_v37 = vsel %vm4289_vm9, %v7777_v61, %v7778_v29  ;;  %v14875_v59 = vld [vmem:[#allocation2 + $0x1c0] sm:$0xff]  }
 0x3f1   : > { %6672 = vrot.lane.b32.xlu0 %v14811_v57, %s11600_s9  ;;  %v7780_v7 = vrot.slane %v11232_v21, 1  ;;  %v10469_v57 = vcombine.low %v2896_v6, %v14854_v16  ;;  %v14882_v6 = vld [vmem:[#allocation2 + $0x80] sm:$0xff]  }
 0x3f2   : > { %v14837_v50 = vpop.permute.xlu1 %6216  ;;  %v7699_v28 = vsel %vm4289_vm9, %v7697_v32, %v7698_v42 }
 0x3f3   : > { %v14841_v58 = vpop.permute.xlu0 %6222  ;;  %v7781_v21 = vsel %vm4289_vm9, %v7778_v29, %v7780_v7  ;;  %v7221_v18 = vshll.u32 %v10469_v57, 16  ;;  %v7219_v32 = vshrl.u32 %v10469_v57, 16  ;;  %v7226_v29 = vshll.u32 %v14875_v59, 16  ;;  %v11240_v7 = vld [vmem:[#allocation2 + $0x1c8] ss:$0 sps:$4 sm:$0x11]  }
 0x3f4   : > { %17493 = vst [vmem:[#allocation305_spill] sm:$0xff] %v14841_v58  ;;  %6608 = vrot.lane.b32.xlu1 %v14818_v25, %s11600_s9  ;;  %v17517_v58 = vld [vmem:[#allocation104_spill] sm:$0xff] }
 0x3f5   : > { %7534 = vrot.lane.b32.xlu0 %v7209_v20, %s11602_s17  ;;  %v14864_v20 = vld [vmem:[#allocation2 + $0x7c] sm:$0xf] }
 0x3f6   : > { %v14848_v30 = vpop.permute.xlu1 %6220  ;;  %v10437_v25 = vcombine.low %v2832_v23, %v14864_v20 }
 0x3f7   : > { %v14852_v48 = vpop.permute.xlu0 %6226 }
 0x3f8   : > { %17494 = vst [vmem:[#allocation306_spill] sm:$0xff] %v14852_v48  ;;  %7470 = vrot.lane.b32.xlu1 %v6889_v1, %s11602_s17  ;;  %v7700_v1 = vrot.slane %v11234_v2, 1  ;;  %v6901_v2 = vshll.u32 %v10437_v25, 16 }
 0x3f9   : > { %7536 = vrot.lane.b32.xlu0 %v7217_v9, %s11602_s17 }
 0x3fa   : > { %v14860_v38 = vpop.permute.xlu1 %6224  ;;  %v7701_v61 = vsel %vm4289_vm9, %v7698_v42, %v7700_v1  ;;  %v6906_v42 = vshll.u32 %v14882_v6, 16  ;;  %v11242_v1 = vld [vmem:[#allocation2 + $0x88] ss:$0 sps:$4 sm:$0x11]  }
 0x3fb   : > { %17495 = vst [vmem:[#allocation307_spill] sm:$0xff] %v14860_v38  ;;  %v14866_v45 = vpop.permute.xlu0 %6230 }
 0x3fc   : > { %17496 = vst [vmem:[#allocation308_spill] sm:$0xff] %v14866_v45  ;;  %7472 = vrot.lane.b32.xlu1 %v6897_v31, %s11602_s17 }
 0x3fd   : > { %7918 = vrot.lane.b32.xlu0 %v7779_v37, %s11603_s19  ;;  %v7223_v37 = vrot.slane %v7221_v18, 1  ;;  %v7230_v18 = vshrl.u32 %v14875_v59, 16 }
 0x3fe   : > { %v14872_v10 = vpop.permute.xlu1 %6228 }
 0x3ff   : > { %17497 = vst [vmem:[#allocation309_spill] sm:$0xff] %v14872_v10  ;;  %v14877_v9 = vpop.permute.xlu0 %6234  ;;  %v7224_v45 = vor.u32 %v7223_v37, %v7219_v32  ;;  %v7234_v10 = vshll.u32 %v11240_v7, 16 }
 0x400   : > { %17498 = vst [vmem:[#allocation310_spill] sm:$0xff] %v14877_v9  ;;  %7854 = vrot.lane.b32.xlu1 %v7699_v28, %s11603_s19  ;;  %v6899_v28 = vshrl.u32 %v10437_v25, 16 }
 0x401   : > { %7920 = vrot.lane.b32.xlu0 %v7781_v21, %s11603_s19  ;;  %v6903_v21 = vrot.slane %v6901_v2, 1  ;;  %v6910_v2 = vshrl.u32 %v14882_v6, 16 }
 0x402   : > { %v14884_v31 = vpop.permute.xlu1 %6232 }
 0x403   : > { %17499 = vst [vmem:[#allocation311_spill] sm:$0xff] %v14884_v31  ;;  %v14887_v23 = vpop.permute.xlu0 %6238  ;;  %v7228_v31 = vrot.slane %v7226_v29, 1  ;;  %v7236_v29 = vrot.slane %v7234_v10, 1 }
 0x404   : > { %17500 = vst [vmem:[#allocation312_spill] sm:$0xff] %v14887_v23  ;;  %7856 = vrot.lane.b32.xlu1 %v7701_v61, %s11603_s19  ;;  %v6908_v61 = vrot.slane %v6906_v42, 1  ;;  %v6914_v23 = vshll.u32 %v11242_v1, 16 }
 0x405   : > { %6674 = vrot.lane.b32.xlu0 %v10469_v57, %s11600_s9  ;;  %v6904_v57 = vor.u32 %v6903_v21, %v6899_v28  ;;  %v7229_v32 = vsel %vm3424_vm2, %v7224_v45, %v7228_v31  ;;  %v7232_v37 = vor.u32 %v7230_v18, %v7228_v31  ;;  %v2900_v31 = vld [vmem:[#allocation2 + $0x1cc] sm:$0xf]  ;;  %v14918_v18 = vld [vmem:[#allocation2 + $0x1d0] sm:$0xf] }
 0x406   : > { %v14892_v9 = vpop.permute.xlu1 %6236  ;;  %v6912_v28 = vor.u32 %v6910_v2, %v6908_v61  ;;  %v6916_v21 = vrot.slane %v6914_v23, 1  ;;  %v2836_v2 = vld [vmem:[#allocation2 + $0x8c] sm:$0xf] }
 0x407   : > { %17501 = vst [vmem:[#allocation313_spill] sm:$0xff] %v14892_v9  ;;  %v14895_v48 = vpop.permute.xlu0 %6242  ;;  %v10545_v9 = vcombine.low %v2996_v19, %v14854_v16  ;;  %v7237_v45 = vsel %vm3424_vm2, %v7232_v37, %v7236_v29  ;;  %v7783_v19 = vrot.slane %v14875_v59, 1 }
 0x408   : > { %17502 = vst [vmem:[#allocation314_spill] sm:$0xff] %v14895_v48  ;;  %6610 = vrot.lane.b32.xlu1 %v10437_v25, %s11600_s9  ;;  %v2980_v48 = vld [vmem:[#allocation2 + $0x78] sm:$0xe]  ;;  %v6909_v25 = vsel %vm3424_vm2, %v6904_v57, %v6908_v61  ;;  %v6917_v23 = vsel %vm3424_vm2, %v6912_v28, %v6916_v21  ;;  %v7785_v61 = vrot.slane %v11240_v7, 1 }
 0x409   : > { %6676 = vrot.lane.b32.xlu0 %v14875_v59, %s11600_s9  ;;  %v10529_v42 = vcombine.low %v2980_v48, %v14864_v20  ;;  %v7782_v10 = vrot.slane %v10545_v9, 1  ;;  %v7703_v48 = vrot.slane %v14882_v6, 1  ;;  %v10471_v59 = vcombine.low %v2900_v31, %v14918_v18  ;;  %v14939_v21 = vld [vmem:[#allocation2 + $0x1d4] sm:$0xff]  }
 0x40a   : > { %v14901_v34 = vpop.permute.xlu1 %6240  ;;  %v7786_v7 = vsel %vm4289_vm9, %v7783_v19, %v7785_v61  ;;  %v14946_v31 = vld [vmem:[#allocation2 + $0x94] sm:$0xff]   ;;  %v14951_v61 = vld [vmem:[#allocation2 + $0x1dc] ss:$0 sps:$4 sm:$0x11]   ;;  %v7250_v63 = vshrl.u32 %v14939_v21, 16 }
 0x40b   : > { %17503 = vst [vmem:[#allocation315_spill] sm:$0xff] %v14901_v34  ;;  %v14905_v38 = vpop.permute.xlu0 %6246  ;;  %v7702_v57 = vrot.slane %v10529_v42, 1  ;;  %v7784_v9 = vsel %vm4289_vm9, %v7782_v10, %v7783_v19  ;;  %v7241_v42 = vshll.u32 %v10471_v59, 16  ;;  %v7246_v19 = vshll.u32 %v14939_v21, 16 }
 0x40c   : > { %17504 = vst [vmem:[#allocation316_spill] sm:$0xff] %v14905_v38  ;;  %6612 = vrot.lane.b32.xlu1 %v14882_v6, %s11600_s9  ;;  %v6930_v8 = vshrl.u32 %v14946_v31, 16 }
 0x40d   : > { %7538 = vrot.lane.b32.xlu0 %v7229_v32, %s11602_s17  ;;  %v14928_v32 = vld [vmem:[#allocation2 + $0x90] sm:$0xf]  ;;  %v7704_v29 = vsel %vm4289_vm9, %v7702_v57, %v7703_v48  ;;  %v7239_v57 = vshrl.u32 %v10471_v59, 16 }
 0x40e   : > { %v14912_v34 = vpop.permute.xlu1 %6244  ;;  %v10439_v6 = vcombine.low %v2836_v2, %v14928_v32 }
 0x40f   : > { %17505 = vst [vmem:[#allocation317_spill] sm:$0xff] %v14912_v34  ;;  %v14916_v16 = vpop.permute.xlu0 %6250 }
 0x410   : > { %17506 = vst [vmem:[#allocation318_spill] sm:$0xff] %v14916_v16  ;;  %7474 = vrot.lane.b32.xlu1 %v6909_v25, %s11602_s17  ;;  %v7705_v25 = vrot.slane %v11242_v1, 1  ;;  %v6921_v1 = vshll.u32 %v10439_v6, 16  ;;  %v17512_v16 = vld [vmem:[#allocation34_spill] sm:$0xff]  ;;  %v6919_v34 = vshrl.u32 %v10439_v6, 16 }
 0x411   : > { %7540 = vrot.lane.b32.xlu0 %v7237_v45, %s11602_s17 }
 0x412   : > { %v14924_v20 = vpop.permute.xlu1 %6248  ;;  %v7706_v10 = vsel %vm4289_vm9, %v7703_v48, %v7705_v25  ;;  %v17513_v25 = vld [vmem:[#allocation69_spill] sm:$0xff]  ;;  %v6923_v51 = vrot.slane %v6921_v1, 1 }
 0x413   : > { %17507 = vst [vmem:[#allocation319_spill] sm:$0xff] %v14924_v20  ;;  %v14930_v37 = vpop.permute.xlu0 %6254  ;;  %v17514_v20 = vld [vmem:[#allocation22_spill] sm:$0xff] }
 0x414   : > { %17508 = vst [vmem:[#allocation320_spill] sm:$0xff] %v14930_v37  ;;  %7476 = vrot.lane.b32.xlu1 %v6917_v23, %s11602_s17  ;;  %v17510_v37 = vld [vmem:[#allocation32_spill] sm:$0xff]  ;;  %v8036_v38 = vsel %vm7970_vm12, %v17514_v20, %v17513_v25  ;;  %v7254_v20 = vshll.u32 %v14951_v61, 16  ;;  %v11485_v25 = vld [vmem:[#allocation2 + $0x148] sm:$0xff]  }
 0x415   : > { %7922 = vrot.lane.b32.xlu0 %v7784_v9, %s11603_s19  ;;  %v7243_v9 = vrot.slane %v7241_v42, 1  ;;  %v14964_v42 = vld [vmem:[#allocation2 + $0x9c] ss:$0 sps:$4 sm:$0x11]   ;;  %v8165_v60 = vsel %vm8099_vm13, %v8036_v38, %v17518_v53  ;;  %v6924_v53 = vor.u32 %v6923_v51, %v6919_v34  ;;  %v7788_v51 = vrot.slane %v14939_v21, 1 }
 0x416   : > { %v14936_v28 = vpop.permute.xlu1 %6252 }
 0x417   : > { %17509 = vst [vmem:[#allocation321_spill] sm:$0xff] %v14936_v28  ;;  %v14941_v45 = vpop.permute.xlu0 %6658 }
 0x418   : > { %7858 = vrot.lane.b32.xlu1 %v7704_v29, %s11603_s19  ;;  %v17511_v29 = vld [vmem:[#allocation6_spill] sm:$0xff] }
 0x419   : > { %7924 = vrot.lane.b32.xlu0 %v7786_v7, %s11603_s19  ;;  %v7972_v28 = vsel %vm7970_vm12, %v17511_v29, %v17510_v37  ;;  %v11484_v7 = vld [vmem:[#allocation2 + $0x8] sm:$0xff]   ;;  %v6926_v37 = vshll.u32 %v14946_v31, 16 }
 0x41a   : > { %v14948_v23 = vpop.permute.xlu1 %6594  ;;  %v7974_v48 = vsel %vm7970_vm12, %v11484_v7, %v17512_v16  ;;  %v2997_v29 = vld [vmem:[#allocation2 + $0x1cc] sm:$0xe]  ;;  %v7244_v16 = vor.u32 %v7243_v9, %v7239_v57  ;;  %v7248_v7 = vrot.slane %v7246_v19, 1  ;;  %v17519_v57 = vld [vmem:[#allocation136_spill] sm:$0xff] }
 0x41b   : > { %v14953_v2 = vpop.permute.xlu0 %6660  ;;  %v8103_v1 = vsel %vm8099_vm13, %v7974_v48, %v17517_v58  ;;  %v10546_v19 = vcombine.low %v2997_v29, %v14918_v18  ;;  %v6928_v58 = vrot.slane %v6926_v37, 1  ;;  %v2981_v48 = vld [vmem:[#allocation2 + $0x8c] sm:$0xe] }
 0x41c   : > { %7860 = vrot.lane.b32.xlu1 %v7706_v10, %s11603_s19  ;;  %v17515_v10 = vld [vmem:[#allocation72_spill] sm:$0xff]  ;;  %v7252_v18 = vor.u32 %v7250_v63, %v7248_v7  ;;  %v10530_v37 = vcombine.low %v2981_v48, %v14928_v32 }
 0x41d   : > { %6678 = vrot.lane.b32.xlu0 %v10471_v59, %s11600_s9  ;;  %v8038_v0 = vsel %vm7970_vm12, %v11485_v25, %v17515_v10  ;;  %v8101_v59 = vsel %vm8099_vm13, %v7972_v28, %v17516_v17  ;;  %v6934_v25 = vshll.u32 %v14964_v42, 16  ;;  %v17520_v10 = vld [vmem:[#allocation181_spill] sm:$0xff]  ;;  %v7256_v28 = vrot.slane %v7254_v20, 1 }
 0x41e   : > { %v14968_v11 = vpop.permute.xlu1 %6596  ;;  %v8167_v9 = vsel %vm8099_vm13, %v8038_v0, %v17519_v57  ;;  %v8230_v17 = vsel %vm8228_vm14, %v8101_v59, %v17520_v10  ;;  %v8294_v0 = vsel %vm8228_vm14, %v8165_v60, %v14110_v49  ;;  %v7787_v34 = vrot.slane %v10546_v19, 1 }
 0x41f   : > { %v7523_v36 = vpop.permute.xlu0 %7522  ;;  %v8423_v29 = vsel %vm8357_vm15, %v8294_v0, %v14468_v35  ;;  %v6932_v49 = vor.u32 %v6930_v8, %v6928_v58  ;;  %v6936_v60 = vrot.slane %v6934_v25, 1  ;;  %v6929_v35 = vsel %vm3424_vm2, %v6924_v53, %v6928_v58 }
 0x420   : > { %6614 = vrot.lane.b32.xlu1 %v10439_v6, %s11600_s9  ;;  %v7249_v6 = vsel %vm3424_vm2, %v7244_v16, %v7248_v7  ;;  %v8552_v63 = vsel %vm8486_vm0, %v8423_v29, %v14813_v46  ;;  %v8296_v16 = vsel %vm8228_vm14, %v8167_v9, %v14137_v56  ;;  %v7257_v8 = vsel %vm3424_vm2, %v7252_v18, %v7256_v28  ;;  %v2904_v56 = vld [vmem:[#allocation2 + $0x1e0] sm:$0xf]  ;;  %v15015_v9 = vld [vmem:[#allocation2 + $0x1e4] sm:$0xf] }
 0x421   : > { %6680 = vrot.lane.b32.xlu0 %v14939_v21, %s11600_s9  ;;  %v8681_v7 = vsel %vm8615_vm1, %v8552_v63, %v14941_v45  ;;  %v17521_v21 = vld [vmem:[#allocation188_spill] sm:$0xff]  ;;  %v8359_v57 = vsel %vm8357_vm15, %v8230_v17, %v14337_v14  ;;  %v8425_v19 = vsel %vm8357_vm15, %v8296_v16, %v14483_v15  ;;  %v6937_v14 = vsel %vm3424_vm2, %v6932_v49, %v6936_v60  ;;  %v2840_v18 = vld [vmem:[#allocation2 + $0xa0] sm:$0xf]  ;;  %v15035_v28 = vld [vmem:[#allocation2 + $0xa4] sm:$0xf] }
 0x422   : > { %v7459_v38 = vpop.permute.xlu1 %7458  ;;  %v8232_v46 = vsel %vm8228_vm14, %v8103_v1, %v17521_v21  ;;  %v8810_v32 = vsel %vm8744_vm3, %v8681_v7, %v7523_v36  ;;  %v8488_v45 = vsel %vm8486_vm0, %v8359_v57, %v14636_v24  ;;  %v7789_v1 = vsel %vm4289_vm9, %v7787_v34, %v7788_v51  ;;  %v15055_v63 = vld [vmem:[#allocation2 + $0x1e8] sm:$0xff]  }
 0x423   : > { %v7525_v59 = vpop.permute.xlu0 %7524  ;;  %v8554_v15 = vsel %vm8486_vm0, %v8425_v19, %v14828_v62  ;;  %v8617_v36 = vsel %vm8615_vm1, %v8488_v45, %v14948_v23  ;;  %v7707_v17 = vrot.slane %v10530_v37, 1  ;;  %v7708_v24 = vrot.slane %v14946_v31, 1  ;;  %v15064_v16 = vld [vmem:[#allocation2 + $0xa8] sm:$0xff]   ;;  %v15074_v19 = vld [vmem:[#allocation2 + $0xb0] ss:$0 sps:$4 sm:$0x11]  }
 0x424   : > { %6616 = vrot.lane.b32.xlu1 %v14946_v31, %s11600_s9  ;;  %v8683_v53 = vsel %vm8615_vm1, %v8554_v15, %v14953_v2  ;;  %v8746_v58 = vsel %vm8744_vm3, %v8617_v36, %v7459_v38  ;;  %v10473_v62 = vcombine.low %v2904_v56, %v15015_v9  ;;  %v8361_v23 = vsel %vm8357_vm15, %v8232_v46, %v14350_v3  ;;  %v15069_v46 = vld [vmem:[#allocation2 + $0x1f0] ss:$0 sps:$4 sm:$0x11]   ;;  %v2998_v45 = vld [vmem:[#allocation2 + $0x1e0] sm:$0xe] }
 0x425   : > { %7542 = vrot.lane.b32.xlu0 %v7249_v6, %s11602_s17  ;;  %v7790_v6 = vrot.slane %v14951_v61, 1  ;;  %v8812_v48 = vsel %vm8744_vm3, %v8683_v53, %v7525_v59  ;;  %v8490_v2 = vsel %vm8486_vm0, %v8361_v23, %v14654_v43  ;;  %v7709_v3 = vsel %vm4289_vm9, %v7707_v17, %v7708_v24  ;;  %v17522_v17 = vld [vmem:[#allocation35_spill] sm:$0xff] }
 0x426   : > { %v7461_v20 = vpop.permute.xlu1 %7460  ;;  %v8619_v61 = vsel %vm8615_vm1, %v8490_v2, %v14968_v11  ;;  %v7710_v59 = vrot.slane %v14964_v42, 1  ;;  %v10441_v34 = vcombine.low %v2840_v18, %v15035_v28  ;;  %v7266_v21 = vshll.u32 %v15055_v63, 16 }
 0x427   : > { %v7907_v25 = vpop.permute.xlu0 %7906  ;;  %v8748_v43 = vsel %vm8744_vm3, %v8619_v61, %v7461_v20  ;;  %v7791_v60 = vsel %vm4289_vm9, %v7788_v51, %v7790_v6  ;;  %v7259_v51 = vshrl.u32 %v10473_v62, 16  ;;  %v6946_v56 = vshll.u32 %v15064_v16, 16  ;;  %v17525_v6 = vld [vmem:[#allocation23_spill] sm:$0xff] }
 0x428   : > { %v8939_v10 = vsel %vm8873_vm4, %v8810_v32, %v7907_v25  ;;  %7478 = vrot.lane.b32.xlu1 %v6929_v35, %s11602_s17  ;;  %v7261_v35 = vshll.u32 %v10473_v62, 16  ;;  %v7711_v42 = vsel %vm4289_vm9, %v7708_v24, %v7710_v59  ;;  %v6941_v7 = vshll.u32 %v10441_v34, 16  ;;  %v17523_v24 = vld [vmem:[#allocation8_spill] sm:$0xff] }
 0x429   : > { %7544 = vrot.lane.b32.xlu0 %v7257_v8, %s11602_s17  ;;  %10893 = vmatprep.mubr.msk.bf16.mxu1 %vm9024_vm5, %v8939_v10  ;;  %v6939_v32 = vshrl.u32 %v10441_v34, 16  ;;  %v7270_v15 = vshrl.u32 %v15055_v63, 16  ;;  %v7274_v36 = vshll.u32 %v15069_v46, 16  ;;  %v7976_v53 = vsel %vm7970_vm12, %v17523_v24, %v17522_v17 }
 0x42a   : > { %v7843_v0 = vpop.permute.xlu1 %7842  ;;  %v7263_v8 = vrot.slane %v7261_v35, 1  ;;  %v6943_v25 = vrot.slane %v6941_v7, 1  ;;  %v10547_v18 = vcombine.low %v2998_v45, %v15015_v9  ;;  %v6950_v23 = vshrl.u32 %v15064_v16, 16  ;;  %v2982_v35 = vld [vmem:[#allocation2 + $0xa0] sm:$0xe] }
 0x42b   : > { %v7909_v29 = vpop.permute.xlu0 %7908  ;;  %v8875_v31 = vsel %vm8873_vm4, %v8746_v58, %v7843_v0  ;;  %v17524_v0 = vld [vmem:[#allocation71_spill] sm:$0xff]  ;;  %v6948_v59 = vrot.slane %v6946_v56, 1  ;;  %v7793_v45 = vrot.slane %v15055_v63, 1 }
 0x42c   : > { %v8941_v38 = vsel %vm8873_vm4, %v8812_v48, %v7909_v29  ;;  %7480 = vrot.lane.b32.xlu1 %v6937_v14, %s11602_s17  ;;  %10829 = vmatprep.mubr.msk.bf16.mxu0 %vm9024_vm5, %v8875_v31  ;;  %v7268_v14 = vrot.slane %v7266_v21, 1  ;;  %v6954_v48 = vshll.u32 %v15074_v19, 16  ;;  %v11486_v29 = vld [vmem:[#allocation2 + $0x1c] sm:$0xff]   ;;  %v17526_v31 = vld [vmem:[#allocation38_spill] sm:$0xff]  ;;  %v7792_v56 = vrot.slane %v10547_v18, 1 }
 0x42d   : > { %7926 = vrot.lane.b32.xlu0 %v7789_v1, %s11603_s19  ;;  %10894 = vmatmul.mubr.msk.bf16.vlgmr.msra.gmra.mrb[0].mxu1 %vm9024_vm5, %v8941_v38  ;;  %v7264_v1 = vor.u32 %v7263_v8, %v7259_v51  ;;  %v7978_v2 = vsel %vm7970_vm12, %v11486_v29, %v17526_v31  ;;  %v17527_v38 = vld [vmem:[#allocation135_spill] sm:$0xff]  ;;  %v17530_v21 = vld [vmem:[#allocation106_spill] sm:$0xff] }
 0x42e   : > { %v7845_v49 = vpop.permute.xlu1 %7844  ;;  %v17529_v51 = vld [vmem:[#allocation103_spill] sm:$0xff] }
 0x42f   : > { %v15057_v37 = vpop.permute.xlu0 %6662  ;;  %v8877_v11 = vsel %vm8873_vm4, %v8748_v43, %v7845_v49  ;;  %v7269_v43 = vsel %vm3424_vm2, %v7264_v1, %v7268_v14  ;;  %v7272_v49 = vor.u32 %v7270_v15, %v7268_v14  ;;  %v8105_v8 = vsel %vm8099_vm13, %v7976_v53, %v17529_v51  ;;  %v17531_v15 = vld [vmem:[#allocation138_spill] sm:$0xff]  ;;  %v17532_v53 = vld [vmem:[#allocation185_spill] sm:$0xff] }
 0x430   : > { %7862 = vrot.lane.b32.xlu1 %v7709_v3, %s11603_s19  ;;  %10830 = vmatmul.mubr.msk.bf16.vlgmr.msra.gmra.mrb[0].mxu0 %vm9024_vm5, %v8877_v11  ;;  %v6944_v3 = vor.u32 %v6943_v25, %v6939_v32  ;;  %v11487_v11 = vld [vmem:[#allocation2 + $0x15c] sm:$0xff]   ;;  %v8107_v32 = vsel %vm8099_vm13, %v7978_v2, %v17530_v21  ;;  %v6952_v1 = vor.u32 %v6950_v23, %v6948_v59  ;;  %v6956_v14 = vrot.slane %v6954_v48, 1  ;;  %v17533_v23 = vld [vmem:[#allocation191_spill] sm:$0xff] }
 0x431   : > { %7928 = vrot.lane.b32.xlu0 %v7791_v60, %s11603_s19  ;;  %v7276_v60 = vrot.slane %v7274_v36, 1  ;;  %v2908_v2 = vld [vmem:[#allocation2 + $0x1f4] sm:$0xf] }
 0x432   : > { %v15066_v20 = vpop.permute.xlu1 %6598  ;;  %v6949_v24 = vsel %vm3424_vm2, %v6944_v3, %v6948_v59 }
 0x433   : > { %v15071_v57 = vpop.permute.xlu0 %6664  ;;  %v7277_v18 = vsel %vm3424_vm2, %v7272_v49, %v7276_v60  ;;  %v7795_v49 = vrot.slane %v15069_v46, 1  ;;  %v2844_v60 = vld [vmem:[#allocation2 + $0xb4] sm:$0xf] }
 0x434   : > { %7864 = vrot.lane.b32.xlu1 %v7711_v42, %s11603_s19  ;;  %v17528_v42 = vld [vmem:[#allocation74_spill] sm:$0xff] }
 0x435   : > { %6682 = vrot.lane.b32.xlu0 %v10473_v62, %s11600_s9  ;;  %v8040_v62 = vsel %vm7970_vm12, %v17525_v6, %v17524_v0  ;;  %v8042_v7 = vsel %vm7970_vm12, %v11487_v11, %v17528_v42  ;;  %v8234_v0 = vsel %vm8228_vm14, %v8105_v8, %v17532_v53  ;;  %v7796_v21 = vsel %vm4289_vm9, %v7793_v45, %v7795_v49 }
 0x436   : > { %v15078_v10 = vpop.permute.xlu1 %6600  ;;  %v8169_v61 = vsel %vm8099_vm13, %v8040_v62, %v17527_v38  ;;  %v8171_v36 = vsel %vm8099_vm13, %v8042_v7, %v17531_v15  ;;  %v8363_v48 = vsel %vm8357_vm15, %v8234_v0, %v14345_v33  ;;  %v6957_v33 = vsel %vm3424_vm2, %v6952_v1, %v6956_v14 }
 0x437   : > { %v7527_v58 = vpop.permute.xlu0 %7526  ;;  %v7715_v7 = vrot.slane %v15074_v19, 1 }
 0x438   : > { %6618 = vrot.lane.b32.xlu1 %v10441_v34, %s11600_s9  ;;  %v8298_v34 = vsel %vm8228_vm14, %v8169_v61, %v14125_v41  ;;  %v7794_v61 = vsel %vm4289_vm9, %v7792_v56, %v7793_v45  ;;  %v15182_v56 = vld [vmem:[#allocation2 + $0xbc] sm:$0xff]  }
 0x439   : > { %6684 = vrot.lane.b32.xlu0 %v15055_v63, %s11600_s9  ;;  %v8427_v25 = vsel %vm8357_vm15, %v8298_v34, %v14477_v44  ;;  %v10531_v44 = vcombine.low %v2982_v35, %v15035_v28  ;;  %v8300_v63 = vsel %vm8228_vm14, %v8171_v36, %v14150_v26  ;;  %v15133_v26 = vld [vmem:[#allocation2 + $0x1f8] sm:$0xf] }
 0x43a   : > { %v7463_v9 = vpop.permute.xlu1 %7462  ;;  %v8556_v17 = vsel %vm8486_vm0, %v8427_v25, %v14823_v13  ;;  %v8236_v13 = vsel %vm8228_vm14, %v8107_v32, %v17533_v23  ;;  %v8429_v28 = vsel %vm8357_vm15, %v8300_v63, %v14492_v54  ;;  %v15153_v35 = vld [vmem:[#allocation2 + $0xb8] sm:$0xf]  ;;  %v15173_v32 = vld [vmem:[#allocation2 + $0x1fc] sm:$0xff]   ;;  %v6966_v63 = vshll.u32 %v15182_v56, 16 }
 0x43b   : > { %v7529_v41 = vpop.permute.xlu0 %7528  ;;  %v8685_v6 = vsel %vm8615_vm1, %v8556_v17, %v15057_v37  ;;  %v8492_v37 = vsel %vm8486_vm0, %v8363_v48, %v14647_v22  ;;  %v8558_v54 = vsel %vm8486_vm0, %v8429_v28, %v14837_v50  ;;  %v7712_v3 = vrot.slane %v10531_v44, 1  ;;  %v15187_v17 = vld [vmem:[#allocation2 + $0x204] ss:$0 sps:$4 sm:$0x11]   ;;  %v17534_v28 = vld [vmem:[#allocation36_spill] sm:$0xff] }
 0x43c   : > { %6620 = vrot.lane.b32.xlu1 %v15064_v16, %s11600_s9  ;;  %v8814_v29 = vsel %vm8744_vm3, %v8685_v6, %v7527_v58  ;;  %v8621_v58 = vsel %vm8615_vm1, %v8492_v37, %v15066_v20  ;;  %v7713_v22 = vrot.slane %v15064_v16, 1  ;;  %v8687_v59 = vsel %vm8615_vm1, %v8558_v54, %v15071_v57  ;;  %v15192_v44 = vld [vmem:[#allocation2 + $0xc4] ss:$0 sps:$4 sm:$0x11]   ;;  %v2999_v6 = vld [vmem:[#allocation2 + $0x1f4] sm:$0xe] }
 0x43d   : > { %7546 = vrot.lane.b32.xlu0 %v7269_v43, %s11602_s17  ;;  %v8750_v34 = vsel %vm8744_vm3, %v8621_v58, %v7463_v9  ;;  %v10475_v50 = vcombine.low %v2908_v2, %v15133_v26  ;;  %v8365_v20 = vsel %vm8357_vm15, %v8236_v13, %v14358_v55  ;;  %v8816_v11 = vsel %vm8744_vm3, %v8687_v59, %v7529_v41  ;;  %v17536_v37 = vld [vmem:[#allocation73_spill] sm:$0xff] }
 0x43e   : > { %v7465_v62 = vpop.permute.xlu1 %7464  ;;  %v8494_v57 = vsel %vm8486_vm0, %v8365_v20, %v14666_v5  ;;  %v7714_v55 = vsel %vm4289_vm9, %v7712_v3, %v7713_v22  ;;  %v10443_v51 = vcombine.low %v2844_v60, %v15153_v35  ;;  %v7716_v19 = vsel %vm4289_vm9, %v7713_v22, %v7715_v7  ;;  %v11488_v3 = vld [vmem:[#allocation2 + $0x30] sm:$0xff]   ;;  %v17538_v22 = vld [vmem:[#allocation40_spill] sm:$0xff] }
 0x43f   : > { %v7911_v31 = vpop.permute.xlu0 %7910  ;;  %v8623_v46 = vsel %vm8615_vm1, %v8494_v57, %v15078_v10  ;;  %v7281_v25 = vshll.u32 %v10475_v50, 16  ;;  %v7279_v45 = vshrl.u32 %v10475_v50, 16  ;;  %v7286_v36 = vshll.u32 %v15173_v32, 16  ;;  %v11489_v57 = vld [vmem:[#allocation2 + $0x170] sm:$0xff]  }
 0x440   : > { %v8943_v38 = vsel %vm8873_vm4, %v8814_v29, %v7911_v31  ;;  %7482 = vrot.lane.b32.xlu1 %v6949_v24, %s11602_s17  ;;  %v8752_v5 = vsel %vm8744_vm3, %v8623_v46, %v7465_v62  ;;  %v6961_v1 = vshll.u32 %v10443_v51, 16  ;;  %v6959_v53 = vshrl.u32 %v10443_v51, 16  ;;  %v17535_v29 = vld [vmem:[#allocation7_spill] sm:$0xff] }
 0x441   : > { %7548 = vrot.lane.b32.xlu0 %v7277_v18, %s11602_s17  ;;  %10897 = vmatprep.mubr.msk.bf16.mxu1 %vm9024_vm5, %v8943_v38  ;;  %v7283_v15 = vrot.slane %v7281_v25, 1  ;;  %v7288_v23 = vrot.slane %v7286_v36, 1  ;;  %v7290_v13 = vshrl.u32 %v15173_v32, 16  ;;  %v7294_v48 = vshll.u32 %v15187_v17, 16  ;;  %v17537_v38 = vld [vmem:[#allocation24_spill] sm:$0xff] }
 0x442   : > { %v7847_v43 = vpop.permute.xlu1 %7846  ;;  %v6963_v0 = vrot.slane %v6961_v1, 1  ;;  %v7980_v31 = vsel %vm7970_vm12, %v17535_v29, %v17534_v28  ;;  %v6970_v54 = vshrl.u32 %v15182_v56, 16  ;;  %v6974_v58 = vshll.u32 %v15192_v44, 16  ;;  %v17543_v1 = vld [vmem:[#allocation140_spill] sm:$0xff]  ;;  %v2912_v29 = vld [vmem:[#allocation2 + $0x208] sm:$0xf] }
 0x443   : > { %v7913_v42 = vpop.permute.xlu0 %7912  ;;  %v8879_v16 = vsel %vm8873_vm4, %v8750_v34, %v7847_v43  ;;  %v7284_v18 = vor.u32 %v7283_v15, %v7279_v45  ;;  %v7982_v59 = vsel %vm7970_vm12, %v11488_v3, %v17538_v22  ;;  %v17539_v34 = vld [vmem:[#allocation137_spill] sm:$0xff]  ;;  %v7798_v25 = vrot.slane %v15173_v32, 1  ;;  %v2848_v3 = vld [vmem:[#allocation2 + $0xc8] sm:$0xf]  ;;  %v15271_v22 = vld [vmem:[#allocation2 + $0xcc] sm:$0xf] }
 0x444   : > { %v8945_v9 = vsel %vm8873_vm4, %v8816_v11, %v7913_v42  ;;  %7484 = vrot.lane.b32.xlu1 %v6957_v33, %s11602_s17  ;;  %10833 = vmatprep.mubr.msk.bf16.mxu0 %vm9024_vm5, %v8879_v16  ;;  %v10548_v33 = vcombine.low %v2999_v6, %v15133_v26  ;;  %v6964_v49 = vor.u32 %v6963_v0, %v6959_v53  ;;  %v7296_v42 = vrot.slane %v7294_v48, 1  ;;  %v2983_v16 = vld [vmem:[#allocation2 + $0xb4] sm:$0xe]  ;;  %v17544_v53 = vld [vmem:[#allocation189_spill] sm:$0xff] }
 0x445   : > { %7930 = vrot.lane.b32.xlu0 %v7794_v61, %s11603_s19  ;;  %10898 = vmatmul.mubr.msk.bf16.gmra.mrb[4].mxu1 %vm9024_vm5, %v8945_v9  ;;  %v8044_v61 = vsel %vm7970_vm12, %v17537_v38, %v17536_v37  ;;  %v7289_v20 = vsel %vm3424_vm2, %v7284_v18, %v7288_v23  ;;  %v7292_v11 = vor.u32 %v7290_v13, %v7288_v23  ;;  %v17540_v9 = vld [vmem:[#allocation76_spill] sm:$0xff]  ;;  %v17545_v23 = vld [vmem:[#allocation194_spill] sm:$0xff] }
 0x446   : > { %v7849_v8 = vpop.permute.xlu1 %7848  ;;  %v8173_v43 = vsel %vm8099_vm13, %v8044_v61, %v17539_v34  ;;  %v8046_v46 = vsel %vm7970_vm12, %v11489_v57, %v17540_v9  ;;  %v15291_v57 = vld [vmem:[#allocation2 + $0x210] sm:$0xff]  }
 0x447   : > { %v15175_v41 = vpop.permute.xlu0 %6666  ;;  %v8881_v10 = vsel %vm8873_vm4, %v8752_v5, %v7849_v8  ;;  %v8302_v60 = vsel %vm8228_vm14, %v8173_v43, %v14140_v40  ;;  %v8175_v45 = vsel %vm8099_vm13, %v8046_v46, %v17543_v1  ;;  %v7297_v18 = vsel %vm3424_vm2, %v7292_v11, %v7296_v42 }
 0x448   : > { %7866 = vrot.lane.b32.xlu1 %v7714_v55, %s11603_s19  ;;  %10834 = vmatmul.mubr.msk.bf16.gmra.mrb[4].mxu0 %vm9024_vm5, %v8881_v10  ;;  %v17541_v55 = vld [vmem:[#allocation105_spill] sm:$0xff]  ;;  %v8431_v8 = vsel %vm8357_vm15, %v8302_v60, %v14486_v39  ;;  %v10532_v39 = vcombine.low %v2983_v16, %v15153_v35 }
 0x449   : > { %7932 = vrot.lane.b32.xlu0 %v7796_v21, %s11603_s19  ;;  %v8109_v7 = vsel %vm8099_vm13, %v7980_v31, %v17541_v55  ;;  %v7797_v21 = vrot.slane %v10548_v33, 1  ;;  %v8560_v15 = vsel %vm8486_vm0, %v8431_v8, %v14831_v4  ;;  %v15300_v55 = vld [vmem:[#allocation2 + $0xd0] sm:$0xff]  }
 0x44a   : > { %v15184_v14 = vpop.permute.xlu1 %6602  ;;  %v8238_v0 = vsel %vm8228_vm14, %v8109_v7, %v17544_v53  ;;  %v7717_v38 = vrot.slane %v10532_v39, 1 }
 0x44b   : > { %v15189_v24 = vpop.permute.xlu0 %6668  ;;  %v8367_v13 = vsel %vm8357_vm15, %v8238_v0, %v14353_v47  ;;  %v7799_v37 = vsel %vm4289_vm9, %v7797_v21, %v7798_v25  ;;  %v15305_v21 = vld [vmem:[#allocation2 + $0x218] ss:$0 sps:$4 sm:$0x11]   ;;  %v7310_v0 = vshrl.u32 %v15291_v57, 16 }
 0x44c   : > { %7868 = vrot.lane.b32.xlu1 %v7716_v19, %s11603_s19  ;;  %v6976_v19 = vrot.slane %v6974_v58, 1  ;;  %v7800_v58 = vrot.slane %v15187_v17, 1 }
 0x44d   : > { %6686 = vrot.lane.b32.xlu0 %v10475_v50, %s11600_s9  ;;  %v6968_v50 = vrot.slane %v6966_v63, 1  ;;  %v8689_v63 = vsel %vm8615_vm1, %v8560_v15, %v15175_v41  ;;  %v8496_v41 = vsel %vm8486_vm0, %v8367_v13, %v14658_v52  ;;  %v7718_v52 = vrot.slane %v15182_v56, 1  ;;  %v3000_v15 = vld [vmem:[#allocation2 + $0x208] sm:$0xe]  ;;  %v17551_v13 = vld [vmem:[#allocation25_spill] sm:$0xff] }
 0x44e   : > { %v15196_v62 = vpop.permute.xlu1 %6604  ;;  %v7801_v16 = vsel %vm4289_vm9, %v7798_v25, %v7800_v58 }
 0x44f   : > { %v7531_v2 = vpop.permute.xlu0 %7530  ;;  %v6972_v10 = vor.u32 %v6970_v54, %v6968_v50  ;;  %v6969_v36 = vsel %vm3424_vm2, %v6964_v49, %v6968_v50  ;;  %v17547_v49 = vld [vmem:[#allocation279_spill] sm:$0xff]  ;;  %v7719_v60 = vsel %vm4289_vm9, %v7717_v38, %v7718_v52 }
 0x450   : > { %6622 = vrot.lane.b32.xlu1 %v10443_v51, %s11600_s9  ;;  %v17542_v51 = vld [vmem:[#allocation108_spill] sm:$0xff]  ;;  %v8818_v48 = vsel %vm8744_vm3, %v8689_v63, %v7531_v2  ;;  %v8625_v2 = vsel %vm8615_vm1, %v8496_v41, %v15184_v14  ;;  %v17546_v14 = vld [vmem:[#allocation225_spill] sm:$0xff]  ;;  %v17548_v63 = vld [vmem:[#allocation39_spill] sm:$0xff] }
 0x451   : > { %6688 = vrot.lane.b32.xlu0 %v15173_v32, %s11600_s9  ;;  %v8111_v5 = vsel %vm8099_vm13, %v7982_v59, %v17542_v51  ;;  %v8304_v32 = vsel %vm8228_vm14, %v8175_v45, %v14166_v27  ;;  %v15251_v27 = vld [vmem:[#allocation2 + $0x20c] sm:$0xf]  ;;  %v6977_v47 = vsel %vm3424_vm2, %v6972_v10, %v6976_v19  ;;  %v15310_v10 = vld [vmem:[#allocation2 + $0xd8] ss:$0 sps:$4 sm:$0x11]   ;;  %v6986_v45 = vshll.u32 %v15300_v55, 16 }
 0x452   : > { %v7467_v26 = vpop.permute.xlu1 %7466  ;;  %v8240_v4 = vsel %vm8228_vm14, %v8111_v5, %v17545_v23  ;;  %v8433_v35 = vsel %vm8357_vm15, %v8304_v32, %v14501_v12  ;;  %v7314_v32 = vshll.u32 %v15305_v21, 16  ;;  %v11490_v41 = vld [vmem:[#allocation2 + $0x44] sm:$0xff]  }
 0x453   : > { %v7533_v40 = vpop.permute.xlu0 %7532  ;;  %v8562_v12 = vsel %vm8486_vm0, %v8433_v35, %v14848_v30  ;;  %v8754_v33 = vsel %vm8744_vm3, %v8625_v2, %v7467_v26  ;;  %v10477_v30 = vcombine.low %v2912_v29, %v15251_v27  ;;  %v8369_v59 = vsel %vm8357_vm15, %v8240_v4, %v17546_v14  ;;  %v17550_v4 = vld [vmem:[#allocation75_spill] sm:$0xff]  ;;  %v17555_v14 = vld [vmem:[#allocation78_spill] sm:$0xff] }
 0x454   : > { %6624 = vrot.lane.b32.xlu1 %v15182_v56, %s11600_s9  ;;  %v8691_v61 = vsel %vm8615_vm1, %v8562_v12, %v15189_v24  ;;  %v8498_v24 = vsel %vm8486_vm0, %v8369_v59, %v17547_v49  ;;  %v7720_v26 = vrot.slane %v15192_v44, 1  ;;  %v8048_v35 = vsel %vm7970_vm12, %v17551_v13, %v17550_v4  ;;  %v15369_v4 = vld [vmem:[#allocation2 + $0x220] sm:$0xf]  ;;  %v17566_v13 = vld [vmem:[#allocation278_spill] sm:$0xff] }
 0x455   : > { %7550 = vrot.lane.b32.xlu0 %v7289_v20, %s11602_s17  ;;  %v8820_v34 = vsel %vm8744_vm3, %v8691_v61, %v7533_v40  ;;  %v8627_v17 = vsel %vm8615_vm1, %v8498_v24, %v15196_v62  ;;  %v10445_v20 = vcombine.low %v2848_v3, %v15271_v22  ;;  %v7301_v9 = vshll.u32 %v10477_v30, 16  ;;  %v11491_v3 = vld [vmem:[#allocation2 + $0x184] sm:$0xff]   ;;  %v17558_v24 = vld [vmem:[#allocation251_spill] sm:$0xff] }
 0x456   : > { %v7469_v6 = vpop.permute.xlu1 %7468  ;;  %v7721_v44 = vsel %vm4289_vm9, %v7718_v52, %v7720_v26  ;;  %v7299_v5 = vshrl.u32 %v10477_v30, 16  ;;  %v7306_v40 = vshll.u32 %v15291_v57, 16  ;;  %v6994_v29 = vshll.u32 %v15310_v10, 16  ;;  %v17554_v52 = vld [vmem:[#allocation220_spill] sm:$0xff] }
 0x457   : > { %v7915_v28 = vpop.permute.xlu0 %7914  ;;  %v8756_v11 = vsel %vm8744_vm3, %v8627_v17, %v7469_v6  ;;  %v6981_v7 = vshll.u32 %v10445_v20, 16  ;;  %v7303_v8 = vrot.slane %v7301_v9, 1  ;;  %v6979_v19 = vshrl.u32 %v10445_v20, 16  ;;  %v17549_v6 = vld [vmem:[#allocation9_spill] sm:$0xff] }
 0x458   : > { %v8947_v31 = vsel %vm8873_vm4, %v8818_v48, %v7915_v28  ;;  %7486 = vrot.lane.b32.xlu1 %v6969_v36, %s11602_s17  ;;  %v7308_v53 = vrot.slane %v7306_v40, 1  ;;  %v10549_v48 = vcombine.low %v3000_v15, %v15251_v27  ;;  %v6990_v28 = vshrl.u32 %v15300_v55, 16  ;;  %v17560_v9 = vld [vmem:[#allocation305_spill] sm:$0xff]  ;;  %v17562_v40 = vld [vmem:[#allocation148_spill] sm:$0xff] }
 0x459   : > { %7552 = vrot.lane.b32.xlu0 %v7297_v18, %s11602_s17  ;;  %10901 = vmatprep.mubr.msk.bf16.mxu1 %vm9024_vm5, %v8947_v31  ;;  %v6983_v1 = vrot.slane %v6981_v7, 1  ;;  %v7304_v39 = vor.u32 %v7303_v8, %v7299_v5  ;;  %v7984_v18 = vsel %vm7970_vm12, %v17549_v6, %v17548_v63  ;;  %v17552_v31 = vld [vmem:[#allocation43_spill] sm:$0xff]  ;;  %v6988_v38 = vrot.slane %v6986_v45, 1  ;;  %v17561_v5 = vld [vmem:[#allocation192_spill] sm:$0xff] }
 0x45a   : > { %v7851_v54 = vpop.permute.xlu1 %7850  ;;  %v7316_v58 = vrot.slane %v7314_v32, 1  ;;  %v8050_v59 = vsel %vm7970_vm12, %v11491_v3, %v17555_v14  ;;  %v7803_v26 = vrot.slane %v15291_v57, 1  ;;  %v17563_v15 = vld [vmem:[#allocation196_spill] sm:$0xff]  ;;  %v17565_v32 = vld [vmem:[#allocation253_spill] sm:$0xff] }
 0x45b   : > { %v7917_v43 = vpop.permute.xlu0 %7916  ;;  %v8883_v56 = vsel %vm8873_vm4, %v8754_v33, %v7851_v54  ;;  %v6984_v2 = vor.u32 %v6983_v1, %v6979_v19  ;;  %v7309_v33 = vsel %vm3424_vm2, %v7304_v39, %v7308_v53  ;;  %v7312_v54 = vor.u32 %v7310_v0, %v7308_v53  ;;  %v17564_v53 = vld [vmem:[#allocation224_spill] sm:$0xff]  ;;  %v17569_v3 = vld [vmem:[#allocation281_spill] sm:$0xff] }
 0x45c   : > { %v8949_v50 = vsel %vm8873_vm4, %v8820_v34, %v7917_v43  ;;  %7488 = vrot.lane.b32.xlu1 %v6977_v47, %s11602_s17  ;;  %10837 = vmatprep.mubr.msk.bf16.mxu0 %vm9024_vm5, %v8883_v56  ;;  %v17553_v47 = vld [vmem:[#allocation139_spill] sm:$0xff]  ;;  %v17557_v56 = vld [vmem:[#allocation110_spill] sm:$0xff] }
 0x45d   : > { %7934 = vrot.lane.b32.xlu0 %v7799_v37, %s11603_s19  ;;  %10902 = vmatmul.mubr.msk.bf16.gmra.mrb[8].mxu1 %vm9024_vm5, %v8949_v50  ;;  %v7986_v37 = vsel %vm7970_vm12, %v11490_v41, %v17552_v31  ;;  %v8177_v12 = vsel %vm8099_vm13, %v8048_v35, %v17553_v47  ;;  %v17556_v34 = vld [vmem:[#allocation107_spill] sm:$0xff]  ;;  %v7317_v45 = vsel %vm3424_vm2, %v7312_v54, %v7316_v58  ;;  %v2852_v47 = vld [vmem:[#allocation2 + $0xdc] sm:$0xf] }
 0x45e   : > { %v7853_v42 = vpop.permute.xlu1 %7852  ;;  %v8306_v61 = vsel %vm8228_vm14, %v8177_v12, %v17554_v52  ;;  %v8113_v43 = vsel %vm8099_vm13, %v7984_v18, %v17556_v34  ;;  %v8115_v49 = vsel %vm8099_vm13, %v7986_v37, %v17557_v56  ;;  %v2916_v18 = vld [vmem:[#allocation2 + $0x21c] sm:$0xf]  ;;  %v7723_v37 = vrot.slane %v15300_v55, 1  ;;  %v15384_v12 = vld [vmem:[#allocation2 + $0xe0] sm:$0xf] }
 0x45f   : > { %v15293_v46 = vpop.permute.xlu0 %6670  ;;  %v8885_v62 = vsel %vm8873_vm4, %v8756_v11, %v7853_v42  ;;  %v8435_v50 = vsel %vm8357_vm15, %v8306_v61, %v17558_v24  ;;  %v6996_v11 = vrot.slane %v6994_v29, 1  ;;  %v17559_v42 = vld [vmem:[#allocation142_spill] sm:$0xff]  ;;  %v8242_v8 = vsel %vm8228_vm14, %v8113_v43, %v17561_v5  ;;  %v17567_v29 = vld [vmem:[#allocation307_spill] sm:$0xff] }
 0x460   : > { %7870 = vrot.lane.b32.xlu1 %v7719_v60, %s11603_s19  ;;  %10838 = vmatmul.mubr.msk.bf16.gmra.mrb[8].mxu0 %vm9024_vm5, %v8885_v62  ;;  %v7802_v60 = vrot.slane %v10549_v48, 1  ;;  %v8564_v62 = vsel %vm8486_vm0, %v8435_v50, %v17560_v9  ;;  %v8244_v39 = vsel %vm8228_vm14, %v8115_v49, %v17563_v15  ;;  %v8371_v0 = vsel %vm8357_vm15, %v8242_v8, %v17564_v53  ;;  %v15409_v24 = vld [vmem:[#allocation2 + $0x224] sm:$0xff]   ;;  %v15423_v9 = vld [vmem:[#allocation2 + $0x22c] ss:$0 sps:$4 sm:$0x11]  }
 0x461   : > { %7936 = vrot.lane.b32.xlu0 %v7801_v16, %s11603_s19  ;;  %v8179_v16 = vsel %vm8099_vm13, %v8050_v59, %v17559_v42  ;;  %v8693_v19 = vsel %vm8615_vm1, %v8564_v62, %v15293_v46  ;;  %v8500_v46 = vsel %vm8486_vm0, %v8371_v0, %v17566_v13  ;;  %v7805_v61 = vrot.slane %v15305_v21, 1  ;;  %v3001_v8 = vld [vmem:[#allocation2 + $0x21c] sm:$0xe]  ;;  %v17571_v53 = vld [vmem:[#allocation26_spill] sm:$0xff]  ;;  %v17574_v13 = vld [vmem:[#allocation45_spill] sm:$0xff] }
 0x462   : > { %v15302_v51 = vpop.permute.xlu1 %6606  ;;  %v7804_v48 = vsel %vm4289_vm9, %v7802_v60, %v7803_v26  ;;  %v10447_v21 = vcombine.low %v2852_v47, %v15384_v12  ;;  %v7725_v34 = vrot.slane %v15310_v10, 1  ;;  %v7334_v15 = vshll.u32 %v15423_v9, 16 }
 0x463   : > { %v15307_v25 = vpop.permute.xlu0 %6672  ;;  %v7806_v49 = vsel %vm4289_vm9, %v7803_v26, %v7805_v61 }
 0x464   : > { %7872 = vrot.lane.b32.xlu1 %v7721_v44, %s11603_s19  ;;  %v6989_v44 = vsel %vm3424_vm2, %v6984_v2, %v6988_v38  ;;  %v7001_v60 = vshll.u32 %v10447_v21, 16  ;;  %v7726_v10 = vsel %vm4289_vm9, %v7723_v37, %v7725_v34  ;;  %v7336_v61 = vrot.slane %v7334_v15, 1  ;;  %v17582_v34 = vld [vmem:[#allocation306_spill] sm:$0xff]  ;;  %v17587_v15 = vld [vmem:[#allocation255_spill] sm:$0xff] }
 0x465   : > { %6690 = vrot.lane.b32.xlu0 %v10477_v30, %s11600_s9  ;;  %v2984_v30 = vld [vmem:[#allocation2 + $0xc8] sm:$0xe] }
 0x466   : > { %v15314_v36 = vpop.permute.xlu1 %6608  ;;  %v10533_v7 = vcombine.low %v2984_v30, %v15271_v22 }
 0x467   : > { %v7535_v23 = vpop.permute.xlu0 %7534 }
 0x468   : > { %6626 = vrot.lane.b32.xlu1 %v10445_v20, %s11600_s9  ;;  %v6992_v20 = vor.u32 %v6990_v28, %v6988_v38  ;;  %v8822_v63 = vsel %vm8744_vm3, %v8693_v19, %v7535_v23  ;;  %v8629_v23 = vsel %vm8615_vm1, %v8500_v46, %v15302_v51  ;;  %v7722_v31 = vrot.slane %v10533_v7, 1 }
 0x469   : > { %6692 = vrot.lane.b32.xlu0 %v15291_v57, %s11600_s9  ;;  %v8308_v57 = vsel %vm8228_vm14, %v8179_v16, %v17562_v40  ;;  %v10479_v51 = vcombine.low %v2916_v18, %v15369_v4  ;;  %v7326_v16 = vshll.u32 %v15409_v24, 16  ;;  %v7003_v7 = vrot.slane %v7001_v60, 1  ;;  %v15430_v40 = vld [vmem:[#allocation2 + $0xec] ss:$0 sps:$4 sm:$0x11]   ;;  %v11492_v18 = vld [vmem:[#allocation2 + $0x58] sm:$0xff]  }
 0x46a   : > { %v7471_v27 = vpop.permute.xlu1 %7470  ;;  %v8437_v22 = vsel %vm8357_vm15, %v8308_v57, %v17565_v32  ;;  %v6997_v28 = vsel %vm3424_vm2, %v6992_v20, %v6996_v11  ;;  %v7724_v59 = vsel %vm4289_vm9, %v7722_v31, %v7723_v37  ;;  %v15418_v20 = vld [vmem:[#allocation2 + $0xe4] sm:$0xff]   ;;  %v7990_v46 = vsel %vm7970_vm12, %v11492_v18, %v17574_v13 }
 0x46b   : > { %v7537_v17 = vpop.permute.xlu0 %7536  ;;  %v8566_v41 = vsel %vm8486_vm0, %v8437_v22, %v17567_v29  ;;  %v8758_v38 = vsel %vm8744_vm3, %v8629_v23, %v7471_v27  ;;  %v7321_v50 = vshll.u32 %v10479_v51, 16  ;;  %v7319_v26 = vshrl.u32 %v10479_v51, 16  ;;  %v17572_v22 = vld [vmem:[#allocation41_spill] sm:$0xff] }
 0x46c   : > { %6628 = vrot.lane.b32.xlu1 %v15300_v55, %s11600_s9  ;;  %v8695_v2 = vsel %vm8615_vm1, %v8566_v41, %v15307_v25  ;;  %v7006_v5 = vshll.u32 %v15418_v20, 16  ;;  %v7010_v23 = vshrl.u32 %v15418_v20, 16  ;;  %v7014_v31 = vshll.u32 %v15430_v40, 16  ;;  %v17576_v37 = vld [vmem:[#allocation221_spill] sm:$0xff] }
 0x46d   : > { %7554 = vrot.lane.b32.xlu0 %v7309_v33, %s11602_s17  ;;  %v17568_v33 = vld [vmem:[#allocation227_spill] sm:$0xff]  ;;  %v8824_v58 = vsel %vm8744_vm3, %v8695_v2, %v7537_v17  ;;  %v7323_v42 = vrot.slane %v7321_v50, 1 }
 0x46e   : > { %v7473_v1 = vpop.permute.xlu1 %7472  ;;  %v8373_v54 = vsel %vm8357_vm15, %v8244_v39, %v17568_v33  ;;  %v17570_v39 = vld [vmem:[#allocation77_spill] sm:$0xff]  ;;  %v7008_v41 = vrot.slane %v7006_v5, 1  ;;  %v11493_v33 = vld [vmem:[#allocation2 + $0x198] sm:$0xff]   ;;  %v7016_v60 = vrot.slane %v7014_v31, 1 }
 0x46f   : > { %v7919_v6 = vpop.permute.xlu0 %7918  ;;  %v8502_v14 = vsel %vm8486_vm0, %v8373_v54, %v17569_v3  ;;  %v7324_v19 = vor.u32 %v7323_v42, %v7319_v26  ;;  %v8052_v0 = vsel %vm7970_vm12, %v17571_v53, %v17570_v39  ;;  %v17583_v26 = vld [vmem:[#allocation195_spill] sm:$0xff] }
 0x470   : > { %v8951_v35 = vsel %vm8873_vm4, %v8822_v63, %v7919_v6  ;;  %7490 = vrot.lane.b32.xlu1 %v6989_v44, %s11602_s17  ;;  %v8631_v27 = vsel %vm8615_vm1, %v8502_v14, %v15314_v36  ;;  %v6999_v44 = vshrl.u32 %v10447_v21, 16  ;;  %v17573_v63 = vld [vmem:[#allocation10_spill] sm:$0xff]  ;;  %v17580_v14 = vld [vmem:[#allocation252_spill] sm:$0xff] }
 0x471   : > { %7556 = vrot.lane.b32.xlu0 %v7317_v45, %s11602_s17  ;;  %10905 = vmatprep.mubr.msk.bf16.mxu1 %vm9024_vm5, %v8951_v35  ;;  %v8760_v43 = vsel %vm8744_vm3, %v8631_v27, %v7473_v1  ;;  %v7328_v1 = vrot.slane %v7326_v16, 1  ;;  %v7330_v45 = vshrl.u32 %v15409_v24, 16  ;;  %v7988_v6 = vsel %vm7970_vm12, %v17573_v63, %v17572_v22  ;;  %v17575_v35 = vld [vmem:[#allocation141_spill] sm:$0xff]  ;;  %v17581_v27 = vld [vmem:[#allocation144_spill] sm:$0xff]  ;;  %v17584_v16 = vld [vmem:[#allocation223_spill] sm:$0xff] }
 0x472   : > { %v7855_v52 = vpop.permute.xlu1 %7854  ;;  %v7004_v29 = vor.u32 %v7003_v7, %v6999_v44  ;;  %v15487_v22 = vld [vmem:[#allocation2 + $0x234] sm:$0xf]  ;;  %v17588_v63 = vld [vmem:[#allocation280_spill] sm:$0xff] }
 0x473   : > { %v7921_v30 = vpop.permute.xlu0 %7920  ;;  %v8887_v55 = vsel %vm8873_vm4, %v8758_v38, %v7855_v52  ;;  %v7329_v38 = vsel %vm3424_vm2, %v7324_v19, %v7328_v1  ;;  %v7332_v52 = vor.u32 %v7330_v45, %v7328_v1  ;;  %v17586_v1 = vld [vmem:[#allocation226_spill] sm:$0xff] }
 0x474   : > { %v8953_v25 = vsel %vm8873_vm4, %v8824_v58, %v7921_v30  ;;  %7492 = vrot.lane.b32.xlu1 %v6997_v28, %s11602_s17  ;;  %10841 = vmatprep.mubr.msk.bf16.mxu0 %vm9024_vm5, %v8887_v55  ;;  %v10550_v28 = vcombine.low %v3001_v8, %v15369_v4  ;;  %v17577_v4 = vld [vmem:[#allocation80_spill] sm:$0xff]  ;;  %v17578_v58 = vld [vmem:[#allocation109_spill] sm:$0xff]  ;;  %v7009_v50 = vsel %vm3424_vm2, %v7004_v29, %v7008_v41  ;;  %v17585_v8 = vld [vmem:[#allocation198_spill] sm:$0xff] }
 0x475   : > { %7938 = vrot.lane.b32.xlu0 %v7804_v48, %s11603_s19  ;;  %10906 = vmatmul.mubr.msk.bf16.gmra.mrb[12].mxu1 %vm9024_vm5, %v8953_v25  ;;  %v8181_v48 = vsel %vm8099_vm13, %v8052_v0, %v17575_v35  ;;  %v8054_v54 = vsel %vm7970_vm12, %v11493_v33, %v17577_v4  ;;  %v8117_v30 = vsel %vm8099_vm13, %v7988_v6, %v17578_v58  ;;  %v17579_v55 = vld [vmem:[#allocation112_spill] sm:$0xff]  ;;  %v2920_v0 = vld [vmem:[#allocation2 + $0x230] sm:$0xf]  ;;  %v17589_v6 = vld [vmem:[#allocation309_spill] sm:$0xff]  ;;  %v7730_v58 = vrot.slane %v15430_v40, 1 }
 0x476   : > { %v7857_v56 = vpop.permute.xlu1 %7856  ;;  %v8310_v47 = vsel %vm8228_vm14, %v8181_v48, %v17576_v37  ;;  %v8119_v3 = vsel %vm8099_vm13, %v7990_v46, %v17579_v55  ;;  %v8246_v42 = vsel %vm8228_vm14, %v8117_v30, %v17583_v26  ;;  %v2856_v29 = vld [vmem:[#allocation2 + $0xf0] sm:$0xf] }
 0x477   : > { %v15411_v17 = vpop.permute.xlu0 %6674  ;;  %v8889_v36 = vsel %vm8873_vm4, %v8760_v43, %v7857_v56  ;;  %v8439_v25 = vsel %vm8357_vm15, %v8310_v47, %v17580_v14  ;;  %v7807_v56 = vrot.slane %v10550_v28, 1  ;;  %v8248_v19 = vsel %vm8228_vm14, %v8119_v3, %v17585_v8  ;;  %v17591_v33 = vld [vmem:[#allocation283_spill] sm:$0xff]  ;;  %v15527_v14 = vld [vmem:[#allocation2 + $0x238] sm:$0xff]  }
 0x478   : > { %7874 = vrot.lane.b32.xlu1 %v7724_v59, %s11603_s19  ;;  %10842 = vmatmul.mubr.msk.bf16.gmra.mrb[12].mxu0 %vm9024_vm5, %v8889_v36  ;;  %v8183_v59 = vsel %vm8099_vm13, %v8054_v54, %v17581_v27  ;;  %v8568_v43 = vsel %vm8486_vm0, %v8439_v25, %v17582_v34  ;;  %v7012_v36 = vor.u32 %v7010_v23, %v7008_v41  ;;  %v7728_v28 = vrot.slane %v15418_v20, 1  ;;  %v15502_v41 = vld [vmem:[#allocation2 + $0xf4] sm:$0xf] }
 0x479   : > { %7940 = vrot.lane.b32.xlu0 %v7806_v49, %s11603_s19  ;;  %v7808_v49 = vrot.slane %v15409_v24, 1  ;;  %v8312_v44 = vsel %vm8228_vm14, %v8183_v59, %v17584_v16  ;;  %v8697_v7 = vsel %vm8615_vm1, %v8568_v43, %v15411_v17  ;;  %v8375_v45 = vsel %vm8357_vm15, %v8246_v42, %v17586_v1  ;;  %v15536_v59 = vld [vmem:[#allocation2 + $0xf8] sm:$0xff]   ;;  %v3002_v42 = vld [vmem:[#allocation2 + $0x230] sm:$0xe] }
 0x47a   : > { %v15420_v11 = vpop.permute.xlu1 %6610  ;;  %v8504_v17 = vsel %vm8486_vm0, %v8375_v45, %v17588_v63  ;;  %v10481_v47 = vcombine.low %v2920_v0, %v15487_v22  ;;  %v7731_v40 = vsel %vm4289_vm9, %v7728_v28, %v7730_v58  ;;  %v7026_v26 = vshll.u32 %v15536_v59, 16  ;;  %v15548_v16 = vld [vmem:[#allocation2 + $0x100] ss:$0 sps:$4 sm:$0x11]   ;;  %v17593_v1 = vld [vmem:[#allocation27_spill] sm:$0xff]  ;;  %v17596_v63 = vld [vmem:[#allocation48_spill] sm:$0xff] }
 0x47b   : > { %v15425_v62 = vpop.permute.xlu0 %6676  ;;  %v7809_v46 = vsel %vm4289_vm9, %v7807_v56, %v7808_v49  ;;  %v8633_v35 = vsel %vm8615_vm1, %v8504_v17, %v15420_v11  ;;  %v7810_v11 = vrot.slane %v15423_v9, 1  ;;  %v10449_v9 = vcombine.low %v2856_v29, %v15502_v41  ;;  %v11494_v0 = vld [vmem:[#allocation2 + $0x6c] sm:$0xff]   ;;  %v17604_v58 = vld [vmem:[#allocation308_spill] sm:$0xff] }
 0x47c   : > { %7876 = vrot.lane.b32.xlu1 %v7726_v10, %s11603_s19  ;;  %v7341_v25 = vshll.u32 %v10481_v47, 16  ;;  %v7339_v43 = vshrl.u32 %v10481_v47, 16  ;;  %v7994_v17 = vsel %vm7970_vm12, %v11494_v0, %v17596_v63 }
 0x47d   : > { %6694 = vrot.lane.b32.xlu0 %v10479_v51, %s11600_s9  ;;  %v2985_v51 = vld [vmem:[#allocation2 + $0xdc] sm:$0xe]  ;;  %v7811_v3 = vsel %vm4289_vm9, %v7808_v49, %v7810_v11  ;;  %v7021_v27 = vshll.u32 %v10449_v9, 16  ;;  %v7346_v49 = vshll.u32 %v15527_v14, 16 }
 0x47e   : > { %v15432_v57 = vpop.permute.xlu1 %6612  ;;  %v10534_v10 = vcombine.low %v2985_v51, %v15384_v12  ;;  %v8441_v12 = vsel %vm8357_vm15, %v8312_v44, %v17587_v15  ;;  %v7343_v56 = vrot.slane %v7341_v25, 1 }
 0x47f   : > { %v7539_v32 = vpop.permute.xlu0 %7538  ;;  %v8570_v18 = vsel %vm8486_vm0, %v8441_v12, %v17589_v6  ;;  %v17594_v12 = vld [vmem:[#allocation44_spill] sm:$0xff]  ;;  %v17597_v6 = vld [vmem:[#allocation143_spill] sm:$0xff] }
 0x480   : > { %6630 = vrot.lane.b32.xlu1 %v10447_v21, %s11600_s9  ;;  %v8826_v39 = vsel %vm8744_vm3, %v8697_v7, %v7539_v32  ;;  %v7017_v32 = vsel %vm3424_vm2, %v7012_v36, %v7016_v60  ;;  %v7727_v48 = vrot.slane %v10534_v10, 1  ;;  %v8699_v23 = vsel %vm8615_vm1, %v8570_v18, %v15425_v62 }
 0x481   : > { %6696 = vrot.lane.b32.xlu0 %v15409_v24, %s11600_s9  ;;  %v7337_v24 = vsel %vm3424_vm2, %v7332_v52, %v7336_v61  ;;  %v7019_v60 = vshrl.u32 %v10449_v9, 16  ;;  %v7023_v10 = vrot.slane %v7021_v27, 1  ;;  %v7344_v7 = vor.u32 %v7343_v56, %v7339_v43  ;;  %v17605_v43 = vld [vmem:[#allocation197_spill] sm:$0xff] }
 0x482   : > { %v7475_v2 = vpop.permute.xlu1 %7474  ;;  %v7729_v54 = vsel %vm4289_vm9, %v7727_v48, %v7728_v28  ;;  %v7034_v48 = vshll.u32 %v15548_v16, 16  ;;  %v17598_v28 = vld [vmem:[#allocation222_spill] sm:$0xff] }
 0x483   : > { %v7541_v21 = vpop.permute.xlu0 %7540  ;;  %v8762_v31 = vsel %vm8744_vm3, %v8633_v35, %v7475_v2  ;;  %v7028_v35 = vrot.slane %v7026_v26, 1 }
 0x484   : > { %6632 = vrot.lane.b32.xlu1 %v15418_v20, %s11600_s9  ;;  %v8828_v61 = vsel %vm8744_vm3, %v8699_v23, %v7541_v21  ;;  %v7036_v27 = vrot.slane %v7034_v48, 1 }
 0x485   : > { %7558 = vrot.lane.b32.xlu0 %v7329_v38, %s11602_s17  ;;  %v17590_v38 = vld [vmem:[#allocation229_spill] sm:$0xff] }
 0x486   : > { %v7477_v5 = vpop.permute.xlu1 %7476  ;;  %v8377_v52 = vsel %vm8357_vm15, %v8248_v19, %v17590_v38  ;;  %v17592_v19 = vld [vmem:[#allocation79_spill] sm:$0xff] }
 0x487   : > { %v7923_v53 = vpop.permute.xlu0 %7922  ;;  %v8506_v4 = vsel %vm8486_vm0, %v8377_v52, %v17591_v33  ;;  %v8056_v45 = vsel %vm7970_vm12, %v17593_v1, %v17592_v19  ;;  %v11495_v38 = vld [vmem:[#allocation2 + $0x1ac] sm:$0xff]  }
 0x488   : > { %v8955_v13 = vsel %vm8873_vm4, %v8826_v39, %v7923_v53  ;;  %7494 = vrot.lane.b32.xlu1 %v7009_v50, %s11602_s17  ;;  %v8635_v2 = vsel %vm8615_vm1, %v8506_v4, %v15432_v57  ;;  %v15541_v50 = vld [vmem:[#allocation2 + $0x240] ss:$0 sps:$4 sm:$0x11]   ;;  %v17595_v39 = vld [vmem:[#allocation11_spill] sm:$0xff]  ;;  %v8185_v18 = vsel %vm8099_vm13, %v8056_v45, %v17597_v6  ;;  %v17602_v4 = vld [vmem:[#allocation254_spill] sm:$0xff] }
 0x489   : > { %7560 = vrot.lane.b32.xlu0 %v7337_v24, %s11602_s17  ;;  %10909 = vmatprep.mubr.msk.bf16.mxu1 %vm9024_vm5, %v8955_v13  ;;  %v8764_v30 = vsel %vm8744_vm3, %v8635_v2, %v7477_v5  ;;  %v7348_v5 = vrot.slane %v7346_v49, 1  ;;  %v7350_v24 = vshrl.u32 %v15527_v14, 16  ;;  %v7354_v8 = vshll.u32 %v15541_v50, 16  ;;  %v17603_v2 = vld [vmem:[#allocation146_spill] sm:$0xff]  ;;  %v17606_v49 = vld [vmem:[#allocation151_spill] sm:$0xff] }
 0x48a   : > { %v7859_v37 = vpop.permute.xlu1 %7858  ;;  %v7992_v53 = vsel %vm7970_vm12, %v17595_v39, %v17594_v12  ;;  %v10551_v13 = vcombine.low %v3002_v42, %v15487_v22  ;;  %v8314_v29 = vsel %vm8228_vm14, %v8185_v18, %v17598_v28  ;;  %v17599_v22 = vld [vmem:[#allocation82_spill] sm:$0xff]  ;;  %v17607_v42 = vld [vmem:[#allocation200_spill] sm:$0xff]  ;;  %v2860_v45 = vld [vmem:[#allocation2 + $0x104] sm:$0xf]  ;;  %v7815_v48 = vrot.slane %v15541_v50, 1 }
 0x48b   : > { %v7925_v51 = vpop.permute.xlu0 %7924  ;;  %v8891_v20 = vsel %vm8873_vm4, %v8762_v31, %v7859_v37  ;;  %v7349_v31 = vsel %vm3424_vm2, %v7344_v7, %v7348_v5  ;;  %v7352_v37 = vor.u32 %v7350_v24, %v7348_v5  ;;  %v7356_v11 = vrot.slane %v7354_v8, 1  ;;  %v17608_v5 = vld [vmem:[#allocation228_spill] sm:$0xff]  ;;  %v17609_v8 = vld [vmem:[#allocation257_spill] sm:$0xff]  ;;  %v15605_v12 = vld [vmem:[#allocation2 + $0x108] sm:$0xf] }
 0x48c   : > { %v8957_v62 = vsel %vm8873_vm4, %v8828_v61, %v7925_v51  ;;  %7496 = vrot.lane.b32.xlu1 %v7017_v32, %s11602_s17  ;;  %10845 = vmatprep.mubr.msk.bf16.mxu0 %vm9024_vm5, %v8891_v20  ;;  %v7030_v32 = vshrl.u32 %v15536_v59, 16  ;;  %v8058_v52 = vsel %vm7970_vm12, %v11495_v38, %v17599_v22  ;;  %v17600_v61 = vld [vmem:[#allocation111_spill] sm:$0xff]  ;;  %v17601_v20 = vld [vmem:[#allocation114_spill] sm:$0xff]  ;;  %v10451_v28 = vcombine.low %v2860_v45, %v15605_v12  ;;  %v2924_v22 = vld [vmem:[#allocation2 + $0x244] sm:$0xf] }
 0x48d   : > { %7942 = vrot.lane.b32.xlu0 %v7809_v46, %s11603_s19  ;;  %10910 = vmatmul.mubr.msk.bf16.gmra.mrb[16].mxu1 %vm9024_vm5, %v8957_v62  ;;  %v7024_v46 = vor.u32 %v7023_v10, %v7019_v60  ;;  %v8121_v51 = vsel %vm8099_vm13, %v7992_v53, %v17600_v61  ;;  %v8123_v33 = vsel %vm8099_vm13, %v7994_v17, %v17601_v20  ;;  %v17610_v39 = vld [vmem:[#allocation282_spill] sm:$0xff]  ;;  %v17611_v53 = vld [vmem:[#allocation311_spill] sm:$0xff]  ;;  %v7735_v38 = vrot.slane %v15548_v16, 1 }
 0x48e   : > { %v7861_v55 = vpop.permute.xlu1 %7860  ;;  %v8443_v62 = vsel %vm8357_vm15, %v8314_v29, %v17602_v4  ;;  %v8250_v56 = vsel %vm8228_vm14, %v8121_v51, %v17605_v43  ;;  %v8252_v7 = vsel %vm8228_vm14, %v8123_v33, %v17607_v42  ;;  %v15644_v33 = vld [vmem:[#allocation2 + $0x10c] sm:$0xff]   ;;  %v7041_v4 = vshll.u32 %v10451_v28, 16 }
 0x48f   : > { %v15529_v21 = vpop.permute.xlu0 %6678  ;;  %v8893_v57 = vsel %vm8873_vm4, %v8764_v30, %v7861_v55  ;;  %v8572_v30 = vsel %vm8486_vm0, %v8443_v62, %v17604_v58  ;;  %v7812_v55 = vrot.slane %v10551_v13, 1  ;;  %v7029_v25 = vsel %vm3424_vm2, %v7024_v46, %v7028_v35  ;;  %v17614_v43 = vld [vmem:[#allocation270_spill] sm:$0xff] }
 0x490   : > { %7878 = vrot.lane.b32.xlu1 %v7729_v54, %s11603_s19  ;;  %10846 = vmatmul.mubr.msk.bf16.gmra.mrb[16].mxu0 %vm9024_vm5, %v8893_v57  ;;  %v8187_v54 = vsel %vm8099_vm13, %v8058_v52, %v17603_v2  ;;  %v7032_v57 = vor.u32 %v7030_v32, %v7028_v35  ;;  %v8701_v10 = vsel %vm8615_vm1, %v8572_v30, %v15529_v21  ;;  %v7733_v13 = vrot.slane %v15536_v59, 1  ;;  %v15640_v52 = vld [vmem:[#allocation2 + $0x248] sm:$0xf]  ;;  %v11496_v2 = vld [vmem:[#allocation2 + $0x240] ss:$0 sps:$4 sm:$0x11]  }
 0x491   : > { %7944 = vrot.lane.b32.xlu0 %v7811_v3, %s11603_s19  ;;  %v7813_v3 = vrot.slane %v15527_v14, 1  ;;  %v8316_v60 = vsel %vm8228_vm14, %v8187_v54, %v17606_v49  ;;  %v8379_v24 = vsel %vm8357_vm15, %v8250_v56, %v17608_v5  ;;  %v10483_v16 = vcombine.low %v2924_v22, %v15640_v52  ;;  %v17617_v5 = vld [vmem:[#allocation12_spill] sm:$0xff] }
 0x492   : > { %v15538_v34 = vpop.permute.xlu1 %6614  ;;  %v8508_v21 = vsel %vm8486_vm0, %v8379_v24, %v17610_v39  ;;  %v6124_v54 = vrot.slane %v11496_v2, 1  ;;  %v7039_v30 = vshrl.u32 %v10451_v28, 16  ;;  %v17615_v56 = vrot.slane %v17614_v43, 1  ;;  %v17630_v2 = vld [vmem:[#allocation230_spill] sm:$0xff] }
 0x493   : > { %v15543_v36 = vpop.permute.xlu0 %6680  ;;  %v7814_v17 = vsel %vm4289_vm9, %v7812_v55, %v7813_v3  ;;  %v8637_v6 = vsel %vm8615_vm1, %v8508_v21, %v15538_v34  ;;  %v17612_v34 = vld [vmem:[#allocation231_spill] sm:$0xff]  ;;  %v7816_v20 = vsel %vm4289_vm9, %v7813_v3, %v7815_v48  ;;  %v7043_v55 = vrot.slane %v7041_v4, 1  ;;  %v17629_v4 = vld [vmem:[#allocation256_spill] sm:$0xff] }
 0x494   : > { %7880 = vrot.lane.b32.xlu1 %v7731_v40, %s11603_s19  ;;  %v8381_v29 = vsel %vm8357_vm15, %v8252_v7, %v17612_v34  ;;  %v7046_v3 = vshll.u32 %v15644_v33, 16  ;;  %v6125_v49 = vsel %vm4289_vm9, %v17615_v56, %v6124_v54  ;;  %v17616_v7 = vld [vmem:[#allocation46_spill] sm:$0xff]  ;;  %v7359_v39 = vshrl.u32 %v10483_v16, 16  ;;  %v15688_v48 = vld [vmem:[#allocation2 + $0x254] ss:$0 sps:$4 sm:$0x11]  }
 0x495   : > { %6698 = vrot.lane.b32.xlu0 %v10481_v47, %s11600_s9  ;;  %v2986_v47 = vld [vmem:[#allocation2 + $0xf0] sm:$0xe]  ;;  %v7996_v24 = vsel %vm7970_vm12, %v17617_v5, %v17616_v7 }
 0x496   : > { %v15550_v44 = vpop.permute.xlu1 %6616  ;;  %v10535_v40 = vcombine.low %v2986_v47, %v15502_v41  ;;  %v8445_v41 = vsel %vm8357_vm15, %v8316_v60, %v17609_v8  ;;  %v17613_v47 = vld [vmem:[#allocation285_spill] sm:$0xff]  ;;  %v17633_v7 = vld [vmem:[#allocation259_spill] sm:$0xff] }
 0x497   : > { %v7543_v15 = vpop.permute.xlu0 %7542  ;;  %v8574_v0 = vsel %vm8486_vm0, %v8445_v41, %v17611_v53  ;;  %v2987_v41 = vld [vmem:[#allocation2 + $0x104] sm:$0xe] }
 0x498   : > { %6634 = vrot.lane.b32.xlu1 %v10449_v9, %s11600_s9  ;;  %v8830_v19 = vsel %vm8744_vm3, %v8701_v10, %v7543_v15  ;;  %v7037_v15 = vsel %vm3424_vm2, %v7032_v57, %v7036_v27  ;;  %v7732_v18 = vrot.slane %v10535_v40, 1  ;;  %v8703_v46 = vsel %vm8615_vm1, %v8574_v0, %v15543_v36  ;;  %v15660_v27 = vld [vmem:[#allocation2 + $0x24c] sm:$0xff]   ;;  %v11497_v0 = vld [vmem:[#allocation2 + $0x80] sm:$0xff]  }
 0x499   : > { %6700 = vrot.lane.b32.xlu0 %v15527_v14, %s11600_s9  ;;  %v7357_v14 = vsel %vm3424_vm2, %v7352_v37, %v7356_v11  ;;  %v7361_v40 = vshll.u32 %v10483_v16, 16  ;;  %v7044_v10 = vor.u32 %v7043_v55, %v7039_v30  ;;  %v7366_v53 = vshll.u32 %v15660_v27, 16  ;;  %v17631_v30 = vld [vmem:[#allocation310_spill] sm:$0xff] }
 0x49a   : > { %v7479_v23 = vpop.permute.xlu1 %7478 }
 0x49b   : > { %v7545_v9 = vpop.permute.xlu0 %7544  ;;  %v8766_v35 = vsel %vm8744_vm3, %v8637_v6, %v7479_v23  ;;  %v7734_v23 = vsel %vm4289_vm9, %v7732_v18, %v7733_v13  ;;  %v7363_v21 = vrot.slane %v7361_v40, 1  ;;  %v11498_v6 = vld [vmem:[#allocation2 + $0x1c0] sm:$0xff]   ;;  %v7374_v40 = vshll.u32 %v15688_v48, 16 }
 0x49c   : > { %6636 = vrot.lane.b32.xlu1 %v15536_v59, %s11600_s9  ;;  %v8510_v59 = vsel %vm8486_vm0, %v8381_v29, %v17613_v47 }
 0x49d   : > { %7562 = vrot.lane.b32.xlu0 %v7349_v31, %s11602_s17  ;;  %v8832_v31 = vsel %vm8744_vm3, %v8703_v46, %v7545_v9  ;;  %v8639_v50 = vsel %vm8615_vm1, %v8510_v59, %v15550_v44  ;;  %v7736_v9 = vsel %vm4289_vm9, %v7733_v13, %v7735_v38  ;;  %v17622_v13 = vld [vmem:[#allocation113_spill] sm:$0xff]  ;;  %v17627_v38 = vld [vmem:[#allocation154_spill] sm:$0xff] }
 0x49e   : > { %v7481_v26 = vpop.permute.xlu1 %7480  ;;  %v8125_v46 = vsel %vm8099_vm13, %v7996_v24, %v17622_v13  ;;  %v17625_v59 = vld [vmem:[#allocation149_spill] sm:$0xff]  ;;  %v17634_v24 = vld [vmem:[#allocation284_spill] sm:$0xff] }
 0x49f   : > { %v7927_v1 = vpop.permute.xlu0 %7926  ;;  %v8768_v61 = vsel %vm8744_vm3, %v8639_v50, %v7481_v26  ;;  %v7048_v26 = vrot.slane %v7046_v3, 1  ;;  %v17626_v50 = vld [vmem:[#allocation199_spill] sm:$0xff]  ;;  %v7370_v3 = vshrl.u32 %v15660_v27, 16 }
 0x4a0   : > { %v8959_v63 = vsel %vm8873_vm4, %v8830_v19, %v7927_v1  ;;  %7498 = vrot.lane.b32.xlu1 %v7029_v25, %s11602_s17  ;;  %v15655_v25 = vld [vmem:[#allocation2 + $0x114] ss:$0 sps:$4 sm:$0x11]   ;;  %v17618_v19 = vld [vmem:[#allocation81_spill] sm:$0xff]  ;;  %v17619_v1 = vld [vmem:[#allocation28_spill] sm:$0xff] }
 0x4a1   : > { %7564 = vrot.lane.b32.xlu0 %v7357_v14, %s11602_s17  ;;  %10913 = vmatprep.mubr.msk.bf16.mxu1 %vm9024_vm5, %v8959_v63  ;;  %v7050_v14 = vshrl.u32 %v15644_v33, 16  ;;  %v7054_v42 = vshll.u32 %v15655_v25, 16  ;;  %v8060_v45 = vsel %vm7970_vm12, %v17619_v1, %v17618_v19  ;;  %v17620_v63 = vld [vmem:[#allocation50_spill] sm:$0xff]  ;;  %v7049_v34 = vsel %vm3424_vm2, %v7044_v10, %v7048_v26 }
 0x4a2   : > { %v7863_v32 = vpop.permute.xlu1 %7862  ;;  %v7738_v10 = vrot.slane %v15644_v33, 1 }
 0x4a3   : > { %v7929_v37 = vpop.permute.xlu0 %7928  ;;  %v8895_v11 = vsel %vm8873_vm4, %v8766_v35, %v7863_v32  ;;  %v17623_v35 = vld [vmem:[#allocation145_spill] sm:$0xff]  ;;  %v7052_v29 = vor.u32 %v7050_v14, %v7048_v26  ;;  %v17632_v14 = vld [vmem:[#allocation202_spill] sm:$0xff] }
 0x4a4   : > { %v8961_v36 = vsel %vm8873_vm4, %v8832_v31, %v7929_v37  ;;  %7500 = vrot.lane.b32.xlu1 %v7037_v15, %s11602_s17  ;;  %10849 = vmatprep.mubr.msk.bf16.mxu0 %vm9024_vm5, %v8895_v11  ;;  %v17621_v15 = vld [vmem:[#allocation84_spill] sm:$0xff]  ;;  %v8189_v32 = vsel %vm8099_vm13, %v8060_v45, %v17623_v35  ;;  %v7056_v31 = vrot.slane %v7054_v42, 1  ;;  %v10536_v37 = vcombine.low %v2987_v41, %v15605_v12  ;;  %v3003_v26 = vld [vmem:[#allocation2 + $0x244] sm:$0xe] }
 0x4a5   : > { %7946 = vrot.lane.b32.xlu0 %v7814_v17, %s11603_s19  ;;  %10914 = vmatmul.mubr.msk.bf16.gmra.mrb[20].mxu1 %vm9024_vm5, %v8961_v36  ;;  %v7998_v17 = vsel %vm7970_vm12, %v11497_v0, %v17620_v63  ;;  %v8062_v18 = vsel %vm7970_vm12, %v11498_v6, %v17621_v15  ;;  %v17624_v11 = vld [vmem:[#allocation116_spill] sm:$0xff]  ;;  %v8318_v22 = vsel %vm8228_vm14, %v8189_v32, %v17627_v38  ;;  %v17635_v45 = vld [vmem:[#allocation313_spill] sm:$0xff]  ;;  %v7376_v63 = vrot.slane %v7374_v40, 1 }
 0x4a6   : > { %v7865_v51 = vpop.permute.xlu1 %7864  ;;  %v8127_v47 = vsel %vm8099_vm13, %v7998_v17, %v17624_v11  ;;  %v8191_v36 = vsel %vm8099_vm13, %v8062_v18, %v17625_v59  ;;  %v7364_v12 = vor.u32 %v7363_v21, %v7359_v39  ;;  %v10552_v17 = vcombine.low %v3003_v26, %v15640_v52  ;;  %v17636_v35 = vld [vmem:[#allocation233_spill] sm:$0xff]  ;;  %v15742_v52 = vld [vmem:[#allocation2 + $0x11c] sm:$0xf] }
 0x4a7   : > { %v6683_v44 = vpop.permute.xlu0 %6682  ;;  %v8897_v62 = vsel %vm8873_vm4, %v8768_v61, %v7865_v51  ;;  %v17628_v51 = vld [vmem:[#allocation158_spill] sm:$0xff]  ;;  %v8256_v42 = vsel %vm8228_vm14, %v8127_v47, %v17632_v14 }
 0x4a8   : > { %7882 = vrot.lane.b32.xlu1 %v7734_v23, %s11603_s19  ;;  %10850 = vmatmul.mubr.msk.bf16.gmra.mrb[20].mxu0 %vm9024_vm5, %v8897_v62  ;;  %v8254_v23 = vsel %vm8228_vm14, %v8125_v46, %v17626_v50  ;;  %v8447_v62 = vsel %vm8357_vm15, %v8318_v22, %v17629_v4  ;;  %v7818_v50 = vrot.slane %v15660_v27, 1 }
 0x4a9   : > { %7948 = vrot.lane.b32.xlu0 %v7816_v20, %s11603_s19  ;;  %v8320_v20 = vsel %vm8228_vm14, %v8191_v36, %v17628_v51  ;;  %v8383_v54 = vsel %vm8357_vm15, %v8254_v23, %v17630_v2  ;;  %v8576_v55 = vsel %vm8486_vm0, %v8447_v62, %v17631_v30  ;;  %v7817_v36 = vrot.slane %v10552_v17, 1  ;;  %v15771_v30 = vld [vmem:[#allocation2 + $0x120] sm:$0xff]  }
 0x4aa   : > { %v15652_v58 = vpop.permute.xlu1 %6618  ;;  %v8705_v43 = vsel %vm8615_vm1, %v8576_v55, %v6683_v44  ;;  %v8449_v5 = vsel %vm8357_vm15, %v8320_v20, %v17633_v7  ;;  %v8512_v41 = vsel %vm8486_vm0, %v8383_v54, %v17634_v24  ;;  %v2811_v44 = vld [vmem:[#allocation2 + $0x244] sm:$0xe]  ;;  %v7820_v62 = vrot.slane %v15688_v48, 1 }
 0x4ab   : > { %v15657_v57 = vpop.permute.xlu0 %6684  ;;  %v8578_v39 = vsel %vm8486_vm0, %v8449_v5, %v17635_v45  ;;  %v8641_v0 = vsel %vm8615_vm1, %v8512_v41, %v15652_v58  ;;  %v8385_v58 = vsel %vm8357_vm15, %v8256_v42, %v17636_v35  ;;  %v7066_v14 = vshll.u32 %v15771_v30, 16  ;;  %v17638_v7 = vld [vmem:[#allocation49_spill] sm:$0xff]  ;;  %v11502_v41 = vld [vmem:[#allocation2 + $0x94] sm:$0xff]  }
 0x4ac   : > { %7884 = vrot.lane.b32.xlu1 %v7736_v9, %s11603_s19  ;;  %v7368_v9 = vrot.slane %v7366_v53, 1  ;;  %v7740_v53 = vrot.slane %v15655_v25, 1  ;;  %v8707_v6 = vsel %vm8615_vm1, %v8578_v39, %v15657_v57  ;;  %v11499_v25 = vld [vmem:[#allocation2 + $0x248] sm:$0xf]  ;;  %v7821_v48 = vsel %vm4289_vm9, %v7818_v50, %v7820_v62  ;;  %v17639_v5 = vld [vmem:[#allocation13_spill] sm:$0xff] }
 0x4ad   : > { %6638 = vrot.lane.b32.xlu0 %v10451_v28, %s11600_s9  ;;  %v10425_v46 = vcombine.low %v2811_v44, %v11499_v25  ;;  %v8000_v24 = vsel %vm7970_vm12, %v17639_v5, %v17638_v7  ;;  %v17641_v44 = vld [vmem:[#allocation83_spill] sm:$0xff]  ;;  %v17642_v45 = vld [vmem:[#allocation29_spill] sm:$0xff]  ;;  %v7070_v17 = vshrl.u32 %v15771_v30, 16 }
 0x4ae   : > { %v15666_v60 = vpop.permute.xlu1 %6620  ;;  %v7741_v11 = vsel %vm4289_vm9, %v7738_v10, %v7740_v53  ;;  %v8064_v39 = vsel %vm7970_vm12, %v17642_v45, %v17641_v44  ;;  %v11503_v53 = vld [vmem:[#allocation2 + $0x1d4] sm:$0xff]   ;;  %v17655_v7 = vld [vmem:[#allocation261_spill] sm:$0xff] }
 0x4af   : > { %v7547_v8 = vpop.permute.xlu0 %7546  ;;  %v6126_v22 = vrot.slane %v10425_v46, 1  ;;  %v17657_v44 = vld [vmem:[#allocation315_spill] sm:$0xff] }
 0x4b0   : > { %6256 = vrot.lane.b32.xlu1 %v6125_v49, %s11599_s6  ;;  %v7057_v49 = vsel %vm3424_vm2, %v7052_v29, %v7056_v31  ;;  %v8834_v19 = vsel %vm8744_vm3, %v8705_v43, %v7547_v8  ;;  %v7372_v8 = vor.u32 %v7370_v3, %v7368_v9  ;;  %v2864_v31 = vld [vmem:[#allocation2 + $0x118] sm:$0xf]  ;;  %v11501_v43 = vld [vmem:[#allocation2 + $0x254] ss:$0 sps:$4 sm:$0x11]  }
 0x4b1   : > { %6640 = vrot.lane.b32.xlu0 %v15644_v33, %s11600_s9  ;;  %v7369_v33 = vsel %vm3424_vm2, %v7364_v12, %v7368_v9  ;;  %v10453_v20 = vcombine.low %v2864_v31, %v15742_v52  ;;  %v2928_v12 = vld [vmem:[#allocation2 + $0x258] sm:$0xf]  ;;  %v15766_v9 = vld [vmem:[#allocation2 + $0x25c] sm:$0xf] }
 0x4b2   : > { %v7483_v28 = vpop.permute.xlu1 %7482  ;;  %v7377_v59 = vsel %vm3424_vm2, %v7372_v8, %v7376_v63  ;;  %v10485_v40 = vcombine.low %v2928_v12, %v15766_v9  ;;  %v15823_v12 = vld [vmem:[#allocation2 + $0x268] ss:$0 sps:$4 sm:$0x11]  }
 0x4b3   : > { %v7549_v61 = vpop.permute.xlu0 %7548  ;;  %v8770_v15 = vsel %vm8744_vm3, %v8641_v0, %v7483_v28  ;;  %v7061_v55 = vshll.u32 %v10453_v20, 16  ;;  %v17643_v0 = vld [vmem:[#allocation86_spill] sm:$0xff] }
 0x4b4   : > { %6702 = vrot.lane.b32.xlu1 %v10483_v16, %s11600_s9  ;;  %v7737_v16 = vrot.slane %v10536_v37, 1  ;;  %v8836_v32 = vsel %vm8744_vm3, %v8707_v6, %v7549_v61  ;;  %v17637_v37 = vld [vmem:[#allocation287_spill] sm:$0xff]  ;;  %v8066_v8 = vsel %vm7970_vm12, %v11503_v53, %v17643_v0  ;;  %v7394_v0 = vshll.u32 %v15823_v12, 16 }
 0x4b5   : > { %7502 = vrot.lane.b32.xlu0 %v7049_v34, %s11602_s17  ;;  %v8514_v57 = vsel %vm8486_vm0, %v8385_v58, %v17637_v37  ;;  %v11500_v61 = vld [vmem:[#allocation2 + $0x24c] sm:$0xff]   ;;  %v7063_v26 = vrot.slane %v7061_v55, 1  ;;  %v7068_v58 = vrot.slane %v7066_v14, 1  ;;  %v17648_v37 = vld [vmem:[#allocation201_spill] sm:$0xff] }
 0x4b6   : > { %v7485_v56 = vpop.permute.xlu1 %7484  ;;  %v7739_v13 = vsel %vm4289_vm9, %v7737_v16, %v7738_v10  ;;  %v8643_v47 = vsel %vm8615_vm1, %v8514_v57, %v15666_v60  ;;  %v6127_v51 = vrot.slane %v11500_v61, 1  ;;  %v7059_v10 = vshrl.u32 %v10453_v20, 16  ;;  %v17651_v61 = vld [vmem:[#allocation159_spill] sm:$0xff] }
 0x4b7   : > { %v7931_v1 = vpop.permute.xlu0 %7930  ;;  %v8772_v23 = vsel %vm8744_vm3, %v8643_v47, %v7485_v56  ;;  %v6129_v56 = vrot.slane %v11501_v43, 1 }
 0x4b8   : > { %v8963_v21 = vsel %vm8873_vm4, %v8834_v19, %v7931_v1  ;;  %6704 = vrot.lane.b32.xlu1 %v15660_v27, %s11600_s9  ;;  %v7819_v27 = vsel %vm4289_vm9, %v7817_v36, %v7818_v50  ;;  %v6128_v54 = vsel %vm4289_vm9, %v6126_v22, %v6127_v51  ;;  %v17640_v19 = vld [vmem:[#allocation53_spill] sm:$0xff]  ;;  %v7064_v35 = vor.u32 %v7063_v26, %v7059_v10  ;;  %v17650_v36 = vld [vmem:[#allocation258_spill] sm:$0xff]  ;;  %v17654_v26 = vld [vmem:[#allocation204_spill] sm:$0xff] }
 0x4b9   : > { %7504 = vrot.lane.b32.xlu0 %v7057_v49, %s11602_s17  ;;  %10917 = vmatprep.mubr.msk.bf16.mxu1 %vm9024_vm5, %v8963_v21  ;;  %v15779_v49 = vld [vmem:[#allocation2 + $0x128] ss:$0 sps:$4 sm:$0x11]   ;;  %v8002_v1 = vsel %vm7970_vm12, %v11502_v41, %v17640_v19  ;;  %v15793_v21 = vld [vmem:[#allocation2 + $0x260] sm:$0xff]   ;;  %v6130_v63 = vsel %vm4289_vm9, %v6127_v51, %v6129_v56 }
 0x4ba   : > { %v7867_v18 = vpop.permute.xlu1 %7866  ;;  %v7074_v6 = vshll.u32 %v15779_v49, 16  ;;  %v7386_v22 = vshll.u32 %v15793_v21, 16  ;;  %v7069_v56 = vsel %vm3424_vm2, %v7064_v35, %v7068_v58 }
 0x4bb   : > { %v7933_v34 = vpop.permute.xlu0 %7932  ;;  %v8899_v29 = vsel %vm8873_vm4, %v8770_v15, %v7867_v18  ;;  %v17644_v15 = vld [vmem:[#allocation115_spill] sm:$0xff] }
 0x4bc   : > { %v8965_v28 = vsel %vm8873_vm4, %v8836_v32, %v7933_v34  ;;  %7566 = vrot.lane.b32.xlu1 %v7369_v33, %s11602_s17  ;;  %10853 = vmatprep.mubr.msk.bf16.mxu0 %vm9024_vm5, %v8899_v29  ;;  %v7381_v33 = vshll.u32 %v10485_v40, 16  ;;  %v8129_v18 = vsel %vm8099_vm13, %v8000_v24, %v17644_v15  ;;  %v17646_v32 = vld [vmem:[#allocation118_spill] sm:$0xff]  ;;  %v17647_v29 = vld [vmem:[#allocation152_spill] sm:$0xff]  ;;  %v7076_v62 = vrot.slane %v7074_v6, 1  ;;  %v17658_v15 = vld [vmem:[#allocation235_spill] sm:$0xff] }
 0x4bd   : > { %7886 = vrot.lane.b32.xlu0 %v7739_v13, %s11603_s19  ;;  %10918 = vmatmul.mubr.msk.bf16.gmra.mrb[24].mxu1 %vm9024_vm5, %v8965_v28  ;;  %v17645_v13 = vld [vmem:[#allocation147_spill] sm:$0xff]  ;;  %v8131_v34 = vsel %vm8099_vm13, %v8002_v1, %v17646_v32  ;;  %v8195_v31 = vsel %vm8099_vm13, %v8066_v8, %v17647_v29  ;;  %v8258_v57 = vsel %vm8228_vm14, %v8129_v18, %v17648_v37  ;;  %v17656_v24 = vld [vmem:[#allocation286_spill] sm:$0xff]  ;;  %v7743_v6 = vrot.slane %v15771_v30, 1  ;;  %v17659_v32 = vld [vmem:[#allocation289_spill] sm:$0xff] }
 0x4be   : > { %v7869_v38 = vpop.permute.xlu1 %7868  ;;  %v8193_v25 = vsel %vm8099_vm13, %v8064_v39, %v17645_v13  ;;  %v17649_v28 = vld [vmem:[#allocation155_spill] sm:$0xff]  ;;  %v8324_v51 = vsel %vm8228_vm14, %v8195_v31, %v17651_v61  ;;  %v8260_v14 = vsel %vm8228_vm14, %v8131_v34, %v17654_v26  ;;  %v7388_v39 = vrot.slane %v7386_v22, 1  ;;  %v2932_v26 = vld [vmem:[#allocation2 + $0x26c] sm:$0xf] }
 0x4bf   : > { %v15758_v4 = vpop.permute.xlu0 %6686  ;;  %v8901_v60 = vsel %vm8873_vm4, %v8772_v23, %v7869_v38  ;;  %v7379_v23 = vshrl.u32 %v10485_v40, 16  ;;  %v7383_v38 = vrot.slane %v7381_v33, 1  ;;  %v8453_v5 = vsel %vm8357_vm15, %v8324_v51, %v17655_v7 }
 0x4c0   : > { %7568 = vrot.lane.b32.xlu1 %v7377_v59, %s11602_s17  ;;  %10854 = vmatmul.mubr.msk.bf16.gmra.mrb[24].mxu0 %vm9024_vm5, %v8901_v60  ;;  %v2988_v59 = vld [vmem:[#allocation2 + $0x118] sm:$0xe]  ;;  %v8389_v18 = vsel %vm8357_vm15, %v8260_v14, %v17658_v15  ;;  %v7396_v31 = vrot.slane %v7394_v0, 1  ;;  %v7823_v51 = vrot.slane %v15793_v21, 1  ;;  %v15897_v14 = vld [vmem:[#allocation2 + $0x270] sm:$0xf] }
 0x4c1   : > { %7888 = vrot.lane.b32.xlu0 %v7741_v11, %s11603_s19  ;;  %v8322_v11 = vsel %vm8228_vm14, %v8193_v25, %v17649_v28  ;;  %v10537_v10 = vcombine.low %v2988_v59, %v15742_v52  ;;  %v7384_v52 = vor.u32 %v7383_v38, %v7379_v23  ;;  %v8518_v34 = vsel %vm8486_vm0, %v8389_v18, %v17659_v32  ;;  %v15869_v28 = vld [vmem:[#allocation2 + $0x130] sm:$0xf]  ;;  %v15918_v18 = vld [vmem:[#allocation2 + $0x13c] ss:$0 sps:$4 sm:$0x11]  }
 0x4c2   : > { %v15768_v2 = vpop.permute.xlu1 %6622  ;;  %v8451_v50 = vsel %vm8357_vm15, %v8322_v11, %v17650_v36  ;;  %v7745_v36 = vrot.slane %v15779_v49, 1  ;;  %v17664_v0 = vld [vmem:[#allocation55_spill] sm:$0xff]  ;;  %v17669_v32 = vld [vmem:[#allocation156_spill] sm:$0xff] }
 0x4c3   : > { %v15773_v3 = vpop.permute.xlu0 %6688 }
 0x4c4   : > { %7950 = vrot.lane.b32.xlu1 %v7819_v27, %s11603_s19  ;;  %v7072_v27 = vor.u32 %v7070_v17, %v7068_v58  ;;  %v7742_v17 = vrot.slane %v10537_v10, 1  ;;  %v2812_v58 = vld [vmem:[#allocation2 + $0x258] sm:$0xe] }
 0x4c5   : > { %6258 = vrot.lane.b32.xlu0 %v6128_v54, %s11599_s6  ;;  %v17653_v54 = vld [vmem:[#allocation232_spill] sm:$0xff] }
 0x4c6   : > { %v15781_v16 = vpop.permute.xlu1 %6624  ;;  %v8387_v55 = vsel %vm8357_vm15, %v8258_v57, %v17653_v54  ;;  %v7077_v53 = vsel %vm3424_vm2, %v7072_v27, %v7076_v62  ;;  %v2868_v57 = vld [vmem:[#allocation2 + $0x12c] sm:$0xf]  ;;  %v7744_v59 = vsel %vm4289_vm9, %v7742_v17, %v7743_v6  ;;  %v11505_v27 = vld [vmem:[#allocation2 + $0x260] sm:$0xff]  }
 0x4c7   : > { %v7551_v42 = vpop.permute.xlu0 %7550  ;;  %v8516_v41 = vsel %vm8486_vm0, %v8387_v55, %v17656_v24  ;;  %v6132_v62 = vrot.slane %v11505_v27, 1  ;;  %v15889_v55 = vld [vmem:[#allocation2 + $0x134] sm:$0xff]  }
 0x4c8   : > { %7952 = vrot.lane.b32.xlu1 %v7821_v48, %s11603_s19  ;;  %v8645_v33 = vsel %vm8615_vm1, %v8516_v41, %v15768_v2  ;;  %v3004_v2 = vld [vmem:[#allocation2 + $0x258] sm:$0xe]  ;;  %v7086_v41 = vshll.u32 %v15889_v55, 16 }
 0x4c9   : > { %6642 = vrot.lane.b32.xlu0 %v10453_v20, %s11600_s9  ;;  %v17652_v20 = vld [vmem:[#allocation312_spill] sm:$0xff]  ;;  %v10553_v37 = vcombine.low %v3004_v2, %v15766_v9  ;;  %v10455_v9 = vcombine.low %v2868_v57, %v15869_v28 }
 0x4ca   : > { %v7487_v46 = vpop.permute.xlu1 %7486  ;;  %v8580_v60 = vsel %vm8486_vm0, %v8451_v50, %v17652_v20  ;;  %v11504_v50 = vld [vmem:[#allocation2 + $0x25c] sm:$0xf]  ;;  %v7746_v20 = vsel %vm4289_vm9, %v7743_v6, %v7745_v36  ;;  %v17666_v6 = vld [vmem:[#allocation150_spill] sm:$0xff] }
 0x4cb   : > { %v7553_v47 = vpop.permute.xlu0 %7552  ;;  %v8709_v48 = vsel %vm8615_vm1, %v8580_v60, %v15758_v4  ;;  %v8582_v4 = vsel %vm8486_vm0, %v8453_v5, %v17657_v44  ;;  %v7822_v61 = vrot.slane %v10553_v37, 1  ;;  %v7079_v5 = vshrl.u32 %v10455_v9, 16  ;;  %v17672_v37 = vld [vmem:[#allocation260_spill] sm:$0xff]  ;;  %v17673_v36 = vld [vmem:[#allocation314_spill] sm:$0xff] }
 0x4cc   : > { %6260 = vrot.lane.b32.xlu1 %v6130_v63, %s11599_s6  ;;  %v8838_v19 = vsel %vm8744_vm3, %v8709_v48, %v7551_v42  ;;  %v7390_v42 = vshrl.u32 %v15793_v21, 16  ;;  %v8711_v8 = vsel %vm8615_vm1, %v8582_v4, %v15773_v3  ;;  %v7081_v48 = vshll.u32 %v10455_v9, 16  ;;  %v11506_v4 = vld [vmem:[#allocation2 + $0x268] ss:$0 sps:$4 sm:$0x11]  }
 0x4cd   : > { %6644 = vrot.lane.b32.xlu0 %v15771_v30, %s11600_s9  ;;  %v8840_v13 = vsel %vm8744_vm3, %v8711_v8, %v7553_v47  ;;  %v7389_v30 = vsel %vm3424_vm2, %v7384_v52, %v7388_v39  ;;  %v15907_v52 = vcombine.low %v2932_v26, %v15897_v14  ;;  %v17678_v26 = vld [vmem:[#allocation288_spill] sm:$0xff] }
 0x4ce   : > { %v7489_v43 = vpop.permute.xlu1 %7488  ;;  %v7392_v29 = vor.u32 %v7390_v42, %v7388_v39  ;;  %v7083_v24 = vrot.slane %v7081_v48, 1  ;;  %v17662_v39 = vld [vmem:[#allocation51_spill] sm:$0xff]  ;;  %v11507_v42 = vld [vmem:[#allocation2 + $0xa8] sm:$0xff]  }
 0x4cf   : > { %v7935_v1 = vpop.permute.xlu0 %7934  ;;  %v8006_v8 = vsel %vm7970_vm12, %v11507_v42, %v17664_v0 }
 0x4d0   : > { %v8967_v45 = vsel %vm8873_vm4, %v8838_v19, %v7935_v1  ;;  %6706 = vrot.lane.b32.xlu1 %v10485_v40, %s11600_s9  ;;  %v8774_v40 = vsel %vm8744_vm3, %v8645_v33, %v7487_v46  ;;  %v8647_v46 = vsel %vm8615_vm1, %v8518_v34, %v15781_v16  ;;  %v10426_v16 = vcombine.low %v2812_v58, %v11504_v50  ;;  %v17660_v19 = vld [vmem:[#allocation85_spill] sm:$0xff]  ;;  %v17661_v1 = vld [vmem:[#allocation30_spill] sm:$0xff] }
 0x4d1   : > { %7506 = vrot.lane.b32.xlu0 %v7069_v56, %s11602_s17  ;;  %10921 = vmatprep.mubr.msk.bf16.mxu1 %vm9024_vm5, %v8967_v45  ;;  %v8776_v11 = vsel %vm8744_vm3, %v8647_v46, %v7489_v43  ;;  %v7397_v22 = vsel %vm3424_vm2, %v7392_v29, %v7396_v31  ;;  %v7824_v43 = vsel %vm4289_vm9, %v7822_v61, %v7823_v51  ;;  %v6134_v45 = vrot.slane %v11506_v4, 1  ;;  %v17663_v33 = vld [vmem:[#allocation14_spill] sm:$0xff]  ;;  %v17671_v29 = vld [vmem:[#allocation203_spill] sm:$0xff] }
 0x4d2   : > { %v7871_v63 = vpop.permute.xlu1 %7870  ;;  %v6131_v60 = vrot.slane %v10426_v16, 1  ;;  %v8068_v44 = vsel %vm7970_vm12, %v17661_v1, %v17660_v19  ;;  %v17674_v61 = vld [vmem:[#allocation163_spill] sm:$0xff]  ;;  %v2989_v19 = vld [vmem:[#allocation2 + $0x12c] sm:$0xe]  ;;  %v17679_v1 = vld [vmem:[#allocation317_spill] sm:$0xff] }
 0x4d3   : > { %v7937_v25 = vpop.permute.xlu0 %7936  ;;  %v8903_v35 = vsel %vm8873_vm4, %v8774_v40, %v7871_v63  ;;  %v11508_v40 = vld [vmem:[#allocation2 + $0x1e8] sm:$0xff]   ;;  %v17665_v63 = vld [vmem:[#allocation88_spill] sm:$0xff]  ;;  %v8197_v2 = vsel %vm8099_vm13, %v8068_v44, %v17666_v6  ;;  %v6135_v16 = vsel %vm4289_vm9, %v6132_v62, %v6134_v45 }
 0x4d4   : > { %v8969_v3 = vsel %vm8873_vm4, %v8840_v13, %v7937_v25  ;;  %6708 = vrot.lane.b32.xlu1 %v15793_v21, %s11600_s9  ;;  %10857 = vmatprep.mubr.msk.bf16.mxu0 %vm9024_vm5, %v8903_v35  ;;  %v7825_v21 = vrot.slane %v15823_v12, 1  ;;  %v6133_v10 = vsel %vm4289_vm9, %v6131_v60, %v6132_v62  ;;  %v8070_v17 = vsel %vm7970_vm12, %v11508_v40, %v17665_v63  ;;  %v17667_v13 = vld [vmem:[#allocation117_spill] sm:$0xff]  ;;  %v17668_v35 = vld [vmem:[#allocation120_spill] sm:$0xff]  ;;  %v17677_v62 = vld [vmem:[#allocation263_spill] sm:$0xff] }
 0x4d5   : > { %7508 = vrot.lane.b32.xlu0 %v7077_v53, %s11602_s17  ;;  %10922 = vmatmul.mubr.msk.bf16.gmra.mrb[28].mxu1 %vm9024_vm5, %v8969_v3  ;;  %v8004_v53 = vsel %vm7970_vm12, %v17663_v33, %v17662_v39  ;;  %v8135_v58 = vsel %vm8099_vm13, %v8006_v8, %v17668_v35  ;;  %v8199_v34 = vsel %vm8099_vm13, %v8070_v17, %v17669_v32  ;;  %v17670_v3 = vld [vmem:[#allocation162_spill] sm:$0xff]  ;;  %v7399_v39 = vshrl.u32 %v15907_v52, 16  ;;  %v17680_v63 = vld [vmem:[#allocation237_spill] sm:$0xff] }
 0x4d6   : > { %v7873_v47 = vpop.permute.xlu1 %7872  ;;  %v7826_v12 = vsel %vm4289_vm9, %v7823_v51, %v7825_v21  ;;  %v8133_v25 = vsel %vm8099_vm13, %v8004_v53, %v17667_v13  ;;  %v8328_v51 = vsel %vm8228_vm14, %v8199_v34, %v17674_v61  ;;  %v17676_v21 = vld [vmem:[#allocation206_spill] sm:$0xff]  ;;  %v15967_v53 = vld [vmem:[#allocation2 + $0x27c] ss:$0 sps:$4 sm:$0x11]  }
 0x4d7   : > { %v15874_v23 = vpop.permute.xlu0 %6690  ;;  %v8905_v38 = vsel %vm8873_vm4, %v8776_v11, %v7873_v47  ;;  %v8262_v31 = vsel %vm8228_vm14, %v8133_v25, %v17671_v29  ;;  %v7084_v11 = vor.u32 %v7083_v24, %v7079_v5  ;;  %v7088_v47 = vrot.slane %v7086_v41, 1  ;;  %v17681_v25 = vld [vmem:[#allocation291_spill] sm:$0xff] }
 0x4d8   : > { %7570 = vrot.lane.b32.xlu1 %v7389_v30, %s11602_s17  ;;  %10858 = vmatmul.mubr.msk.bf16.gmra.mrb[28].mxu0 %vm9024_vm5, %v8905_v38  ;;  %v8326_v30 = vsel %vm8228_vm14, %v8197_v2, %v17670_v3  ;;  %v7090_v38 = vshrl.u32 %v15889_v55, 16  ;;  %v7414_v34 = vshll.u32 %v15967_v53, 16  ;;  %v2872_v3 = vld [vmem:[#allocation2 + $0x140] sm:$0xf] }
 0x4d9   : > { %7890 = vrot.lane.b32.xlu0 %v7744_v59, %s11603_s19  ;;  %v8455_v57 = vsel %vm8357_vm15, %v8326_v30, %v17672_v37  ;;  %v15933_v59 = vld [vmem:[#allocation2 + $0x274] sm:$0xff]   ;;  %v15989_v30 = vld [vmem:[#allocation2 + $0x144] sm:$0xf]  ;;  %v3005_v37 = vld [vmem:[#allocation2 + $0x26c] sm:$0xe] }
 0x4da   : > { %v15883_v49 = vpop.permute.xlu1 %6626  ;;  %v8584_v50 = vsel %vm8486_vm0, %v8455_v57, %v17673_v36  ;;  %v7406_v4 = vshll.u32 %v15933_v59, 16  ;;  %v7410_v32 = vshrl.u32 %v15933_v59, 16  ;;  %v16001_v36 = vcombine.low %v2872_v3, %v15989_v30 }
 0x4db   : > { %v15886_v54 = vpop.permute.xlu0 %6692  ;;  %v8713_v27 = vsel %vm8615_vm1, %v8584_v50, %v15874_v23 }
 0x4dc   : > { %7572 = vrot.lane.b32.xlu1 %v7397_v22, %s11602_s17  ;;  %v7401_v22 = vshll.u32 %v15907_v52, 16 }
 0x4dd   : > { %7892 = vrot.lane.b32.xlu0 %v7746_v20, %s11603_s19  ;;  %v17675_v20 = vld [vmem:[#allocation234_spill] sm:$0xff] }
 0x4de   : > { %v15894_v56 = vpop.permute.xlu1 %6628  ;;  %v8391_v60 = vsel %vm8357_vm15, %v8262_v31, %v17675_v20  ;;  %v7403_v33 = vrot.slane %v7401_v22, 1  ;;  %v11509_v20 = vld [vmem:[#allocation2 + $0x270] sm:$0xf] }
 0x4df   : > { %v7555_v7 = vpop.permute.xlu0 %7554  ;;  %v8520_v5 = vsel %vm8486_vm0, %v8391_v60, %v17678_v26  ;;  %v11510_v26 = vld [vmem:[#allocation2 + $0x274] sm:$0xff]  }
 0x4e0   : > { %7954 = vrot.lane.b32.xlu1 %v7824_v43, %s11603_s19  ;;  %v7094_v43 = vshll.u32 %v15918_v18, 16  ;;  %v8842_v24 = vsel %vm8744_vm3, %v8713_v27, %v7555_v7  ;;  %v8649_v45 = vsel %vm8615_vm1, %v8520_v5, %v15883_v49  ;;  %v7092_v7 = vor.u32 %v7090_v38, %v7088_v47 }
 0x4e1   : > { %6262 = vrot.lane.b32.xlu0 %v6133_v10, %s11599_s6  ;;  %v8457_v10 = vsel %vm8357_vm15, %v8328_v51, %v17677_v62  ;;  %v10538_v49 = vcombine.low %v2989_v19, %v15869_v28  ;;  %v10554_v38 = vcombine.low %v3005_v37, %v15897_v14  ;;  %v7750_v51 = vrot.slane %v15918_v18, 1 }
 0x4e2   : > { %v7491_v15 = vpop.permute.xlu1 %7490  ;;  %v8586_v44 = vsel %vm8486_vm0, %v8457_v10, %v17679_v1  ;;  %v7096_v40 = vrot.slane %v7094_v43, 1  ;;  %v7101_v43 = vshll.u32 %v16001_v36, 16  ;;  %v6137_v5 = vrot.slane %v11510_v26, 1  ;;  %v11511_v1 = vld [vmem:[#allocation2 + $0xbc] sm:$0xff]   ;;  %v17699_v26 = vld [vmem:[#allocation239_spill] sm:$0xff] }
 0x4e3   : > { %v7557_v46 = vpop.permute.xlu0 %7556  ;;  %v8715_v42 = vsel %vm8615_vm1, %v8586_v44, %v15886_v54  ;;  %v8778_v0 = vsel %vm8744_vm3, %v8649_v45, %v7491_v15  ;;  %v7408_v54 = vrot.slane %v7406_v4, 1  ;;  %v7404_v15 = vor.u32 %v7403_v33, %v7399_v39  ;;  %v17684_v44 = vld [vmem:[#allocation58_spill] sm:$0xff]  ;;  %v17686_v4 = vld [vmem:[#allocation31_spill] sm:$0xff] }
 0x4e4   : > { %7956 = vrot.lane.b32.xlu1 %v7826_v12, %s11603_s19  ;;  %v7089_v12 = vsel %vm3424_vm2, %v7084_v11, %v7088_v47  ;;  %v8844_v6 = vsel %vm8744_vm3, %v8715_v42, %v7557_v46  ;;  %v7097_v29 = vsel %vm3424_vm2, %v7092_v7, %v7096_v40  ;;  %v7747_v31 = vrot.slane %v10538_v49, 1  ;;  %v2813_v47 = vld [vmem:[#allocation2 + $0x26c] sm:$0xe]  ;;  %v17688_v42 = vld [vmem:[#allocation119_spill] sm:$0xff] }
 0x4e5   : > { %6646 = vrot.lane.b32.xlu0 %v10455_v9, %s11600_s9  ;;  %v8264_v9 = vsel %vm8228_vm14, %v8135_v58, %v17676_v21  ;;  %v7409_v50 = vsel %vm3424_vm2, %v7404_v15, %v7408_v54  ;;  %v10427_v60 = vcombine.low %v2813_v47, %v11509_v20  ;;  %v7827_v21 = vrot.slane %v10554_v38, 1  ;;  %v17687_v7 = vld [vmem:[#allocation90_spill] sm:$0xff]  ;;  %v11513_v38 = vld [vmem:[#allocation2 + $0x27c] ss:$0 sps:$4 sm:$0x11]  }
 0x4e6   : > { %v7493_v48 = vpop.permute.xlu1 %7492  ;;  %v8393_v17 = vsel %vm8357_vm15, %v8264_v9, %v17680_v63  ;;  %v7828_v9 = vrot.slane %v15933_v59, 1  ;;  %v7103_v40 = vrot.slane %v7101_v43, 1  ;;  %v17689_v63 = vld [vmem:[#allocation122_spill] sm:$0xff]  ;;  %v17698_v43 = vld [vmem:[#allocation316_spill] sm:$0xff] }
 0x4e7   : > { %v7939_v41 = vpop.permute.xlu0 %7938  ;;  %v8522_v35 = vsel %vm8486_vm0, %v8393_v17, %v17681_v25  ;;  %v6136_v10 = vrot.slane %v10427_v60, 1  ;;  %v7830_v25 = vrot.slane %v15967_v53, 1 }
 0x4e8   : > { %v8971_v23 = vsel %vm8873_vm4, %v8842_v24, %v7939_v41  ;;  %6264 = vrot.lane.b32.xlu1 %v6135_v16, %s11599_s6  ;;  %v8651_v28 = vsel %vm8615_vm1, %v8522_v35, %v15894_v56  ;;  %v7748_v56 = vrot.slane %v15889_v55, 1  ;;  %v7412_v16 = vor.u32 %v7410_v32, %v7408_v54  ;;  %v17682_v24 = vld [vmem:[#allocation54_spill] sm:$0xff]  ;;  %v17683_v41 = vld [vmem:[#allocation15_spill] sm:$0xff] }
 0x4e9   : > { %6648 = vrot.lane.b32.xlu0 %v15889_v55, %s11600_s9  ;;  %10925 = vmatprep.mubr.msk.bf16.mxu1 %vm9024_vm5, %v8971_v23  ;;  %v7416_v55 = vrot.slane %v7414_v34, 1  ;;  %v8008_v19 = vsel %vm7970_vm12, %v17683_v41, %v17682_v24  ;;  %v8010_v23 = vsel %vm7970_vm12, %v11511_v1, %v17684_v44  ;;  %v16044_v35 = vld [vmem:[#allocation2 + $0x150] ss:$0 sps:$4 sm:$0x11]   ;;  %v17693_v32 = vld [vmem:[#allocation166_spill] sm:$0xff]  ;;  %v17700_v41 = vld [vmem:[#allocation265_spill] sm:$0xff] }
 0x4ea   : > { %v7875_v8 = vpop.permute.xlu1 %7874  ;;  %v7749_v61 = vsel %vm4289_vm9, %v7747_v31, %v7748_v56  ;;  %v7751_v18 = vsel %vm4289_vm9, %v7748_v56, %v7750_v51  ;;  %v8139_v17 = vsel %vm8099_vm13, %v8010_v23, %v17689_v63  ;;  %v17694_v31 = vld [vmem:[#allocation208_spill] sm:$0xff]  ;;  %v17695_v56 = vld [vmem:[#allocation170_spill] sm:$0xff] }
 0x4eb   : > { %v7941_v2 = vpop.permute.xlu0 %7940  ;;  %v8907_v13 = vsel %vm8873_vm4, %v8778_v0, %v7875_v8  ;;  %v7417_v14 = vsel %vm3424_vm2, %v7412_v16, %v7416_v55  ;;  %v8137_v0 = vsel %vm8099_vm13, %v8008_v19, %v17688_v42  ;;  %v7099_v8 = vshrl.u32 %v16001_v36, 16  ;;  %v17701_v1 = vld [vmem:[#allocation290_spill] sm:$0xff] }
 0x4ec   : > { %v8973_v58 = vsel %vm8873_vm4, %v8844_v6, %v7941_v2  ;;  %6710 = vrot.lane.b32.xlu1 %v15907_v52, %s11600_s9  ;;  %10861 = vmatprep.mubr.msk.bf16.mxu0 %vm9024_vm5, %v8907_v13  ;;  %v8780_v52 = vsel %vm8744_vm3, %v8651_v28, %v7493_v48  ;;  %v16013_v48 = vld [vmem:[#allocation2 + $0x148] sm:$0xff]   ;;  %v17690_v6 = vld [vmem:[#allocation153_spill] sm:$0xff]  ;;  %v7829_v13 = vsel %vm4289_vm9, %v7827_v21, %v7828_v9 }
 0x4ed   : > { %7510 = vrot.lane.b32.xlu0 %v7089_v12, %s11602_s17  ;;  %10926 = vmatmul.mubr.msk.bf16.gmra.mrb[32].mxu1 %vm9024_vm5, %v8973_v58  ;;  %v17685_v12 = vld [vmem:[#allocation87_spill] sm:$0xff]  ;;  %v7106_v49 = vshll.u32 %v16013_v48, 16  ;;  %v17691_v58 = vld [vmem:[#allocation160_spill] sm:$0xff]  ;;  %v17692_v28 = vld [vmem:[#allocation205_spill] sm:$0xff]  ;;  %v8268_v53 = vsel %vm8228_vm14, %v8139_v17, %v17694_v31  ;;  %v7104_v51 = vor.u32 %v7103_v40, %v7099_v8  ;;  %v7110_v60 = vshrl.u32 %v16013_v48, 16 }
 0x4ee   : > { %v7877_v46 = vpop.permute.xlu1 %7876  ;;  %v8072_v45 = vsel %vm7970_vm12, %v17686_v4, %v17685_v12  ;;  %v8266_v15 = vsel %vm8228_vm14, %v8137_v0, %v17692_v28  ;;  %v7831_v21 = vsel %vm4289_vm9, %v7828_v9, %v7830_v25  ;;  %v8397_v24 = vsel %vm8357_vm15, %v8268_v53, %v17699_v26  ;;  %v16085_v9 = vld [vmem:[%s17065_s2] ss:$0 sm:$0xff]  ;;  %v16102_v63 = vld [vmem:[#allocation2 + $0x288] sm:$0xff]   ;;  %v2990_v31 = vld [vmem:[#allocation2 + $0x140] sm:$0xe] }
 0x4ef   : > { %v15994_v57 = vpop.permute.xlu0 %6694  ;;  %v8909_v11 = vsel %vm8873_vm4, %v8780_v52, %v7877_v46  ;;  %v8201_v2 = vsel %vm8099_vm13, %v8072_v45, %v17690_v6  ;;  %v6138_v52 = vsel %vm4289_vm9, %v6136_v10, %v6137_v5  ;;  %v2936_v46 = vld [vmem:[#allocation2 + $0x280] sm:$0xf]  ;;  %v7108_v20 = vrot.slane %v7106_v49, 1 }
 0x4f0   : > { %6712 = vrot.lane.b32.xlu1 %v15933_v59, %s11600_s9  ;;  %10862 = vmatmul.mubr.msk.bf16.gmra.mrb[32].mxu0 %vm9024_vm5, %v8909_v11  ;;  %v11512_v59 = vld [vmem:[#allocation2 + $0x1fc] sm:$0xff]   ;;  %v8330_v34 = vsel %vm8228_vm14, %v8201_v2, %v17693_v32  ;;  %v7114_v10 = vshll.u32 %v16044_v35, 16 }
 0x4f1   : > { %7512 = vrot.lane.b32.xlu0 %v7097_v29, %s11602_s17  ;;  %v8074_v39 = vsel %vm7970_vm12, %v11512_v59, %v17687_v7  ;;  %v16053_v29 = vld [vmem:[#allocation2 + $0x284] sm:$0xf]  ;;  %v17696_v11 = vld [vmem:[#allocation236_spill] sm:$0xff]  ;;  %v17703_v59 = vld [vmem:[#allocation319_spill] sm:$0xff]  ;;  %v7109_v40 = vsel %vm3424_vm2, %v7104_v51, %v7108_v20  ;;  %v16100_v49 = vor.u32 %v7110_v60, %v7108_v20 }
 0x4f2   : > { %v16006_v22 = vpop.permute.xlu1 %6630  ;;  %v8203_v54 = vsel %vm8099_vm13, %v8074_v39, %v17691_v58  ;;  %v8395_v47 = vsel %vm8357_vm15, %v8266_v15, %v17696_v11  ;;  %v17702_v4 = vld [vmem:[#allocation293_spill] sm:$0xff]  ;;  %v16110_v2 = vrot.slane %v7114_v10, 1 }
 0x4f3   : > { %v16010_v27 = vpop.permute.xlu0 %6696  ;;  %v8332_v37 = vsel %vm8228_vm14, %v8203_v54, %v17695_v56  ;;  %v8524_v44 = vsel %vm8486_vm0, %v8395_v47, %v17701_v1  ;;  %v8526_v45 = vsel %vm8486_vm0, %v8397_v24, %v17702_v4  ;;  %v7430_v1 = vshrl.u32 %v16102_v63, 16  ;;  %v2876_v4 = vld [vmem:[#allocation2 + $0x154] sm:$0xf] }
 0x4f4   : > { %7574 = vrot.lane.b32.xlu1 %v7409_v50, %s11602_s17  ;;  %v17697_v50 = vld [vmem:[#allocation262_spill] sm:$0xff]  ;;  %v8461_v19 = vsel %vm8357_vm15, %v8332_v37, %v17700_v41  ;;  %v7426_v37 = vshll.u32 %v16102_v63, 16 }
 0x4f5   : > { %7894 = vrot.lane.b32.xlu0 %v7749_v61, %s11603_s19  ;;  %v8459_v16 = vsel %vm8357_vm15, %v8330_v34, %v17697_v50  ;;  %v6139_v61 = vrot.slane %v11513_v38, 1  ;;  %v8590_v7 = vsel %vm8486_vm0, %v8461_v19, %v17703_v59  ;;  %v16137_v38 = vld [vmem:[#allocation2 + $0x290] ss:$0 sps:$4 sm:$0x11]  }
 0x4f6   : > { %v16019_v62 = vpop.permute.xlu1 %6632 }
 0x4f7   : > { %v7559_v33 = vpop.permute.xlu0 %7558  ;;  %v6140_v8 = vsel %vm4289_vm9, %v6137_v5, %v6139_v61  ;;  %v8655_v11 = vsel %vm8615_vm1, %v8526_v45, %v16019_v62  ;;  %v16161_v45 = vld [vmem:[#allocation2 + $0x158] sm:$0xf] }
 0x4f8   : > { %7576 = vrot.lane.b32.xlu1 %v7417_v14, %s11602_s17  ;;  %v8588_v14 = vsel %vm8486_vm0, %v8459_v16, %v17698_v43  ;;  %v10539_v43 = vcombine.low %v2990_v31, %v15989_v30  ;;  %v7428_v30 = vrot.slane %v7426_v37, 1  ;;  %v17712_v37 = vld [vmem:[#allocation157_spill] sm:$0xff] }
 0x4f9   : > { %7896 = vrot.lane.b32.xlu0 %v7751_v18, %s11603_s19  ;;  %v16071_v18 = vcombine.low %v2936_v46, %v16053_v29  ;;  %v8717_v23 = vsel %vm8615_vm1, %v8588_v14, %v15994_v57 }
 0x4fa   : > { %v7495_v3 = vpop.permute.xlu1 %7494  ;;  %v8846_v39 = vsel %vm8744_vm3, %v8717_v23, %v7559_v33  ;;  %v8653_v33 = vsel %vm8615_vm1, %v8524_v44, %v16006_v22 }
 0x4fb   : > { %v7561_v55 = vpop.permute.xlu0 %7560  ;;  %v7421_v5 = vshll.u32 %v16071_v18, 16  ;;  %v8782_v25 = vsel %vm8744_vm3, %v8653_v33, %v7495_v3  ;;  %v7419_v28 = vshrl.u32 %v16071_v18, 16  ;;  %v7432_v33 = vor.u32 %v7430_v1, %v7428_v30 }
 0x4fc   : > { %7958 = vrot.lane.b32.xlu1 %v7829_v13, %s11603_s19  ;;  %v8719_v13 = vsel %vm8615_vm1, %v8590_v7, %v16010_v27  ;;  %v7117_v7 = vsel %vm3424_vm2, %v16100_v49, %v16110_v2 }
 0x4fd   : > { %6266 = vrot.lane.b32.xlu0 %v6138_v52, %s11599_s6 }
 0x4fe   : > { %v7497_v12 = vpop.permute.xlu1 %7496 }
 0x4ff   : > { %v7943_v42 = vpop.permute.xlu0 %7942  ;;  %v8784_v62 = vsel %vm8744_vm3, %v8655_v11, %v7497_v12  ;;  %v7434_v12 = vshll.u32 %v16137_v38, 16 }
 0x500   : > { %v8975_v57 = vsel %vm8873_vm4, %v8846_v39, %v7943_v42  ;;  %v10895_v0 = vpop.f32.mrb[0].mxu1  ;;  %7960 = vrot.lane.b32.xlu1 %v7831_v21, %s11603_s19  ;;  %v7752_v39 = vrot.slane %v10539_v43, 1  ;;  %v7753_v42 = vrot.slane %v16013_v48, 1 }
 0x501   : > { %v9459_v17 = vadd.f32 %v10895_v0, %v16085_v9  ;;  %6650 = vrot.lane.b32.xlu0 %v16001_v36, %s11600_s9  ;;  %v9450_v6 = vpop.f32.mrb[1].mxu1  ;;  %10929 = vmatprep.mubr.msk.bf16.mxu1 %vm9024_vm5, %v8975_v57  ;;  %v8848_v36 = vsel %vm8744_vm3, %v8719_v13, %v7561_v55  ;;  %v7423_v55 = vrot.slane %v7421_v5, 1  ;;  %v3006_v57 = vld [vmem:[#allocation2 + $0x280] sm:$0xe]  ;;  %v7755_v5 = vrot.slane %v16044_v35, 1 }
 0x502   : > { %v9451_v58 = vadd.f32 %v16085_v9, %v9450_v6  ;;  %v10896_v22 = vpop.f32.mrb[2].mxu1  ;;  %v7879_v54 = vpop.permute.xlu1 %7878  ;;  %v7754_v2 = vsel %vm4289_vm9, %v7752_v39, %v7753_v42  ;;  %v11514_v13 = vld [vmem:[#allocation2 + $0x284] sm:$0xf] }
 0x503   : > { %v9771_v15 = vmax.f32 %v9459_v17, 0.0  ;;  %v9462_v32 = vadd.f32 %v10896_v22, %v16085_v9  ;;  %v7945_v34 = vpop.permute.xlu0 %7944  ;;  %v9453_v52 = vpop.f32.mrb[3].mxu1  ;;  %v8911_v46 = vsel %vm8873_vm4, %v8782_v25, %v7879_v54  ;;  %v7424_v23 = vor.u32 %v7423_v55, %v7419_v28  ;;  %v17705_v22 = vld [vmem:[#allocation16_spill] sm:$0xff]  ;;  %v11515_v28 = vld [vmem:[#allocation2 + $0xd0] sm:$0xff]   ;;  %v17710_v35 = vld [vmem:[#allocation121_spill] sm:$0xff] }
 0x504   : > { %v9769_v27 = vmax.f32 %v9451_v58, 0.0  ;;  %v8977_v3 = vsel %vm8873_vm4, %v8848_v36, %v7945_v34  ;;  %v9454_v53 = vadd.f32 %v16085_v9, %v9453_v52  ;;  %v10831_v56 = vpop.f32.mrb[0].mxu0  ;;  %6268 = vrot.lane.b32.xlu1 %v6140_v8, %s11599_s6  ;;  %10865 = vmatprep.mubr.msk.bf16.mxu0 %vm9024_vm5, %v8911_v46  ;;  %v2814_v8 = vld [vmem:[#allocation2 + $0x280] sm:$0xe]  ;;  %v10555_v17 = vcombine.low %v3006_v57, %v16053_v29  ;;  %v17704_v58 = vld [vmem:[#allocation56_spill] sm:$0xff]  ;;  %v11516_v52 = vld [vmem:[#allocation2 + $0x210] sm:$0xff]  }
 0x505   : > { %9900 = vst.msk [vmem:[%s16129_s27 + $0x210] sm:$0xff] %vm9833_vm6, %v9771_v15  ;;  %v9772_v47 = vmax.f32 %v9462_v32, 0.0  ;;  %v9203_v50 = vadd.f32 %v10831_v56, %v16085_v9  ;;  %6652 = vrot.lane.b32.xlu0 %v16013_v48, %s11600_s9  ;;  %v9194_v16 = vpop.f32.mrb[1].mxu0  ;;  %10930 = vmatmul.mubr.msk.bf16.gmra.mrb[36].mxu1 %vm9024_vm5, %v8977_v3  ;;  %v7429_v49 = vsel %vm3424_vm2, %v7424_v23, %v7428_v30  ;;  %v7436_v48 = vrot.slane %v7434_v12, 1  ;;  %v17706_v36 = vld [vmem:[#allocation60_spill] sm:$0xff]  ;;  %v17707_v32 = vld [vmem:[#allocation89_spill] sm:$0xff] }
 0x506   : > { %9898 = vst.msk [vmem:[%s16129_s27 + $0x200] sm:$0xff] %vm9833_vm6, %v9769_v27  ;;  %v9770_v61 = vmax.f32 %v9454_v53, 0.0  ;;  %v9195_v51 = vadd.f32 %v16085_v9, %v9194_v16  ;;  %v10832_v20 = vpop.f32.mrb[2].mxu0  ;;  %v7881_v60 = vpop.permute.xlu1 %7880  ;;  %v10428_v25 = vcombine.low %v2814_v8, %v11514_v13  ;;  %v8012_v54 = vsel %vm7970_vm12, %v17705_v22, %v17704_v58  ;;  %v17708_v34 = vld [vmem:[#allocation33_spill] sm:$0xff]  ;;  %v17709_v46 = vld [vmem:[#allocation92_spill] sm:$0xff]  ;;  %v17716_v30 = vld [vmem:[#allocation210_spill] sm:$0xff] }
 0x507   : > { %9901 = vst.msk [vmem:[%s16129_s27 + $0x218] sm:$0xff] %vm9833_vm6, %v9772_v47  ;;  %v9707_v14 = vmax.f32 %v9203_v50, 0.0  ;;  %v9206_v21 = vadd.f32 %v10832_v20, %v16085_v9  ;;  %v16147_v10 = vpop.permute.xlu0 %6698  ;;  %v9197_v26 = vpop.f32.mrb[3].mxu0  ;;  %v8913_v24 = vsel %vm8873_vm4, %v8784_v62, %v7881_v60  ;;  %v8014_v15 = vsel %vm7970_vm12, %v11515_v28, %v17706_v36  ;;  %v17711_v53 = vld [vmem:[#allocation124_spill] sm:$0xff]  ;;  %v17719_v8 = vld [vmem:[#allocation238_spill] sm:$0xff]  ;;  %v17722_v13 = vld [vmem:[#allocation267_spill] sm:$0xff] }
 0x508   : > { %9899 = vst.msk [vmem:[%s16129_s27 + $0x208] sm:$0xff] %vm9833_vm6, %v9770_v61  ;;  %v9705_v41 = vmax.f32 %v9195_v51, 0.0  ;;  %v9198_v19 = vadd.f32 %v16085_v9, %v9197_v26  ;;  %6714 = vrot.lane.b32.xlu1 %v16071_v18, %s11600_s9  ;;  %10866 = vmatmul.mubr.msk.bf16.gmra.mrb[36].mxu0 %vm9024_vm5, %v8913_v24  ;;  %v8076_v29 = vsel %vm7970_vm12, %v17708_v34, %v17707_v32  ;;  %v17713_v50 = vld [vmem:[#allocation164_spill] sm:$0xff]  ;;  %v7832_v62 = vrot.slane %v10555_v17, 1  ;;  %v17714_v51 = vld [vmem:[#allocation167_spill] sm:$0xff]  ;;  %v17721_v17 = vld [vmem:[#allocation318_spill] sm:$0xff] }
 0x509   : > { %9836 = vst.msk [vmem:[%s16129_s27 + $0x10] sm:$0xff] %vm9833_vm6, %v9707_v14  ;;  %v9708_v44 = vmax.f32 %v9206_v21, 0.0  ;;  %7514 = vrot.lane.b32.xlu0 %v7109_v40, %s11602_s17  ;;  %v16180_v40 = vcombine.low %v2876_v4, %v16161_v45  ;;  %v8078_v31 = vsel %vm7970_vm12, %v11516_v52, %v17709_v46  ;;  %v8141_v3 = vsel %vm8099_vm13, %v8012_v54, %v17710_v35  ;;  %v11517_v21 = vld [vmem:[#allocation2 + $0x288] sm:$0xff]   ;;  %v16215_v24 = vld [vmem:[#allocation2 + $0x15c] sm:$0xff]   ;;  %v2940_v28 = vld [vmem:[#allocation2 + $0x294] sm:$0xf] }
 0x50a   : > { %9834 = vst.msk [vmem:[%s16129_s27] sm:$0xff] %vm9833_vm6, %v9705_v41  ;;  %v9706_v18 = vmax.f32 %v9198_v19, 0.0  ;;  %v16165_v59 = vpop.permute.xlu1 %6634  ;;  %v8143_v56 = vsel %vm8099_vm13, %v8014_v15, %v17711_v53  ;;  %v8205_v11 = vsel %vm8099_vm13, %v8076_v29, %v17712_v37  ;;  %v8207_v16 = vsel %vm8099_vm13, %v8078_v31, %v17713_v50  ;;  %v17715_v41 = vld [vmem:[#allocation207_spill] sm:$0xff]  ;;  %v17718_v23 = vld [vmem:[#allocation264_spill] sm:$0xff]  ;;  %v17725_v52 = vld [vmem:[#allocation321_spill] sm:$0xff] }
 0x50b   : > { %9837 = vst.msk [vmem:[%s16129_s27 + $0x18] sm:$0xff] %vm9833_vm6, %v9708_v44  ;;  %v16173_v0 = vpop.permute.xlu0 %6700  ;;  %v7121_v47 = vshll.u32 %v16180_v40, 16  ;;  %v7437_v55 = vsel %vm3424_vm2, %v7432_v33, %v7436_v48  ;;  %v7833_v61 = vrot.slane %v16102_v63, 1  ;;  %v8334_v20 = vsel %vm8228_vm14, %v8205_v11, %v17714_v51  ;;  %v17717_v44 = vld [vmem:[#allocation171_spill] sm:$0xff]  ;;  %v17720_v33 = vld [vmem:[#allocation241_spill] sm:$0xff]  ;;  %v17723_v15 = vld [vmem:[#allocation292_spill] sm:$0xff] }
 0x50c   : > { %9835 = vst.msk [vmem:[%s16129_s27 + $0x8] sm:$0xff] %vm9833_vm6, %v9706_v18  ;;  %6716 = vrot.lane.b32.xlu1 %v16102_v63, %s11600_s9  ;;  %v7756_v43 = vsel %vm4289_vm9, %v7753_v42, %v7755_v5  ;;  %v6141_v14 = vrot.slane %v10428_v25, 1  ;;  %v6142_v26 = vrot.slane %v11517_v21, 1  ;;  %v8270_v19 = vsel %vm8228_vm14, %v8141_v3, %v17715_v41  ;;  %v16242_v36 = vld [vmem:[#allocation2 + $0x298] sm:$0xf]  ;;  %v17724_v34 = vld [vmem:[#allocation295_spill] sm:$0xff] }
 0x50d   : > { %7516 = vrot.lane.b32.xlu0 %v7117_v7, %s11602_s17  ;;  %v8272_v1 = vsel %vm8228_vm14, %v8143_v56, %v17716_v30  ;;  %v8336_v63 = vsel %vm8228_vm14, %v8207_v16, %v17717_v44  ;;  %v8463_v12 = vsel %vm8357_vm15, %v8334_v20, %v17718_v23  ;;  %v7835_v18 = vrot.slane %v16137_v38, 1  ;;  %v11518_v7 = vld [vmem:[#allocation2 + $0x290] ss:$0 sps:$4 sm:$0x11]  }
 0x50e   : > { %v16185_v6 = vpop.permute.xlu1 %6636  ;;  %v6144_v39 = vrot.slane %v11518_v7, 1  ;;  %v7119_v42 = vshrl.u32 %v16180_v40, 16  ;;  %v7123_v57 = vrot.slane %v7121_v47, 1  ;;  %v8401_v48 = vsel %vm8357_vm15, %v8272_v1, %v17720_v33  ;;  %v16267_v20 = vld [vmem:[#allocation2 + $0x164] ss:$0 sps:$4 sm:$0x11]  }
 0x50f   : > { %v7563_v27 = vpop.permute.xlu0 %7562  ;;  %v7834_v5 = vsel %vm4289_vm9, %v7832_v62, %v7833_v61  ;;  %v8465_v38 = vsel %vm8357_vm15, %v8336_v63, %v17722_v13  ;;  %v6143_v22 = vsel %vm4289_vm9, %v6141_v14, %v6142_v26  ;;  %v7126_v54 = vshll.u32 %v16215_v24, 16 }
 0x510   : > { %7578 = vrot.lane.b32.xlu1 %v7429_v49, %s11602_s17  ;;  %v8399_v49 = vsel %vm8357_vm15, %v8270_v19, %v17719_v8  ;;  %v8530_v29 = vsel %vm8486_vm0, %v8401_v48, %v17724_v34  ;;  %v8594_v46 = vsel %vm8486_vm0, %v8465_v38, %v17725_v52  ;;  %v7836_v53 = vsel %vm4289_vm9, %v7833_v61, %v7835_v18  ;;  %v16285_v18 = vld [vmem:[#allocation2 + $0x29c] sm:$0xff]  }
 0x511   : > { %7898 = vrot.lane.b32.xlu0 %v7754_v2, %s11603_s19  ;;  %v8592_v2 = vsel %vm8486_vm0, %v8463_v12, %v17721_v17  ;;  %v8528_v32 = vsel %vm8486_vm0, %v8399_v49, %v17723_v15  ;;  %v6145_v56 = vsel %vm4289_vm9, %v6142_v26, %v6144_v39  ;;  %v7124_v37 = vor.u32 %v7123_v57, %v7119_v42  ;;  %v16309_v15 = vld [vmem:[#allocation2 + $0x2a4] ss:$0 sps:$4 sm:$0x11]  }
 0x512   : > { %v7499_v60 = vpop.permute.xlu1 %7498  ;;  %v8721_v25 = vsel %vm8615_vm1, %v8592_v2, %v16147_v10  ;;  %v8657_v11 = vsel %vm8615_vm1, %v8528_v32, %v16165_v59  ;;  %v8723_v16 = vsel %vm8615_vm1, %v8594_v46, %v16173_v0  ;;  %v7128_v59 = vrot.slane %v7126_v54, 1 }
 0x513   : > { %v7565_v4 = vpop.permute.xlu0 %7564  ;;  %v8850_v31 = vsel %vm8744_vm3, %v8721_v25, %v7563_v27  ;;  %v16261_v27 = vcombine.low %v2940_v28, %v16242_v36  ;;  %v7130_v44 = vshrl.u32 %v16215_v24, 16  ;;  %v8659_v63 = vsel %vm8615_vm1, %v8530_v29, %v16185_v6 }
 0x514   : > { %7580 = vrot.lane.b32.xlu1 %v7437_v55, %s11602_s17  ;;  %v8786_v55 = vsel %vm8744_vm3, %v8657_v11, %v7499_v60  ;;  %v7446_v28 = vshll.u32 %v16285_v18, 16  ;;  %v7758_v11 = vrot.slane %v16215_v24, 1 }
 0x515   : > { %7900 = vrot.lane.b32.xlu0 %v7756_v43, %s11603_s19  ;;  %v8852_v43 = vsel %vm8744_vm3, %v8723_v16, %v7565_v4  ;;  %v7441_v7 = vshll.u32 %v16261_v27, 16  ;;  %v7439_v25 = vshrl.u32 %v16261_v27, 16  ;;  %v7132_v29 = vor.u32 %v7130_v44, %v7128_v59  ;;  %v17726_v16 = vld [vmem:[#allocation59_spill] sm:$0xff]  ;;  %v17731_v44 = vld [vmem:[#allocation240_spill] sm:$0xff] }
 0x516   : > { %v7501_v58 = vpop.permute.xlu1 %7500 }
 0x517   : > { %v7947_v10 = vpop.permute.xlu0 %7946  ;;  %v8788_v39 = vsel %vm8744_vm3, %v8659_v63, %v7501_v58  ;;  %v7443_v54 = vrot.slane %v7441_v7, 1  ;;  %v17732_v63 = vld [vmem:[#allocation294_spill] sm:$0xff] }
 0x518   : > { %v8979_v35 = vsel %vm8873_vm4, %v8850_v31, %v7947_v10  ;;  %v10899_v3 = vpop.f32.mrb[4].mxu1  ;;  %7962 = vrot.lane.b32.xlu1 %v7834_v5, %s11603_s19  ;;  %v2991_v5 = vld [vmem:[#allocation2 + $0x154] sm:$0xe]  ;;  %v17733_v7 = vld [vmem:[#allocation126_spill] sm:$0xff] }
 0x519   : > { %v9475_v47 = vadd.f32 %v10899_v3, %v16085_v9  ;;  %6270 = vrot.lane.b32.xlu0 %v6143_v22, %s11599_s6  ;;  %v9466_v50 = vpop.f32.mrb[5].mxu1  ;;  %10933 = vmatprep.mubr.msk.bf16.mxu1 %vm9024_vm5, %v8979_v35  ;;  %v7129_v22 = vsel %vm3424_vm2, %v7124_v37, %v7128_v59  ;;  %v10540_v46 = vcombine.low %v2991_v5, %v16161_v45  ;;  %v7448_v35 = vrot.slane %v7446_v28, 1 }
 0x51a   : > { %v9467_v62 = vadd.f32 %v16085_v9, %v9466_v50  ;;  %v10900_v61 = vpop.f32.mrb[6].mxu1  ;;  %v7883_v51 = vpop.permute.xlu1 %7882  ;;  %v7444_v10 = vor.u32 %v7443_v54, %v7439_v25  ;;  %v7450_v3 = vshrl.u32 %v16285_v18, 16  ;;  %v17738_v25 = vld [vmem:[#allocation161_spill] sm:$0xff] }
 0x51b   : > { %v9775_v14 = vmax.f32 %v9475_v47, 0.0  ;;  %v9478_v21 = vadd.f32 %v10900_v61, %v16085_v9  ;;  %v7949_v26 = vpop.permute.xlu0 %7948  ;;  %v9469_v41 = vpop.f32.mrb[7].mxu1  ;;  %v8915_v19 = vsel %vm8873_vm4, %v8786_v55, %v7883_v51  ;;  %v7757_v37 = vrot.slane %v10540_v46, 1  ;;  %v3007_v47 = vld [vmem:[#allocation2 + $0x294] sm:$0xe]  ;;  %v17727_v55 = vld [vmem:[#allocation17_spill] sm:$0xff] }
 0x51c   : > { %v9773_v0 = vmax.f32 %v9467_v62, 0.0  ;;  %v8981_v60 = vsel %vm8873_vm4, %v8852_v43, %v7949_v26  ;;  %v9470_v30 = vadd.f32 %v16085_v9, %v9469_v41  ;;  %v10835_v1 = vpop.f32.mrb[4].mxu0  ;;  %7964 = vrot.lane.b32.xlu1 %v7836_v53, %s11603_s19  ;;  %10869 = vmatprep.mubr.msk.bf16.mxu0 %vm9024_vm5, %v8915_v19  ;;  %v7454_v53 = vshll.u32 %v16309_v15, 16  ;;  %v17728_v43 = vld [vmem:[#allocation123_spill] sm:$0xff]  ;;  %v17729_v41 = vld [vmem:[#allocation209_spill] sm:$0xff] }
 0x51d   : > { %9904 = vst.msk [vmem:[%s16129_s27 + $0x230] sm:$0xff] %vm9833_vm6, %v9775_v14  ;;  %v9776_v23 = vmax.f32 %v9478_v21, 0.0  ;;  %v9219_v12 = vadd.f32 %v10835_v1, %v16085_v9  ;;  %6654 = vrot.lane.b32.xlu0 %v16180_v40, %s11600_s9  ;;  %v9210_v4 = vpop.f32.mrb[5].mxu0  ;;  %10934 = vmatmul.mubr.msk.bf16.gmra.mrb[40].mxu1 %vm9024_vm5, %v8981_v60  ;;  %v7134_v40 = vshll.u32 %v16267_v20, 16  ;;  %v7449_v62 = vsel %vm3424_vm2, %v7444_v10, %v7448_v35  ;;  %v11519_v60 = vld [vmem:[#allocation2 + $0xe4] sm:$0xff]  }
 0x51e   : > { %9902 = vst.msk [vmem:[%s16129_s27 + $0x220] sm:$0xff] %vm9833_vm6, %v9773_v0  ;;  %v9774_v6 = vmax.f32 %v9470_v30, 0.0  ;;  %v9211_v42 = vadd.f32 %v16085_v9, %v9210_v4  ;;  %v10836_v57 = vpop.f32.mrb[6].mxu0  ;;  %v7885_v8 = vpop.permute.xlu1 %7884  ;;  %v7452_v61 = vor.u32 %v7450_v3, %v7448_v35  ;;  %v7456_v51 = vrot.slane %v7454_v53, 1  ;;  %v17730_v30 = vld [vmem:[#allocation62_spill] sm:$0xff]  ;;  %v17741_v3 = vld [vmem:[#allocation168_spill] sm:$0xff] }
 0x51f   : > { %9905 = vst.msk [vmem:[%s16129_s27 + $0x238] sm:$0xff] %vm9833_vm6, %v9776_v23  ;;  %v9711_v49 = vmax.f32 %v9219_v12, 0.0  ;;  %v9222_v33 = vadd.f32 %v10836_v57, %v16085_v9  ;;  %v6639_v48 = vpop.permute.xlu0 %6638  ;;  %v9213_v17 = vpop.f32.mrb[7].mxu0  ;;  %v8917_v2 = vsel %vm8873_vm4, %v8788_v39, %v7885_v8  ;;  %v7136_v52 = vrot.slane %v7134_v40, 1  ;;  %v17734_v8 = vld [vmem:[#allocation91_spill] sm:$0xff]  ;;  %v17735_v40 = vld [vmem:[#allocation37_spill] sm:$0xff] }
 0x520   : > { %9903 = vst.msk [vmem:[%s16129_s27 + $0x228] sm:$0xff] %vm9833_vm6, %v9774_v6  ;;  %v9709_v13 = vmax.f32 %v9211_v42, 0.0  ;;  %v9214_v38 = vadd.f32 %v16085_v9, %v9213_v17  ;;  %6272 = vrot.lane.b32.xlu1 %v6145_v56, %s11599_s6  ;;  %10870 = vmatmul.mubr.msk.bf16.gmra.mrb[40].mxu0 %vm9024_vm5, %v8917_v2  ;;  %v10556_v59 = vcombine.low %v3007_v47, %v16242_v36  ;;  %v7760_v26 = vrot.slane %v16267_v20, 1 }
 0x521   : > { %9840 = vst.msk [vmem:[%s16129_s27 + $0x30] sm:$0xff] %vm9833_vm6, %v9711_v49  ;;  %v9712_v58 = vmax.f32 %v9222_v33, 0.0  ;;  %6656 = vrot.lane.b32.xlu0 %v16215_v24, %s11600_s9  ;;  %v7137_v45 = vsel %vm3424_vm2, %v7132_v29, %v7136_v52  ;;  %v7759_v21 = vsel %vm4289_vm9, %v7757_v37, %v7758_v11  ;;  %v8018_v1 = vsel %vm7970_vm12, %v11519_v60, %v17730_v30  ;;  %v17736_v33 = vld [vmem:[#allocation212_spill] sm:$0xff] }
 0x522   : > { %9838 = vst.msk [vmem:[%s16129_s27 + $0x20] sm:$0xff] %vm9833_vm6, %v9709_v13  ;;  %v9710_v32 = vmax.f32 %v9214_v38, 0.0  ;;  %v16313_v34 = vpop.permute.xlu1 %6256  ;;  %v7457_v20 = vsel %vm3424_vm2, %v7452_v61, %v7456_v51  ;;  %v7837_v12 = vrot.slane %v10556_v59, 1  ;;  %v7838_v4 = vrot.slane %v16285_v18, 1  ;;  %v11520_v13 = vld [vmem:[#allocation2 + $0x224] sm:$0xff]  }
 0x523   : > { %9841 = vst.msk [vmem:[%s16129_s27 + $0x38] sm:$0xff] %vm9833_vm6, %v9712_v58  ;;  %v6641_v31 = vpop.permute.xlu0 %6640  ;;  %v8147_v39 = vsel %vm8099_vm13, %v8018_v1, %v17733_v7  ;;  %v7761_v57 = vsel %vm4289_vm9, %v7758_v11, %v7760_v26  ;;  %v8080_v49 = vsel %vm7970_vm12, %v17735_v40, %v17734_v8  ;;  %v17739_v58 = vld [vmem:[#allocation243_spill] sm:$0xff]  ;;  %v7840_v35 = vrot.slane %v16309_v15, 1  ;;  %v17746_v7 = vld [vmem:[#allocation269_spill] sm:$0xff] }
 0x524   : > { %9839 = vst.msk [vmem:[%s16129_s27 + $0x28] sm:$0xff] %vm9833_vm6, %v9710_v32  ;;  %6718 = vrot.lane.b32.xlu1 %v16261_v27, %s11600_s9  ;;  %v8016_v27 = vsel %vm7970_vm12, %v17727_v55, %v17726_v16  ;;  %v8276_v17 = vsel %vm8228_vm14, %v8147_v39, %v17736_v33  ;;  %v17740_v32 = vld [vmem:[#allocation297_spill] sm:$0xff]  ;;  %v7839_v10 = vsel %vm4289_vm9, %v7837_v12, %v7838_v4  ;;  %v17743_v55 = vld [vmem:[#allocation266_spill] sm:$0xff] }
 0x525   : > { %7518 = vrot.lane.b32.xlu0 %v7129_v22, %s11602_s17  ;;  %v8145_v24 = vsel %vm8099_vm13, %v8016_v27, %v17728_v43  ;;  %v8405_v22 = vsel %vm8357_vm15, %v8276_v17, %v17739_v58  ;;  %v17744_v43 = vld [vmem:[#allocation320_spill] sm:$0xff]  ;;  %v7841_v1 = vsel %vm4289_vm9, %v7838_v4, %v7840_v35 }
 0x526   : > { %v16325_v56 = vpop.permute.xlu1 %6702  ;;  %v8274_v19 = vsel %vm8228_vm14, %v8145_v24, %v17729_v41  ;;  %v8534_v29 = vsel %vm8486_vm0, %v8405_v22, %v17740_v32  ;;  %v17747_v22 = vld [vmem:[#allocation61_spill] sm:$0xff] }
 0x527   : > { %v7503_v50 = vpop.permute.xlu0 %7502  ;;  %v8403_v36 = vsel %vm8357_vm15, %v8274_v19, %v17731_v44  ;;  %v8663_v11 = vsel %vm8615_vm1, %v8534_v29, %v6641_v31  ;;  %v17745_v44 = vld [vmem:[#allocation175_spill] sm:$0xff]  ;;  %v17749_v32 = vld [vmem:[#allocation125_spill] sm:$0xff] }
 0x528   : > { %6720 = vrot.lane.b32.xlu1 %v16285_v18, %s11600_s9  ;;  %v8532_v23 = vsel %vm8486_vm0, %v8403_v36, %v17732_v63  ;;  %v17737_v18 = vld [vmem:[#allocation94_spill] sm:$0xff]  ;;  %s11604_s9 = smov [#allocation3]  }
 0x529   : > { %7520 = vrot.lane.b32.xlu0 %v7137_v45, %s11602_s17  ;;  %v8661_v6 = vsel %vm8615_vm1, %v8532_v23, %v6639_v48  ;;  %v8082_v38 = vsel %vm7970_vm12, %v11520_v13, %v17737_v18  ;;  %v8209_v48 = vsel %vm8099_vm13, %v8080_v49, %v17738_v25  ;;  %v17742_v45 = vld [vmem:[#allocation174_spill] sm:$0xff]  ;;  %s11534_s10 = sshll.u32 %s11604_s9, 4  ;;  %s11535_s10 = int_to_ptr.vmem [resolvable:$false] %s11534_s10 }
 0x52a   : > { %v16339_v14 = vpop.permute.xlu1 %6704  ;;  %v8790_v2 = vsel %vm8744_vm3, %v8661_v6, %v7503_v50  ;;  %v8211_v53 = vsel %vm8099_vm13, %v8082_v38, %v17741_v3  ;;  %v8338_v37 = vsel %vm8228_vm14, %v8209_v48, %v17742_v45  ;;  %v17751_v3 = vld [vmem:[#allocation242_spill] sm:$0xff]  ;;  %s11536_s11 = scalar_lea.vmem %s11535_s10, 32768  ;;  %p11537_p0 = scmp.lt.s32.totalorder %s17012_s4, %s11535_s10 }
 0x52b   : > { %v7505_v0 = vpop.permute.xlu0 %7504  ;;  %v8467_v27 = vsel %vm8357_vm15, %v8338_v37, %v17743_v55  ;;  %v8340_v36 = vsel %vm8228_vm14, %v8211_v53, %v17745_v44  ;;  %v11521_v37 = vld [vmem:[#allocation2 + $0xf8] sm:$0xff]   ;;  %p11538_p1 = scmp.lt.s32.totalorder %s11536_s11, %s11530_s8 }
 0x52c   : > { %7582 = vrot.lane.b32.xlu1 %v7449_v62, %s11602_s17  ;;  %v8792_v62 = vsel %vm8744_vm3, %v8663_v11, %v7505_v0  ;;  %v8596_v24 = vsel %vm8486_vm0, %v8467_v27, %v17744_v43  ;;  %v8469_v39 = vsel %vm8357_vm15, %v8340_v36, %v17746_v7  ;;  %v17752_v11 = vld [vmem:[#allocation64_spill] sm:$0xff] }
 0x52d   : > { %7902 = vrot.lane.b32.xlu0 %v7759_v21, %s11603_s19  ;;  %v8725_v19 = vsel %vm8615_vm1, %v8596_v24, %v16325_v56  ;;  %v8598_v40 = vsel %vm8486_vm0, %v8469_v39, %v16313_v34  ;;  %v17755_v27 = vld [vmem:[#allocation296_spill] sm:$0xff]  ;;  %p11539_p2 = por %p11538_p1, %p11537_p0 }
 0x52e   : > { %v7567_v42 = vpop.permute.xlu1 %7566  ;;  %v8727_v17 = vsel %vm8615_vm1, %v8598_v40, %v16339_v14  ;;  %v17757_v24 = vld [vmem:[#allocation128_spill] sm:$0xff] }
 0x52f   : > { %v7887_v5 = vpop.permute.xlu0 %7886  ;;  %v8854_v63 = vsel %vm8744_vm3, %v8725_v19, %v7567_v42  ;;  %p11540_p3 = pnand %p11539_p2, %p11533_p13 }
 0x530   : > { %v8919_v54 = vsel %vm8873_vm4, %v8790_v2, %v7887_v5  ;;  %v10903_v28 = vpop.f32.mrb[8].mxu1  ;;  %7584 = vrot.lane.b32.xlu1 %v7457_v20, %s11602_s17 }
 0x531   : > { %v9491_v52 = vadd.f32 %v10903_v28, %v16085_v9  ;;  %7904 = vrot.lane.b32.xlu0 %v7761_v57, %s11603_s19  ;;  %v9482_v46 = vpop.f32.mrb[9].mxu1  ;;  %10873 = vmatprep.mubr.msk.bf16.mxu0 %vm9024_vm5, %v8919_v54  ;;  %v17748_v54 = vld [vmem:[#allocation18_spill] sm:$0xff] }
 0x532   : > { %v9483_v47 = vadd.f32 %v16085_v9, %v9482_v46  ;;  %v10904_v50 = vpop.f32.mrb[10].mxu1  ;;  %v7569_v16 = vpop.permute.xlu1 %7568  ;;  %v8020_v28 = vsel %vm7970_vm12, %v17748_v54, %v17747_v22  ;;  %v17750_v46 = vld [vmem:[#allocation211_spill] sm:$0xff] }
 0x533   : > { %v9779_v61 = vmax.f32 %v9491_v52, 0.0  ;;  %v9494_v15 = vadd.f32 %v10904_v50, %v16085_v9  ;;  %v7889_v51 = vpop.permute.xlu0 %7888  ;;  %v9485_v59 = vpop.f32.mrb[11].mxu1  ;;  %v8856_v5 = vsel %vm8744_vm3, %v8727_v17, %v7569_v16  ;;  %v8149_v29 = vsel %vm8099_vm13, %v8020_v28, %v17749_v32  ;;  %v17753_v50 = vld [vmem:[#allocation93_spill] sm:$0xff]  ;;  %v17754_v16 = vld [vmem:[#allocation42_spill] sm:$0xff] }
 0x534   : > { %v9777_v31 = vmax.f32 %v9483_v47, 0.0  ;;  %v8921_v21 = vsel %vm8873_vm4, %v8792_v62, %v7889_v51  ;;  %v9486_v26 = vadd.f32 %v16085_v9, %v9485_v59  ;;  %v10839_v41 = vpop.f32.mrb[8].mxu0  ;;  %7966 = vrot.lane.b32.xlu1 %v7839_v10, %s11603_s19  ;;  %v8278_v10 = vsel %vm8228_vm14, %v8149_v29, %v17750_v46  ;;  %v11522_v51 = vld [vmem:[#allocation2 + $0x238] sm:$0xff]   ;;  %v17762_v17 = vld [vmem:[#allocation178_spill] sm:$0xff] }
 0x535   : > { %9908 = vst.msk [vmem:[%s16129_s27 + $0x250] sm:$0xff] %vm9833_vm6, %v9779_v61  ;;  %v9780_v0 = vmax.f32 %v9494_v15, 0.0  ;;  %v9235_v60 = vadd.f32 %v10839_v41, %v16085_v9  ;;  %v9226_v30 = vpop.f32.mrb[9].mxu0  ;;  %10874 = vmatmul.mubr.msk.bf16.gmra.mrb[44].mxu0 %vm9024_vm5, %v8921_v21  ;;  %v8407_v53 = vsel %vm8357_vm15, %v8278_v10, %v17751_v3  ;;  %v8022_v47 = vsel %vm7970_vm12, %v11521_v37, %v17752_v11  ;;  %v17756_v59 = vld [vmem:[#allocation96_spill] sm:$0xff] }
 0x536   : > { %9906 = vst.msk [vmem:[%s16129_s27 + $0x240] sm:$0xff] %vm9833_vm6, %v9777_v31  ;;  %v9778_v23 = vmax.f32 %v9486_v26, 0.0  ;;  %v9227_v56 = vadd.f32 %v16085_v9, %v9226_v30  ;;  %v10840_v20 = vpop.f32.mrb[10].mxu0  ;;  %v7951_v12 = vpop.permute.xlu1 %7950  ;;  %v8084_v55 = vsel %vm7970_vm12, %v17754_v16, %v17753_v50  ;;  %v8536_v62 = vsel %vm8486_vm0, %v8407_v53, %v17755_v27  ;;  %v17766_v27 = vld [vmem:[#allocation272_spill] sm:$0xff] }
 0x537   : > { %9909 = vst.msk [vmem:[%s16129_s27 + $0x258] sm:$0xff] %vm9833_vm6, %v9780_v0  ;;  %v9715_v4 = vmax.f32 %v9235_v60, 0.0  ;;  %v9238_v6 = vadd.f32 %v10840_v20, %v16085_v9  ;;  %v16413_v57 = vpop.permute.xlu0 %6258  ;;  %v9229_v42 = vpop.f32.mrb[11].mxu0  ;;  %v8983_v8 = vsel %vm8873_vm4, %v8854_v63, %v7951_v12  ;;  %v8086_v43 = vsel %vm7970_vm12, %v11522_v51, %v17756_v59  ;;  %v17758_v0 = vld [vmem:[#allocation214_spill] sm:$0xff] }
 0x538   : > { %9907 = vst.msk [vmem:[%s16129_s27 + $0x248] sm:$0xff] %vm9833_vm6, %v9778_v23  ;;  %v9713_v49 = vmax.f32 %v9227_v56, 0.0  ;;  %v9230_v33 = vadd.f32 %v16085_v9, %v9229_v42  ;;  %7968 = vrot.lane.b32.xlu1 %v7841_v1, %s11603_s19  ;;  %10937 = vmatprep.mubr.msk.bf16.mxu1 %vm9024_vm5, %v8983_v8  ;;  %v8151_v31 = vsel %vm8099_vm13, %v8022_v47, %v17757_v24  ;;  %v17759_v23 = vld [vmem:[#allocation245_spill] sm:$0xff]  ;;  %v17761_v42 = vld [vmem:[#allocation299_spill] sm:$0xff] }
 0x539   : > { %9844 = vst.msk [vmem:[%s16129_s27 + $0x50] sm:$0xff] %vm9833_vm6, %v9715_v4  ;;  %v9716_v2 = vmax.f32 %v9238_v6, 0.0  ;;  %v8280_v60 = vsel %vm8228_vm14, %v8151_v31, %v17758_v0  ;;  %v17760_v4 = vld [vmem:[#allocation165_spill] sm:$0xff]  ;;  %v17767_v0 = vld [vmem:[#allocation63_spill] sm:$0xff] }
 0x53a   : > { %9842 = vst.msk [vmem:[%s16129_s27 + $0x40] sm:$0xff] %vm9833_vm6, %v9713_v49  ;;  %v9714_v34 = vmax.f32 %v9230_v33, 0.0  ;;  %v7953_v13 = vpop.permute.xlu1 %7952  ;;  %v8409_v56 = vsel %vm8357_vm15, %v8280_v60, %v17759_v23  ;;  %v8213_v6 = vsel %vm8099_vm13, %v8084_v55, %v17760_v4  ;;  %v17768_v60 = vld [vmem:[#allocation19_spill] sm:$0xff] }
 0x53b   : > { %9845 = vst.msk [vmem:[%s16129_s27 + $0x58] sm:$0xff] %vm9833_vm6, %v9716_v2  ;;  %v6643_v18 = vpop.permute.xlu0 %6642  ;;  %v8985_v38 = vsel %vm8873_vm4, %v8856_v5, %v7953_v13  ;;  %v8538_v8 = vsel %vm8486_vm0, %v8409_v56, %v17761_v42  ;;  %v8342_v2 = vsel %vm8228_vm14, %v8213_v6, %v17762_v17  ;;  %v11523_v42 = vld [vmem:[#allocation2 + $0x10c] sm:$0xff]  }
 0x53c   : > { %9843 = vst.msk [vmem:[%s16129_s27 + $0x48] sm:$0xff] %vm9833_vm6, %v9714_v34  ;;  %10938 = vmatmul.mubr.msk.bf16.gmra.mrb[44].mxu1 %vm9024_vm5, %v8985_v38  ;;  %v8665_v21 = vsel %vm8615_vm1, %v8536_v62, %v6643_v18 }
 0x53e   : > { %v16436_v25 = vpop.permute.xlu1 %6260 }
 0x53f   : > { %v6645_v14 = vpop.permute.xlu0 %6644 }
 0x540   : > { %v8667_v5 = vsel %vm8615_vm1, %v8538_v8, %v6645_v14  ;;  %v17771_v8 = vld [vmem:[#allocation66_spill] sm:$0xff] }
 0x542   : > { %v6707_v48 = vpop.permute.xlu1 %6706 }
 0x543   : > { %v7507_v58 = vpop.permute.xlu0 %7506 }
 0x544   : > { %v8794_v30 = vsel %vm8744_vm3, %v8665_v21, %v7507_v58  ;;  %v17763_v58 = vld [vmem:[#allocation268_spill] sm:$0xff] }
 0x545   : > { %v8471_v22 = vsel %vm8357_vm15, %v8342_v2, %v17763_v58 }
 0x546   : > { %v16443_v52 = vpop.permute.xlu1 %6708  ;;  %v8600_v46 = vsel %vm8486_vm0, %v8471_v22, %v16413_v57  ;;  %v17765_v57 = vld [vmem:[#allocation182_spill] sm:$0xff] }
 0x547   : > { %v7509_v35 = vpop.permute.xlu0 %7508  ;;  %v8729_v37 = vsel %vm8615_vm1, %v8600_v46, %v6707_v48 }
 0x548   : > { %v10907_v45 = vpop.f32.mrb[12].mxu1  ;;  %v8796_v54 = vsel %vm8744_vm3, %v8667_v5, %v7509_v35  ;;  %v17764_v35 = vld [vmem:[#allocation172_spill] sm:$0xff] }
 0x549   : > { %v9507_v61 = vadd.f32 %v10907_v45, %v16085_v9  ;;  %v9498_v15 = vpop.f32.mrb[13].mxu1  ;;  %v8215_v45 = vsel %vm8099_vm13, %v8086_v43, %v17764_v35  ;;  %v17777_v35 = vld [vmem:[#allocation216_spill] sm:$0xff] }
 0x54a   : > { %v9499_v26 = vadd.f32 %v16085_v9, %v9498_v15  ;;  %v10908_v41 = vpop.f32.mrb[14].mxu1  ;;  %v7571_v19 = vpop.permute.xlu1 %7570  ;;  %v8344_v47 = vsel %vm8228_vm14, %v8215_v45, %v17765_v57 }
 0x54b   : > { %v9783_v1 = vmax.f32 %v9507_v61, 0.0  ;;  %v9510_v44 = vadd.f32 %v10908_v41, %v16085_v9  ;;  %v7891_v36 = vpop.permute.xlu0 %7890  ;;  %v9501_v63 = vpop.f32.mrb[15].mxu1  ;;  %v8858_v50 = vsel %vm8744_vm3, %v8729_v37, %v7571_v19  ;;  %v8473_v62 = vsel %vm8357_vm15, %v8344_v47, %v17766_v27 }
 0x54c   : > { %v9781_v20 = vmax.f32 %v9499_v26, 0.0  ;;  %v8923_v12 = vsel %vm8873_vm4, %v8794_v30, %v7891_v36  ;;  %v9502_v7 = vadd.f32 %v16085_v9, %v9501_v63  ;;  %v10843_v39 = vpop.f32.mrb[12].mxu0  ;;  %v8602_v15 = vsel %vm8486_vm0, %v8473_v62, %v16436_v25 }
 0x54d   : > { %9912 = vst.msk [vmem:[%s16129_s27 + $0x270] sm:$0xff] %vm9833_vm6, %v9783_v1  ;;  %v9784_v40 = vmax.f32 %v9510_v44, 0.0  ;;  %v9251_v49 = vadd.f32 %v10843_v39, %v16085_v9  ;;  %v9242_v33 = vpop.f32.mrb[13].mxu0  ;;  %10877 = vmatprep.mubr.msk.bf16.mxu0 %vm9024_vm5, %v8923_v12  ;;  %v8731_v51 = vsel %vm8615_vm1, %v8602_v15, %v16443_v52  ;;  %v8024_v30 = vsel %vm7970_vm12, %v17768_v60, %v17767_v0  ;;  %v17769_v44 = vld [vmem:[#allocation127_spill] sm:$0xff]  ;;  %v17779_v15 = vld [vmem:[#allocation169_spill] sm:$0xff] }
 0x54e   : > { %9910 = vst.msk [vmem:[%s16129_s27 + $0x260] sm:$0xff] %vm9833_vm6, %v9781_v20  ;;  %v9782_v34 = vmax.f32 %v9502_v7, 0.0  ;;  %v9243_v13 = vadd.f32 %v16085_v9, %v9242_v33  ;;  %v10844_v18 = vpop.f32.mrb[14].mxu0  ;;  %v7573_v38 = vpop.permute.xlu1 %7572  ;;  %v8153_v36 = vsel %vm8099_vm13, %v8024_v30, %v17769_v44  ;;  %v17770_v20 = vld [vmem:[#allocation213_spill] sm:$0xff]  ;;  %v17782_v30 = vld [vmem:[#allocation271_spill] sm:$0xff] }
 0x54f   : > { %9913 = vst.msk [vmem:[%s16129_s27 + $0x278] sm:$0xff] %vm9833_vm6, %v9784_v40  ;;  %v9719_v28 = vmax.f32 %v9251_v49, 0.0  ;;  %v9254_v32 = vadd.f32 %v10844_v18, %v16085_v9  ;;  %v7893_v14 = vpop.permute.xlu0 %7892  ;;  %v9245_v29 = vpop.f32.mrb[15].mxu0  ;;  %v8860_v59 = vsel %vm8744_vm3, %v8731_v51, %v7573_v38  ;;  %v8282_v12 = vsel %vm8228_vm14, %v8153_v36, %v17770_v20  ;;  %v17772_v49 = vld [vmem:[#allocation244_spill] sm:$0xff]  ;;  %v17775_v38 = vld [vmem:[#allocation298_spill] sm:$0xff] }
 0x550   : > { %9911 = vst.msk [vmem:[%s16129_s27 + $0x268] sm:$0xff] %vm9833_vm6, %v9782_v34  ;;  %v9717_v10 = vmax.f32 %v9243_v13, 0.0  ;;  %v8925_v3 = vsel %vm8873_vm4, %v8796_v54, %v7893_v14  ;;  %v9246_v53 = vadd.f32 %v16085_v9, %v9245_v29  ;;  %v8026_v40 = vsel %vm7970_vm12, %v11523_v42, %v17771_v8  ;;  %v17773_v34 = vld [vmem:[#allocation95_spill] sm:$0xff] }
 0x551   : > { %9848 = vst.msk [vmem:[%s16129_s27 + $0x70] sm:$0xff] %vm9833_vm6, %v9719_v28  ;;  %v9720_v11 = vmax.f32 %v9254_v32, 0.0  ;;  %10878 = vmatmul.mubr.msk.bf16.gmra.mrb[48].mxu0 %vm9024_vm5, %v8925_v3  ;;  %v8411_v33 = vsel %vm8357_vm15, %v8282_v12, %v17772_v49  ;;  %v17774_v13 = vld [vmem:[#allocation47_spill] sm:$0xff]  ;;  %v17776_v32 = vld [vmem:[#allocation130_spill] sm:$0xff]  ;;  %v17784_v12 = vld [vmem:[#allocation176_spill] sm:$0xff] }
 0x552   : > { %9846 = vst.msk [vmem:[%s16129_s27 + $0x60] sm:$0xff] %vm9833_vm6, %v9717_v10  ;;  %v9718_v16 = vmax.f32 %v9246_v53, 0.0  ;;  %v7955_v55 = vpop.permute.xlu1 %7954  ;;  %v8088_v18 = vsel %vm7970_vm12, %v17774_v13, %v17773_v34  ;;  %v8540_v58 = vsel %vm8486_vm0, %v8411_v33, %v17775_v38  ;;  %v8155_v14 = vsel %vm8099_vm13, %v8026_v40, %v17776_v32  ;;  %v11524_v36 = vld [vmem:[#allocation2 + $0x24c] sm:$0xff]  }
 0x553   : > { %9849 = vst.msk [vmem:[%s16129_s27 + $0x78] sm:$0xff] %vm9833_vm6, %v9720_v11  ;;  %v16512_v48 = vpop.permute.xlu0 %6262  ;;  %v8987_v61 = vsel %vm8873_vm4, %v8858_v50, %v7955_v55  ;;  %v8284_v45 = vsel %vm8228_vm14, %v8155_v14, %v17777_v35  ;;  %v8217_v51 = vsel %vm8099_vm13, %v8088_v18, %v17779_v15  ;;  %v17786_v40 = vld [vmem:[#allocation274_spill] sm:$0xff]  ;;  %v17790_v15 = vld [vmem:[#allocation215_spill] sm:$0xff] }
 0x554   : > { %9847 = vst.msk [vmem:[%s16129_s27 + $0x68] sm:$0xff] %vm9833_vm6, %v9718_v16  ;;  %10941 = vmatprep.mubr.msk.bf16.mxu1 %vm9024_vm5, %v8987_v61  ;;  %v17778_v16 = vld [vmem:[#allocation247_spill] sm:$0xff] }
 0x555   : > { %v8413_v55 = vsel %vm8357_vm15, %v8284_v45, %v17778_v16  ;;  %v17787_v45 = vld [vmem:[#allocation65_spill] sm:$0xff] }
 0x556   : > { %v7957_v43 = vpop.permute.xlu1 %7956 }
 0x557   : > { %v6647_v24 = vpop.permute.xlu0 %6646  ;;  %v8989_v31 = vsel %vm8873_vm4, %v8860_v59, %v7957_v43  ;;  %v17780_v59 = vld [vmem:[#allocation301_spill] sm:$0xff] }
 0x558   : > { %10942 = vmatmul.mubr.msk.bf16.gmra.mrb[48].mxu1 %vm9024_vm5, %v8989_v31  ;;  %v8669_v29 = vsel %vm8615_vm1, %v8540_v58, %v6647_v24  ;;  %v8542_v43 = vsel %vm8486_vm0, %v8413_v55, %v17780_v59  ;;  %v17781_v31 = vld [vmem:[#allocation179_spill] sm:$0xff] }
 0x55a   : > { %v16525_v21 = vpop.permute.xlu1 %6264 }
 0x55b   : > { %v6649_v26 = vpop.permute.xlu0 %6648 }
 0x55e   : > { %v16527_v41 = vpop.permute.xlu1 %6710 }
 0x55f   : > { %v7511_v25 = vpop.permute.xlu0 %7510 }
 0x560   : > { %v10911_v19 = vpop.f32.mrb[16].mxu1  ;;  %v8798_v37 = vsel %vm8744_vm3, %v8669_v29, %v7511_v25  ;;  %v8346_v25 = vsel %vm8228_vm14, %v8217_v51, %v17781_v31 }
 0x561   : > { %v9523_v52 = vadd.f32 %v10911_v19, %v16085_v9  ;;  %v9514_v1 = vpop.f32.mrb[17].mxu1  ;;  %v8671_v19 = vsel %vm8615_vm1, %v8542_v43, %v6649_v26 }
 0x562   : > { %v9515_v63 = vadd.f32 %v16085_v9, %v9514_v1  ;;  %v10912_v23 = vpop.f32.mrb[18].mxu1  ;;  %v16536_v56 = vpop.permute.xlu1 %6712 }
 0x563   : > { %v9787_v7 = vmax.f32 %v9523_v52, 0.0  ;;  %v9526_v39 = vadd.f32 %v10912_v23, %v16085_v9  ;;  %v7513_v4 = vpop.permute.xlu0 %7512  ;;  %v9517_v6 = vpop.f32.mrb[19].mxu1  ;;  %v8475_v52 = vsel %vm8357_vm15, %v8346_v25, %v17782_v30  ;;  %v17791_v25 = vld [vmem:[#allocation246_spill] sm:$0xff]  ;;  %v11526_v30 = vld [vmem:[#allocation2 + $0x120] sm:$0xff]  }
 0x564   : > { %v9785_v17 = vmax.f32 %v9515_v63, 0.0  ;;  %v9518_v2 = vadd.f32 %v16085_v9, %v9517_v6  ;;  %v10847_v5 = vpop.f32.mrb[16].mxu0  ;;  %v8800_v1 = vsel %vm8744_vm3, %v8671_v19, %v7513_v4  ;;  %v17783_v63 = vld [vmem:[#allocation98_spill] sm:$0xff]  ;;  %v8604_v20 = vsel %vm8486_vm0, %v8475_v52, %v16512_v48  ;;  %v17785_v4 = vld [vmem:[#allocation183_spill] sm:$0xff]  ;;  %v17792_v52 = vld [vmem:[#allocation68_spill] sm:$0xff] }
 0x565   : > { %9916 = vst.msk [vmem:[%s16129_s27 + $0x290] sm:$0xff] %vm9833_vm6, %v9787_v7  ;;  %v9788_v22 = vmax.f32 %v9526_v39, 0.0  ;;  %v9267_v54 = vadd.f32 %v10847_v5, %v16085_v9  ;;  %v9258_v28 = vpop.f32.mrb[17].mxu0  ;;  %v8090_v23 = vsel %vm7970_vm12, %v11524_v36, %v17783_v63  ;;  %v8733_v39 = vsel %vm8615_vm1, %v8604_v20, %v16527_v41 }
 0x566   : > { %9914 = vst.msk [vmem:[%s16129_s27 + $0x280] sm:$0xff] %vm9833_vm6, %v9785_v17  ;;  %v9786_v46 = vmax.f32 %v9518_v2, 0.0  ;;  %v9259_v10 = vadd.f32 %v16085_v9, %v9258_v28  ;;  %v10848_v3 = vpop.f32.mrb[18].mxu0  ;;  %v7575_v53 = vpop.permute.xlu1 %7574  ;;  %v8219_v7 = vsel %vm8099_vm13, %v8090_v23, %v17784_v12  ;;  %v17794_v23 = vld [vmem:[#allocation132_spill] sm:$0xff] }
 0x567   : > { %9917 = vst.msk [vmem:[%s16129_s27 + $0x298] sm:$0xff] %vm9833_vm6, %v9788_v22  ;;  %v9723_v11 = vmax.f32 %v9267_v54, 0.0  ;;  %v9270_v57 = vadd.f32 %v10848_v3, %v16085_v9  ;;  %v7895_v47 = vpop.permute.xlu0 %7894  ;;  %v9261_v50 = vpop.f32.mrb[19].mxu0  ;;  %v8348_v6 = vsel %vm8228_vm14, %v8219_v7, %v17785_v4  ;;  %v8862_v42 = vsel %vm8744_vm3, %v8733_v39, %v7575_v53  ;;  %v16627_v3 = vld [vmem:[%s17065_s2] ss:$0 sm:$0xff]  ;;  %v17795_v39 = vld [vmem:[#allocation218_spill] sm:$0xff] }
 0x568   : > { %9915 = vst.msk [vmem:[%s16129_s27 + $0x288] sm:$0xff] %vm9833_vm6, %v9786_v46  ;;  %v9721_v27 = vmax.f32 %v9259_v10, 0.0  ;;  %v8927_v62 = vsel %vm8873_vm4, %v8798_v37, %v7895_v47  ;;  %v9262_v61 = vadd.f32 %v16085_v9, %v9261_v50  ;;  %v8477_v48 = vsel %vm8357_vm15, %v8348_v6, %v17786_v40  ;;  %v17788_v37 = vld [vmem:[#allocation20_spill] sm:$0xff]  ;;  %v17789_v50 = vld [vmem:[#allocation129_spill] sm:$0xff] }
 0x569   : > { %9852 = vst.msk [vmem:[%s16129_s27 + $0x90] sm:$0xff] %vm9833_vm6, %v9723_v11  ;;  %v9724_v24 = vmax.f32 %v9270_v57, 0.0  ;;  %10881 = vmatprep.mubr.msk.bf16.mxu0 %vm9024_vm5, %v8927_v62  ;;  %v8606_v17 = vsel %vm8486_vm0, %v8477_v48, %v16525_v21  ;;  %v8028_v11 = vsel %vm7970_vm12, %v17788_v37, %v17787_v45  ;;  %v17797_v40 = vld [vmem:[#allocation52_spill] sm:$0xff] }
 0x56a   : > { %9850 = vst.msk [vmem:[%s16129_s27 + $0x80] sm:$0xff] %vm9833_vm6, %v9721_v27  ;;  %v9722_v0 = vmax.f32 %v9262_v61, 0.0  ;;  %v7577_v60 = vpop.permute.xlu1 %7576  ;;  %v8735_v41 = vsel %vm8615_vm1, %v8606_v17, %v16536_v56  ;;  %v8157_v16 = vsel %vm8099_vm13, %v8028_v11, %v17789_v50  ;;  %v17804_v37 = vld [vmem:[#allocation180_spill] sm:$0xff] }
 0x56b   : > { %9853 = vst.msk [vmem:[%s16129_s27 + $0x98] sm:$0xff] %vm9833_vm6, %v9724_v24  ;;  %v7897_v44 = vpop.permute.xlu0 %7896  ;;  %v8864_v2 = vsel %vm8744_vm3, %v8735_v41, %v7577_v60  ;;  %v8286_v51 = vsel %vm8228_vm14, %v8157_v16, %v17790_v15  ;;  %v17806_v16 = vld [vmem:[#allocation276_spill] sm:$0xff] }
 0x56c   : > { %9851 = vst.msk [vmem:[%s16129_s27 + $0x88] sm:$0xff] %vm9833_vm6, %v9722_v0  ;;  %v8929_v26 = vsel %vm8873_vm4, %v8800_v1, %v7897_v44  ;;  %v8415_v19 = vsel %vm8357_vm15, %v8286_v51, %v17791_v25  ;;  %v8030_v1 = vsel %vm7970_vm12, %v11526_v30, %v17792_v52  ;;  %v17793_v44 = vld [vmem:[#allocation300_spill] sm:$0xff] }
 0x56d   : > { %10882 = vmatmul.mubr.msk.bf16.gmra.mrb[52].mxu0 %vm9024_vm5, %v8929_v26  ;;  %v8544_v36 = vsel %vm8486_vm0, %v8415_v19, %v17793_v44  ;;  %v8159_v20 = vsel %vm8099_vm13, %v8030_v1, %v17794_v23 }
 0x56e   : > { %v7959_v8 = vpop.permute.xlu1 %7958  ;;  %v8288_v4 = vsel %vm8228_vm14, %v8159_v20, %v17795_v39 }
 0x56f   : > { %v16606_v49 = vpop.permute.xlu0 %6266  ;;  %v8991_v33 = vsel %vm8873_vm4, %v8862_v42, %v7959_v8  ;;  %v17796_v8 = vld [vmem:[#allocation97_spill] sm:$0xff] }
 0x570   : > { %10945 = vmatprep.mubr.msk.bf16.mxu1 %vm9024_vm5, %v8991_v33  ;;  %v8092_v48 = vsel %vm7970_vm12, %v17797_v40, %v17796_v8  ;;  %v17798_v33 = vld [vmem:[#allocation249_spill] sm:$0xff] }
 0x571   : > { %v8417_v17 = vsel %vm8357_vm15, %v8288_v4, %v17798_v33  ;;  %v17807_v33 = vld [vmem:[#allocation67_spill] sm:$0xff] }
 0x572   : > { %v7961_v5 = vpop.permute.xlu1 %7960 }
 0x573   : > { %v6651_v34 = vpop.permute.xlu0 %6650  ;;  %v8993_v13 = vsel %vm8873_vm4, %v8864_v2, %v7961_v5  ;;  %v17799_v2 = vld [vmem:[#allocation173_spill] sm:$0xff] }
 0x574   : > { %10946 = vmatmul.mubr.msk.bf16.gmra.mrb[52].mxu1 %vm9024_vm5, %v8993_v13  ;;  %v8673_v26 = vsel %vm8615_vm1, %v8544_v36, %v6651_v34  ;;  %v8221_v5 = vsel %vm8099_vm13, %v8092_v48, %v17799_v2  ;;  %v17800_v34 = vld [vmem:[#allocation303_spill] sm:$0xff] }
 0x575   : > { %v8546_v13 = vsel %vm8486_vm0, %v8417_v17, %v17800_v34  ;;  %v17808_v17 = vld [vmem:[#allocation21_spill] sm:$0xff] }
 0x576   : > { %v16617_v18 = vpop.permute.xlu1 %6268 }
 0x577   : > { %v6653_v38 = vpop.permute.xlu0 %6652 }
 0x578   : > { %v10915_v58 = vpop.f32.mrb[20].mxu1 }
 0x579   : > { %v9539_v21 = vadd.f32 %v10915_v58, %v16085_v9  ;;  %v9530_v22 = vpop.f32.mrb[21].mxu1  ;;  %v17801_v58 = vld [vmem:[#allocation186_spill] sm:$0xff] }
 0x57a   : > { %v9531_v54 = vadd.f32 %v16085_v9, %v9530_v22  ;;  %v10916_v28 = vpop.f32.mrb[22].mxu1  ;;  %v16621_v56 = vpop.permute.xlu1 %6714  ;;  %v8675_v22 = vsel %vm8615_vm1, %v8546_v13, %v6653_v38 }
 0x57b   : > { %v9791_v32 = vmax.f32 %v9539_v21, 0.0  ;;  %v9542_v14 = vadd.f32 %v10916_v28, %v16085_v9  ;;  %v7515_v29 = vpop.permute.xlu0 %7514  ;;  %v9533_v46 = vpop.f32.mrb[23].mxu1  ;;  %v8350_v21 = vsel %vm8228_vm14, %v8221_v5, %v17801_v58  ;;  %v17802_v28 = vld [vmem:[#allocation273_spill] sm:$0xff]  ;;  %v17809_v5 = vld [vmem:[#allocation131_spill] sm:$0xff] }
 0x57c   : > { %v9789_v10 = vmax.f32 %v9531_v54, 0.0  ;;  %v9534_v53 = vadd.f32 %v16627_v3, %v9533_v46  ;;  %v10851_v35 = vpop.f32.mrb[20].mxu0  ;;  %v8802_v6 = vsel %vm8744_vm3, %v8673_v26, %v7515_v29  ;;  %v11527_v46 = vld [vmem:[#allocation2 + $0x260] sm:$0xff]  }
 0x57d   : > { %9920 = vst.msk [vmem:[%s16129_s27 + $0x2b0] sm:$0xff] %vm9833_vm6, %v9791_v32  ;;  %v9792_v57 = vmax.f32 %v9542_v14, 0.0  ;;  %v9283_v9 = vadd.f32 %v16627_v3, %v10851_v35  ;;  %v9274_v47 = vpop.f32.mrb[21].mxu0  ;;  %v8479_v32 = vsel %vm8357_vm15, %v8350_v21, %v17802_v28  ;;  %v17810_v21 = vld [vmem:[#allocation217_spill] sm:$0xff]  ;;  %v17811_v28 = vld [vmem:[#allocation248_spill] sm:$0xff] }
 0x57e   : > { %9918 = vst.msk [vmem:[%s16129_s27 + $0x2a0] sm:$0xff] %vm9833_vm6, %v9789_v10  ;;  %v9790_v55 = vmax.f32 %v9534_v53, 0.0  ;;  %v9275_v27 = vadd.f32 %v16627_v3, %v9274_v47  ;;  %v10852_v62 = vpop.f32.mrb[22].mxu0  ;;  %v6717_v61 = vpop.permute.xlu1 %6716  ;;  %v17803_v10 = vld [vmem:[#allocation100_spill] sm:$0xff]  ;;  %v8608_v35 = vsel %vm8486_vm0, %v8479_v32, %v16606_v49 }
 0x57f   : > { %9921 = vst.msk [vmem:[%s16129_s27 + $0x2b8] sm:$0xff] %vm9833_vm6, %v9792_v57  ;;  %v9727_v59 = vmax.f32 %v9283_v9, 0.0  ;;  %v9286_v43 = vadd.f32 %v16627_v3, %v10852_v62  ;;  %v7517_v24 = vpop.permute.xlu0 %7516  ;;  %v9277_v31 = vpop.f32.mrb[23].mxu0  ;;  %v8094_v53 = vsel %vm7970_vm12, %v11527_v46, %v17803_v10  ;;  %v8737_v38 = vsel %vm8615_vm1, %v8608_v35, %v16621_v56  ;;  %v17805_v57 = vld [vmem:[#allocation187_spill] sm:$0xff]  ;;  %v17813_v10 = vld [vmem:[#allocation302_spill] sm:$0xff] }
 0x580   : > { %9919 = vst.msk [vmem:[%s16129_s27 + $0x2a8] sm:$0xff] %vm9833_vm6, %v9790_v55  ;;  %v9725_v0 = vmax.f32 %v9275_v27, 0.0  ;;  %v9278_v60 = vadd.f32 %v16627_v3, %v9277_v31  ;;  %v8804_v14 = vsel %vm8744_vm3, %v8675_v22, %v7517_v24  ;;  %v8223_v11 = vsel %vm8099_vm13, %v8094_v53, %v17804_v37  ;;  %v17814_v35 = vld [vmem:[#allocation134_spill] sm:$0xff] }
 0x581   : > { %9856 = vst.msk [vmem:[%s16129_s27 + $0xb0] sm:$0xff] %vm9833_vm6, %v9727_v59  ;;  %v9728_v63 = vmax.f32 %v9286_v43, 0.0  ;;  %v8352_v9 = vsel %vm8228_vm14, %v8223_v11, %v17805_v57 }
 0x582   : > { %9854 = vst.msk [vmem:[%s16129_s27 + $0xa0] sm:$0xff] %vm9833_vm6, %v9725_v0  ;;  %v9726_v12 = vmax.f32 %v9278_v60, 0.0  ;;  %v7579_v7 = vpop.permute.xlu1 %7578  ;;  %v8481_v55 = vsel %vm8357_vm15, %v8352_v9, %v17806_v16  ;;  %v17817_v16 = vld [vmem:[#allocation57_spill] sm:$0xff] }
 0x583   : > { %9857 = vst.msk [vmem:[%s16129_s27 + $0xb8] sm:$0xff] %vm9833_vm6, %v9728_v63  ;;  %v7899_v42 = vpop.permute.xlu0 %7898  ;;  %v8866_v47 = vsel %vm8744_vm3, %v8737_v38, %v7579_v7  ;;  %v8610_v62 = vsel %vm8486_vm0, %v8481_v55, %v16617_v18  ;;  %v17815_v38 = vld [vmem:[#allocation219_spill] sm:$0xff] }
 0x584   : > { %9855 = vst.msk [vmem:[%s16129_s27 + $0xa8] sm:$0xff] %vm9833_vm6, %v9726_v12  ;;  %v8931_v41 = vsel %vm8873_vm4, %v8802_v6, %v7899_v42  ;;  %v8739_v56 = vsel %vm8615_vm1, %v8610_v62, %v6717_v61 }
 0x585   : > { %10885 = vmatprep.mubr.msk.bf16.mxu0 %vm9024_vm5, %v8931_v41  ;;  %v8032_v41 = vsel %vm7970_vm12, %v17808_v17, %v17807_v33 }
 0x586   : > { %v7581_v54 = vpop.permute.xlu1 %7580  ;;  %v8161_v34 = vsel %vm8099_vm13, %v8032_v41, %v17809_v5 }
 0x587   : > { %v7901_v29 = vpop.permute.xlu0 %7900  ;;  %v8868_v15 = vsel %vm8744_vm3, %v8739_v56, %v7581_v54  ;;  %v8290_v22 = vsel %vm8228_vm14, %v8161_v34, %v17810_v21 }
 0x588   : > { %v8933_v45 = vsel %vm8873_vm4, %v8804_v14, %v7901_v29  ;;  %v8419_v32 = vsel %vm8357_vm15, %v8290_v22, %v17811_v28  ;;  %v11528_v14 = vld [vmem:[#allocation2 + $0x134] sm:$0xff]   ;;  %v17812_v29 = vld [vmem:[#allocation70_spill] sm:$0xff] }
 0x589   : > { %10886 = vmatmul.mubr.msk.bf16.gmra.mrb[56].mxu0 %vm9024_vm5, %v8933_v45  ;;  %v8034_v46 = vsel %vm7970_vm12, %v11528_v14, %v17812_v29  ;;  %v8548_v53 = vsel %vm8486_vm0, %v8419_v32, %v17813_v10 }
 0x58a   : > { %v7963_v50 = vpop.permute.xlu1 %7962  ;;  %v8163_v45 = vsel %vm8099_vm13, %v8034_v46, %v17814_v35 }
 0x58b   : > { %v16701_v49 = vpop.permute.xlu0 %6270  ;;  %v8995_v27 = vsel %vm8873_vm4, %v8866_v47, %v7963_v50  ;;  %v8292_v57 = vsel %vm8228_vm14, %v8163_v45, %v17815_v38  ;;  %v17816_v50 = vld [vmem:[#allocation99_spill] sm:$0xff] }
 0x58c   : > { %10949 = vmatprep.mubr.msk.bf16.mxu1 %vm9024_vm5, %v8995_v27  ;;  %v8096_v55 = vsel %vm7970_vm12, %v17817_v16, %v17816_v50  ;;  %v17818_v27 = vld [vmem:[#allocation250_spill] sm:$0xff] }
 0x58d   : > { %v8421_v62 = vsel %vm8357_vm15, %v8292_v57, %v17818_v27 }
 0x58e   : > { %v7965_v51 = vpop.permute.xlu1 %7964 }
 0x58f   : > { %v6655_v59 = vpop.permute.xlu0 %6654  ;;  %v8997_v43 = vsel %vm8873_vm4, %v8868_v15, %v7965_v51  ;;  %v17819_v15 = vld [vmem:[#allocation177_spill] sm:$0xff] }
 0x590   : > { %v10919_v24 = vpop.f32.mrb[24].mxu1  ;;  %10950 = vmatmul.mubr.msk.bf16.gmra.mrb[56].mxu1 %vm9024_vm5, %v8997_v43  ;;  %v8677_v37 = vsel %vm8615_vm1, %v8548_v53, %v6655_v59  ;;  %v8225_v51 = vsel %vm8099_vm13, %v8096_v55, %v17819_v15  ;;  %v17820_v59 = vld [vmem:[#allocation304_spill] sm:$0xff] }
 0x591   : > { %v9555_v31 = vadd.f32 %v16627_v3, %v10919_v24  ;;  %v9546_v25 = vpop.f32.mrb[25].mxu1  ;;  %v8550_v43 = vsel %vm8486_vm0, %v8421_v62, %v17820_v59  ;;  %v17821_v24 = vld [vmem:[#allocation190_spill] sm:$0xff] }
 0x592   : > { %v9547_v18 = vadd.f32 %v16627_v3, %v9546_v25  ;;  %v10920_v19 = vpop.f32.mrb[26].mxu1  ;;  %v16713_v0 = vpop.permute.xlu1 %6272 }
 0x593   : > { %v9795_v61 = vmax.f32 %v9555_v31, 0.0  ;;  %v9558_v60 = vadd.f32 %v16627_v3, %v10920_v19  ;;  %v6657_v30 = vpop.permute.xlu0 %6656  ;;  %v9549_v52 = vpop.f32.mrb[27].mxu1  ;;  %v8354_v31 = vsel %vm8228_vm14, %v8225_v51, %v17821_v24  ;;  %v17822_v19 = vld [vmem:[#allocation275_spill] sm:$0xff] }
 0x594   : > { %v9793_v1 = vmax.f32 %v9547_v18, 0.0  ;;  %v9550_v44 = vadd.f32 %v16627_v3, %v9549_v52  ;;  %v10855_v36 = vpop.f32.mrb[24].mxu0  ;;  %v8679_v25 = vsel %vm8615_vm1, %v8550_v43, %v6657_v30 }
 0x595   : > { %9924 = vst.msk [vmem:[%s16129_s27 + $0x2d0] sm:$0xff] %vm9833_vm6, %v9795_v61  ;;  %v9796_v63 = vmax.f32 %v9558_v60, 0.0  ;;  %v9299_v23 = vadd.f32 %v16627_v3, %v10855_v36  ;;  %v9290_v20 = vpop.f32.mrb[25].mxu0  ;;  %v8483_v61 = vsel %vm8357_vm15, %v8354_v31, %v17822_v19 }
 0x596   : > { %9922 = vst.msk [vmem:[%s16129_s27 + $0x2c0] sm:$0xff] %vm9833_vm6, %v9793_v1  ;;  %v9794_v26 = vmax.f32 %v9550_v44, 0.0  ;;  %v9291_v12 = vadd.f32 %v16627_v3, %v9290_v20  ;;  %v10856_v7 = vpop.f32.mrb[26].mxu0  ;;  %v6719_v39 = vpop.permute.xlu1 %6718  ;;  %v11529_v1 = vld [vmem:[#allocation2 + $0x274] sm:$0xff]   ;;  %v17823_v44 = vld [vmem:[#allocation102_spill] sm:$0xff] }
 0x597   : > { %9925 = vst.msk [vmem:[%s16129_s27 + $0x2d8] sm:$0xff] %vm9833_vm6, %v9796_v63  ;;  %v9731_v4 = vmax.f32 %v9299_v23, 0.0  ;;  %v9302_v6 = vadd.f32 %v16627_v3, %v10856_v7  ;;  %v7519_v42 = vpop.permute.xlu0 %7518  ;;  %v9293_v8 = vpop.f32.mrb[27].mxu0  ;;  %v8098_v36 = vsel %vm7970_vm12, %v11529_v1, %v17823_v44  ;;  %v8612_v63 = vsel %vm8486_vm0, %v8483_v61, %v16701_v49  ;;  %v17824_v20 = vld [vmem:[#allocation184_spill] sm:$0xff] }
 0x598   : > { %9923 = vst.msk [vmem:[%s16129_s27 + $0x2c8] sm:$0xff] %vm9833_vm6, %v9794_v26  ;;  %v9729_v40 = vmax.f32 %v9291_v12, 0.0  ;;  %v9294_v48 = vadd.f32 %v16627_v3, %v9293_v8  ;;  %v8806_v9 = vsel %vm8744_vm3, %v8677_v37, %v7519_v42  ;;  %v8227_v26 = vsel %vm8099_vm13, %v8098_v36, %v17824_v20  ;;  %v17825_v12 = vld [vmem:[#allocation193_spill] sm:$0xff] }
 0x599   : > { %9860 = vst.msk [vmem:[%s16129_s27 + $0xd0] sm:$0xff] %vm9833_vm6, %v9731_v4  ;;  %v9732_v2 = vmax.f32 %v9302_v6, 0.0  ;;  %v8741_v30 = vsel %vm8615_vm1, %v8612_v63, %v6719_v39  ;;  %v8356_v7 = vsel %vm8228_vm14, %v8227_v26, %v17825_v12  ;;  %v17826_v42 = vld [vmem:[#allocation277_spill] sm:$0xff] }
 0x59a   : > { %9858 = vst.msk [vmem:[%s16129_s27 + $0xc0] sm:$0xff] %vm9833_vm6, %v9729_v40  ;;  %v9730_v13 = vmax.f32 %v9294_v48, 0.0  ;;  %v6721_v58 = vpop.permute.xlu1 %6720  ;;  %v8485_v8 = vsel %vm8357_vm15, %v8356_v7, %v17826_v42 }
 0x59b   : > { %9861 = vst.msk [vmem:[%s16129_s27 + $0xd8] sm:$0xff] %vm9833_vm6, %v9732_v2  ;;  %v7521_v54 = vpop.permute.xlu0 %7520  ;;  %v8614_v40 = vsel %vm8486_vm0, %v8485_v8, %v16713_v0 }
 0x59c   : > { %9859 = vst.msk [vmem:[%s16129_s27 + $0xc8] sm:$0xff] %vm9833_vm6, %v9730_v13  ;;  %v8808_v60 = vsel %vm8744_vm3, %v8679_v25, %v7521_v54  ;;  %v8743_v39 = vsel %vm8615_vm1, %v8614_v40, %v6721_v58 }
 0x59e   : > { %v7583_v11 = vpop.permute.xlu1 %7582 }
 0x59f   : > { %v7903_v47 = vpop.permute.xlu0 %7902  ;;  %v8870_v4 = vsel %vm8744_vm3, %v8741_v30, %v7583_v11 }
 0x5a0   : > { %v8935_v56 = vsel %vm8873_vm4, %v8806_v9, %v7903_v47 }
 0x5a1   : > { %10889 = vmatprep.mubr.msk.bf16.mxu0 %vm9024_vm5, %v8935_v56 }
 0x5a2   : > { %v7585_v18 = vpop.permute.xlu1 %7584 }
 0x5a3   : > { %v7905_v52 = vpop.permute.xlu0 %7904  ;;  %v8872_v41 = vsel %vm8744_vm3, %v8743_v39, %v7585_v18 }
 0x5a4   : > { %v8937_v23 = vsel %vm8873_vm4, %v8808_v60, %v7905_v52 }
 0x5a5   : > { %10890 = vmatmul.mubr.msk.bf16.gmra.mrb[60].mxu0 %vm9024_vm5, %v8937_v23 }
 0x5a6   : > { %v7967_v6 = vpop.permute.xlu1 %7966 }
 0x5a7   : > { %v8999_v49 = vsel %vm8873_vm4, %v8870_v4, %v7967_v6 }
 0x5a8   : > { %v10923_v48 = vpop.f32.mrb[28].mxu1  ;;  %10953 = vmatprep.mubr.msk.bf16.mxu1 %vm9024_vm5, %v8999_v49 }
 0x5a9   : > { %v9571_v33 = vadd.f32 %v16627_v3, %v10923_v48  ;;  %v9562_v17 = vpop.f32.mrb[29].mxu1 }
 0x5aa   : > { %v9563_v2 = vadd.f32 %v16627_v3, %v9562_v17  ;;  %v10924_v5 = vpop.f32.mrb[30].mxu1  ;;  %v7969_v34 = vpop.permute.xlu1 %7968 }
 0x5ab   : > { %v9799_v13 = vmax.f32 %v9571_v33, 0.0  ;;  %v9574_v21 = vadd.f32 %v16627_v3, %v10924_v5  ;;  %v9565_v0 = vpop.f32.mrb[31].mxu1  ;;  %v9001_v22 = vsel %vm8873_vm4, %v8872_v41, %v7969_v34  ;;  %v10859_v54 = vpop.f32.mrb[28].mxu0 }
 0x5ac   : > { %v9797_v58 = vmax.f32 %v9563_v2, 0.0  ;;  %v9566_v28 = vadd.f32 %v16627_v3, %v9565_v0  ;;  %v9315_v32 = vadd.f32 %v16627_v3, %v10859_v54  ;;  %v9306_v14 = vpop.f32.mrb[29].mxu0  ;;  %10954 = vmatmul.mubr.msk.bf16.gmra.mrb[60].mxu1 %vm9024_vm5, %v9001_v22 }
 0x5ad   : > { %9928 = vst.msk [vmem:[%s16129_s27 + $0x2f0] sm:$0xff] %vm9833_vm6, %v9799_v13  ;;  %v9800_v29 = vmax.f32 %v9574_v21, 0.0  ;;  %v9307_v46 = vadd.f32 %v16627_v3, %v9306_v14  ;;  %v10860_v10 = vpop.f32.mrb[30].mxu0 }
 0x5ae   : > { %9926 = vst.msk [vmem:[%s16129_s27 + $0x2e0] sm:$0xff] %vm9833_vm6, %v9797_v58  ;;  %v9798_v53 = vmax.f32 %v9566_v28, 0.0  ;;  %v9735_v35 = vmax.f32 %v9315_v32, 0.0  ;;  %v9318_v45 = vadd.f32 %v16627_v3, %v10860_v10  ;;  %v9309_v37 = vpop.f32.mrb[31].mxu0 }
 0x5af   : > { %9929 = vst.msk [vmem:[%s16129_s27 + $0x2f8] sm:$0xff] %vm9833_vm6, %v9800_v29  ;;  %v9733_v11 = vmax.f32 %v9307_v46, 0.0  ;;  %v9310_v38 = vadd.f32 %v16627_v3, %v9309_v37 }
 0x5b0   : > { %9927 = vst.msk [vmem:[%s16129_s27 + $0x2e8] sm:$0xff] %vm9833_vm6, %v9798_v53  ;;  %9864 = vst.msk [vmem:[%s16129_s27 + $0xf0] sm:$0xff] %vm9833_vm6, %v9735_v35  ;;  %v9736_v57 = vmax.f32 %v9318_v45, 0.0 }
 0x5b1   : > { %9862 = vst.msk [vmem:[%s16129_s27 + $0xe0] sm:$0xff] %vm9833_vm6, %v9733_v11  ;;  %v9734_v9 = vmax.f32 %v9310_v38, 0.0 }
 0x5b2   : > { %9865 = vst.msk [vmem:[%s16129_s27 + $0xf8] sm:$0xff] %vm9833_vm6, %v9736_v57 }
 0x5b3   : > { %9863 = vst.msk [vmem:[%s16129_s27 + $0xe8] sm:$0xff] %vm9833_vm6, %v9734_v9 }
 0x5c0   : > { %v10927_v47 = vpop.f32.mrb[32].mxu1 }
 0x5c1   : > { %v9587_v50 = vadd.f32 %v16627_v3, %v10927_v47  ;;  %v9578_v16 = vpop.f32.mrb[33].mxu1 }
 0x5c2   : > { %v9579_v55 = vadd.f32 %v16627_v3, %v9578_v16  ;;  %v10928_v27 = vpop.f32.mrb[34].mxu1 }
 0x5c3   : > { %v9803_v62 = vmax.f32 %v9587_v50, 0.0  ;;  %v9590_v56 = vadd.f32 %v16627_v3, %v10928_v27  ;;  %v9581_v15 = vpop.f32.mrb[35].mxu1  ;;  %v10863_v51 = vpop.f32.mrb[32].mxu0 }
 0x5c4   : > { %v9801_v59 = vmax.f32 %v9579_v55, 0.0  ;;  %v9582_v43 = vadd.f32 %v16627_v3, %v9581_v15  ;;  %v9331_v24 = vadd.f32 %v16627_v3, %v10863_v51  ;;  %v9322_v31 = vpop.f32.mrb[33].mxu0 }
 0x5c5   : > { %9932 = vst.msk [vmem:[%s16129_s27 + $0x310] sm:$0xff] %vm9833_vm6, %v9803_v62  ;;  %v9804_v25 = vmax.f32 %v9590_v56, 0.0  ;;  %v9323_v18 = vadd.f32 %v16627_v3, %v9322_v31  ;;  %v10864_v19 = vpop.f32.mrb[34].mxu0 }
 0x5c6   : > { %9930 = vst.msk [vmem:[%s16129_s27 + $0x300] sm:$0xff] %vm9833_vm6, %v9801_v59  ;;  %v9802_v61 = vmax.f32 %v9582_v43, 0.0  ;;  %v9739_v60 = vmax.f32 %v9331_v24, 0.0  ;;  %v9334_v52 = vadd.f32 %v16627_v3, %v10864_v19  ;;  %v9325_v1 = vpop.f32.mrb[35].mxu0 }
 0x5c7   : > { %9933 = vst.msk [vmem:[%s16129_s27 + $0x318] sm:$0xff] %vm9833_vm6, %v9804_v25  ;;  %v9737_v44 = vmax.f32 %v9323_v18, 0.0  ;;  %v9326_v36 = vadd.f32 %v16627_v3, %v9325_v1 }
 0x5c8   : > { %9931 = vst.msk [vmem:[%s16129_s27 + $0x308] sm:$0xff] %vm9833_vm6, %v9802_v61  ;;  %9868 = vst.msk [vmem:[%s16129_s27 + $0x110] sm:$0xff] %vm9833_vm6, %v9739_v60  ;;  %v9740_v63 = vmax.f32 %v9334_v52, 0.0 }
 0x5c9   : > { %9866 = vst.msk [vmem:[%s16129_s27 + $0x100] sm:$0xff] %vm9833_vm6, %v9737_v44  ;;  %v9738_v23 = vmax.f32 %v9326_v36, 0.0 }
 0x5ca   : > { %9869 = vst.msk [vmem:[%s16129_s27 + $0x118] sm:$0xff] %vm9833_vm6, %v9740_v63 }
 0x5cb   : > { %9867 = vst.msk [vmem:[%s16129_s27 + $0x108] sm:$0xff] %vm9833_vm6, %v9738_v23 }
 0x5d8   : > { %v10931_v20 = vpop.f32.mrb[36].mxu1 }
 0x5d9   : > { %v9603_v26 = vadd.f32 %v16627_v3, %v10931_v20  ;;  %v9594_v30 = vpop.f32.mrb[37].mxu1 }
 0x5da   : > { %v9595_v12 = vadd.f32 %v16627_v3, %v9594_v30  ;;  %v10932_v7 = vpop.f32.mrb[38].mxu1 }
 0x5db   : > { %v9807_v4 = vmax.f32 %v9603_v26, 0.0  ;;  %v9606_v6 = vadd.f32 %v16627_v3, %v10932_v7  ;;  %v9597_v42 = vpop.f32.mrb[39].mxu1  ;;  %v10867_v8 = vpop.f32.mrb[36].mxu0 }
 0x5dc   : > { %v9805_v49 = vmax.f32 %v9595_v12, 0.0  ;;  %v9598_v40 = vadd.f32 %v16627_v3, %v9597_v42  ;;  %v9347_v48 = vadd.f32 %v16627_v3, %v10867_v8  ;;  %v9338_v39 = vpop.f32.mrb[37].mxu0 }
 0x5dd   : > { %9936 = vst.msk [vmem:[%s16129_s27 + $0x330] sm:$0xff] %vm9833_vm6, %v9807_v4  ;;  %v9808_v33 = vmax.f32 %v9606_v6, 0.0  ;;  %v9339_v17 = vadd.f32 %v16627_v3, %v9338_v39  ;;  %v10868_v41 = vpop.f32.mrb[38].mxu0 }
 0x5de   : > { %9934 = vst.msk [vmem:[%s16129_s27 + $0x320] sm:$0xff] %vm9833_vm6, %v9805_v49  ;;  %v9806_v2 = vmax.f32 %v9598_v40, 0.0  ;;  %v9743_v5 = vmax.f32 %v9347_v48, 0.0  ;;  %v9350_v34 = vadd.f32 %v16627_v3, %v10868_v41  ;;  %v9341_v13 = vpop.f32.mrb[39].mxu0 }
 0x5df   : > { %9937 = vst.msk [vmem:[%s16129_s27 + $0x338] sm:$0xff] %vm9833_vm6, %v9808_v33  ;;  %v9741_v21 = vmax.f32 %v9339_v17, 0.0  ;;  %v9342_v0 = vadd.f32 %v16627_v3, %v9341_v13 }
 0x5e0   : > { %9935 = vst.msk [vmem:[%s16129_s27 + $0x328] sm:$0xff] %vm9833_vm6, %v9806_v2  ;;  %9872 = vst.msk [vmem:[%s16129_s27 + $0x130] sm:$0xff] %vm9833_vm6, %v9743_v5  ;;  %v9744_v22 = vmax.f32 %v9350_v34, 0.0 }
 0x5e1   : > { %9870 = vst.msk [vmem:[%s16129_s27 + $0x120] sm:$0xff] %vm9833_vm6, %v9741_v21  ;;  %v9742_v54 = vmax.f32 %v9342_v0, 0.0 }
 0x5e2   : > { %9873 = vst.msk [vmem:[%s16129_s27 + $0x138] sm:$0xff] %vm9833_vm6, %v9744_v22 }
 0x5e3   : > { %9871 = vst.msk [vmem:[%s16129_s27 + $0x128] sm:$0xff] %vm9833_vm6, %v9742_v54 }
 0x5f0   : > { %v10935_v58 = vpop.f32.mrb[40].mxu1 }
 0x5f1   : > { %v9619_v28 = vadd.f32 %v16627_v3, %v10935_v58  ;;  %v9610_v32 = vpop.f32.mrb[41].mxu1 }
 0x5f2   : > { %v9611_v14 = vadd.f32 %v16627_v3, %v9610_v32  ;;  %v10936_v29 = vpop.f32.mrb[42].mxu1 }
 0x5f3   : > { %v9811_v46 = vmax.f32 %v9619_v28, 0.0  ;;  %v9622_v10 = vadd.f32 %v16627_v3, %v10936_v29  ;;  %v9613_v53 = vpop.f32.mrb[43].mxu1  ;;  %v10871_v35 = vpop.f32.mrb[40].mxu0 }
 0x5f4   : > { %v9809_v45 = vmax.f32 %v9611_v14, 0.0  ;;  %v9614_v37 = vadd.f32 %v16627_v3, %v9613_v53  ;;  %v9363_v11 = vadd.f32 %v16627_v3, %v10871_v35  ;;  %v9354_v38 = vpop.f32.mrb[41].mxu0 }
 0x5f5   : > { %9940 = vst.msk [vmem:[%s16129_s27 + $0x350] sm:$0xff] %vm9833_vm6, %v9811_v46  ;;  %v9812_v57 = vmax.f32 %v9622_v10, 0.0  ;;  %v9355_v9 = vadd.f32 %v16627_v3, %v9354_v38  ;;  %v10872_v47 = vpop.f32.mrb[42].mxu0 }
 0x5f6   : > { %9938 = vst.msk [vmem:[%s16129_s27 + $0x340] sm:$0xff] %vm9833_vm6, %v9809_v45  ;;  %v9810_v50 = vmax.f32 %v9614_v37, 0.0  ;;  %v9747_v16 = vmax.f32 %v9363_v11, 0.0  ;;  %v9366_v55 = vadd.f32 %v16627_v3, %v10872_v47  ;;  %v9357_v27 = vpop.f32.mrb[43].mxu0 }
 0x5f7   : > { %9941 = vst.msk [vmem:[%s16129_s27 + $0x358] sm:$0xff] %vm9833_vm6, %v9812_v57  ;;  %v9745_v62 = vmax.f32 %v9355_v9, 0.0  ;;  %v9358_v56 = vadd.f32 %v16627_v3, %v9357_v27 }
 0x5f8   : > { %9939 = vst.msk [vmem:[%s16129_s27 + $0x348] sm:$0xff] %vm9833_vm6, %v9810_v50  ;;  %9876 = vst.msk [vmem:[%s16129_s27 + $0x150] sm:$0xff] %vm9833_vm6, %v9747_v16  ;;  %v9748_v15 = vmax.f32 %v9366_v55, 0.0 }
 0x5f9   : > { %9874 = vst.msk [vmem:[%s16129_s27 + $0x140] sm:$0xff] %vm9833_vm6, %v9745_v62  ;;  %v9746_v51 = vmax.f32 %v9358_v56, 0.0 }
 0x5fa   : > { %9877 = vst.msk [vmem:[%s16129_s27 + $0x158] sm:$0xff] %vm9833_vm6, %v9748_v15 }
 0x5fb   : > { %9875 = vst.msk [vmem:[%s16129_s27 + $0x148] sm:$0xff] %vm9833_vm6, %v9746_v51 }
 0x608   : > { %v10875_v59 = vpop.f32.mrb[44].mxu0 }
 0x609   : > { %v9379_v43 = vadd.f32 %v16627_v3, %v10875_v59  ;;  %v9370_v24 = vpop.f32.mrb[45].mxu0 }
 0x60a   : > { %v9371_v31 = vadd.f32 %v16627_v3, %v9370_v24  ;;  %v10876_v25 = vpop.f32.mrb[46].mxu0 }
 0x60b   : > { %v9751_v18 = vmax.f32 %v9379_v43, 0.0  ;;  %v9382_v19 = vadd.f32 %v16627_v3, %v10876_v25  ;;  %v9373_v61 = vpop.f32.mrb[47].mxu0 }
 0x60c   : > { %v9749_v60 = vmax.f32 %v9371_v31, 0.0  ;;  %v9374_v52 = vadd.f32 %v16627_v3, %v9373_v61 }
 0x60d   : > { %9880 = vst.msk [vmem:[%s16129_s27 + $0x170] sm:$0xff] %vm9833_vm6, %v9751_v18  ;;  %v9752_v1 = vmax.f32 %v9382_v19, 0.0 }
 0x60e   : > { %9878 = vst.msk [vmem:[%s16129_s27 + $0x160] sm:$0xff] %vm9833_vm6, %v9749_v60  ;;  %v9750_v44 = vmax.f32 %v9374_v52, 0.0 }
 0x60f   : > { %9881 = vst.msk [vmem:[%s16129_s27 + $0x178] sm:$0xff] %vm9833_vm6, %v9752_v1  ;;  %v10939_v36 = vpop.f32.mrb[44].mxu1 }
 0x610   : > { %9879 = vst.msk [vmem:[%s16129_s27 + $0x168] sm:$0xff] %vm9833_vm6, %v9750_v44  ;;  %v9635_v63 = vadd.f32 %v16627_v3, %v10939_v36  ;;  %v9626_v23 = vpop.f32.mrb[45].mxu1 }
 0x611   : > { %v9627_v20 = vadd.f32 %v16627_v3, %v9626_v23  ;;  %v10940_v26 = vpop.f32.mrb[46].mxu1 }
 0x612   : > { %v9815_v30 = vmax.f32 %v9635_v63, 0.0  ;;  %v9638_v12 = vadd.f32 %v16627_v3, %v10940_v26  ;;  %v9629_v7 = vpop.f32.mrb[47].mxu1 }
 0x613   : > { %v9813_v4 = vmax.f32 %v9627_v20, 0.0  ;;  %v9630_v6 = vadd.f32 %v16627_v3, %v9629_v7 }
 0x614   : > { %9944 = vst.msk [vmem:[%s16129_s27 + $0x370] sm:$0xff] %vm9833_vm6, %v9815_v30  ;;  %v9816_v42 = vmax.f32 %v9638_v12, 0.0 }
 0x615   : > { %9942 = vst.msk [vmem:[%s16129_s27 + $0x360] sm:$0xff] %vm9833_vm6, %v9813_v4  ;;  %v9814_v8 = vmax.f32 %v9630_v6, 0.0 }
 0x616   : > { %9945 = vst.msk [vmem:[%s16129_s27 + $0x378] sm:$0xff] %vm9833_vm6, %v9816_v42 }
 0x617   : > { %9943 = vst.msk [vmem:[%s16129_s27 + $0x368] sm:$0xff] %vm9833_vm6, %v9814_v8 }
 0x624   : > { %v10879_v49 = vpop.f32.mrb[48].mxu0 }
 0x625   : > { %v9395_v40 = vadd.f32 %v16627_v3, %v10879_v49  ;;  %v9386_v48 = vpop.f32.mrb[49].mxu0 }
 0x626   : > { %v9387_v39 = vadd.f32 %v16627_v3, %v9386_v48  ;;  %v10880_v33 = vpop.f32.mrb[50].mxu0 }
 0x627   : > { %v9755_v17 = vmax.f32 %v9395_v40, 0.0  ;;  %v9398_v41 = vadd.f32 %v16627_v3, %v10880_v33  ;;  %v9389_v2 = vpop.f32.mrb[51].mxu0 }
 0x628   : > { %v9753_v5 = vmax.f32 %v9387_v39, 0.0  ;;  %v9390_v34 = vadd.f32 %v16627_v3, %v9389_v2 }
 0x629   : > { %9884 = vst.msk [vmem:[%s16129_s27 + $0x190] sm:$0xff] %vm9833_vm6, %v9755_v17  ;;  %v9756_v13 = vmax.f32 %v9398_v41, 0.0 }
 0x62a   : > { %9882 = vst.msk [vmem:[%s16129_s27 + $0x180] sm:$0xff] %vm9833_vm6, %v9753_v5  ;;  %v9754_v21 = vmax.f32 %v9390_v34, 0.0 }
 0x62b   : > { %9885 = vst.msk [vmem:[%s16129_s27 + $0x198] sm:$0xff] %vm9833_vm6, %v9756_v13  ;;  %v10943_v0 = vpop.f32.mrb[48].mxu1 }
 0x62c   : > { %9883 = vst.msk [vmem:[%s16129_s27 + $0x188] sm:$0xff] %vm9833_vm6, %v9754_v21  ;;  %v9651_v22 = vadd.f32 %v16627_v3, %v10943_v0  ;;  %v9642_v54 = vpop.f32.mrb[49].mxu1 }
 0x62d   : > { %v9643_v58 = vadd.f32 %v16627_v3, %v9642_v54  ;;  %v10944_v28 = vpop.f32.mrb[50].mxu1 }
 0x62e   : > { %v9819_v32 = vmax.f32 %v9651_v22, 0.0  ;;  %v9654_v14 = vadd.f32 %v16627_v3, %v10944_v28  ;;  %v9645_v29 = vpop.f32.mrb[51].mxu1 }
 0x62f   : > { %v9817_v46 = vmax.f32 %v9643_v58, 0.0  ;;  %v9646_v10 = vadd.f32 %v16627_v3, %v9645_v29 }
 0x630   : > { %9948 = vst.msk [vmem:[%s16129_s27 + $0x390] sm:$0xff] %vm9833_vm6, %v9819_v32  ;;  %v9820_v53 = vmax.f32 %v9654_v14, 0.0 }
 0x631   : > { %9946 = vst.msk [vmem:[%s16129_s27 + $0x380] sm:$0xff] %vm9833_vm6, %v9817_v46  ;;  %v9818_v35 = vmax.f32 %v9646_v10, 0.0 }
 0x632   : > { %9949 = vst.msk [vmem:[%s16129_s27 + $0x398] sm:$0xff] %vm9833_vm6, %v9820_v53 }
 0x633   : > { %9947 = vst.msk [vmem:[%s16129_s27 + $0x388] sm:$0xff] %vm9833_vm6, %v9818_v35 }
 0x640   : > { %v10883_v45 = vpop.f32.mrb[52].mxu0 }
 0x641   : > { %v9411_v37 = vadd.f32 %v16627_v3, %v10883_v45  ;;  %v9402_v11 = vpop.f32.mrb[53].mxu0 }
 0x642   : > { %v9403_v38 = vadd.f32 %v16627_v3, %v9402_v11  ;;  %v10884_v57 = vpop.f32.mrb[54].mxu0 }
 0x643   : > { %v9759_v9 = vmax.f32 %v9411_v37, 0.0  ;;  %v9414_v47 = vadd.f32 %v16627_v3, %v10884_v57  ;;  %v9405_v50 = vpop.f32.mrb[55].mxu0 }
 0x644   : > { %v9757_v16 = vmax.f32 %v9403_v38, 0.0  ;;  %v9406_v55 = vadd.f32 %v16627_v3, %v9405_v50 }
 0x645   : > { %9888 = vst.msk [vmem:[%s16129_s27 + $0x1b0] sm:$0xff] %vm9833_vm6, %v9759_v9  ;;  %v9760_v27 = vmax.f32 %v9414_v47, 0.0 }
 0x646   : > { %9886 = vst.msk [vmem:[%s16129_s27 + $0x1a0] sm:$0xff] %vm9833_vm6, %v9757_v16  ;;  %v9758_v62 = vmax.f32 %v9406_v55, 0.0 }
 0x647   : > { %9889 = vst.msk [vmem:[%s16129_s27 + $0x1b8] sm:$0xff] %vm9833_vm6, %v9760_v27  ;;  %v10947_v56 = vpop.f32.mrb[52].mxu1 }
 0x648   : > { %9887 = vst.msk [vmem:[%s16129_s27 + $0x1a8] sm:$0xff] %vm9833_vm6, %v9758_v62  ;;  %v9667_v15 = vadd.f32 %v16627_v3, %v10947_v56  ;;  %v9658_v51 = vpop.f32.mrb[53].mxu1 }
 0x649   : > { %v9659_v59 = vadd.f32 %v16627_v3, %v9658_v51  ;;  %v10948_v43 = vpop.f32.mrb[54].mxu1 }
 0x64a   : > { %v9823_v24 = vmax.f32 %v9667_v15, 0.0  ;;  %v9670_v31 = vadd.f32 %v16627_v3, %v10948_v43  ;;  %v9661_v25 = vpop.f32.mrb[55].mxu1 }
 0x64b   : > { %v9821_v18 = vmax.f32 %v9659_v59, 0.0  ;;  %v9662_v19 = vadd.f32 %v16627_v3, %v9661_v25 }
 0x64c   : > { %9952 = vst.msk [vmem:[%s16129_s27 + $0x3b0] sm:$0xff] %vm9833_vm6, %v9823_v24  ;;  %v9824_v61 = vmax.f32 %v9670_v31, 0.0 }
 0x64d   : > { %9950 = vst.msk [vmem:[%s16129_s27 + $0x3a0] sm:$0xff] %vm9833_vm6, %v9821_v18  ;;  %v9822_v60 = vmax.f32 %v9662_v19, 0.0 }
 0x64e   : > { %9953 = vst.msk [vmem:[%s16129_s27 + $0x3b8] sm:$0xff] %vm9833_vm6, %v9824_v61 }
 0x64f   : > { %9951 = vst.msk [vmem:[%s16129_s27 + $0x3a8] sm:$0xff] %vm9833_vm6, %v9822_v60 }
 0x65c   : > { %v10887_v52 = vpop.f32.mrb[56].mxu0 }
 0x65d   : > { %v9427_v1 = vadd.f32 %v16627_v3, %v10887_v52  ;;  %v9418_v44 = vpop.f32.mrb[57].mxu0 }
 0x65e   : > { %v9419_v36 = vadd.f32 %v16627_v3, %v9418_v44  ;;  %v10888_v63 = vpop.f32.mrb[58].mxu0 }
 0x65f   : > { %v9763_v23 = vmax.f32 %v9427_v1, 0.0  ;;  %v9430_v20 = vadd.f32 %v16627_v3, %v10888_v63  ;;  %v9421_v26 = vpop.f32.mrb[59].mxu0 }
 0x660   : > { %v9761_v30 = vmax.f32 %v9419_v36, 0.0  ;;  %v9422_v12 = vadd.f32 %v16627_v3, %v9421_v26 }
 0x661   : > { %9892 = vst.msk [vmem:[%s16129_s27 + $0x1d0] sm:$0xff] %vm9833_vm6, %v9763_v23  ;;  %v9764_v7 = vmax.f32 %v9430_v20, 0.0 }
 0x662   : > { %9890 = vst.msk [vmem:[%s16129_s27 + $0x1c0] sm:$0xff] %vm9833_vm6, %v9761_v30  ;;  %v9762_v4 = vmax.f32 %v9422_v12, 0.0 }
 0x663   : > { %9893 = vst.msk [vmem:[%s16129_s27 + $0x1d8] sm:$0xff] %vm9833_vm6, %v9764_v7  ;;  %v10951_v6 = vpop.f32.mrb[56].mxu1 }
 0x664   : > { %9891 = vst.msk [vmem:[%s16129_s27 + $0x1c8] sm:$0xff] %vm9833_vm6, %v9762_v4  ;;  %v9683_v42 = vadd.f32 %v16627_v3, %v10951_v6  ;;  %v9674_v8 = vpop.f32.mrb[57].mxu1 }
 0x665   : > { %v9675_v49 = vadd.f32 %v16627_v3, %v9674_v8  ;;  %v10952_v40 = vpop.f32.mrb[58].mxu1 }
 0x666   : > { %v9827_v48 = vmax.f32 %v9683_v42, 0.0  ;;  %v9686_v39 = vadd.f32 %v16627_v3, %v10952_v40  ;;  %v9677_v33 = vpop.f32.mrb[59].mxu1 }
 0x667   : > { %v9825_v17 = vmax.f32 %v9675_v49, 0.0  ;;  %v9678_v41 = vadd.f32 %v16627_v3, %v9677_v33 }
 0x668   : > { %9956 = vst.msk [vmem:[%s16129_s27 + $0x3d0] sm:$0xff] %vm9833_vm6, %v9827_v48  ;;  %v9828_v2 = vmax.f32 %v9686_v39, 0.0 }
 0x669   : > { %9954 = vst.msk [vmem:[%s16129_s27 + $0x3c0] sm:$0xff] %vm9833_vm6, %v9825_v17  ;;  %v9826_v5 = vmax.f32 %v9678_v41, 0.0 }
 0x66a   : > { %9957 = vst.msk [vmem:[%s16129_s27 + $0x3d8] sm:$0xff] %vm9833_vm6, %v9828_v2 }
 0x66b   : > { %9955 = vst.msk [vmem:[%s16129_s27 + $0x3c8] sm:$0xff] %vm9833_vm6, %v9826_v5 }
 0x678   : > { %v10891_v34 = vpop.f32.mrb[60].mxu0 }
 0x679   : > { %v9443_v13 = vadd.f32 %v16627_v3, %v10891_v34  ;;  %v9434_v21 = vpop.f32.mrb[61].mxu0 }
 0x67a   : > { %v9435_v0 = vadd.f32 %v16627_v3, %v9434_v21  ;;  %v10892_v22 = vpop.f32.mrb[62].mxu0 }
 0x67b   : > { %v9767_v54 = vmax.f32 %v9443_v13, 0.0  ;;  %v9446_v58 = vadd.f32 %v16627_v3, %v10892_v22  ;;  %v9437_v28 = vpop.f32.mrb[63].mxu0 }
 0x67c   : > { %v9765_v32 = vmax.f32 %v9435_v0, 0.0  ;;  %v9438_v14 = vadd.f32 %v16627_v3, %v9437_v28 }
 0x67d   : > { %9896 = vst.msk [vmem:[%s16129_s27 + $0x1f0] sm:$0xff] %vm9833_vm6, %v9767_v54  ;;  %v9768_v29 = vmax.f32 %v9446_v58, 0.0 }
 0x67e   : > { %9894 = vst.msk [vmem:[%s16129_s27 + $0x1e0] sm:$0xff] %vm9833_vm6, %v9765_v32  ;;  %v9766_v46 = vmax.f32 %v9438_v14, 0.0 }
 0x67f   : > { %9897 = vst.msk [vmem:[%s16129_s27 + $0x1f8] sm:$0xff] %vm9833_vm6, %v9768_v29  ;;  %v10955_v10 = vpop.f32.mrb[60].mxu1 }
 0x680   : > { %9895 = vst.msk [vmem:[%s16129_s27 + $0x1e8] sm:$0xff] %vm9833_vm6, %v9766_v46  ;;  %v9699_v53 = vadd.f32 %v16627_v3, %v10955_v10  ;;  %v9690_v35 = vpop.f32.mrb[61].mxu1 }
 0x681   : > { %v9691_v45 = vadd.f32 %v16627_v3, %v9690_v35  ;;  %v10956_v37 = vpop.f32.mrb[62].mxu1 }
 0x682   : > { %v9831_v11 = vmax.f32 %v9699_v53, 0.0  ;;  %v9702_v38 = vadd.f32 %v16627_v3, %v10956_v37  ;;  %v9693_v57 = vpop.f32.mrb[63].mxu1 }
 0x683   : > { %v9829_v9 = vmax.f32 %v9691_v45, 0.0  ;;  %v9694_v47 = vadd.f32 %v16627_v3, %v9693_v57 }
 0x684   : > { %9960 = vst.msk [vmem:[%s16129_s27 + $0x3f0] sm:$0xff] %vm9833_vm6, %v9831_v11  ;;  %v9832_v50 = vmax.f32 %v9702_v38, 0.0 }
 0x685   : > { %9958 = vst.msk [vmem:[%s16129_s27 + $0x3e0] sm:$0xff] %vm9833_vm6, %v9829_v9  ;;  %v9830_v16 = vmax.f32 %v9694_v47, 0.0 }
 0x686   : > { %9961 = vst.msk [vmem:[%s16129_s27 + $0x3f8] sm:$0xff] %vm9833_vm6, %v9832_v50 }
 0x687   : > { %9959 = vst.msk [vmem:[%s16129_s27 + $0x3e8] sm:$0xff] %vm9833_vm6, %v9830_v16 }
 0x688   : > { %11543 = shalt.err (!%p11540_p3)
}
 0x689   : > { %s11544_s17 = scalar_lea.hbm %s17010_s7, 16384  ;;  %s11548_s24 = scalar_lea.hbm %s17066_s3, 32768 }
 0x68a   : > { %p11545_p4 = scmp.ne.s32.totalorder %s17010_s7, %s11544_s17  ;;  %p11549_p9 = scmp.lt.u32.totalorder %s17010_s7, %s17066_s3 }
 0x68b   : > { %p11550_p10 = scmp.lt.u32.totalorder %s11548_s24, %s11544_s17  ;;  %p11552_p12 = scmp.lt.u32.totalorder %s11544_s17, %s17010_s7 }
 0x68c   : > { %p11546_p7 = pnand %p11545_p4, %p11665_p5 }
 0x68d   : > { %p11551_p11 = por %p11550_p10, %p11549_p9 }
 0x68e   : > { %p11547_p8 = pneg %p11546_p7 }
 0x68f   : > { %p11553_p13 = por %p11552_p12, %p11551_p11 }
 0x691   : > { %p11554_p0 = pnand %p11553_p13, %p11547_p8 }
 0x693   : > { %11557 = shalt.err (!%p11554_p0)
}
 0x694   : > { %s11605_s27 = smov 128   ;;  %s11606_s28 = smov 8  }
 0x695   : > { %10961 = dma.vmem_to_hbm [thread:$0]  (%p11665_p5), %s17012_s4, 16384, %s17010_s7, %s17022_s16, %s11605_s27, %s11605_s27, %s11606_s28  }
 0x696 PF: > { %p10967_p1 = scmp.ge.s32.totalorder %s11592_s15, 2  ;;  %s9991_s29 = sand.u32 1, %s11580_s12  }
 0x697   : > { %s9992_s30 = scalar_lea.sflag [#allocation4], %s9991_s29 }
 0x698   : > { %p10964_p2 = pnand %p10967_p1, %p11669_p6 }
 0x69a   : > { %11575 = dma.done.wait (!%p10964_p2), %s9992_s30, 16384  }
 0x69b   : > { %11577 = vsyncadd (!%p10964_p2), %s9992_s30, 4294950912  ;;  %p13_p3 = scmp.ge.s32.totalorder %s11652_s18, 4   ;;  %s17827_s12 = smov %s11584_s13 }
 0x69c   : > { %s17828_s13 = smov %s11588_s14  ;;  %s17829_s14 = smov %s11663_s21 }
 0x69d   : > { %s17830_s15 = smov %s11652_s18  ;;  %15 = sbr.rel (!%p13_p3) target bundleno = 3 (0x3), region = 69 }
 0x6a4   :  { %9997 = vsyncpa [#allocation4], 1 }
 0x6a5   :  { %9999 = vsyncpa [#allocation4 + $0x1], 1 }

</bundles_post_ra>
